<compile_context>
chip_gen: v7x
topology: tpu7x:2x2x1
jax: 0.10.0
libtpu: 0.0.40
codegen_flags: <defaults>
</compile_context>

<pallas_src>
import numpy as np
import jax
import jax.numpy as jnp
from jax.experimental import pallas as pl
from jax.experimental.pallas import tpu as pltpu

SQRT2 = float(np.sqrt(2.0))
RSQRT2 = float(np.sqrt(0.5))
CONV_CLAMP = 256.0

# setup_filter([1,3,3,1]): outer product normalized to sum 1 (symmetric -> flip is a no-op).
_F4 = np.outer([1.0, 3.0, 3.0, 1.0], [1.0, 3.0, 3.0, 1.0])
_F4 = _F4 / _F4.sum()


# ------------------------- init (torch-like raw parameters) -------------------------

def init_discriminator_params(key, img_channels=3):
    ks = jax.random.split(key, 10)
    randn = lambda k, s: jax.random.normal(k, s, jnp.float32)   # torch.randn analogue
    zeros = lambda n: jnp.zeros((n,), jnp.float32)              # biases init to zero
    return {
        'b16': {  # in_channels=0, tmp=16, out=32, resolution=16
            'fromrgb_w': randn(ks[0], (16, img_channels, 1, 1)), 'fromrgb_b': zeros(16),
            'conv0_w': randn(ks[1], (16, 16, 3, 3)), 'conv0_b': zeros(16),
            'conv1_w': randn(ks[2], (32, 16, 3, 3)), 'conv1_b': zeros(32),
            'skip_w': randn(ks[3], (32, 16, 1, 1)),
        },
        'b8': {   # in_channels=32, tmp=32, out=64, resolution=8
            'conv0_w': randn(ks[4], (32, 32, 3, 3)), 'conv0_b': zeros(32),
            'conv1_w': randn(ks[5], (64, 32, 3, 3)), 'conv1_b': zeros(64),
            'skip_w': randn(ks[6], (64, 32, 1, 1)),
        },
        'b4': {   # epilogue: in=64, mbstd(+1), resolution=4, cmap_dim=0
            'conv_w': randn(ks[7], (64, 65, 3, 3)), 'conv_b': zeros(64),
            'fc_w': randn(ks[8], (64, 64 * 4 * 4)), 'fc_b': zeros(64),
            'out_w': randn(ks[9], (1, 64)), 'out_b': zeros(1),
        },
    }


# --------------------- host-side weight preparation (runs once) ---------------------

def _build_w_cols(wk, w_in, w_out, stride, pad):
    """wk: (Cout, Cin, KW) width taps for one fixed vertical tap.
    Returns M (w_in*Cin, w_out*Cout) implementing, over the merged (x, channel) lanes,
      out[n*Cout + o] = sum_j wk[o, c, j] * in[(stride*n - pad + j)*Cin + c]  (zero outside)."""
    cout, cin, kw = wk.shape
    m = np.zeros((w_in * cin, w_out * cout), np.float32)
    for n in range(w_out):
        for j in range(kw):
            wi = stride * n - pad + j
            if 0 <= wi < w_in:
                m[wi * cin:(wi + 1) * cin, n * cout:(n + 1) * cout] = wk[:, :, j].T
    return m


def _build_row_sel(batch, h_in, h_out, stride, dy):
    """S (batch*h_out, batch*h_in): S[(b,m), (b, stride*m + dy)] = 1 when in range (else 0 row)."""
    s = np.zeros((batch * h_out, batch * h_in), np.float32)
    for b in range(batch):
        for m in range(h_out):
            y = stride * m + dy
            if 0 <= y < h_in:
                s[b * h_out + m, b * h_in + y] = 1.0
    return s


def _conv_same_mats(w3, w_spatial, gain):
    """3x3 'same' conv (pad 1): one lane-matrix per vertical tap dy=-1,0,+1."""
    return np.stack([_build_w_cols(w3[:, :, p, :] * gain, w_spatial, w_spatial, 1, 1)
                     for p in range(3)])


def _conv_down_mats(w3, f4, w_in, gain):
    """conv2d_resample(down=2): blur [1,3,3,1] folded with the 3x3 kernel into an effective
    6x6 stride-2 kernel (pad 2); one lane-matrix per vertical tap dy=-2..+3."""
    cout, cin = w3.shape[:2]
    weff = np.zeros((cout, cin, 6, 6), np.float32)
    for p in range(3):
        for q in range(3):
            weff[:, :, p:p + 4, q:q + 4] += w3[:, :, p, q][:, :, None, None] * f4[None, None]
    return np.stack([_build_w_cols(weff[:, :, u, :] * gain, w_in, w_in // 2, 2, 2)
                     for u in range(6)])


def _skip_down_mats(w1, f4, w_in, gain):
    """1x1 skip with down=2: blur + 1x1 conv == effective 4x4 stride-2 kernel (pad 1)."""
    w11 = w1[:, :, 0, 0]
    mats = []
    for a in range(4):                       # dy = a - 1
        wk = w11[:, :, None] * f4[a][None, None, :]
        mats.append(_build_w_cols(wk * gain, w_in, w_in // 2, 2, 1))
    return np.stack(mats)


def prepare_discriminator_inputs(params, batch_size=4):
    """Fold weight gains, the resample filter, padding, strides, the NCHW flatten and the
    (x, channel) lane layout into matmul-ready constants; pack them into a per-pipeline-step
    bf16 weight slab and one f32 row-vector slab.  Done once at init."""
    assert batch_size == 4, "kernel specialized to batch == mbstd group_size == 4"
    B = batch_size
    f4 = _F4.astype(np.float32)
    g = lambda a: np.asarray(a, np.float32)
    p16, p8, p4 = params['b16'], params['b8'], params['b4']

    def block_mats(p, W):
        cin = g(p['conv0_w']).shape[1]
        gain3 = 1.0 / np.sqrt(cin * 9.0)
        gain1 = 1.0 / np.sqrt(cin * 1.0)
        m = np.concatenate([
            _conv_same_mats(g(p['conv0_w']), W, gain3),        # [0:3]  conv0  dy=-1,0,+1
            _conv_down_mats(g(p['conv1_w']), f4, W, gain3),    # [3:9]  conv1  dy=-2..+3
            _skip_down_mats(g(p['skip_w']), f4, W, gain1),     # [9:13] skip   dy=-1..+2
        ], axis=0)
        sd = np.stack([_build_row_sel(B, W, W // 2, 2, dy) for dy in range(-2, 4)])
        ss = np.stack([_build_row_sel(B, W, W, 1, dy) for dy in (-1, 1)])
        return m, sd, ss

    m16, sd16, ss16 = block_mats(p16, 16)
    m8, sd8, ss8 = block_mats(p8, 8)

    # fromrgb (1x1, img_channels -> 16) at res 16.
    wfr_raw = g(p16['fromrgb_w'])
    wfr = _build_w_cols(wfr_raw[:, :, 0, :] * (1.0 / np.sqrt(wfr_raw.shape[1])), 16, 16, 1, 0)

    # Epilogue: conv (65 -> 64, 3x3, pad 1), fc (1024 -> 64), out (64 -> 1).
    wce = g(p4['conv_w'])                                     # (64, 65, 3, 3)
    gain_e = 1.0 / np.sqrt(65 * 9.0)
    me = _conv_same_mats(wce[:, :64], 4, gain_e)
    ss4 = np.stack([_build_row_sel(B, 4, 4, 1, dy) for dy in (-1, 1)])
    gavg = np.tile(np.eye(4, dtype=np.float32), (B, B)) / float(B)   # mbstd group-mean over batch

    # Contribution of the (spatially constant) minibatch-std channel, border taps included.
    wstd_full = np.zeros((4, 4 * 64), np.float32)
    for hh in range(4):
        for ww in range(4):
            for pp in range(3):
                for qq in range(3):
                    if 0 <= hh + pp - 1 < 4 and 0 <= ww + qq - 1 < 4:
                        wstd_full[hh, ww * 64:(ww + 1) * 64] += wce[:, 64, pp, qq] * gain_e
    wstd = np.tile(wstd_full, (B, 1))                         # rows (b, y)

    # fc: NCHW flatten (c, h, w) folded into per-row (h) weight slices over (w, c) lanes.
    wfc = (g(p4['fc_w']).reshape(64, 64, 4, 4).transpose(2, 3, 1, 0).reshape(4, 256, 64)
           * (1.0 / np.sqrt(64 * 4 * 4)))
    selfc = np.zeros((4, B, B * 4), np.float32)               # row (b, h) -> row b
    for hh in range(4):
        for bb in range(B):
            selfc[hh, bb, bb * 4 + hh] = 1.0
    wout = g(p4['out_w']).T * (1.0 / np.sqrt(64.0))

    # ---- pack the big lane-weight matrices per pipeline step (rows 0:16 step0, 16:32 step1) ----
    mats = np.zeros((32, 256, 256), np.float32)
    mats[0:13] = m16            # step 0: b16 (conv0 @0, conv1 @3, skip @9)
    mats[16:29] = m8            # step 1: b8  (same layout at local base 0)
    mats[29:32] = me            # step 1: epilogue conv at local base 13

    # ---- pack all f32 (row, 256) vectors into one array ----
    fvec = np.zeros((24, 256), np.float32)
    fvec[0] = np.tile(g(p16['fromrgb_b']), 16)
    fvec[1] = np.tile(g(p16['conv0_b']), 16)
    fvec[2] = np.tile(g(p16['conv1_b']), 8)
    fvec[3] = np.tile(g(p8['conv0_b']), 8)
    fvec[4] = np.tile(g(p8['conv1_b']), 4)
    fvec[5] = np.tile(g(p4['conv_b']), 4)
    fvec[6:22] = wstd
    fvec[22, 0:64] = g(p4['fc_b'])
    fvec[23, 0] = g(p4['out_b'])[0]

    bf = lambda a: jnp.asarray(a, jnp.bfloat16)
    fp = lambda a: jnp.asarray(a, jnp.float32)
    return {
        'mats': bf(mats), 'wfr': bf(wfr), 'fvec': fp(fvec),
        'sd16': bf(sd16), 'ss16': bf(ss16), 'sd8': bf(sd8), 'ss8': bf(ss8),
        'ss4': bf(ss4), 'gavg': fp(gavg), 'selfc': bf(selfc),
        'wfc': bf(wfc), 'wout': fp(wout),
    }


# --------------------------------- fused Pallas kernel ---------------------------------

def _disc_kernel(img_ref, wfr_ref, mats_ref, fvec_ref,
                 sd16_ref, ss16_ref, sd8_ref, ss8_ref, ss4_ref,
                 gavg_ref, selfc_ref, wfc_ref, wout_ref,
                 out_ref, xcarry_ref):
    f32 = jnp.float32
    bf16 = jnp.bfloat16

    def mm(a, b):
        return jnp.dot(a, b, preferred_element_type=f32)

    def bact(y, b, lrelu, gain, clamp):       # bias_act semantics of the reference
        if b is not None:
            y = y + b
        if lrelu:
            y = jnp.where(y >= 0.0, y, 0.2 * y)
        if gain != 1.0:
            y = y * gain
        if clamp is not None:
            y = jnp.clip(y, -clamp, clamp)
        return y

    def conv_same(xb, m_base, ss_ref):
        # 3x3 'same' conv: width taps/padding live inside the lane-weight blocks;
        # vertical +/-1 taps via tiny row-selection matmuls (index 0: dy=-1, 1: dy=+1).
        y = mm(xb, mats_ref[m_base + 1])
        y = y + mm(mm(ss_ref[0], xb).astype(bf16), mats_ref[m_base + 0])
        y = y + mm(mm(ss_ref[1], xb).astype(bf16), mats_ref[m_base + 2])
        return y

    def conv_down(xb, m_base, sd_ref, sd_base, ntaps):
        # stride-2 conv with the [1,3,3,1] blur folded in: per vertical tap select the
        # (strided, zero-padded) rows, then one lane-dense matmul.
        acc = None
        for i in range(ntaps):
            rows = mm(sd_ref[sd_base + i], xb).astype(bf16)
            term = mm(rows, mats_ref[m_base + i])
            acc = term if acc is None else acc + term
        return acc

    def res_block(xb, sd_ref, ss_ref, b0, b1):
        y0 = conv_same(xb, 0, ss_ref)                                  # conv0
        y0 = bact(y0, b0, True, SQRT2, CONV_CLAMP)
        y1 = conv_down(y0.astype(bf16), 3, sd_ref, 0, 6)               # conv1 (down=2)
        y1 = bact(y1, b1, True, 1.0, CONV_CLAMP * RSQRT2)              # gain sqrt2*sqrt.5
        ysk = conv_down(xb, 9, sd_ref, 1, 4)                           # skip (down=2, no bias)
        return ysk * RSQRT2 + y1

    # ---------------- step 0: fromrgb + block b16 (16x16 -> 32ch @ 8x8) ----------------
    @pl.when(pl.program_id(0) == 0)
    def _stage0():
        img = img_ref[...].astype(bf16)                       # (B*16, 16*3)
        x = mm(img, wfr_ref[...])
        x = bact(x, fvec_ref[0:1, :], True, SQRT2, CONV_CLAMP)           # fromrgb (lrelu)
        x = res_block(x.astype(bf16), sd16_ref, ss16_ref,
                      fvec_ref[1:2, :], fvec_ref[2:3, :])
        xcarry_ref[...] = x                                   # (B*8, 8*32) carried to step 1

    # ---------------- step 1: block b8 (8x8 -> 64ch @ 4x4) + b4 epilogue ----------------
    @pl.when(pl.program_id(0) == 1)
    def _stage1():
        x = res_block(xcarry_ref[...].astype(bf16), sd8_ref, ss8_ref,
                      fvec_ref[3:4, :], fvec_ref[4:5, :])     # (B*4, 4*64), f32

        # MinibatchStdLayer (group_size=4 == B, num_channels=1): a single std statistic.
        gavg = gavg_ref[...]
        mu = mm(gavg, x)                                      # group mean per (y, x, c)
        d = x - mu
        var = mm(gavg, d * d)
        std = jnp.sqrt(var + 1e-8)
        s = jnp.sum(std, axis=1, keepdims=True)
        s = jnp.sum(s, axis=0, keepdims=True) * (1.0 / (std.shape[0] * std.shape[1]))  # (1,1)

        xb = x.astype(bf16)
        y = conv_same(xb, 13, ss4_ref)                        # epilogue conv, 64 regular channels
        y = y + s * fvec_ref[6:22, :]                         # + constant std-channel contribution
        y = bact(y, fvec_ref[5:6, :], True, SQRT2, CONV_CLAMP)
        yb = y.astype(bf16)

        # fc over the NCHW flatten (permutation folded into wfc at init), then 'out'.
        z = None
        for h in range(4):
            rows = mm(selfc_ref[h], yb).astype(bf16)          # (B, 4*64) = rows with this h
            term = mm(rows, wfc_ref[h])                       # (B, 64)
            z = term if z is None else z + term
        z = bact(z, fvec_ref[22:23, 0:64], True, SQRT2, None)  # fc (lrelu)

        out_ref[...] = mm(z, wout_ref[...]) + fvec_ref[23:24, 0:1]   # out (linear), (B, 1)


# --------------------------------- public forward ---------------------------------

def _pinned(shape):
    """Full-array block fetched once (constant block index across the 2-step grid)."""
    zeros = (0,) * len(shape)
    def imap(i):
        return zeros
    return pl.BlockSpec(shape, imap)


@jax.jit
def _forward_jit(prepared, img_nchw):
    B = img_nchw.shape[0]
    img = jnp.transpose(img_nchw.astype(jnp.float32), (0, 2, 3, 1))   # NCHW -> NHWC
    img2d = img.reshape(B * 16, 16 * 3)                               # rows (b, y), lanes (x, c)
    p = prepared
    in_specs = [
        _pinned((B * 16, 16 * 3)),                                   # img2d
        _pinned(p['wfr'].shape),                                     # fromrgb lane weights
        pl.BlockSpec((16, 256, 256), lambda i: (i, 0, 0)),           # per-step weight slab
        _pinned(p['fvec'].shape),                                    # biases / std-map / fc,out b
        _pinned(p['sd16'].shape), _pinned(p['ss16'].shape),
        _pinned(p['sd8'].shape), _pinned(p['ss8'].shape),
        _pinned(p['ss4'].shape),
        _pinned(p['gavg'].shape), _pinned(p['selfc'].shape),
        _pinned(p['wfc'].shape), _pinned(p['wout'].shape),
    ]
    return pl.pallas_call(
        _disc_kernel,
        out_shape=jax.ShapeDtypeStruct((B, 1), jnp.float32),
        grid=(2,),
        in_specs=in_specs,
        out_specs=pl.BlockSpec((B, 1), lambda i: (0, 0)),
        scratch_shapes=[pltpu.VMEM((B * 8, 8 * 32), jnp.float32)],    # x carried step0 -> step1
        compiler_params=pltpu.CompilerParams(
            dimension_semantics=("arbitrary",),
            vmem_limit_bytes=32 * 1024 * 1024),
    )(img2d, p['wfr'], p['mats'], p['fvec'],
      p['sd16'], p['ss16'], p['sd8'], p['ss8'], p['ss4'],
      p['gavg'], p['selfc'], p['wfc'], p['wout'])


def discriminator_forward(prepared, img_nchw, c=None):
    # c_dim == 0 -> MappingNetwork / cmap branch not built; dis_cam_weight == 0 -> no cam head.
    del c
    assert img_nchw.shape[0] == 4, "prepared inputs are specialized to batch == 4"
    return {'score': _forward_jit(prepared, img_nchw), 'cam': None}


if __name__ == "__main__":
    key = jax.random.PRNGKey(0)
    kp, kx = jax.random.split(key)
    params = init_discriminator_params(kp, img_channels=3)
    prepared = prepare_discriminator_inputs(params, batch_size=4)
    img = jax.random.normal(kx, (4, 3, 16, 16), jnp.float32)          # NCHW, like PyTorch
    out = discriminator_forward(prepared, img, c=None)
    score = jax.block_until_ready(out['score'])
    assert score.shape == (4, 1) and score.dtype == jnp.float32
    assert bool(jnp.all(jnp.isfinite(score)))
    print("KERNEL_OK")
</pallas_src>

<mosaic_0001>
module attributes {stable_mosaic.version = 11 : i64} {
  func.func @_disc_kernel(%arg0: i32, %arg1: memref<64x48xf32, #tpu.memory_space<vmem>>, %arg2: memref<48x256xbf16, #tpu.memory_space<vmem>>, %arg3: memref<16x256x256xbf16, #tpu.memory_space<vmem>>, %arg4: memref<24x256xf32, #tpu.memory_space<vmem>>, %arg5: memref<6x32x64xbf16, #tpu.memory_space<vmem>>, %arg6: memref<2x64x64xbf16, #tpu.memory_space<vmem>>, %arg7: memref<6x16x32xbf16, #tpu.memory_space<vmem>>, %arg8: memref<2x32x32xbf16, #tpu.memory_space<vmem>>, %arg9: memref<2x16x16xbf16, #tpu.memory_space<vmem>>, %arg10: memref<16x16xf32, #tpu.memory_space<vmem>>, %arg11: memref<4x4x16xbf16, #tpu.memory_space<vmem>>, %arg12: memref<4x256x64xbf16, #tpu.memory_space<vmem>>, %arg13: memref<64x1xf32, #tpu.memory_space<vmem>>, %arg14: memref<4x1xf32, #tpu.memory_space<vmem>>, %arg15: memref<32x256xf32, #tpu.memory_space<vmem>>) attributes {dimension_semantics = [#tpu.dimension_semantics<arbitrary>], iteration_bounds = array<i64: 2>, scalar_prefetch = 0 : i64, scratch_operands = 1 : i64, tpu.core_type = #tpu.core_type<tc>, window_params = [{pipeline_mode = #tpu.pipeline_mode<synchronous>, transform_indices = @transform_0, window_bounds = array<i64: 64, 48>}, {pipeline_mode = #tpu.pipeline_mode<synchronous>, transform_indices = @transform_1, window_bounds = array<i64: 48, 256>}, {transform_indices = @transform_2, window_bounds = array<i64: 16, 256, 256>}, {pipeline_mode = #tpu.pipeline_mode<synchronous>, transform_indices = @transform_3, window_bounds = array<i64: 24, 256>}, {pipeline_mode = #tpu.pipeline_mode<synchronous>, transform_indices = @transform_4, window_bounds = array<i64: 6, 32, 64>}, {pipeline_mode = #tpu.pipeline_mode<synchronous>, transform_indices = @transform_5, window_bounds = array<i64: 2, 64, 64>}, {pipeline_mode = #tpu.pipeline_mode<synchronous>, transform_indices = @transform_6, window_bounds = array<i64: 6, 16, 32>}, {pipeline_mode = #tpu.pipeline_mode<synchronous>, transform_indices = @transform_7, window_bounds = array<i64: 2, 32, 32>}, {pipeline_mode = #tpu.pipeline_mode<synchronous>, transform_indices = @transform_8, window_bounds = array<i64: 2, 16, 16>}, {pipeline_mode = #tpu.pipeline_mode<synchronous>, transform_indices = @transform_9, window_bounds = array<i64: 16, 16>}, {pipeline_mode = #tpu.pipeline_mode<synchronous>, transform_indices = @transform_10, window_bounds = array<i64: 4, 4, 16>}, {pipeline_mode = #tpu.pipeline_mode<synchronous>, transform_indices = @transform_11, window_bounds = array<i64: 4, 256, 64>}, {pipeline_mode = #tpu.pipeline_mode<synchronous>, transform_indices = @transform_12, window_bounds = array<i64: 64, 1>}, {pipeline_mode = #tpu.pipeline_mode<synchronous>, transform_indices = @transform_13, window_bounds = array<i64: 4, 1>}]} {
    %c0_i32 = arith.constant 0 : i32
    %0 = arith.cmpi eq, %arg0, %c0_i32 : i32
    %1 = arith.extui %0 : i1 to i32
    %c0_i32_0 = arith.constant 0 : i32
    %2 = arith.cmpi ne, %1, %c0_i32_0 : i32
    scf.if %2 {
      %c0 = arith.constant 0 : index
      %c0_2 = arith.constant 0 : index
      %6 = vector.load %arg1[%c0, %c0_2] : memref<64x48xf32, #tpu.memory_space<vmem>>, vector<64x48xf32>
      %7 = arith.truncf %6 : vector<64x48xf32> to vector<64x48xbf16>
      %c0_3 = arith.constant 0 : index
      %c0_4 = arith.constant 0 : index
      %8 = vector.load %arg2[%c0_3, %c0_4] : memref<48x256xbf16, #tpu.memory_space<vmem>>, vector<48x256xbf16>
      %cst = arith.constant dense<0.000000e+00> : vector<64x256xf32>
      %9 = tpu.matmul %7, %8, %cst {dimension_numbers = #tpu.dot_dimension_numbers<[1], [0], [0], [1], [0, 0, 1, 1], [], []>} : vector<64x48xbf16>, vector<48x256xbf16>, vector<64x256xf32> -> vector<64x256xf32>
      %c0_5 = arith.constant 0 : index
      %c0_6 = arith.constant 0 : index
      %10 = vector.load %arg4[%c0_5, %c0_6] : memref<24x256xf32, #tpu.memory_space<vmem>>, vector<1x256xf32>
      %11 = vector.broadcast %10 : vector<1x256xf32> to vector<64x256xf32>
      %12 = arith.addf %9, %11 : vector<64x256xf32>
      %cst_7 = arith.constant 0.000000e+00 : f32
      %13 = vector.broadcast %cst_7 : f32 to vector<64x256xf32>
      %14 = arith.cmpf oge, %12, %13 : vector<64x256xf32>
      %cst_8 = arith.constant 2.000000e-01 : f32
      %15 = vector.broadcast %cst_8 : f32 to vector<64x256xf32>
      %16 = arith.mulf %15, %12 : vector<64x256xf32>
      %17 = arith.select %14, %12, %16 : vector<64x256xi1>, vector<64x256xf32>
      %cst_9 = arith.constant 1.41421354 : f32
      %18 = vector.broadcast %cst_9 : f32 to vector<64x256xf32>
      %19 = arith.mulf %17, %18 : vector<64x256xf32>
      %cst_10 = arith.constant -2.560000e+02 : f32
      %cst_11 = arith.constant 2.560000e+02 : f32
      %20 = vector.broadcast %cst_10 : f32 to vector<64x256xf32>
      %21 = arith.maximumf %20, %19 : vector<64x256xf32>
      %22 = vector.broadcast %cst_11 : f32 to vector<64x256xf32>
      %23 = arith.minimumf %22, %21 : vector<64x256xf32>
      %24 = arith.truncf %23 : vector<64x256xf32> to vector<64x256xbf16>
      %c1 = arith.constant 1 : index
      %c0_12 = arith.constant 0 : index
      %25 = vector.load %arg4[%c1, %c0_12] : memref<24x256xf32, #tpu.memory_space<vmem>>, vector<1x256xf32>
      %c2 = arith.constant 2 : index
      %c0_13 = arith.constant 0 : index
      %26 = vector.load %arg4[%c2, %c0_13] : memref<24x256xf32, #tpu.memory_space<vmem>>, vector<1x256xf32>
      %c1_14 = arith.constant 1 : index
      %c0_15 = arith.constant 0 : index
      %c0_16 = arith.constant 0 : index
      %27 = vector.load %arg3[%c1_14, %c0_15, %c0_16] : memref<16x256x256xbf16, #tpu.memory_space<vmem>>, vector<1x256x256xbf16>
      %28 = vector.shape_cast %27 : vector<1x256x256xbf16> to vector<256x256xbf16>
      %cst_17 = arith.constant dense<0.000000e+00> : vector<64x256xf32>
      %29 = tpu.matmul %24, %28, %cst_17 {dimension_numbers = #tpu.dot_dimension_numbers<[1], [0], [0], [1], [0, 0, 1, 1], [], []>} : vector<64x256xbf16>, vector<256x256xbf16>, vector<64x256xf32> -> vector<64x256xf32>
      %c0_18 = arith.constant 0 : index
      %c0_19 = arith.constant 0 : index
      %c0_20 = arith.constant 0 : index
      %30 = vector.load %arg6[%c0_18, %c0_19, %c0_20] : memref<2x64x64xbf16, #tpu.memory_space<vmem>>, vector<1x64x64xbf16>
      %31 = vector.shape_cast %30 : vector<1x64x64xbf16> to vector<64x64xbf16>
      %cst_21 = arith.constant dense<0.000000e+00> : vector<64x256xf32>
      %32 = tpu.matmul %31, %24, %cst_21 {dimension_numbers = #tpu.dot_dimension_numbers<[1], [0], [0], [1], [0, 0, 1, 1], [], []>} : vector<64x64xbf16>, vector<64x256xbf16>, vector<64x256xf32> -> vector<64x256xf32>
      %33 = arith.truncf %32 : vector<64x256xf32> to vector<64x256xbf16>
      %c0_22 = arith.constant 0 : index
      %c0_23 = arith.constant 0 : index
      %c0_24 = arith.constant 0 : index
      %34 = vector.load %arg3[%c0_22, %c0_23, %c0_24] : memref<16x256x256xbf16, #tpu.memory_space<vmem>>, vector<1x256x256xbf16>
      %35 = vector.shape_cast %34 : vector<1x256x256xbf16> to vector<256x256xbf16>
      %cst_25 = arith.constant dense<0.000000e+00> : vector<64x256xf32>
      %36 = tpu.matmul %33, %35, %cst_25 {dimension_numbers = #tpu.dot_dimension_numbers<[1], [0], [0], [1], [0, 0, 1, 1], [], []>} : vector<64x256xbf16>, vector<256x256xbf16>, vector<64x256xf32> -> vector<64x256xf32>
      %37 = arith.addf %29, %36 : vector<64x256xf32>
      %c1_26 = arith.constant 1 : index
      %c0_27 = arith.constant 0 : index
      %c0_28 = arith.constant 0 : index
      %38 = vector.load %arg6[%c1_26, %c0_27, %c0_28] : memref<2x64x64xbf16, #tpu.memory_space<vmem>>, vector<1x64x64xbf16>
      %39 = vector.shape_cast %38 : vector<1x64x64xbf16> to vector<64x64xbf16>
      %cst_29 = arith.constant dense<0.000000e+00> : vector<64x256xf32>
      %40 = tpu.matmul %39, %24, %cst_29 {dimension_numbers = #tpu.dot_dimension_numbers<[1], [0], [0], [1], [0, 0, 1, 1], [], []>} : vector<64x64xbf16>, vector<64x256xbf16>, vector<64x256xf32> -> vector<64x256xf32>
      %41 = arith.truncf %40 : vector<64x256xf32> to vector<64x256xbf16>
      %c2_30 = arith.constant 2 : index
      %c0_31 = arith.constant 0 : index
      %c0_32 = arith.constant 0 : index
      %42 = vector.load %arg3[%c2_30, %c0_31, %c0_32] : memref<16x256x256xbf16, #tpu.memory_space<vmem>>, vector<1x256x256xbf16>
      %43 = vector.shape_cast %42 : vector<1x256x256xbf16> to vector<256x256xbf16>
      %cst_33 = arith.constant dense<0.000000e+00> : vector<64x256xf32>
      %44 = tpu.matmul %41, %43, %cst_33 {dimension_numbers = #tpu.dot_dimension_numbers<[1], [0], [0], [1], [0, 0, 1, 1], [], []>} : vector<64x256xbf16>, vector<256x256xbf16>, vector<64x256xf32> -> vector<64x256xf32>
      %45 = arith.addf %37, %44 : vector<64x256xf32>
      %46 = vector.broadcast %25 : vector<1x256xf32> to vector<64x256xf32>
      %47 = arith.addf %45, %46 : vector<64x256xf32>
      %cst_34 = arith.constant 0.000000e+00 : f32
      %48 = vector.broadcast %cst_34 : f32 to vector<64x256xf32>
      %49 = arith.cmpf oge, %47, %48 : vector<64x256xf32>
      %cst_35 = arith.constant 2.000000e-01 : f32
      %50 = vector.broadcast %cst_35 : f32 to vector<64x256xf32>
      %51 = arith.mulf %50, %47 : vector<64x256xf32>
      %52 = arith.select %49, %47, %51 : vector<64x256xi1>, vector<64x256xf32>
      %cst_36 = arith.constant 1.41421354 : f32
      %53 = vector.broadcast %cst_36 : f32 to vector<64x256xf32>
      %54 = arith.mulf %52, %53 : vector<64x256xf32>
      %cst_37 = arith.constant -2.560000e+02 : f32
      %cst_38 = arith.constant 2.560000e+02 : f32
      %55 = vector.broadcast %cst_37 : f32 to vector<64x256xf32>
      %56 = arith.maximumf %55, %54 : vector<64x256xf32>
      %57 = vector.broadcast %cst_38 : f32 to vector<64x256xf32>
      %58 = arith.minimumf %57, %56 : vector<64x256xf32>
      %59 = arith.truncf %58 : vector<64x256xf32> to vector<64x256xbf16>
      %c0_39 = arith.constant 0 : index
      %c0_40 = arith.constant 0 : index
      %c0_41 = arith.constant 0 : index
      %60 = vector.load %arg5[%c0_39, %c0_40, %c0_41] : memref<6x32x64xbf16, #tpu.memory_space<vmem>>, vector<1x32x64xbf16>
      %61 = vector.shape_cast %60 : vector<1x32x64xbf16> to vector<32x64xbf16>
      %cst_42 = arith.constant dense<0.000000e+00> : vector<32x256xf32>
      %62 = tpu.matmul %61, %59, %cst_42 {dimension_numbers = #tpu.dot_dimension_numbers<[1], [0], [0], [1], [0, 0, 1, 1], [], []>} : vector<32x64xbf16>, vector<64x256xbf16>, vector<32x256xf32> -> vector<32x256xf32>
      %63 = arith.truncf %62 : vector<32x256xf32> to vector<32x256xbf16>
      %c3 = arith.constant 3 : index
      %c0_43 = arith.constant 0 : index
      %c0_44 = arith.constant 0 : index
      %64 = vector.load %arg3[%c3, %c0_43, %c0_44] : memref<16x256x256xbf16, #tpu.memory_space<vmem>>, vector<1x256x256xbf16>
      %65 = vector.shape_cast %64 : vector<1x256x256xbf16> to vector<256x256xbf16>
      %cst_45 = arith.constant dense<0.000000e+00> : vector<32x256xf32>
      %66 = tpu.matmul %63, %65, %cst_45 {dimension_numbers = #tpu.dot_dimension_numbers<[1], [0], [0], [1], [0, 0, 1, 1], [], []>} : vector<32x256xbf16>, vector<256x256xbf16>, vector<32x256xf32> -> vector<32x256xf32>
      %c1_46 = arith.constant 1 : index
      %c0_47 = arith.constant 0 : index
      %c0_48 = arith.constant 0 : index
      %67 = vector.load %arg5[%c1_46, %c0_47, %c0_48] : memref<6x32x64xbf16, #tpu.memory_space<vmem>>, vector<1x32x64xbf16>
      %68 = vector.shape_cast %67 : vector<1x32x64xbf16> to vector<32x64xbf16>
      %cst_49 = arith.constant dense<0.000000e+00> : vector<32x256xf32>
      %69 = tpu.matmul %68, %59, %cst_49 {dimension_numbers = #tpu.dot_dimension_numbers<[1], [0], [0], [1], [0, 0, 1, 1], [], []>} : vector<32x64xbf16>, vector<64x256xbf16>, vector<32x256xf32> -> vector<32x256xf32>
      %70 = arith.truncf %69 : vector<32x256xf32> to vector<32x256xbf16>
      %c4 = arith.constant 4 : index
      %c0_50 = arith.constant 0 : index
      %c0_51 = arith.constant 0 : index
      %71 = vector.load %arg3[%c4, %c0_50, %c0_51] : memref<16x256x256xbf16, #tpu.memory_space<vmem>>, vector<1x256x256xbf16>
      %72 = vector.shape_cast %71 : vector<1x256x256xbf16> to vector<256x256xbf16>
      %cst_52 = arith.constant dense<0.000000e+00> : vector<32x256xf32>
      %73 = tpu.matmul %70, %72, %cst_52 {dimension_numbers = #tpu.dot_dimension_numbers<[1], [0], [0], [1], [0, 0, 1, 1], [], []>} : vector<32x256xbf16>, vector<256x256xbf16>, vector<32x256xf32> -> vector<32x256xf32>
      %74 = arith.addf %66, %73 : vector<32x256xf32>
      %c2_53 = arith.constant 2 : index
      %c0_54 = arith.constant 0 : index
      %c0_55 = arith.constant 0 : index
      %75 = vector.load %arg5[%c2_53, %c0_54, %c0_55] : memref<6x32x64xbf16, #tpu.memory_space<vmem>>, vector<1x32x64xbf16>
      %76 = vector.shape_cast %75 : vector<1x32x64xbf16> to vector<32x64xbf16>
      %cst_56 = arith.constant dense<0.000000e+00> : vector<32x256xf32>
      %77 = tpu.matmul %76, %59, %cst_56 {dimension_numbers = #tpu.dot_dimension_numbers<[1], [0], [0], [1], [0, 0, 1, 1], [], []>} : vector<32x64xbf16>, vector<64x256xbf16>, vector<32x256xf32> -> vector<32x256xf32>
      %78 = arith.truncf %77 : vector<32x256xf32> to vector<32x256xbf16>
      %c5 = arith.constant 5 : index
      %c0_57 = arith.constant 0 : index
      %c0_58 = arith.constant 0 : index
      %79 = vector.load %arg3[%c5, %c0_57, %c0_58] : memref<16x256x256xbf16, #tpu.memory_space<vmem>>, vector<1x256x256xbf16>
      %80 = vector.shape_cast %79 : vector<1x256x256xbf16> to vector<256x256xbf16>
      %cst_59 = arith.constant dense<0.000000e+00> : vector<32x256xf32>
      %81 = tpu.matmul %78, %80, %cst_59 {dimension_numbers = #tpu.dot_dimension_numbers<[1], [0], [0], [1], [0, 0, 1, 1], [], []>} : vector<32x256xbf16>, vector<256x256xbf16>, vector<32x256xf32> -> vector<32x256xf32>
      %82 = arith.addf %74, %81 : vector<32x256xf32>
      %c3_60 = arith.constant 3 : index
      %c0_61 = arith.constant 0 : index
      %c0_62 = arith.constant 0 : index
      %83 = vector.load %arg5[%c3_60, %c0_61, %c0_62] : memref<6x32x64xbf16, #tpu.memory_space<vmem>>, vector<1x32x64xbf16>
      %84 = vector.shape_cast %83 : vector<1x32x64xbf16> to vector<32x64xbf16>
      %cst_63 = arith.constant dense<0.000000e+00> : vector<32x256xf32>
      %85 = tpu.matmul %84, %59, %cst_63 {dimension_numbers = #tpu.dot_dimension_numbers<[1], [0], [0], [1], [0, 0, 1, 1], [], []>} : vector<32x64xbf16>, vector<64x256xbf16>, vector<32x256xf32> -> vector<32x256xf32>
      %86 = arith.truncf %85 : vector<32x256xf32> to vector<32x256xbf16>
      %c6 = arith.constant 6 : index
      %c0_64 = arith.constant 0 : index
      %c0_65 = arith.constant 0 : index
      %87 = vector.load %arg3[%c6, %c0_64, %c0_65] : memref<16x256x256xbf16, #tpu.memory_space<vmem>>, vector<1x256x256xbf16>
      %88 = vector.shape_cast %87 : vector<1x256x256xbf16> to vector<256x256xbf16>
      %cst_66 = arith.constant dense<0.000000e+00> : vector<32x256xf32>
      %89 = tpu.matmul %86, %88, %cst_66 {dimension_numbers = #tpu.dot_dimension_numbers<[1], [0], [0], [1], [0, 0, 1, 1], [], []>} : vector<32x256xbf16>, vector<256x256xbf16>, vector<32x256xf32> -> vector<32x256xf32>
      %90 = arith.addf %82, %89 : vector<32x256xf32>
      %c4_67 = arith.constant 4 : index
      %c0_68 = arith.constant 0 : index
      %c0_69 = arith.constant 0 : index
      %91 = vector.load %arg5[%c4_67, %c0_68, %c0_69] : memref<6x32x64xbf16, #tpu.memory_space<vmem>>, vector<1x32x64xbf16>
      %92 = vector.shape_cast %91 : vector<1x32x64xbf16> to vector<32x64xbf16>
      %cst_70 = arith.constant dense<0.000000e+00> : vector<32x256xf32>
      %93 = tpu.matmul %92, %59, %cst_70 {dimension_numbers = #tpu.dot_dimension_numbers<[1], [0], [0], [1], [0, 0, 1, 1], [], []>} : vector<32x64xbf16>, vector<64x256xbf16>, vector<32x256xf32> -> vector<32x256xf32>
      %94 = arith.truncf %93 : vector<32x256xf32> to vector<32x256xbf16>
      %c7 = arith.constant 7 : index
      %c0_71 = arith.constant 0 : index
      %c0_72 = arith.constant 0 : index
      %95 = vector.load %arg3[%c7, %c0_71, %c0_72] : memref<16x256x256xbf16, #tpu.memory_space<vmem>>, vector<1x256x256xbf16>
      %96 = vector.shape_cast %95 : vector<1x256x256xbf16> to vector<256x256xbf16>
      %cst_73 = arith.constant dense<0.000000e+00> : vector<32x256xf32>
      %97 = tpu.matmul %94, %96, %cst_73 {dimension_numbers = #tpu.dot_dimension_numbers<[1], [0], [0], [1], [0, 0, 1, 1], [], []>} : vector<32x256xbf16>, vector<256x256xbf16>, vector<32x256xf32> -> vector<32x256xf32>
      %98 = arith.addf %90, %97 : vector<32x256xf32>
      %c5_74 = arith.constant 5 : index
      %c0_75 = arith.constant 0 : index
      %c0_76 = arith.constant 0 : index
      %99 = vector.load %arg5[%c5_74, %c0_75, %c0_76] : memref<6x32x64xbf16, #tpu.memory_space<vmem>>, vector<1x32x64xbf16>
      %100 = vector.shape_cast %99 : vector<1x32x64xbf16> to vector<32x64xbf16>
      %cst_77 = arith.constant dense<0.000000e+00> : vector<32x256xf32>
      %101 = tpu.matmul %100, %59, %cst_77 {dimension_numbers = #tpu.dot_dimension_numbers<[1], [0], [0], [1], [0, 0, 1, 1], [], []>} : vector<32x64xbf16>, vector<64x256xbf16>, vector<32x256xf32> -> vector<32x256xf32>
      %102 = arith.truncf %101 : vector<32x256xf32> to vector<32x256xbf16>
      %c8 = arith.constant 8 : index
      %c0_78 = arith.constant 0 : index
      %c0_79 = arith.constant 0 : index
      %103 = vector.load %arg3[%c8, %c0_78, %c0_79] : memref<16x256x256xbf16, #tpu.memory_space<vmem>>, vector<1x256x256xbf16>
      %104 = vector.shape_cast %103 : vector<1x256x256xbf16> to vector<256x256xbf16>
      %cst_80 = arith.constant dense<0.000000e+00> : vector<32x256xf32>
      %105 = tpu.matmul %102, %104, %cst_80 {dimension_numbers = #tpu.dot_dimension_numbers<[1], [0], [0], [1], [0, 0, 1, 1], [], []>} : vector<32x256xbf16>, vector<256x256xbf16>, vector<32x256xf32> -> vector<32x256xf32>
      %106 = arith.addf %98, %105 : vector<32x256xf32>
      %107 = vector.broadcast %26 : vector<1x256xf32> to vector<32x256xf32>
      %108 = arith.addf %106, %107 : vector<32x256xf32>
      %cst_81 = arith.constant 0.000000e+00 : f32
      %109 = vector.broadcast %cst_81 : f32 to vector<32x256xf32>
      %110 = arith.cmpf oge, %108, %109 : vector<32x256xf32>
      %cst_82 = arith.constant 2.000000e-01 : f32
      %111 = vector.broadcast %cst_82 : f32 to vector<32x256xf32>
      %112 = arith.mulf %111, %108 : vector<32x256xf32>
      %113 = arith.select %110, %108, %112 : vector<32x256xi1>, vector<32x256xf32>
      %cst_83 = arith.constant -181.019333 : f32
      %cst_84 = arith.constant 181.019333 : f32
      %114 = vector.broadcast %cst_83 : f32 to vector<32x256xf32>
      %115 = arith.maximumf %114, %113 : vector<32x256xf32>
      %116 = vector.broadcast %cst_84 : f32 to vector<32x256xf32>
      %117 = arith.minimumf %116, %115 : vector<32x256xf32>
      %c1_85 = arith.constant 1 : index
      %c0_86 = arith.constant 0 : index
      %c0_87 = arith.constant 0 : index
      %118 = vector.load %arg5[%c1_85, %c0_86, %c0_87] : memref<6x32x64xbf16, #tpu.memory_space<vmem>>, vector<1x32x64xbf16>
      %119 = vector.shape_cast %118 : vector<1x32x64xbf16> to vector<32x64xbf16>
      %cst_88 = arith.constant dense<0.000000e+00> : vector<32x256xf32>
      %120 = tpu.matmul %119, %24, %cst_88 {dimension_numbers = #tpu.dot_dimension_numbers<[1], [0], [0], [1], [0, 0, 1, 1], [], []>} : vector<32x64xbf16>, vector<64x256xbf16>, vector<32x256xf32> -> vector<32x256xf32>
      %121 = arith.truncf %120 : vector<32x256xf32> to vector<32x256xbf16>
      %c9 = arith.constant 9 : index
      %c0_89 = arith.constant 0 : index
      %c0_90 = arith.constant 0 : index
      %122 = vector.load %arg3[%c9, %c0_89, %c0_90] : memref<16x256x256xbf16, #tpu.memory_space<vmem>>, vector<1x256x256xbf16>
      %123 = vector.shape_cast %122 : vector<1x256x256xbf16> to vector<256x256xbf16>
      %cst_91 = arith.constant dense<0.000000e+00> : vector<32x256xf32>
      %124 = tpu.matmul %121, %123, %cst_91 {dimension_numbers = #tpu.dot_dimension_numbers<[1], [0], [0], [1], [0, 0, 1, 1], [], []>} : vector<32x256xbf16>, vector<256x256xbf16>, vector<32x256xf32> -> vector<32x256xf32>
      %c2_92 = arith.constant 2 : index
      %c0_93 = arith.constant 0 : index
      %c0_94 = arith.constant 0 : index
      %125 = vector.load %arg5[%c2_92, %c0_93, %c0_94] : memref<6x32x64xbf16, #tpu.memory_space<vmem>>, vector<1x32x64xbf16>
      %126 = vector.shape_cast %125 : vector<1x32x64xbf16> to vector<32x64xbf16>
      %cst_95 = arith.constant dense<0.000000e+00> : vector<32x256xf32>
      %127 = tpu.matmul %126, %24, %cst_95 {dimension_numbers = #tpu.dot_dimension_numbers<[1], [0], [0], [1], [0, 0, 1, 1], [], []>} : vector<32x64xbf16>, vector<64x256xbf16>, vector<32x256xf32> -> vector<32x256xf32>
      %128 = arith.truncf %127 : vector<32x256xf32> to vector<32x256xbf16>
      %c10 = arith.constant 10 : index
      %c0_96 = arith.constant 0 : index
      %c0_97 = arith.constant 0 : index
      %129 = vector.load %arg3[%c10, %c0_96, %c0_97] : memref<16x256x256xbf16, #tpu.memory_space<vmem>>, vector<1x256x256xbf16>
      %130 = vector.shape_cast %129 : vector<1x256x256xbf16> to vector<256x256xbf16>
      %cst_98 = arith.constant dense<0.000000e+00> : vector<32x256xf32>
      %131 = tpu.matmul %128, %130, %cst_98 {dimension_numbers = #tpu.dot_dimension_numbers<[1], [0], [0], [1], [0, 0, 1, 1], [], []>} : vector<32x256xbf16>, vector<256x256xbf16>, vector<32x256xf32> -> vector<32x256xf32>
      %132 = arith.addf %124, %131 : vector<32x256xf32>
      %c3_99 = arith.constant 3 : index
      %c0_100 = arith.constant 0 : index
      %c0_101 = arith.constant 0 : index
      %133 = vector.load %arg5[%c3_99, %c0_100, %c0_101] : memref<6x32x64xbf16, #tpu.memory_space<vmem>>, vector<1x32x64xbf16>
      %134 = vector.shape_cast %133 : vector<1x32x64xbf16> to vector<32x64xbf16>
      %cst_102 = arith.constant dense<0.000000e+00> : vector<32x256xf32>
      %135 = tpu.matmul %134, %24, %cst_102 {dimension_numbers = #tpu.dot_dimension_numbers<[1], [0], [0], [1], [0, 0, 1, 1], [], []>} : vector<32x64xbf16>, vector<64x256xbf16>, vector<32x256xf32> -> vector<32x256xf32>
      %136 = arith.truncf %135 : vector<32x256xf32> to vector<32x256xbf16>
      %c11 = arith.constant 11 : index
      %c0_103 = arith.constant 0 : index
      %c0_104 = arith.constant 0 : index
      %137 = vector.load %arg3[%c11, %c0_103, %c0_104] : memref<16x256x256xbf16, #tpu.memory_space<vmem>>, vector<1x256x256xbf16>
      %138 = vector.shape_cast %137 : vector<1x256x256xbf16> to vector<256x256xbf16>
      %cst_105 = arith.constant dense<0.000000e+00> : vector<32x256xf32>
      %139 = tpu.matmul %136, %138, %cst_105 {dimension_numbers = #tpu.dot_dimension_numbers<[1], [0], [0], [1], [0, 0, 1, 1], [], []>} : vector<32x256xbf16>, vector<256x256xbf16>, vector<32x256xf32> -> vector<32x256xf32>
      %140 = arith.addf %132, %139 : vector<32x256xf32>
      %c4_106 = arith.constant 4 : index
      %c0_107 = arith.constant 0 : index
      %c0_108 = arith.constant 0 : index
      %141 = vector.load %arg5[%c4_106, %c0_107, %c0_108] : memref<6x32x64xbf16, #tpu.memory_space<vmem>>, vector<1x32x64xbf16>
      %142 = vector.shape_cast %141 : vector<1x32x64xbf16> to vector<32x64xbf16>
      %cst_109 = arith.constant dense<0.000000e+00> : vector<32x256xf32>
      %143 = tpu.matmul %142, %24, %cst_109 {dimension_numbers = #tpu.dot_dimension_numbers<[1], [0], [0], [1], [0, 0, 1, 1], [], []>} : vector<32x64xbf16>, vector<64x256xbf16>, vector<32x256xf32> -> vector<32x256xf32>
      %144 = arith.truncf %143 : vector<32x256xf32> to vector<32x256xbf16>
      %c12 = arith.constant 12 : index
      %c0_110 = arith.constant 0 : index
      %c0_111 = arith.constant 0 : index
      %145 = vector.load %arg3[%c12, %c0_110, %c0_111] : memref<16x256x256xbf16, #tpu.memory_space<vmem>>, vector<1x256x256xbf16>
      %146 = vector.shape_cast %145 : vector<1x256x256xbf16> to vector<256x256xbf16>
      %cst_112 = arith.constant dense<0.000000e+00> : vector<32x256xf32>
      %147 = tpu.matmul %144, %146, %cst_112 {dimension_numbers = #tpu.dot_dimension_numbers<[1], [0], [0], [1], [0, 0, 1, 1], [], []>} : vector<32x256xbf16>, vector<256x256xbf16>, vector<32x256xf32> -> vector<32x256xf32>
      %148 = arith.addf %140, %147 : vector<32x256xf32>
      %cst_113 = arith.constant 0.707106769 : f32
      %149 = vector.broadcast %cst_113 : f32 to vector<32x256xf32>
      %150 = arith.mulf %148, %149 : vector<32x256xf32>
      %151 = arith.addf %150, %117 : vector<32x256xf32>
      %c0_114 = arith.constant 0 : index
      %c0_115 = arith.constant 0 : index
      %152 = vector.load %arg15[%c0_114, %c0_115] : memref<32x256xf32, #tpu.memory_space<vmem>>, vector<32x256xf32>
      tpu.vector_store %arg15[%c0_114, %c0_115], %151 {strides = array<i32>} : memref<32x256xf32, #tpu.memory_space<vmem>>, vector<32x256xf32>,
    } else {
    }
    %c1_i32 = arith.constant 1 : i32
    %3 = arith.cmpi eq, %arg0, %c1_i32 : i32
    %4 = arith.extui %3 : i1 to i32
    %c0_i32_1 = arith.constant 0 : i32
    %5 = arith.cmpi ne, %4, %c0_i32_1 : i32
    scf.if %5 {
      %c0 = arith.constant 0 : index
      %c0_2 = arith.constant 0 : index
      %6 = vector.load %arg15[%c0, %c0_2] : memref<32x256xf32, #tpu.memory_space<vmem>>, vector<32x256xf32>
      %7 = arith.truncf %6 : vector<32x256xf32> to vector<32x256xbf16>
      %c3 = arith.constant 3 : index
      %c0_3 = arith.constant 0 : index
      %8 = vector.load %arg4[%c3, %c0_3] : memref<24x256xf32, #tpu.memory_space<vmem>>, vector<1x256xf32>
      %c4 = arith.constant 4 : index
      %c0_4 = arith.constant 0 : index
      %9 = vector.load %arg4[%c4, %c0_4] : memref<24x256xf32, #tpu.memory_space<vmem>>, vector<1x256xf32>
      %c1 = arith.constant 1 : index
      %c0_5 = arith.constant 0 : index
      %c0_6 = arith.constant 0 : index
      %10 = vector.load %arg3[%c1, %c0_5, %c0_6] : memref<16x256x256xbf16, #tpu.memory_space<vmem>>, vector<1x256x256xbf16>
      %11 = vector.shape_cast %10 : vector<1x256x256xbf16> to vector<256x256xbf16>
      %cst = arith.constant dense<0.000000e+00> : vector<32x256xf32>
      %12 = tpu.matmul %7, %11, %cst {dimension_numbers = #tpu.dot_dimension_numbers<[1], [0], [0], [1], [0, 0, 1, 1], [], []>} : vector<32x256xbf16>, vector<256x256xbf16>, vector<32x256xf32> -> vector<32x256xf32>
      %c0_7 = arith.constant 0 : index
      %c0_8 = arith.constant 0 : index
      %c0_9 = arith.constant 0 : index
      %13 = vector.load %arg8[%c0_7, %c0_8, %c0_9] : memref<2x32x32xbf16, #tpu.memory_space<vmem>>, vector<1x32x32xbf16>
      %14 = vector.shape_cast %13 : vector<1x32x32xbf16> to vector<32x32xbf16>
      %cst_10 = arith.constant dense<0.000000e+00> : vector<32x256xf32>
      %15 = tpu.matmul %14, %7, %cst_10 {dimension_numbers = #tpu.dot_dimension_numbers<[1], [0], [0], [1], [0, 0, 1, 1], [], []>} : vector<32x32xbf16>, vector<32x256xbf16>, vector<32x256xf32> -> vector<32x256xf32>
      %16 = arith.truncf %15 : vector<32x256xf32> to vector<32x256xbf16>
      %c0_11 = arith.constant 0 : index
      %c0_12 = arith.constant 0 : index
      %c0_13 = arith.constant 0 : index
      %17 = vector.load %arg3[%c0_11, %c0_12, %c0_13] : memref<16x256x256xbf16, #tpu.memory_space<vmem>>, vector<1x256x256xbf16>
      %18 = vector.shape_cast %17 : vector<1x256x256xbf16> to vector<256x256xbf16>
      %cst_14 = arith.constant dense<0.000000e+00> : vector<32x256xf32>
      %19 = tpu.matmul %16, %18, %cst_14 {dimension_numbers = #tpu.dot_dimension_numbers<[1], [0], [0], [1], [0, 0, 1, 1], [], []>} : vector<32x256xbf16>, vector<256x256xbf16>, vector<32x256xf32> -> vector<32x256xf32>
      %20 = arith.addf %12, %19 : vector<32x256xf32>
      %c1_15 = arith.constant 1 : index
      %c0_16 = arith.constant 0 : index
      %c0_17 = arith.constant 0 : index
      %21 = vector.load %arg8[%c1_15, %c0_16, %c0_17] : memref<2x32x32xbf16, #tpu.memory_space<vmem>>, vector<1x32x32xbf16>
      %22 = vector.shape_cast %21 : vector<1x32x32xbf16> to vector<32x32xbf16>
      %cst_18 = arith.constant dense<0.000000e+00> : vector<32x256xf32>
      %23 = tpu.matmul %22, %7, %cst_18 {dimension_numbers = #tpu.dot_dimension_numbers<[1], [0], [0], [1], [0, 0, 1, 1], [], []>} : vector<32x32xbf16>, vector<32x256xbf16>, vector<32x256xf32> -> vector<32x256xf32>
      %24 = arith.truncf %23 : vector<32x256xf32> to vector<32x256xbf16>
      %c2 = arith.constant 2 : index
      %c0_19 = arith.constant 0 : index
      %c0_20 = arith.constant 0 : index
      %25 = vector.load %arg3[%c2, %c0_19, %c0_20] : memref<16x256x256xbf16, #tpu.memory_space<vmem>>, vector<1x256x256xbf16>
      %26 = vector.shape_cast %25 : vector<1x256x256xbf16> to vector<256x256xbf16>
      %cst_21 = arith.constant dense<0.000000e+00> : vector<32x256xf32>
      %27 = tpu.matmul %24, %26, %cst_21 {dimension_numbers = #tpu.dot_dimension_numbers<[1], [0], [0], [1], [0, 0, 1, 1], [], []>} : vector<32x256xbf16>, vector<256x256xbf16>, vector<32x256xf32> -> vector<32x256xf32>
      %28 = arith.addf %20, %27 : vector<32x256xf32>
      %29 = vector.broadcast %8 : vector<1x256xf32> to vector<32x256xf32>
      %30 = arith.addf %28, %29 : vector<32x256xf32>
      %cst_22 = arith.constant 0.000000e+00 : f32
      %31 = vector.broadcast %cst_22 : f32 to vector<32x256xf32>
      %32 = arith.cmpf oge, %30, %31 : vector<32x256xf32>
      %cst_23 = arith.constant 2.000000e-01 : f32
      %33 = vector.broadcast %cst_23 : f32 to vector<32x256xf32>
      %34 = arith.mulf %33, %30 : vector<32x256xf32>
      %35 = arith.select %32, %30, %34 : vector<32x256xi1>, vector<32x256xf32>
      %cst_24 = arith.constant 1.41421354 : f32
      %36 = vector.broadcast %cst_24 : f32 to vector<32x256xf32>
      %37 = arith.mulf %35, %36 : vector<32x256xf32>
      %cst_25 = arith.constant -2.560000e+02 : f32
      %cst_26 = arith.constant 2.560000e+02 : f32
      %38 = vector.broadcast %cst_25 : f32 to vector<32x256xf32>
      %39 = arith.maximumf %38, %37 : vector<32x256xf32>
      %40 = vector.broadcast %cst_26 : f32 to vector<32x256xf32>
      %41 = arith.minimumf %40, %39 : vector<32x256xf32>
      %42 = arith.truncf %41 : vector<32x256xf32> to vector<32x256xbf16>
      %c0_27 = arith.constant 0 : index
      %c0_28 = arith.constant 0 : index
      %c0_29 = arith.constant 0 : index
      %43 = vector.load %arg7[%c0_27, %c0_28, %c0_29] : memref<6x16x32xbf16, #tpu.memory_space<vmem>>, vector<1x16x32xbf16>
      %44 = vector.shape_cast %43 : vector<1x16x32xbf16> to vector<16x32xbf16>
      %cst_30 = arith.constant dense<0.000000e+00> : vector<16x256xf32>
      %45 = tpu.matmul %44, %42, %cst_30 {dimension_numbers = #tpu.dot_dimension_numbers<[1], [0], [0], [1], [0, 0, 1, 1], [], []>} : vector<16x32xbf16>, vector<32x256xbf16>, vector<16x256xf32> -> vector<16x256xf32>
      %46 = arith.truncf %45 : vector<16x256xf32> to vector<16x256xbf16>
      %c3_31 = arith.constant 3 : index
      %c0_32 = arith.constant 0 : index
      %c0_33 = arith.constant 0 : index
      %47 = vector.load %arg3[%c3_31, %c0_32, %c0_33] : memref<16x256x256xbf16, #tpu.memory_space<vmem>>, vector<1x256x256xbf16>
      %48 = vector.shape_cast %47 : vector<1x256x256xbf16> to vector<256x256xbf16>
      %cst_34 = arith.constant dense<0.000000e+00> : vector<16x256xf32>
      %49 = tpu.matmul %46, %48, %cst_34 {dimension_numbers = #tpu.dot_dimension_numbers<[1], [0], [0], [1], [0, 0, 1, 1], [], []>} : vector<16x256xbf16>, vector<256x256xbf16>, vector<16x256xf32> -> vector<16x256xf32>
      %c1_35 = arith.constant 1 : index
      %c0_36 = arith.constant 0 : index
      %c0_37 = arith.constant 0 : index
      %50 = vector.load %arg7[%c1_35, %c0_36, %c0_37] : memref<6x16x32xbf16, #tpu.memory_space<vmem>>, vector<1x16x32xbf16>
      %51 = vector.shape_cast %50 : vector<1x16x32xbf16> to vector<16x32xbf16>
      %cst_38 = arith.constant dense<0.000000e+00> : vector<16x256xf32>
      %52 = tpu.matmul %51, %42, %cst_38 {dimension_numbers = #tpu.dot_dimension_numbers<[1], [0], [0], [1], [0, 0, 1, 1], [], []>} : vector<16x32xbf16>, vector<32x256xbf16>, vector<16x256xf32> -> vector<16x256xf32>
      %53 = arith.truncf %52 : vector<16x256xf32> to vector<16x256xbf16>
      %c4_39 = arith.constant 4 : index
      %c0_40 = arith.constant 0 : index
      %c0_41 = arith.constant 0 : index
      %54 = vector.load %arg3[%c4_39, %c0_40, %c0_41] : memref<16x256x256xbf16, #tpu.memory_space<vmem>>, vector<1x256x256xbf16>
      %55 = vector.shape_cast %54 : vector<1x256x256xbf16> to vector<256x256xbf16>
      %cst_42 = arith.constant dense<0.000000e+00> : vector<16x256xf32>
      %56 = tpu.matmul %53, %55, %cst_42 {dimension_numbers = #tpu.dot_dimension_numbers<[1], [0], [0], [1], [0, 0, 1, 1], [], []>} : vector<16x256xbf16>, vector<256x256xbf16>, vector<16x256xf32> -> vector<16x256xf32>
      %57 = arith.addf %49, %56 : vector<16x256xf32>
      %c2_43 = arith.constant 2 : index
      %c0_44 = arith.constant 0 : index
      %c0_45 = arith.constant 0 : index
      %58 = vector.load %arg7[%c2_43, %c0_44, %c0_45] : memref<6x16x32xbf16, #tpu.memory_space<vmem>>, vector<1x16x32xbf16>
      %59 = vector.shape_cast %58 : vector<1x16x32xbf16> to vector<16x32xbf16>
      %cst_46 = arith.constant dense<0.000000e+00> : vector<16x256xf32>
      %60 = tpu.matmul %59, %42, %cst_46 {dimension_numbers = #tpu.dot_dimension_numbers<[1], [0], [0], [1], [0, 0, 1, 1], [], []>} : vector<16x32xbf16>, vector<32x256xbf16>, vector<16x256xf32> -> vector<16x256xf32>
      %61 = arith.truncf %60 : vector<16x256xf32> to vector<16x256xbf16>
      %c5 = arith.constant 5 : index
      %c0_47 = arith.constant 0 : index
      %c0_48 = arith.constant 0 : index
      %62 = vector.load %arg3[%c5, %c0_47, %c0_48] : memref<16x256x256xbf16, #tpu.memory_space<vmem>>, vector<1x256x256xbf16>
      %63 = vector.shape_cast %62 : vector<1x256x256xbf16> to vector<256x256xbf16>
      %cst_49 = arith.constant dense<0.000000e+00> : vector<16x256xf32>
      %64 = tpu.matmul %61, %63, %cst_49 {dimension_numbers = #tpu.dot_dimension_numbers<[1], [0], [0], [1], [0, 0, 1, 1], [], []>} : vector<16x256xbf16>, vector<256x256xbf16>, vector<16x256xf32> -> vector<16x256xf32>
      %65 = arith.addf %57, %64 : vector<16x256xf32>
      %c3_50 = arith.constant 3 : index
      %c0_51 = arith.constant 0 : index
      %c0_52 = arith.constant 0 : index
      %66 = vector.load %arg7[%c3_50, %c0_51, %c0_52] : memref<6x16x32xbf16, #tpu.memory_space<vmem>>, vector<1x16x32xbf16>
      %67 = vector.shape_cast %66 : vector<1x16x32xbf16> to vector<16x32xbf16>
      %cst_53 = arith.constant dense<0.000000e+00> : vector<16x256xf32>
      %68 = tpu.matmul %67, %42, %cst_53 {dimension_numbers = #tpu.dot_dimension_numbers<[1], [0], [0], [1], [0, 0, 1, 1], [], []>} : vector<16x32xbf16>, vector<32x256xbf16>, vector<16x256xf32> -> vector<16x256xf32>
      %69 = arith.truncf %68 : vector<16x256xf32> to vector<16x256xbf16>
      %c6 = arith.constant 6 : index
      %c0_54 = arith.constant 0 : index
      %c0_55 = arith.constant 0 : index
      %70 = vector.load %arg3[%c6, %c0_54, %c0_55] : memref<16x256x256xbf16, #tpu.memory_space<vmem>>, vector<1x256x256xbf16>
      %71 = vector.shape_cast %70 : vector<1x256x256xbf16> to vector<256x256xbf16>
      %cst_56 = arith.constant dense<0.000000e+00> : vector<16x256xf32>
      %72 = tpu.matmul %69, %71, %cst_56 {dimension_numbers = #tpu.dot_dimension_numbers<[1], [0], [0], [1], [0, 0, 1, 1], [], []>} : vector<16x256xbf16>, vector<256x256xbf16>, vector<16x256xf32> -> vector<16x256xf32>
      %73 = arith.addf %65, %72 : vector<16x256xf32>
      %c4_57 = arith.constant 4 : index
      %c0_58 = arith.constant 0 : index
      %c0_59 = arith.constant 0 : index
      %74 = vector.load %arg7[%c4_57, %c0_58, %c0_59] : memref<6x16x32xbf16, #tpu.memory_space<vmem>>, vector<1x16x32xbf16>
      %75 = vector.shape_cast %74 : vector<1x16x32xbf16> to vector<16x32xbf16>
      %cst_60 = arith.constant dense<0.000000e+00> : vector<16x256xf32>
      %76 = tpu.matmul %75, %42, %cst_60 {dimension_numbers = #tpu.dot_dimension_numbers<[1], [0], [0], [1], [0, 0, 1, 1], [], []>} : vector<16x32xbf16>, vector<32x256xbf16>, vector<16x256xf32> -> vector<16x256xf32>
      %77 = arith.truncf %76 : vector<16x256xf32> to vector<16x256xbf16>
      %c7 = arith.constant 7 : index
      %c0_61 = arith.constant 0 : index
      %c0_62 = arith.constant 0 : index
      %78 = vector.load %arg3[%c7, %c0_61, %c0_62] : memref<16x256x256xbf16, #tpu.memory_space<vmem>>, vector<1x256x256xbf16>
      %79 = vector.shape_cast %78 : vector<1x256x256xbf16> to vector<256x256xbf16>
      %cst_63 = arith.constant dense<0.000000e+00> : vector<16x256xf32>
      %80 = tpu.matmul %77, %79, %cst_63 {dimension_numbers = #tpu.dot_dimension_numbers<[1], [0], [0], [1], [0, 0, 1, 1], [], []>} : vector<16x256xbf16>, vector<256x256xbf16>, vector<16x256xf32> -> vector<16x256xf32>
      %81 = arith.addf %73, %80 : vector<16x256xf32>
      %c5_64 = arith.constant 5 : index
      %c0_65 = arith.constant 0 : index
      %c0_66 = arith.constant 0 : index
      %82 = vector.load %arg7[%c5_64, %c0_65, %c0_66] : memref<6x16x32xbf16, #tpu.memory_space<vmem>>, vector<1x16x32xbf16>
      %83 = vector.shape_cast %82 : vector<1x16x32xbf16> to vector<16x32xbf16>
      %cst_67 = arith.constant dense<0.000000e+00> : vector<16x256xf32>
      %84 = tpu.matmul %83, %42, %cst_67 {dimension_numbers = #tpu.dot_dimension_numbers<[1], [0], [0], [1], [0, 0, 1, 1], [], []>} : vector<16x32xbf16>, vector<32x256xbf16>, vector<16x256xf32> -> vector<16x256xf32>
      %85 = arith.truncf %84 : vector<16x256xf32> to vector<16x256xbf16>
      %c8 = arith.constant 8 : index
      %c0_68 = arith.constant 0 : index
      %c0_69 = arith.constant 0 : index
      %86 = vector.load %arg3[%c8, %c0_68, %c0_69] : memref<16x256x256xbf16, #tpu.memory_space<vmem>>, vector<1x256x256xbf16>
      %87 = vector.shape_cast %86 : vector<1x256x256xbf16> to vector<256x256xbf16>
      %cst_70 = arith.constant dense<0.000000e+00> : vector<16x256xf32>
      %88 = tpu.matmul %85, %87, %cst_70 {dimension_numbers = #tpu.dot_dimension_numbers<[1], [0], [0], [1], [0, 0, 1, 1], [], []>} : vector<16x256xbf16>, vector<256x256xbf16>, vector<16x256xf32> -> vector<16x256xf32>
      %89 = arith.addf %81, %88 : vector<16x256xf32>
      %90 = vector.broadcast %9 : vector<1x256xf32> to vector<16x256xf32>
      %91 = arith.addf %89, %90 : vector<16x256xf32>
      %cst_71 = arith.constant 0.000000e+00 : f32
      %92 = vector.broadcast %cst_71 : f32 to vector<16x256xf32>
      %93 = arith.cmpf oge, %91, %92 : vector<16x256xf32>
      %cst_72 = arith.constant 2.000000e-01 : f32
      %94 = vector.broadcast %cst_72 : f32 to vector<16x256xf32>
      %95 = arith.mulf %94, %91 : vector<16x256xf32>
      %96 = arith.select %93, %91, %95 : vector<16x256xi1>, vector<16x256xf32>
      %cst_73 = arith.constant -181.019333 : f32
      %cst_74 = arith.constant 181.019333 : f32
      %97 = vector.broadcast %cst_73 : f32 to vector<16x256xf32>
      %98 = arith.maximumf %97, %96 : vector<16x256xf32>
      %99 = vector.broadcast %cst_74 : f32 to vector<16x256xf32>
      %100 = arith.minimumf %99, %98 : vector<16x256xf32>
      %c1_75 = arith.constant 1 : index
      %c0_76 = arith.constant 0 : index
      %c0_77 = arith.constant 0 : index
      %101 = vector.load %arg7[%c1_75, %c0_76, %c0_77] : memref<6x16x32xbf16, #tpu.memory_space<vmem>>, vector<1x16x32xbf16>
      %102 = vector.shape_cast %101 : vector<1x16x32xbf16> to vector<16x32xbf16>
      %cst_78 = arith.constant dense<0.000000e+00> : vector<16x256xf32>
      %103 = tpu.matmul %102, %7, %cst_78 {dimension_numbers = #tpu.dot_dimension_numbers<[1], [0], [0], [1], [0, 0, 1, 1], [], []>} : vector<16x32xbf16>, vector<32x256xbf16>, vector<16x256xf32> -> vector<16x256xf32>
      %104 = arith.truncf %103 : vector<16x256xf32> to vector<16x256xbf16>
      %c9 = arith.constant 9 : index
      %c0_79 = arith.constant 0 : index
      %c0_80 = arith.constant 0 : index
      %105 = vector.load %arg3[%c9, %c0_79, %c0_80] : memref<16x256x256xbf16, #tpu.memory_space<vmem>>, vector<1x256x256xbf16>
      %106 = vector.shape_cast %105 : vector<1x256x256xbf16> to vector<256x256xbf16>
      %cst_81 = arith.constant dense<0.000000e+00> : vector<16x256xf32>
      %107 = tpu.matmul %104, %106, %cst_81 {dimension_numbers = #tpu.dot_dimension_numbers<[1], [0], [0], [1], [0, 0, 1, 1], [], []>} : vector<16x256xbf16>, vector<256x256xbf16>, vector<16x256xf32> -> vector<16x256xf32>
      %c2_82 = arith.constant 2 : index
      %c0_83 = arith.constant 0 : index
      %c0_84 = arith.constant 0 : index
      %108 = vector.load %arg7[%c2_82, %c0_83, %c0_84] : memref<6x16x32xbf16, #tpu.memory_space<vmem>>, vector<1x16x32xbf16>
      %109 = vector.shape_cast %108 : vector<1x16x32xbf16> to vector<16x32xbf16>
      %cst_85 = arith.constant dense<0.000000e+00> : vector<16x256xf32>
      %110 = tpu.matmul %109, %7, %cst_85 {dimension_numbers = #tpu.dot_dimension_numbers<[1], [0], [0], [1], [0, 0, 1, 1], [], []>} : vector<16x32xbf16>, vector<32x256xbf16>, vector<16x256xf32> -> vector<16x256xf32>
      %111 = arith.truncf %110 : vector<16x256xf32> to vector<16x256xbf16>
      %c10 = arith.constant 10 : index
      %c0_86 = arith.constant 0 : index
      %c0_87 = arith.constant 0 : index
      %112 = vector.load %arg3[%c10, %c0_86, %c0_87] : memref<16x256x256xbf16, #tpu.memory_space<vmem>>, vector<1x256x256xbf16>
      %113 = vector.shape_cast %112 : vector<1x256x256xbf16> to vector<256x256xbf16>
      %cst_88 = arith.constant dense<0.000000e+00> : vector<16x256xf32>
      %114 = tpu.matmul %111, %113, %cst_88 {dimension_numbers = #tpu.dot_dimension_numbers<[1], [0], [0], [1], [0, 0, 1, 1], [], []>} : vector<16x256xbf16>, vector<256x256xbf16>, vector<16x256xf32> -> vector<16x256xf32>
      %115 = arith.addf %107, %114 : vector<16x256xf32>
      %c3_89 = arith.constant 3 : index
      %c0_90 = arith.constant 0 : index
      %c0_91 = arith.constant 0 : index
      %116 = vector.load %arg7[%c3_89, %c0_90, %c0_91] : memref<6x16x32xbf16, #tpu.memory_space<vmem>>, vector<1x16x32xbf16>
      %117 = vector.shape_cast %116 : vector<1x16x32xbf16> to vector<16x32xbf16>
      %cst_92 = arith.constant dense<0.000000e+00> : vector<16x256xf32>
      %118 = tpu.matmul %117, %7, %cst_92 {dimension_numbers = #tpu.dot_dimension_numbers<[1], [0], [0], [1], [0, 0, 1, 1], [], []>} : vector<16x32xbf16>, vector<32x256xbf16>, vector<16x256xf32> -> vector<16x256xf32>
      %119 = arith.truncf %118 : vector<16x256xf32> to vector<16x256xbf16>
      %c11 = arith.constant 11 : index
      %c0_93 = arith.constant 0 : index
      %c0_94 = arith.constant 0 : index
      %120 = vector.load %arg3[%c11, %c0_93, %c0_94] : memref<16x256x256xbf16, #tpu.memory_space<vmem>>, vector<1x256x256xbf16>
      %121 = vector.shape_cast %120 : vector<1x256x256xbf16> to vector<256x256xbf16>
      %cst_95 = arith.constant dense<0.000000e+00> : vector<16x256xf32>
      %122 = tpu.matmul %119, %121, %cst_95 {dimension_numbers = #tpu.dot_dimension_numbers<[1], [0], [0], [1], [0, 0, 1, 1], [], []>} : vector<16x256xbf16>, vector<256x256xbf16>, vector<16x256xf32> -> vector<16x256xf32>
      %123 = arith.addf %115, %122 : vector<16x256xf32>
      %c4_96 = arith.constant 4 : index
      %c0_97 = arith.constant 0 : index
      %c0_98 = arith.constant 0 : index
      %124 = vector.load %arg7[%c4_96, %c0_97, %c0_98] : memref<6x16x32xbf16, #tpu.memory_space<vmem>>, vector<1x16x32xbf16>
      %125 = vector.shape_cast %124 : vector<1x16x32xbf16> to vector<16x32xbf16>
      %cst_99 = arith.constant dense<0.000000e+00> : vector<16x256xf32>
      %126 = tpu.matmul %125, %7, %cst_99 {dimension_numbers = #tpu.dot_dimension_numbers<[1], [0], [0], [1], [0, 0, 1, 1], [], []>} : vector<16x32xbf16>, vector<32x256xbf16>, vector<16x256xf32> -> vector<16x256xf32>
      %127 = arith.truncf %126 : vector<16x256xf32> to vector<16x256xbf16>
      %c12 = arith.constant 12 : index
      %c0_100 = arith.constant 0 : index
      %c0_101 = arith.constant 0 : index
      %128 = vector.load %arg3[%c12, %c0_100, %c0_101] : memref<16x256x256xbf16, #tpu.memory_space<vmem>>, vector<1x256x256xbf16>
      %129 = vector.shape_cast %128 : vector<1x256x256xbf16> to vector<256x256xbf16>
      %cst_102 = arith.constant dense<0.000000e+00> : vector<16x256xf32>
      %130 = tpu.matmul %127, %129, %cst_102 {dimension_numbers = #tpu.dot_dimension_numbers<[1], [0], [0], [1], [0, 0, 1, 1], [], []>} : vector<16x256xbf16>, vector<256x256xbf16>, vector<16x256xf32> -> vector<16x256xf32>
      %131 = arith.addf %123, %130 : vector<16x256xf32>
      %cst_103 = arith.constant 0.707106769 : f32
      %132 = vector.broadcast %cst_103 : f32 to vector<16x256xf32>
      %133 = arith.mulf %131, %132 : vector<16x256xf32>
      %134 = arith.addf %133, %100 : vector<16x256xf32>
      %c0_104 = arith.constant 0 : index
      %c0_105 = arith.constant 0 : index
      %135 = vector.load %arg10[%c0_104, %c0_105] : memref<16x16xf32, #tpu.memory_space<vmem>>, vector<16x16xf32>
      %cst_106 = arith.constant dense<0.000000e+00> : vector<16x256xf32>
      %136 = tpu.matmul %135, %134, %cst_106 {dimension_numbers = #tpu.dot_dimension_numbers<[1], [0], [0], [1], [0, 0, 1, 1], [], []>} : vector<16x16xf32>, vector<16x256xf32>, vector<16x256xf32> -> vector<16x256xf32>
      %137 = arith.subf %134, %136 : vector<16x256xf32>
      %138 = arith.mulf %137, %137 : vector<16x256xf32>
      %cst_107 = arith.constant dense<0.000000e+00> : vector<16x256xf32>
      %139 = tpu.matmul %135, %138, %cst_107 {dimension_numbers = #tpu.dot_dimension_numbers<[1], [0], [0], [1], [0, 0, 1, 1], [], []>} : vector<16x16xf32>, vector<16x256xf32>, vector<16x256xf32> -> vector<16x256xf32>
      %cst_108 = arith.constant 9.99999993E-9 : f32
      %140 = vector.broadcast %cst_108 : f32 to vector<16x256xf32>
      %141 = arith.addf %139, %140 : vector<16x256xf32>
      %142 = math.sqrt %141 : vector<16x256xf32>
      %cst_109 = arith.constant dense<0.000000e+00> : vector<16xf32>
      %143 = vector.multi_reduction <add>, %142, %cst_109 [1] : vector<16x256xf32> to vector<16xf32>
      %144 = vector.shape_cast %143 : vector<16xf32> to vector<16x1xf32>
      %cst_110 = arith.constant dense<0.000000e+00> : vector<1xf32>
      %145 = vector.multi_reduction <add>, %144, %cst_110 [0] : vector<16x1xf32> to vector<1xf32>
      %146 = vector.shape_cast %145 : vector<1xf32> to vector<1x1xf32>
      %cst_111 = arith.constant 2.44140625E-4 : f32
      %147 = vector.broadcast %cst_111 : f32 to vector<1x1xf32>
      %148 = arith.mulf %146, %147 : vector<1x1xf32>
      %149 = arith.truncf %134 : vector<16x256xf32> to vector<16x256xbf16>
      %c14 = arith.constant 14 : index
      %c0_112 = arith.constant 0 : index
      %c0_113 = arith.constant 0 : index
      %150 = vector.load %arg3[%c14, %c0_112, %c0_113] : memref<16x256x256xbf16, #tpu.memory_space<vmem>>, vector<1x256x256xbf16>
      %151 = vector.shape_cast %150 : vector<1x256x256xbf16> to vector<256x256xbf16>
      %cst_114 = arith.constant dense<0.000000e+00> : vector<16x256xf32>
      %152 = tpu.matmul %149, %151, %cst_114 {dimension_numbers = #tpu.dot_dimension_numbers<[1], [0], [0], [1], [0, 0, 1, 1], [], []>} : vector<16x256xbf16>, vector<256x256xbf16>, vector<16x256xf32> -> vector<16x256xf32>
      %c0_115 = arith.constant 0 : index
      %c0_116 = arith.constant 0 : index
      %c0_117 = arith.constant 0 : index
      %153 = vector.load %arg9[%c0_115, %c0_116, %c0_117] : memref<2x16x16xbf16, #tpu.memory_space<vmem>>, vector<1x16x16xbf16>
      %154 = vector.shape_cast %153 : vector<1x16x16xbf16> to vector<16x16xbf16>
      %cst_118 = arith.constant dense<0.000000e+00> : vector<16x256xf32>
      %155 = tpu.matmul %154, %149, %cst_118 {dimension_numbers = #tpu.dot_dimension_numbers<[1], [0], [0], [1], [0, 0, 1, 1], [], []>} : vector<16x16xbf16>, vector<16x256xbf16>, vector<16x256xf32> -> vector<16x256xf32>
      %156 = arith.truncf %155 : vector<16x256xf32> to vector<16x256xbf16>
      %c13 = arith.constant 13 : index
      %c0_119 = arith.constant 0 : index
      %c0_120 = arith.constant 0 : index
      %157 = vector.load %arg3[%c13, %c0_119, %c0_120] : memref<16x256x256xbf16, #tpu.memory_space<vmem>>, vector<1x256x256xbf16>
      %158 = vector.shape_cast %157 : vector<1x256x256xbf16> to vector<256x256xbf16>
      %cst_121 = arith.constant dense<0.000000e+00> : vector<16x256xf32>
      %159 = tpu.matmul %156, %158, %cst_121 {dimension_numbers = #tpu.dot_dimension_numbers<[1], [0], [0], [1], [0, 0, 1, 1], [], []>} : vector<16x256xbf16>, vector<256x256xbf16>, vector<16x256xf32> -> vector<16x256xf32>
      %160 = arith.addf %152, %159 : vector<16x256xf32>
      %c1_122 = arith.constant 1 : index
      %c0_123 = arith.constant 0 : index
      %c0_124 = arith.constant 0 : index
      %161 = vector.load %arg9[%c1_122, %c0_123, %c0_124] : memref<2x16x16xbf16, #tpu.memory_space<vmem>>, vector<1x16x16xbf16>
      %162 = vector.shape_cast %161 : vector<1x16x16xbf16> to vector<16x16xbf16>
      %cst_125 = arith.constant dense<0.000000e+00> : vector<16x256xf32>
      %163 = tpu.matmul %162, %149, %cst_125 {dimension_numbers = #tpu.dot_dimension_numbers<[1], [0], [0], [1], [0, 0, 1, 1], [], []>} : vector<16x16xbf16>, vector<16x256xbf16>, vector<16x256xf32> -> vector<16x256xf32>
      %164 = arith.truncf %163 : vector<16x256xf32> to vector<16x256xbf16>
      %c15 = arith.constant 15 : index
      %c0_126 = arith.constant 0 : index
      %c0_127 = arith.constant 0 : index
      %165 = vector.load %arg3[%c15, %c0_126, %c0_127] : memref<16x256x256xbf16, #tpu.memory_space<vmem>>, vector<1x256x256xbf16>
      %166 = vector.shape_cast %165 : vector<1x256x256xbf16> to vector<256x256xbf16>
      %cst_128 = arith.constant dense<0.000000e+00> : vector<16x256xf32>
      %167 = tpu.matmul %164, %166, %cst_128 {dimension_numbers = #tpu.dot_dimension_numbers<[1], [0], [0], [1], [0, 0, 1, 1], [], []>} : vector<16x256xbf16>, vector<256x256xbf16>, vector<16x256xf32> -> vector<16x256xf32>
      %168 = arith.addf %160, %167 : vector<16x256xf32>
      %c6_129 = arith.constant 6 : index
      %c0_130 = arith.constant 0 : index
      %169 = vector.load %arg4[%c6_129, %c0_130] : memref<24x256xf32, #tpu.memory_space<vmem>>, vector<16x256xf32>
      %170 = vector.broadcast %148 : vector<1x1xf32> to vector<16x256xf32>
      %171 = arith.mulf %170, %169 : vector<16x256xf32>
      %172 = arith.addf %168, %171 : vector<16x256xf32>
      %c5_131 = arith.constant 5 : index
      %c0_132 = arith.constant 0 : index
      %173 = vector.load %arg4[%c5_131, %c0_132] : memref<24x256xf32, #tpu.memory_space<vmem>>, vector<1x256xf32>
      %174 = vector.broadcast %173 : vector<1x256xf32> to vector<16x256xf32>
      %175 = arith.addf %172, %174 : vector<16x256xf32>
      %cst_133 = arith.constant 0.000000e+00 : f32
      %176 = vector.broadcast %cst_133 : f32 to vector<16x256xf32>
      %177 = arith.cmpf oge, %175, %176 : vector<16x256xf32>
      %cst_134 = arith.constant 2.000000e-01 : f32
      %178 = vector.broadcast %cst_134 : f32 to vector<16x256xf32>
      %179 = arith.mulf %178, %175 : vector<16x256xf32>
      %180 = arith.select %177, %175, %179 : vector<16x256xi1>, vector<16x256xf32>
      %cst_135 = arith.constant 1.41421354 : f32
      %181 = vector.broadcast %cst_135 : f32 to vector<16x256xf32>
      %182 = arith.mulf %180, %181 : vector<16x256xf32>
      %cst_136 = arith.constant -2.560000e+02 : f32
      %cst_137 = arith.constant 2.560000e+02 : f32
      %183 = vector.broadcast %cst_136 : f32 to vector<16x256xf32>
      %184 = arith.maximumf %183, %182 : vector<16x256xf32>
      %185 = vector.broadcast %cst_137 : f32 to vector<16x256xf32>
      %186 = arith.minimumf %185, %184 : vector<16x256xf32>
      %187 = arith.truncf %186 : vector<16x256xf32> to vector<16x256xbf16>
      %c0_138 = arith.constant 0 : index
      %c0_139 = arith.constant 0 : index
      %c0_140 = arith.constant 0 : index
      %188 = vector.load %arg11[%c0_138, %c0_139, %c0_140] : memref<4x4x16xbf16, #tpu.memory_space<vmem>>, vector<1x4x16xbf16>
      %189 = vector.shape_cast %188 : vector<1x4x16xbf16> to vector<4x16xbf16>
      %cst_141 = arith.constant dense<0.000000e+00> : vector<4x256xf32>
      %190 = tpu.matmul %189, %187, %cst_141 {dimension_numbers = #tpu.dot_dimension_numbers<[1], [0], [0], [1], [0, 0, 1, 1], [], []>} : vector<4x16xbf16>, vector<16x256xbf16>, vector<4x256xf32> -> vector<4x256xf32>
      %191 = arith.truncf %190 : vector<4x256xf32> to vector<4x256xbf16>
      %c0_142 = arith.constant 0 : index
      %c0_143 = arith.constant 0 : index
      %c0_144 = arith.constant 0 : index
      %192 = vector.load %arg12[%c0_142, %c0_143, %c0_144] : memref<4x256x64xbf16, #tpu.memory_space<vmem>>, vector<1x256x64xbf16>
      %193 = vector.shape_cast %192 : vector<1x256x64xbf16> to vector<256x64xbf16>
      %cst_145 = arith.constant dense<0.000000e+00> : vector<4x64xf32>
      %194 = tpu.matmul %191, %193, %cst_145 {dimension_numbers = #tpu.dot_dimension_numbers<[1], [0], [0], [1], [0, 0, 1, 1], [], []>} : vector<4x256xbf16>, vector<256x64xbf16>, vector<4x64xf32> -> vector<4x64xf32>
      %c1_146 = arith.constant 1 : index
      %c0_147 = arith.constant 0 : index
      %c0_148 = arith.constant 0 : index
      %195 = vector.load %arg11[%c1_146, %c0_147, %c0_148] : memref<4x4x16xbf16, #tpu.memory_space<vmem>>, vector<1x4x16xbf16>
      %196 = vector.shape_cast %195 : vector<1x4x16xbf16> to vector<4x16xbf16>
      %cst_149 = arith.constant dense<0.000000e+00> : vector<4x256xf32>
      %197 = tpu.matmul %196, %187, %cst_149 {dimension_numbers = #tpu.dot_dimension_numbers<[1], [0], [0], [1], [0, 0, 1, 1], [], []>} : vector<4x16xbf16>, vector<16x256xbf16>, vector<4x256xf32> -> vector<4x256xf32>
      %198 = arith.truncf %197 : vector<4x256xf32> to vector<4x256xbf16>
      %c1_150 = arith.constant 1 : index
      %c0_151 = arith.constant 0 : index
      %c0_152 = arith.constant 0 : index
      %199 = vector.load %arg12[%c1_150, %c0_151, %c0_152] : memref<4x256x64xbf16, #tpu.memory_space<vmem>>, vector<1x256x64xbf16>
      %200 = vector.shape_cast %199 : vector<1x256x64xbf16> to vector<256x64xbf16>
      %cst_153 = arith.constant dense<0.000000e+00> : vector<4x64xf32>
      %201 = tpu.matmul %198, %200, %cst_153 {dimension_numbers = #tpu.dot_dimension_numbers<[1], [0], [0], [1], [0, 0, 1, 1], [], []>} : vector<4x256xbf16>, vector<256x64xbf16>, vector<4x64xf32> -> vector<4x64xf32>
      %202 = arith.addf %194, %201 : vector<4x64xf32>
      %c2_154 = arith.constant 2 : index
      %c0_155 = arith.constant 0 : index
      %c0_156 = arith.constant 0 : index
      %203 = vector.load %arg11[%c2_154, %c0_155, %c0_156] : memref<4x4x16xbf16, #tpu.memory_space<vmem>>, vector<1x4x16xbf16>
      %204 = vector.shape_cast %203 : vector<1x4x16xbf16> to vector<4x16xbf16>
      %cst_157 = arith.constant dense<0.000000e+00> : vector<4x256xf32>
      %205 = tpu.matmul %204, %187, %cst_157 {dimension_numbers = #tpu.dot_dimension_numbers<[1], [0], [0], [1], [0, 0, 1, 1], [], []>} : vector<4x16xbf16>, vector<16x256xbf16>, vector<4x256xf32> -> vector<4x256xf32>
      %206 = arith.truncf %205 : vector<4x256xf32> to vector<4x256xbf16>
      %c2_158 = arith.constant 2 : index
      %c0_159 = arith.constant 0 : index
      %c0_160 = arith.constant 0 : index
      %207 = vector.load %arg12[%c2_158, %c0_159, %c0_160] : memref<4x256x64xbf16, #tpu.memory_space<vmem>>, vector<1x256x64xbf16>
      %208 = vector.shape_cast %207 : vector<1x256x64xbf16> to vector<256x64xbf16>
      %cst_161 = arith.constant dense<0.000000e+00> : vector<4x64xf32>
      %209 = tpu.matmul %206, %208, %cst_161 {dimension_numbers = #tpu.dot_dimension_numbers<[1], [0], [0], [1], [0, 0, 1, 1], [], []>} : vector<4x256xbf16>, vector<256x64xbf16>, vector<4x64xf32> -> vector<4x64xf32>
      %210 = arith.addf %202, %209 : vector<4x64xf32>
      %c3_162 = arith.constant 3 : index
      %c0_163 = arith.constant 0 : index
      %c0_164 = arith.constant 0 : index
      %211 = vector.load %arg11[%c3_162, %c0_163, %c0_164] : memref<4x4x16xbf16, #tpu.memory_space<vmem>>, vector<1x4x16xbf16>
      %212 = vector.shape_cast %211 : vector<1x4x16xbf16> to vector<4x16xbf16>
      %cst_165 = arith.constant dense<0.000000e+00> : vector<4x256xf32>
      %213 = tpu.matmul %212, %187, %cst_165 {dimension_numbers = #tpu.dot_dimension_numbers<[1], [0], [0], [1], [0, 0, 1, 1], [], []>} : vector<4x16xbf16>, vector<16x256xbf16>, vector<4x256xf32> -> vector<4x256xf32>
      %214 = arith.truncf %213 : vector<4x256xf32> to vector<4x256xbf16>
      %c3_166 = arith.constant 3 : index
      %c0_167 = arith.constant 0 : index
      %c0_168 = arith.constant 0 : index
      %215 = vector.load %arg12[%c3_166, %c0_167, %c0_168] : memref<4x256x64xbf16, #tpu.memory_space<vmem>>, vector<1x256x64xbf16>
      %216 = vector.shape_cast %215 : vector<1x256x64xbf16> to vector<256x64xbf16>
      %cst_169 = arith.constant dense<0.000000e+00> : vector<4x64xf32>
      %217 = tpu.matmul %214, %216, %cst_169 {dimension_numbers = #tpu.dot_dimension_numbers<[1], [0], [0], [1], [0, 0, 1, 1], [], []>} : vector<4x256xbf16>, vector<256x64xbf16>, vector<4x64xf32> -> vector<4x64xf32>
      %218 = arith.addf %210, %217 : vector<4x64xf32>
      %c22 = arith.constant 22 : index
      %c0_170 = arith.constant 0 : index
      %219 = vector.load %arg4[%c22, %c0_170] : memref<24x256xf32, #tpu.memory_space<vmem>>, vector<1x64xf32>
      %220 = vector.broadcast %219 : vector<1x64xf32> to vector<4x64xf32>
      %221 = arith.addf %218, %220 : vector<4x64xf32>
      %cst_171 = arith.constant 0.000000e+00 : f32
      %222 = vector.broadcast %cst_171 : f32 to vector<4x64xf32>
      %223 = arith.cmpf oge, %221, %222 : vector<4x64xf32>
      %cst_172 = arith.constant 2.000000e-01 : f32
      %224 = vector.broadcast %cst_172 : f32 to vector<4x64xf32>
      %225 = arith.mulf %224, %221 : vector<4x64xf32>
      %226 = arith.select %223, %221, %225 : vector<4x64xi1>, vector<4x64xf32>
      %cst_173 = arith.constant 1.41421354 : f32
      %227 = vector.broadcast %cst_173 : f32 to vector<4x64xf32>
      %228 = arith.mulf %226, %227 : vector<4x64xf32>
      %c0_174 = arith.constant 0 : index
      %c0_175 = arith.constant 0 : index
      %229 = vector.load %arg13[%c0_174, %c0_175] : memref<64x1xf32, #tpu.memory_space<vmem>>, vector<64x1xf32>
      %cst_176 = arith.constant dense<0.000000e+00> : vector<4x1xf32>
      %230 = tpu.matmul %228, %229, %cst_176 {dimension_numbers = #tpu.dot_dimension_numbers<[1], [0], [0], [1], [0, 0, 1, 1], [], []>} : vector<4x64xf32>, vector<64x1xf32>, vector<4x1xf32> -> vector<4x1xf32>
      %c23 = arith.constant 23 : index
      %c0_177 = arith.constant 0 : index
      %231 = vector.load %arg4[%c23, %c0_177] : memref<24x256xf32, #tpu.memory_space<vmem>>, vector<1x1xf32>
      %232 = vector.broadcast %231 : vector<1x1xf32> to vector<4x1xf32>
      %233 = arith.addf %230, %232 : vector<4x1xf32>
      %c0_178 = arith.constant 0 : index
      %c0_179 = arith.constant 0 : index
      %234 = vector.load %arg14[%c0_178, %c0_179] : memref<4x1xf32, #tpu.memory_space<vmem>>, vector<4x1xf32>
      tpu.vector_store %arg14[%c0_178, %c0_179], %233 {strides = array<i32>} : memref<4x1xf32, #tpu.memory_space<vmem>>, vector<4x1xf32>,
    } else {
    }
    return
  }
  func.func @transform_0(%arg0: i32) -> (i32, i32) {
    %c0_i32 = arith.constant 0 : i32
    %c0_i32_0 = arith.constant 0 : i32
    %c0_i32_1 = arith.constant 0 : i32
    return %c0_i32, %c0_i32_0 : i32, i32
  }
  func.func @transform_1(%arg0: i32) -> (i32, i32) {
    %c0_i32 = arith.constant 0 : i32
    %c0_i32_0 = arith.constant 0 : i32
    %c0_i32_1 = arith.constant 0 : i32
    return %c0_i32, %c0_i32_0 : i32, i32
  }
  func.func @transform_2(%arg0: i32) -> (i32, i32, i32) {
    %c0_i32 = arith.constant 0 : i32
    %c0_i32_0 = arith.constant 0 : i32
    %c0_i32_1 = arith.constant 0 : i32
    return %arg0, %c0_i32, %c0_i32_0 : i32, i32, i32
  }
  func.func @transform_3(%arg0: i32) -> (i32, i32) {
    %c0_i32 = arith.constant 0 : i32
    %c0_i32_0 = arith.constant 0 : i32
    %c0_i32_1 = arith.constant 0 : i32
    return %c0_i32, %c0_i32_0 : i32, i32
  }
  func.func @transform_4(%arg0: i32) -> (i32, i32, i32) {
    %c0_i32 = arith.constant 0 : i32
    %c0_i32_0 = arith.constant 0 : i32
    %c0_i32_1 = arith.constant 0 : i32
    %c0_i32_2 = arith.constant 0 : i32
    return %c0_i32, %c0_i32_0, %c0_i32_1 : i32, i32, i32
  }
  func.func @transform_5(%arg0: i32) -> (i32, i32, i32) {
    %c0_i32 = arith.constant 0 : i32
    %c0_i32_0 = arith.constant 0 : i32
    %c0_i32_1 = arith.constant 0 : i32
    %c0_i32_2 = arith.constant 0 : i32
    return %c0_i32, %c0_i32_0, %c0_i32_1 : i32, i32, i32
  }
  func.func @transform_6(%arg0: i32) -> (i32, i32, i32) {
    %c0_i32 = arith.constant 0 : i32
    %c0_i32_0 = arith.constant 0 : i32
    %c0_i32_1 = arith.constant 0 : i32
    %c0_i32_2 = arith.constant 0 : i32
    return %c0_i32, %c0_i32_0, %c0_i32_1 : i32, i32, i32
  }
  func.func @transform_7(%arg0: i32) -> (i32, i32, i32) {
    %c0_i32 = arith.constant 0 : i32
    %c0_i32_0 = arith.constant 0 : i32
    %c0_i32_1 = arith.constant 0 : i32
    %c0_i32_2 = arith.constant 0 : i32
    return %c0_i32, %c0_i32_0, %c0_i32_1 : i32, i32, i32
  }
  func.func @transform_8(%arg0: i32) -> (i32, i32, i32) {
    %c0_i32 = arith.constant 0 : i32
    %c0_i32_0 = arith.constant 0 : i32
    %c0_i32_1 = arith.constant 0 : i32
    %c0_i32_2 = arith.constant 0 : i32
    return %c0_i32, %c0_i32_0, %c0_i32_1 : i32, i32, i32
  }
  func.func @transform_9(%arg0: i32) -> (i32, i32) {
    %c0_i32 = arith.constant 0 : i32
    %c0_i32_0 = arith.constant 0 : i32
    %c0_i32_1 = arith.constant 0 : i32
    return %c0_i32, %c0_i32_0 : i32, i32
  }
  func.func @transform_10(%arg0: i32) -> (i32, i32, i32) {
    %c0_i32 = arith.constant 0 : i32
    %c0_i32_0 = arith.constant 0 : i32
    %c0_i32_1 = arith.constant 0 : i32
    %c0_i32_2 = arith.constant 0 : i32
    return %c0_i32, %c0_i32_0, %c0_i32_1 : i32, i32, i32
  }
  func.func @transform_11(%arg0: i32) -> (i32, i32, i32) {
    %c0_i32 = arith.constant 0 : i32
    %c0_i32_0 = arith.constant 0 : i32
    %c0_i32_1 = arith.constant 0 : i32
    %c0_i32_2 = arith.constant 0 : i32
    return %c0_i32, %c0_i32_0, %c0_i32_1 : i32, i32, i32
  }
  func.func @transform_12(%arg0: i32) -> (i32, i32) {
    %c0_i32 = arith.constant 0 : i32
    %c0_i32_0 = arith.constant 0 : i32
    %c0_i32_1 = arith.constant 0 : i32
    return %c0_i32, %c0_i32_0 : i32, i32
  }
  func.func @transform_13(%arg0: i32) -> (i32, i32) {
    %c0_i32 = arith.constant 0 : i32
    %c0_i32_0 = arith.constant 0 : i32
    %c0_i32_1 = arith.constant 0 : i32
    return %c0_i32, %c0_i32_0 : i32, i32
  }
}

</mosaic_0001>

<bundles_post_ra>
// kernel: _forward_jit.1
= control target key start
LH: loop header
LB: loop body
LE: loop exit
PB: predicated region body
PF: predicated region fallthrough
CT: control target
= control target key end

     0   :  { %s18297_s0 = inlined_call_operand.vmem [shape: f32[64,48], index: 0, kind: input, shape index: {}]   ;;  %s18298_s1 = inlined_call_operand.hbm [shape: bf16[48,256], index: 1, kind: input, shape index: {}]   ;;  %s18299_s2 = inlined_call_operand.hbm [shape: bf16[32,256,256], index: 2, kind: input, shape index: {}]   ;;  %s18300_s3 = inlined_call_operand.hbm [shape: f32[24,256], index: 3, kind: input, shape index: {}]   ;;  %s18301_s4 = inlined_call_operand.hbm [shape: bf16[6,32,64], index: 4, kind: input, shape index: {}]   ;;  %s18302_s5 = inlined_call_operand.hbm [shape: bf16[2,64,64], index: 5, kind: input, shape index: {}]   ;;  %s18303_s6 = inlined_call_operand.hbm [shape: bf16[6,16,32], index: 6, kind: input, shape index: {}]   ;;  %s18304_s7 = inlined_call_operand.hbm [shape: bf16[2,32,32], index: 7, kind: input, shape index: {}]   ;;  %s18305_s8 = inlined_call_operand.hbm [shape: bf16[2,16,16], index: 8, kind: input, shape index: {}]   ;;  %s18306_s9 = inlined_call_operand.hbm [shape: f32[16,16], index: 9, kind: input, shape index: {}]   ;;  %s18307_s10 = inlined_call_operand.hbm [shape: bf16[4,4,16], index: 10, kind: input, shape index: {}]   ;;  %s18308_s11 = inlined_call_operand.vmem [shape: bf16[4,256,64], index: 11, kind: input, shape index: {}]   ;;  %s18309_s12 = inlined_call_operand.vmem [shape: f32[64,1], index: 12, kind: input, shape index: {}]   ;;  %s18310_s13 = inlined_call_operand.vmem [shape: f32[4,1], index: 13, kind: output, shape index: {}]  }
   0x1   :  { %18325 = sst [smem:[#allocation27_spill]] %s18297_s0 }
   0x2   :  { %18326 = sst [smem:[#allocation28_spill]] %s18300_s3 }
   0x3   :  { %18327 = sst [smem:[#allocation29_spill]] %s18301_s4 }
   0x4   :  { %18328 = sst [smem:[#allocation30_spill]] %s18308_s11 }
   0x5   :  { %18329 = sst [smem:[#allocation31_spill]] %s18309_s12 }
   0x6   :  { %18330 = sst [smem:[#allocation32_spill]] %s18310_s13 }
   0x7   :  { %18 = vsyncpa [#allocation4], 0 }
   0x8   :  { %19 = vsyncpa [#allocation6], 0 }
   0x9   :  { %21 = vsyncpa [#allocation6 + $0x1], 0 }
   0xa   :  { %22 = vsyncpa [#allocation9], 0 }
   0xb   :  { %23 = vsyncpa [#allocation12], 0 }
   0xc   :  { %24 = vsyncpa [#allocation15], 0 }
   0xd   :  { %25 = vsyncpa [#allocation18], 0  ;;  %s15962_s25 = smov 0   ;;  %s15964_s26 = smov 0  }
   0xe   :  { %s15966_s27 = smov 0   ;;  %s15968_s28 = smov 0  }
   0xf LB: > { %s15869_s29 = smov [#allocation7]   ;;  %s15983_s14 = sadd.s32 4294967295, %s15867_s28   ;;  %s15867_s28 = sphi %s15968_s28, %s18384_s28   ;;  %s15863_s27 = sphi %s15966_s27, %s18383_s27   ;;  %s15859_s26 = sphi %s15964_s26, %s18382_s26   ;;  %s15855_s25 = sphi %s15962_s25, %s18381_s25  }
  0x10   : > { %s363_s30 = sshll.u32 %s15869_s29, 4  ;;  %p11451_p0 = scmp.ge.s32.totalorder %s15867_s28, 1  ;;  %s15989_s30 = int_to_ptr.vmem [resolvable:$true] %s363_s30 }
  0x11   : > { %p18315_p1 = scmp.eq.s32.totalorder %s15983_s14, 0  ;;  %p335_p2 = scmp.lt.s32.totalorder %s15867_s28, 3 }
  0x12   : > { %s15870_s16 = smov [#allocation8]   ;;  %s15871_s19 = smov [#allocation11]  }
  0x13   : > { %p15991_p4 = pnand %p11451_p0, %p335_p2  ;;  %s376_s17 = sshll.u32 %s15870_s16, 4  ;;  %s16003_s17 = int_to_ptr.vmem [resolvable:$true] %s376_s17 }
  0x14   : > { %s16005_s20 = sshll.u32 %s15871_s19, 4  ;;  %s18334_s3 = sld [smem:[#allocation28_spill]]  ;;  %s403_s20 = int_to_ptr.vmem [resolvable:$true] %s16005_s20 }
  0x15   : > { %s18331_s15 = scalar_select %p15991_p4, 1, 0 }
  0x16   : > { %p13912_p5 = pneg %p15991_p4 }
  0x17   : > { %18332 = sst [smem:[#allocation26_spill]] %s18331_s15 }
  0x18   : > { %p15999_p6 = pnand %p13912_p5, %p18315_p1 }
  0x1a   : > { %s15527_s23 = scalar_lea.hbm %s18334_s3, 768  ;;  %p16015_p8 = pneg %p15999_p6 }
  0x1b   : > { %p15528_p7 = scmp.ne.s32.totalorder %s18334_s3, %s15527_s23  ;;  %p15534_p11 = scmp.lt.u32.totalorder %s15527_s23, %s18334_s3 }
  0x1d   : > { %p15530_p9 = pnand %p16015_p8, %p15528_p7 }
  0x1f   : > { %p15531_p10 = pneg %p15530_p9 }
  0x21   : > { %p15536_p12 = pnand %p15534_p11, %p15531_p10 }
  0x23   : > { %15539 = shalt.err (!%p15536_p12)
}
  0x24   : > { %s15540_s21 = scalar_lea.vmem %s15989_s30, 768  ;;  %p15548_p5 = scmp.lt.s32.totalorder %s15989_s30, %s15989_s30 }
  0x25   : > { %p15541_p13 = scmp.ne.s32.totalorder %s15989_s30, %s15540_s21  ;;  %p15549_p3 = scmp.lt.s32.totalorder %s15540_s21, %s15540_s21 }
  0x27   : > { %p15543_p0 = pnand %p15541_p13, %p16015_p8  ;;  %p15550_p7 = por %p15549_p3, %p15548_p5 }
  0x29   : > { %p15544_p2 = pneg %p15543_p0 }
  0x2b   : > { %p15551_p9 = pnand %p15550_p7, %p15544_p2 }
  0x2d   : > { %15554 = shalt.err (!%p15551_p9)
}
  0x2e   : > { %s15872_s22 = smov 256   ;;  %s15873_s13 = smov 16  }
  0x2f   : > { %13918 = dma.hbm_to_vmem [thread:$0]  (!%p15999_p6), %s18334_s3, 768, %s15989_s30, [#allocation6], %s15872_s22, %s15872_s22, %s15873_s13  }
  0x30   : > { %s18336_s4 = sld [smem:[#allocation29_spill]] }
  0x36   : > { %s15555_s12 = scalar_lea.hbm %s18336_s4, 1536 }
  0x37   : > { %p15556_p3 = scmp.ne.s32.totalorder %s18336_s4, %s15555_s12  ;;  %p15562_p12 = scmp.lt.u32.totalorder %s15555_s12, %s18336_s4 }
  0x39   : > { %p15558_p10 = pnand %p15556_p3, %p16015_p8 }
  0x3b   : > { %p15559_p11 = pneg %p15558_p10 }
  0x3d   : > { %p15564_p13 = pnand %p15562_p12, %p15559_p11 }
  0x3f   : > { %15567 = shalt.err (!%p15564_p13)
}
  0x40   : > { %s15568_s30 = scalar_lea.vmem %s16003_s17, 1536  ;;  %p15576_p7 = scmp.lt.s32.totalorder %s16003_s17, %s16003_s17 }
  0x41   : > { %p15569_p0 = scmp.ne.s32.totalorder %s16003_s17, %s15568_s30  ;;  %p15577_p9 = scmp.lt.s32.totalorder %s15568_s30, %s15568_s30 }
  0x43   : > { %p15571_p2 = pnand %p15569_p0, %p16015_p8  ;;  %p15578_p3 = por %p15577_p9, %p15576_p7 }
  0x45   : > { %p15572_p5 = pneg %p15571_p2 }
  0x47   : > { %p15579_p10 = pnand %p15578_p3, %p15572_p5 }
  0x49   : > { %15582 = shalt.err (!%p15579_p10)
}
  0x4a   : > { %s18317_s0 = smov 64   ;;  %s18319_s11 = smov 4  }
  0x4b   : > { %13921 = dma.hbm_to_vmem [thread:$0]  (!%p15999_p6), %s18336_s4, 1536, %s16003_s17, [#allocation9], %s18317_s0, %s18317_s0, %s18319_s11  }
  0x4c   : > { %s15583_s23 = scalar_lea.hbm %s18303_s6, 768 }
  0x4d   : > { %p15584_p11 = scmp.ne.s32.totalorder %s18303_s6, %s15583_s23  ;;  %p15590_p0 = scmp.lt.u32.totalorder %s15583_s23, %s18303_s6 }
  0x4f   : > { %p15586_p12 = pnand %p15584_p11, %p16015_p8 }
  0x51   : > { %p15587_p13 = pneg %p15586_p12 }
  0x53   : > { %p15592_p2 = pnand %p15590_p0, %p15587_p13 }
  0x55   : > { %15595 = shalt.err (!%p15592_p2)
}
  0x56   : > { %s15596_s30 = scalar_lea.vmem %s403_s20, 768  ;;  %p15604_p3 = scmp.lt.s32.totalorder %s403_s20, %s403_s20 }
  0x57   : > { %p15597_p5 = scmp.ne.s32.totalorder %s403_s20, %s15596_s30  ;;  %p15605_p10 = scmp.lt.s32.totalorder %s15596_s30, %s15596_s30 }
  0x59   : > { %p15599_p7 = pnand %p15597_p5, %p16015_p8  ;;  %p15606_p1 = por %p15605_p10, %p15604_p3 }
  0x5b   : > { %p15600_p9 = pneg %p15599_p7 }
  0x5d   : > { %p15607_p4 = pnand %p15606_p1, %p15600_p9 }
  0x5f   : > { %15610 = shalt.err (!%p15607_p4)
}
  0x60   : > { %13927 = dma.hbm_to_vmem [thread:$0]  (!%p15999_p6), %s18303_s6, 768, %s403_s20, [#allocation12], %s18317_s0, %s18317_s0, %s18319_s11  }
  0x61   : > { %s15876_s15 = smov [#allocation14]   ;;  %s15877_s13 = smov [#allocation3]  }
  0x62   : > { %s428_s22 = sshll.u32 %s15876_s15, 4  ;;  %s350_s23 = sshll.u32 %s15877_s13, 4  ;;  %s429_s22 = int_to_ptr.vmem [resolvable:$true] %s428_s22  ;;  %s351_s23 = int_to_ptr.vmem [resolvable:$true] %s350_s23 }
  0x63   : > { %s15611_s19 = scalar_lea.hbm %s18305_s8, 256 }
  0x64   : > { %p15612_p1 = scmp.ne.s32.totalorder %s18305_s8, %s15611_s19  ;;  %p15618_p12 = scmp.lt.u32.totalorder %s15611_s19, %s18305_s8 }
  0x66   : > { %p15614_p4 = pnand %p15612_p1, %p16015_p8 }
  0x68   : > { %p15615_p11 = pneg %p15614_p4 }
  0x6a   : > { %p15620_p13 = pnand %p15618_p12, %p15615_p11 }
  0x6c   : > { %15623 = shalt.err (!%p15620_p13)
}
  0x6d   : > { %s15624_s20 = scalar_lea.vmem %s429_s22, 256  ;;  %p15632_p7 = scmp.lt.s32.totalorder %s429_s22, %s429_s22 }
  0x6e   : > { %p15625_p0 = scmp.ne.s32.totalorder %s429_s22, %s15624_s20  ;;  %p15633_p9 = scmp.lt.s32.totalorder %s15624_s20, %s15624_s20 }
  0x70   : > { %p15627_p2 = pnand %p15625_p0, %p16015_p8  ;;  %p15634_p3 = por %p15633_p9, %p15632_p7 }
  0x72   : > { %p15628_p5 = pneg %p15627_p2 }
  0x74   : > { %p15635_p10 = pnand %p15634_p3, %p15628_p5 }
  0x76   : > { %15638 = shalt.err (!%p15635_p10)
}
  0x77   : > { %13933 = dma.hbm_to_vmem [thread:$0]  (!%p15999_p6), %s18305_s8, 256, %s429_s22, [#allocation15], %s18317_s0, %s18317_s0, %s18319_s11  }
  0x78   : > { %s15639_s24 = scalar_lea.hbm %s18298_s1, 768 }
  0x79   : > { %p15640_p1 = scmp.ne.s32.totalorder %s18298_s1, %s15639_s24  ;;  %p15646_p12 = scmp.lt.u32.totalorder %s15639_s24, %s18298_s1 }
  0x7b   : > { %p15642_p4 = pnand %p15640_p1, %p16015_p8 }
  0x7d   : > { %p15643_p11 = pneg %p15642_p4 }
  0x7f   : > { %p15648_p13 = pnand %p15646_p12, %p15643_p11 }
  0x81   : > { %15651 = shalt.err (!%p15648_p13)
}
  0x82   : > { %s15652_s17 = scalar_lea.vmem %s351_s23, 768  ;;  %p15660_p7 = scmp.lt.s32.totalorder %s351_s23, %s351_s23 }
  0x83   : > { %p15653_p0 = scmp.ne.s32.totalorder %s351_s23, %s15652_s17  ;;  %p15661_p9 = scmp.lt.s32.totalorder %s15652_s17, %s15652_s17 }
  0x85   : > { %p15655_p2 = pnand %p15653_p0, %p16015_p8  ;;  %p15662_p3 = por %p15661_p9, %p15660_p7 }
  0x87   : > { %p15656_p5 = pneg %p15655_p2 }
  0x89   : > { %p15663_p10 = pnand %p15662_p3, %p15656_p5 }
  0x8b   : > { %15666 = shalt.err (!%p15663_p10)
}
  0x8c   : > { %s18321_s22 = smov 128   ;;  %s15879_s20 = smov 8  }
  0x8d   : > { %13915 = dma.hbm_to_vmem [thread:$0]  (!%p15999_p6), %s18298_s1, 768, %s351_s23, [#allocation4], %s18321_s22, %s18321_s22, %s15879_s20  }
  0x8e   : > { %s15880_s15 = smov [#allocation10]   ;;  %s15881_s24 = smov [#allocation13]  }
  0x8f   : > { %s389_s13 = sshll.u32 %s15880_s15, 4  ;;  %s415_s29 = sshll.u32 %s15881_s24, 4  ;;  %s390_s13 = int_to_ptr.vmem [resolvable:$true] %s389_s13  ;;  %s416_s29 = int_to_ptr.vmem [resolvable:$true] %s415_s29 }
  0x90   : > { %s15667_s30 = scalar_lea.hbm %s18302_s5, 1024 }
  0x91   : > { %p15668_p1 = scmp.ne.s32.totalorder %s18302_s5, %s15667_s30  ;;  %p15674_p12 = scmp.lt.u32.totalorder %s15667_s30, %s18302_s5 }
  0x93   : > { %p15670_p4 = pnand %p15668_p1, %p16015_p8 }
  0x95   : > { %p15671_p11 = pneg %p15670_p4 }
  0x97   : > { %p15676_p13 = pnand %p15674_p12, %p15671_p11 }
  0x99   : > { %15679 = shalt.err (!%p15676_p13)
}
  0x9a   : > { %s15680_s23 = scalar_lea.vmem %s390_s13, 1024  ;;  %p15688_p7 = scmp.lt.s32.totalorder %s390_s13, %s390_s13 }
  0x9b   : > { %p15681_p0 = scmp.ne.s32.totalorder %s390_s13, %s15680_s23  ;;  %p15689_p9 = scmp.lt.s32.totalorder %s15680_s23, %s15680_s23 }
  0x9d   : > { %p15683_p2 = pnand %p15681_p0, %p16015_p8  ;;  %p15690_p3 = por %p15689_p9, %p15688_p7 }
  0x9f   : > { %p15684_p5 = pneg %p15683_p2 }
  0xa1   : > { %p15691_p10 = pnand %p15690_p3, %p15684_p5 }
  0xa3   : > { %15694 = shalt.err (!%p15691_p10)
}
  0xa4   : > { %s18337_s0 = smov 4   ;;  %s18338_s3 = smov 64  }
  0xa5   : > { %13924 = dma.hbm_to_vmem [thread:$0]  (!%p15999_p6), %s18302_s5, 1024, %s390_s13, [#allocation9], %s18338_s3, %s18338_s3, %s18337_s0  }
  0xa6   : > { %s15695_s24 = scalar_lea.hbm %s18304_s7, 512 }
  0xa7   : > { %p15696_p1 = scmp.ne.s32.totalorder %s18304_s7, %s15695_s24  ;;  %p15702_p12 = scmp.lt.u32.totalorder %s15695_s24, %s18304_s7 }
  0xa9   : > { %p15698_p4 = pnand %p15696_p1, %p16015_p8 }
  0xab   : > { %p15699_p11 = pneg %p15698_p4 }
  0xad   : > { %p15704_p13 = pnand %p15702_p12, %p15699_p11 }
  0xaf   : > { %15707 = shalt.err (!%p15704_p13)
}
  0xb0   : > { %s15708_s23 = scalar_lea.vmem %s416_s29, 512  ;;  %p15716_p7 = scmp.lt.s32.totalorder %s416_s29, %s416_s29 }
  0xb1   : > { %p15709_p0 = scmp.ne.s32.totalorder %s416_s29, %s15708_s23  ;;  %p15717_p9 = scmp.lt.s32.totalorder %s15708_s23, %s15708_s23 }
  0xb3   : > { %p15711_p2 = pnand %p15709_p0, %p16015_p8  ;;  %p15718_p3 = por %p15717_p9, %p15716_p7 }
  0xb5   : > { %p15712_p5 = pneg %p15711_p2 }
  0xb7   : > { %p15719_p10 = pnand %p15718_p3, %p15712_p5 }
  0xb9   : > { %15722 = shalt.err (!%p15719_p10)
}
  0xba   : > { %13930 = dma.hbm_to_vmem [thread:$0]  (!%p15999_p6), %s18304_s7, 512, %s416_s29, [#allocation12], %s18338_s3, %s18338_s3, %s18337_s0  }
  0xbb   : > { %s15882_s11 = smov [#allocation16]   ;;  %s15883_s15 = smov [#allocation17]  }
  0xbc   : > { %s441_s12 = sshll.u32 %s15882_s11, 4  ;;  %s454_s24 = sshll.u32 %s15883_s15, 4  ;;  %s442_s12 = int_to_ptr.vmem [resolvable:$true] %s441_s12  ;;  %s455_s24 = int_to_ptr.vmem [resolvable:$true] %s454_s24 }
  0xbd   : > { %s15723_s30 = scalar_lea.hbm %s18306_s9, 256 }
  0xbe   : > { %p15724_p1 = scmp.ne.s32.totalorder %s18306_s9, %s15723_s30  ;;  %p15730_p12 = scmp.lt.u32.totalorder %s15723_s30, %s18306_s9 }
  0xc0   : > { %p15726_p4 = pnand %p15724_p1, %p16015_p8 }
  0xc2   : > { %p15727_p11 = pneg %p15726_p4 }
  0xc4   : > { %p15732_p13 = pnand %p15730_p12, %p15727_p11 }
  0xc6   : > { %15735 = shalt.err (!%p15732_p13)
}
  0xc7   : > { %s15736_s29 = scalar_lea.vmem %s442_s12, 256  ;;  %p15744_p7 = scmp.lt.s32.totalorder %s442_s12, %s442_s12 }
  0xc8   : > { %p15737_p0 = scmp.ne.s32.totalorder %s442_s12, %s15736_s29  ;;  %p15745_p9 = scmp.lt.s32.totalorder %s15736_s29, %s15736_s29 }
  0xca   : > { %p15739_p2 = pnand %p15737_p0, %p16015_p8  ;;  %p15746_p3 = por %p15745_p9, %p15744_p7 }
  0xcc   : > { %p15740_p5 = pneg %p15739_p2 }
  0xce   : > { %p15747_p10 = pnand %p15746_p3, %p15740_p5 }
  0xd0   : > { %15750 = shalt.err (!%p15747_p10)
}
  0xd1   : > { %s18339_s0 = smov 128   ;;  %s15751_s15 = scalar_lea.hbm %s18307_s10, 128 }
  0xd2   : > { %13936 = dma.hbm_to_vmem [thread:$0]  (!%p15999_p6), %s18306_s9, 256, %s442_s12, [#allocation15], %s18339_s0, %s18339_s0, %s15879_s20  }
  0xd3   : > { %p15752_p1 = scmp.ne.s32.totalorder %s18307_s10, %s15751_s15  ;;  %p15758_p12 = scmp.lt.u32.totalorder %s15751_s15, %s18307_s10 }
  0xd5   : > { %p15754_p4 = pnand %p15752_p1, %p16015_p8 }
  0xd7   : > { %p15755_p11 = pneg %p15754_p4 }
  0xd9   : > { %p15760_p13 = pnand %p15758_p12, %p15755_p11 }
  0xdb   : > { %15763 = shalt.err (!%p15760_p13)
}
  0xdc   : > { %s15764_s23 = scalar_lea.vmem %s455_s24, 128  ;;  %p15772_p7 = scmp.lt.s32.totalorder %s455_s24, %s455_s24 }
  0xdd   : > { %p15765_p0 = scmp.ne.s32.totalorder %s455_s24, %s15764_s23  ;;  %p15773_p9 = scmp.lt.s32.totalorder %s15764_s23, %s15764_s23 }
  0xdf   : > { %p15767_p2 = pnand %p15765_p0, %p16015_p8  ;;  %p15774_p3 = por %p15773_p9, %p15772_p7 }
  0xe1   : > { %p15768_p5 = pneg %p15767_p2 }
  0xe3   : > { %p15775_p10 = pnand %p15774_p3, %p15768_p5 }
  0xe5   : > { %15778 = shalt.err (!%p15775_p10)
}
  0xe6   : > { %s15884_s12 = smov 32   ;;  %s15885_s16 = smov 2  }
  0xe7   : > { %13939 = dma.hbm_to_vmem [thread:$0]  (!%p15999_p6), %s18307_s10, 128, %s455_s24, [#allocation18], %s15884_s12, %s15884_s12, %s15885_s16  }
  0xe8   : > { %s16208_s22 = sadd.s32 1, %s15867_s28   ;;  %s80_s4 = sadd.s32 1, %s15863_s27 }
  0xe9   : > { %s77_s3 = ssub.s32 %s15867_s28, %s16208_s22  ;;  %p87_p1 = scmp.ne.s32.totalorder %s15863_s27, %s15859_s26 }
  0xea   : > { %p78_p8 = scmp.eq.s32.totalorder %s77_s3, 0  ;;  %p88_p4 = scmp.eq.s32.totalorder %s15867_s28, 0 }
  0xeb   : > { %p93_p11 = scmp.ne.s32.totalorder %s15859_s26, %s15855_s25  ;;  %p18340_p13 = scmp.eq.s32.totalorder %s15983_s14, 0 }
  0xec   : > { %s16219_s11 = scalar_select %p78_p8, %s15863_s27, %s80_s4  }
  0xed   : > { %p89_p12 = por %p88_p4, %p87_p1  ;;  %p16223_p0 = por %p18340_p13, %p93_p11 }
  0xee   : > { %p13953_p2 = scmp.lt.s32.totalorder %s15867_s28, 2  ;;  %s474_s15 = sand.u32 1, %s15867_s28  }
  0xef   : > { %s476_s24 = sand.u32 1, %s15863_s27   ;;  %s13585_s21 = sshll.u32 %s15867_s28, 16 }
  0xf0   : > { %s11462_s19 = sshll.u32 %s476_s24, 12  ;;  %s16234_s23 = scalar_lea.hbm %s18299_s2, %s13585_s21 }
  0xf1   : > { %s478_s25 = scalar_lea.vmem [#allocation5], %s11462_s19  ;;  %p16236_p6 = pnand %p13953_p2, %p89_p12 }
  0xf2   : > { %s486_s12 = sshll.u32 %s478_s25, 4  ;;  %s16242_s28 = scalar_lea.sflag [#allocation6], %s474_s15  ;;  %s16240_s12 = int_to_ptr.vmem [resolvable:$true] %s486_s12 }
  0xf3   : > { %s15779_s13 = scalar_lea.hbm %s16234_s23, 65536  ;;  %p15781_p7 = pneg %p16236_p6 }
  0xf4   : > { %p15780_p5 = scmp.ne.s32.totalorder %s16234_s23, %s15779_s13  ;;  %s15784_s4 = scalar_lea.hbm %s18299_s2, 131072 }
  0xf5   : > { %p15785_p10 = scmp.lt.u32.totalorder %s16234_s23, %s18299_s2  ;;  %p15786_p8 = scmp.lt.u32.totalorder %s15784_s4, %s15779_s13 }
  0xf6   : > { %p15782_p9 = pnand %p15781_p7, %p15780_p5  ;;  %p15788_p4 = scmp.lt.u32.totalorder %s15779_s13, %s16234_s23 }
  0xf7   : > { %p15787_p1 = por %p15786_p8, %p15785_p10 }
  0xf8   : > { %p15783_p3 = pneg %p15782_p9 }
  0xf9   : > { %p15789_p11 = por %p15788_p4, %p15787_p1 }
  0xfb   : > { %p15790_p12 = pnand %p15789_p11, %p15783_p3 }
  0xfd   : > { %15793 = shalt.err (!%p15790_p12)
}
  0xfe   : > { %s15794_s15 = scalar_lea.vmem %s16240_s12, 65536  ;;  %s15886_s21 = smov [#allocation5]  }
  0xff   : > { %p15795_p13 = scmp.ne.s32.totalorder %s16240_s12, %s15794_s15  ;;  %s15799_s30 = sshll.u32 %s15886_s21, 4  ;;  %s15800_s30 = int_to_ptr.vmem [resolvable:$false] %s15799_s30 }
 0x100   : > { %s15801_s17 = scalar_lea.vmem %s15800_s30, 131072  ;;  %p15802_p9 = scmp.lt.s32.totalorder %s16240_s12, %s15800_s30 }
 0x101   : > { %p15797_p2 = pnand %p15795_p13, %p15781_p7  ;;  %p15803_p10 = scmp.lt.s32.totalorder %s15801_s17, %s15794_s15 }
 0x103   : > { %p15798_p5 = pneg %p15797_p2  ;;  %p15804_p8 = por %p15803_p10, %p15802_p9 }
 0x105   : > { %p15805_p1 = pnand %p15804_p8, %p15798_p5 }
 0x107   : > { %15808 = shalt.err (!%p15805_p1)
}
 0x108   : > { %13943 = dma.hbm_to_vmem [thread:$0]  (!%p16236_p6), %s16234_s23, 65536, %s16240_s12, %s16242_s28, %s18339_s0, %s18339_s0, %s15879_s20  }
 0x109   : > { %s18343_s25 = sld [smem:[#allocation26_spill]] }
 0x10f   : > { %p18344_p7 = scmp.ne.s32.totalorder %s18343_s25, 0 }
 0x110   : > { %p18345_p3 = scmp.eq.s32.totalorder (!%p18344_p7), %s15983_s14, 0 }
 0x111   : > { %498 = sbr.rel (%p18344_p7) target bundleno = 6005 (0x1775), region = 72 }
 0x118   : > { %15826 = dma.done.wait (%p18345_p3), [#allocation4], 768   ;;  %p18346_p4 = pmov %p18345_p3 }
 0x119   : > { %s504_s16 = sand.u32 1, %s15983_s14   ;;  %s506_s13 = sand.u32 1, %s15859_s26  }
 0x11a   : > { %15828 = vsyncadd (%p18346_p4), [#allocation4], 4294966528  ;;  %s11468_s29 = sshll.u32 %s506_s13, 12  ;;  %s505_s3 = scalar_lea.sflag [#allocation6], %s504_s16 }
 0x11b   : > { %s16281_s4 = scalar_lea.vmem [#allocation5], %s11468_s29 }
 0x11c   : > { %15830 = dma.done.wait (%p16223_p0), %s505_s3, 65536  }
 0x11d   : > { %15832 = vsyncadd (%p16223_p0), %s505_s3, 4294901760  ;;  %p18347_p6 = pmov %p18345_p3 }
 0x11e   : > { %p18348_p11 = pmov %p18345_p3 }
 0x11f   : > { %15834 = dma.done.wait (%p18347_p6), [#allocation6], 768  }
 0x120   : > { %15836 = vsyncadd (%p18348_p11), [#allocation6], 4294966528  ;;  %p18349_p12 = pmov %p18345_p3 }
 0x121   : > { %p18350_p13 = pmov %p18345_p3 }
 0x122   : > { %15838 = dma.done.wait (%p18349_p12), [#allocation9], 2560  }
 0x123   : > { %15840 = vsyncadd (%p18350_p13), [#allocation9], 4294964736  ;;  %p18351_p2 = pmov %p18345_p3 }
 0x125   : > { %15842 = dma.done.wait (%p18351_p2), [#allocation12], 1280   ;;  %p18352_p5 = pmov %p18351_p2 }
 0x126   : > { %p18353_p0 = pmov %p18351_p2 }
 0x127   : > { %15844 = vsyncadd (%p18352_p5), [#allocation12], 4294966016 }
 0x128   : > { %15846 = dma.done.wait (%p18353_p0), [#allocation15], 512   ;;  %p18354_p9 = pmov %p18353_p0 }
 0x129   : > { %p18355_p10 = pmov %p18353_p0 }
 0x12a   : > { %15848 = vsyncadd (%p18354_p9), [#allocation15], 4294966784 }
 0x12b   : > { %15850 = dma.done.wait (%p18355_p10), [#allocation18], 128   ;;  %p18356_p8 = pmov %p18353_p0 }
 0x12c   : > { %p18357_p1 = scmp.ne.s32.totalorder %s15983_s14, 0 }
 0x12d   : > { %15852 = vsyncadd (%p18356_p8), [#allocation18], 4294967168  ;;  %v14017_v0 = vld [vmem:[#allocation3 + $0x4] ss:$8 sps:$4 sm:$0xff] (!%p18357_p1)   ;;  %v14019_v1 = vld [vmem:[#allocation3] ss:$8 sps:$4 sm:$0xff] (!%p18357_p1)   ;;  %v604_v51 = vlaneseq (!%p18357_p1) }
 0x12e   : > { %583 = sbr.rel (%p18357_p1) target bundleno = 2293 (0x8f5), region = 116  ;;  %v18323_v2 = vmov (!%p18357_p1), 0   ;;  %657 = vmatprep.subr.bf16.mxu0 (!%p18357_p1), %v14017_v0  ;;  %v14020_v3 = vld [vmem:[#allocation3 + $0x14] ss:$8 sps:$4 sm:$0xff] (!%p18357_p1)   ;;  %v14022_v4 = vld [vmem:[#allocation3 + $0x10] ss:$8 sps:$4 sm:$0xff] (!%p18357_p1)  }
 0x12f   : > { %689 = vmatprep.mubr.bf16.mxu0 (!%p18357_p1), %v18323_v2  ;;  %944 = vmatprep.mubr.bf16.mxu1 (!%p18357_p1), %v18323_v2  ;;  %v14023_v5 = vld [vmem:[#allocation3 + $0x24] ss:$8 sps:$4 sm:$0xff] (!%p18357_p1)   ;;  %v14025_v6 = vld [vmem:[#allocation3 + $0x20] ss:$8 sps:$4 sm:$0xff] (!%p18357_p1)   ;;  %s18358_s18 = sld [smem:[#allocation27_spill]] (!%p18357_p1)  ;;  %vm644_vm0 = vcmask (!%p18357_p1), 392192  }
 0x130   : > { %658 = vmatpush1.bf16.msra.mxu0 (!%p18357_p1), %v14019_v1  ;;  %v14028_v9 = vld [vmem:[%s16281_s4 + $0x104] ss:$8 sps:$4 sm:$0xff] (!%p18357_p1)   ;;  %v14026_v11 = vld [vmem:[%s16281_s4 + $0x100] ss:$8 sps:$4 sm:$0xff] (!%p18357_p1)   ;;  %v14031_v12 = vld [vmem:[%s16281_s4 + $0x114] ss:$8 sps:$4 sm:$0xff] (!%p18357_p1)  }
 0x131   : > { %659 = vmatprep.subr.bf16.mxu0 (!%p18357_p1), %v14020_v3  ;;  %v14029_v15 = vld [vmem:[%s16281_s4 + $0x110] ss:$8 sps:$4 sm:$0xff] (!%p18357_p1)   ;;  %v14034_v16 = vld [vmem:[%s16281_s4 + $0x124] ss:$8 sps:$4 sm:$0xff] (!%p18357_p1)   ;;  %v14032_v18 = vld [vmem:[%s16281_s4 + $0x120] ss:$8 sps:$4 sm:$0xff] (!%p18357_p1)  }
 0x132   : > { %v14037_v19 = vld [vmem:[%s16281_s4 + $0x134] ss:$8 sps:$4 sm:$0xff] (!%p18357_p1)   ;;  %v14035_v22 = vld [vmem:[%s16281_s4 + $0x130] ss:$8 sps:$4 sm:$0xff] (!%p18357_p1)   ;;  %v14040_v23 = vld [vmem:[%s16281_s4 + $0x144] ss:$8 sps:$4 sm:$0xff] (!%p18357_p1)  }
 0x133   : > { %v14038_v24 = vld [vmem:[%s16281_s4 + $0x140] ss:$8 sps:$4 sm:$0xff] (!%p18357_p1)   ;;  %v14043_v26 = vld [vmem:[%s16281_s4 + $0x154] ss:$8 sps:$4 sm:$0xff] (!%p18357_p1)   ;;  %v14041_v29 = vld [vmem:[%s16281_s4 + $0x150] ss:$8 sps:$4 sm:$0xff] (!%p18357_p1)  }
 0x134   : > { %660 = vmatpush1.bf16.msra.mxu0 (!%p18357_p1), %v14022_v4  ;;  %v14046_v30 = vld [vmem:[%s16281_s4 + $0x164] ss:$8 sps:$4 sm:$0xff] (!%p18357_p1)   ;;  %v14044_v31 = vld [vmem:[%s16281_s4 + $0x160] ss:$8 sps:$4 sm:$0xff] (!%p18357_p1)   ;;  %v14049_v33 = vld [vmem:[%s16281_s4 + $0x174] ss:$8 sps:$4 sm:$0xff] (!%p18357_p1)  }
 0x135   : > { %v584_v7 = vld [vmem:[%s18358_s18] sm:$0xff]  ;;  %v585_v8 = vld [vmem:[%s18358_s18 + $0x8] sm:$0xff]  ;;  %661 = vmatprep.subr.bf16.mxu0 %v14023_v5  ;;  %v586_v13 = vld [vmem:[%s18358_s18 + $0x10] sm:$0xff]  ;;  %v605_v52 = vshrl.u32 %v604_v51, 7 }
 0x136   : > { %v592_v10 = vpack.c.bf16 %v585_v8, %v584_v7  ;;  %v587_v14 = vld [vmem:[%s18358_s18 + $0x18] sm:$0xff]  ;;  %v588_v20 = vld [vmem:[%s18358_s18 + $0x20] sm:$0xff]  ;;  %v589_v21 = vld [vmem:[%s18358_s18 + $0x28] sm:$0xff] }
 0x137   : > { %v593_v17 = vpack.c.bf16 %v587_v14, %v586_v13  ;;  %v594_v25 = vpack.c.bf16 %v589_v21, %v588_v20  ;;  %v590_v27 = vld [vmem:[%s18358_s18 + $0x30] sm:$0xff]  ;;  %v591_v28 = vld [vmem:[%s18358_s18 + $0x38] sm:$0xff]  ;;  %v14047_v34 = vld [vmem:[%s16281_s4 + $0x170] ss:$8 sps:$4 sm:$0xff]   ;;  %v16374_v53 = vsub.s32 0, %v605_v52  ;;  %v16376_v55 = vsub.s32 1, %v605_v52 }
 0x138   : > { %662 = vmatpush1.bf16.msra.mxu0 %v14025_v6  ;;  %v595_v32 = vpack.c.bf16 %v591_v28, %v590_v27  ;;  %v14052_v35 = vld [vmem:[%s16281_s4 + $0x184] ss:$8 sps:$4 sm:$0xff]   ;;  %v14050_v36 = vld [vmem:[%s16281_s4 + $0x180] ss:$8 sps:$4 sm:$0xff]   ;;  %v14055_v37 = vld [vmem:[%s16281_s4 + $0x194] ss:$8 sps:$4 sm:$0xff]  }
 0x139   : > { %1418 = vmatprep.subr.bf16.mxu0 %v14028_v9  ;;  %v14053_v38 = vld [vmem:[%s16281_s4 + $0x190] ss:$8 sps:$4 sm:$0xff]   ;;  %v14058_v39 = vld [vmem:[%s16281_s4 + $0x1a4] ss:$8 sps:$4 sm:$0xff]   ;;  %v14056_v40 = vld [vmem:[%s16281_s4 + $0x1a0] ss:$8 sps:$4 sm:$0xff]  }
 0x13a   : > { %v14061_v41 = vld [vmem:[%s16281_s4 + $0x1b4] ss:$8 sps:$4 sm:$0xff]   ;;  %v14059_v42 = vld [vmem:[%s16281_s4 + $0x1b0] ss:$8 sps:$4 sm:$0xff]   ;;  %v14064_v43 = vld [vmem:[%s16281_s4 + $0x1c4] ss:$8 sps:$4 sm:$0xff]  }
 0x13b   : > { %11484 = vmatmul.mubr.msk.bf16.vlgmr.msra.gmra.mrb[0].mxu0 %vm644_vm0, %v592_v10  ;;  %v14062_v44 = vld [vmem:[%s16281_s4 + $0x1c0] ss:$8 sps:$4 sm:$0xff]   ;;  %v14067_v45 = vld [vmem:[%s16281_s4 + $0x1d4] ss:$8 sps:$4 sm:$0xff]   ;;  %v14065_v46 = vld [vmem:[%s16281_s4 + $0x1d0] ss:$8 sps:$4 sm:$0xff]  }
 0x13c   : > { %699 = vmatprep.mubr.bf16.mxu0 %v18323_v2  ;;  %1419 = vmatpush1.bf16.msra.mxu0 %v14026_v11  ;;  %v14070_v47 = vld [vmem:[%s16281_s4 + $0x1e4] ss:$8 sps:$4 sm:$0xff]   ;;  %v14068_v48 = vld [vmem:[%s16281_s4 + $0x1e0] ss:$8 sps:$4 sm:$0xff]   ;;  %v14073_v49 = vld [vmem:[%s16281_s4 + $0x1f4] ss:$8 sps:$4 sm:$0xff]  }
 0x13d   : > { %1420 = vmatprep.subr.bf16.mxu0 %v14031_v12  ;;  %v14071_v50 = vld [vmem:[%s16281_s4 + $0x1f0] ss:$8 sps:$4 sm:$0xff]   ;;  %v602_v54 = vld [vmem:[#allocation7] ss:$8 sm:$0x3] }
 0x13e   : > { %v16379_v56 = vrot.slane %v602_v54, %v16374_v53  ;;  %v16382_v57 = vrot.slane %v602_v54, %v16376_v55 }
 0x140   : > { %1421 = vmatpush1.bf16.msra.mxu0 %v14029_v15 }
 0x141   : > { %1422 = vmatprep.subr.bf16.mxu0 %v14034_v16 }
 0x143   : > { %11485 = vmatmul.mubr.msk.bf16.gmra.mrb[4].mxu0 %vm644_vm0, %v593_v17 }
 0x144   : > { %709 = vmatprep.mubr.bf16.mxu0 %v18323_v2  ;;  %1423 = vmatpush1.bf16.msra.mxu0 %v14032_v18 }
 0x145   : > { %1424 = vmatprep.subr.bf16.mxu0 %v14037_v19 }
 0x148   : > { %1425 = vmatpush1.bf16.msra.mxu0 %v14035_v22 }
 0x149   : > { %1426 = vmatprep.subr.bf16.mxu0 %v14040_v23 }
 0x14b   : > { %11486 = vmatmul.mubr.msk.bf16.gmra.mrb[8].mxu0 %vm644_vm0, %v594_v25 }
 0x14c   : > { %719 = vmatprep.mubr.bf16.mxu0 %v18323_v2  ;;  %1427 = vmatpush1.bf16.msra.mxu0 %v14038_v24 }
 0x14d   : > { %1428 = vmatprep.subr.bf16.mxu0 %v14043_v26 }
 0x150   : > { %1429 = vmatpush1.bf16.msra.mxu0 %v14041_v29 }
 0x151   : > { %1430 = vmatprep.subr.bf16.mxu0 %v14046_v30 }
 0x153   : > { %11487 = vmatmul.mubr.msk.bf16.gmra.mrb[12].mxu0 %vm644_vm0, %v595_v32 }
 0x154   : > { %1431 = vmatpush1.bf16.msra.mxu0 %v14044_v31 }
 0x155   : > { %1432 = vmatprep.subr.bf16.mxu0 %v14049_v33 }
 0x158   : > { %1433 = vmatpush1.bf16.msra.mxu0 %v14047_v34 }
 0x159   : > { %1434 = vmatprep.subr.bf16.mxu0 %v14052_v35 }
 0x15c   : > { %1435 = vmatpush1.bf16.msra.mxu0 %v14050_v36 }
 0x15d   : > { %1436 = vmatprep.subr.bf16.mxu0 %v14055_v37 }
 0x160   : > { %1437 = vmatpush1.bf16.msra.mxu0 %v14053_v38 }
 0x161   : > { %1438 = vmatprep.subr.bf16.mxu0 %v14058_v39 }
 0x164   : > { %1439 = vmatpush1.bf16.msra.mxu0 %v14056_v40 }
 0x165   : > { %1440 = vmatprep.subr.bf16.mxu0 %v14061_v41 }
 0x168   : > { %1441 = vmatpush1.bf16.msra.mxu0 %v14059_v42 }
 0x169   : > { %1442 = vmatprep.subr.bf16.mxu0 %v14064_v43 }
 0x16c   : > { %1443 = vmatpush1.bf16.msra.mxu0 %v14062_v44 }
 0x16d   : > { %1444 = vmatprep.subr.bf16.mxu0 %v14067_v45 }
 0x170   : > { %1445 = vmatpush1.bf16.msra.mxu0 %v14065_v46 }
 0x171   : > { %1446 = vmatprep.subr.bf16.mxu0 %v14070_v47 }
 0x174   : > { %1447 = vmatpush1.bf16.msra.mxu0 %v14068_v48 }
 0x175   : > { %1448 = vmatprep.subr.bf16.mxu0 %v14073_v49 }
 0x178   : > { %1449 = vmatpush1.bf16.msra.mxu0 %v14071_v50 }
 0x20e   : > { %v691_v58 = vpop.f32.mrb[0].mxu0 }
 0x20f   : > { %v692_v59 = vadd.f32 %v691_v58, %v16379_v56  ;;  %v693_v60 = vpop.f32.mrb[1].mxu0 }
 0x210   : > { %v694_v61 = vadd.f32 %v693_v60, %v16382_v57  ;;  %v695_v62 = vpop.f32.mrb[2].mxu0 }
 0x211   : > { %vm730_vm1 = vcmp.ge.f32.partialorder %v692_v59, 0.0  ;;  %v746_v63 = vmul.f32 0.2, %v692_v59  ;;  %v696_v0 = vadd.f32 %v695_v62, %v16379_v56  ;;  %v697_v1 = vpop.f32.mrb[3].mxu0 }
 0x212   : > { %vm731_vm2 = vcmp.ge.f32.partialorder %v694_v61, 0.0  ;;  %v747_v3 = vmul.f32 0.2, %v694_v61  ;;  %v698_v4 = vadd.f32 %v697_v1, %v16382_v57 }
 0x213   : > { %v762_v5 = vsel %vm730_vm1, %v692_v59, %v746_v63  ;;  %vm732_vm3 = vcmp.ge.f32.partialorder %v696_v0, 0.0  ;;  %v748_v6 = vmul.f32 0.2, %v696_v0  ;;  %vm899_vm1 = vcmask 523264  }
 0x214   : > { %v778_v7 = vmul.f32 1.4142135, %v762_v5  ;;  %v763_v8 = vsel %vm731_vm2, %v694_v61, %v747_v3  ;;  %vm733_vm4 = vcmp.ge.f32.partialorder %v698_v4, 0.0  ;;  %v749_v9 = vmul.f32 0.2, %v698_v4 }
 0x215   : > { %v779_v10 = vmul.f32 1.4142135, %v763_v8  ;;  %v764_v11 = vsel %vm732_vm3, %v696_v0, %v748_v6 }
 0x216   : > { %v780_v12 = vmul.f32 1.4142135, %v764_v11  ;;  %v765_v13 = vsel %vm733_vm4, %v698_v4, %v749_v9  ;;  %v701_v14 = vpop.f32.mrb[4].mxu0  ;;  %v11488_v18 = vclamps-f32 %v778_v7, 256.0 }
 0x217   : > { %v781_v15 = vmul.f32 1.4142135, %v765_v13  ;;  %v702_v16 = vadd.f32 %v701_v14, %v16379_v56  ;;  %v703_v17 = vpop.f32.mrb[5].mxu0  ;;  %v11489_v19 = vclamps-f32 %v779_v10, 256.0 }
 0x218   : > { %v11490_v20 = vclamps-f32 %v780_v12, 256.0  ;;  %v704_v21 = vadd.f32 %v703_v17, %v16382_v57  ;;  %v705_v22 = vpop.f32.mrb[6].mxu0 }
 0x219   : > { %v11491_v23 = vclamps-f32 %v781_v15, 256.0  ;;  %vm734_vm5 = vcmp.ge.f32.partialorder %v702_v16, 0.0  ;;  %v750_v24 = vmul.f32 0.2, %v702_v16  ;;  %v706_v25 = vadd.f32 %v705_v22, %v16379_v56  ;;  %v707_v26 = vpop.f32.mrb[7].mxu0 }
 0x21a   : > { %v16391_v27 = vpack.c.bf16 %v11490_v20, %v11488_v18  ;;  %vm735_vm6 = vcmp.ge.f32.partialorder %v704_v21, 0.0  ;;  %v751_v28 = vmul.f32 0.2, %v704_v21  ;;  %v708_v29 = vadd.f32 %v707_v26, %v16382_v57 }
 0x21b   : > { %v16394_v30 = vpack.c.bf16 %v11491_v23, %v11489_v19  ;;  %v766_v31 = vsel %vm734_vm5, %v702_v16, %v750_v24  ;;  %vm736_vm7 = vcmp.ge.f32.partialorder %v706_v25, 0.0  ;;  %v752_v32 = vmul.f32 0.2, %v706_v25 }
 0x21c   : > { %v782_v33 = vmul.f32 1.4142135, %v766_v31  ;;  %v767_v34 = vsel %vm735_vm6, %v704_v21, %v751_v28  ;;  %vm737_vm8 = vcmp.ge.f32.partialorder %v708_v29, 0.0  ;;  %v753_v35 = vmul.f32 0.2, %v708_v29 }
 0x21d   : > { %v783_v36 = vmul.f32 1.4142135, %v767_v34  ;;  %v768_v37 = vsel %vm736_vm7, %v706_v25, %v752_v32  ;;  %912 = vmatprep.subr.bf16.mxu1 %v16394_v30  ;;  %1450 = vmatprep.mubr.bf16.mxu0 %v16394_v30 }
 0x21e   : > { %v784_v38 = vmul.f32 1.4142135, %v768_v37  ;;  %v769_v39 = vsel %vm737_vm8, %v708_v29, %v753_v35  ;;  %v711_v40 = vpop.f32.mrb[8].mxu0  ;;  %913 = vmatpush1.bf16.msra.mxu1 %v16391_v27  ;;  %1451 = vmatmul.mubr.bf16.vlgmr.msra.gmra.mrb[16].mxu0 %v16391_v27  ;;  %v11492_v44 = vclamps-f32 %v782_v33, 256.0 }
 0x21f   : > { %v785_v41 = vmul.f32 1.4142135, %v769_v39  ;;  %v712_v42 = vadd.f32 %v711_v40, %v16379_v56  ;;  %v713_v43 = vpop.f32.mrb[9].mxu0  ;;  %v11493_v45 = vclamps-f32 %v783_v36, 256.0  ;;  %v14077_v40 = vld [vmem:[%s16281_s4 + $0x4] ss:$8 sps:$4 sm:$0xff]  }
 0x220   : > { %v11494_v46 = vclamps-f32 %v784_v38, 256.0  ;;  %v714_v47 = vadd.f32 %v713_v43, %v16382_v57  ;;  %v715_v48 = vpop.f32.mrb[10].mxu0  ;;  %v14080_v43 = vld [vmem:[%s16281_s4 + $0x14] ss:$8 sps:$4 sm:$0xff]  }
 0x221   : > { %v11495_v49 = vclamps-f32 %v785_v41, 256.0  ;;  %vm738_vm9 = vcmp.ge.f32.partialorder %v712_v42, 0.0  ;;  %v754_v50 = vmul.f32 0.2, %v712_v42  ;;  %v716_v51 = vadd.f32 %v715_v48, %v16379_v56  ;;  %v717_v52 = vpop.f32.mrb[11].mxu0  ;;  %v14074_v41 = vld [vmem:[#allocation10] sm:$0xff]  }
 0x222   : > { %v16403_v54 = vpack.c.bf16 %v11494_v46, %v11492_v44  ;;  %vm739_vm10 = vcmp.ge.f32.partialorder %v714_v47, 0.0  ;;  %v755_v58 = vmul.f32 0.2, %v714_v47  ;;  %v718_v59 = vadd.f32 %v717_v52, %v16382_v57  ;;  %v14078_v44 = vld [vmem:[%s16281_s4 + $0x10] ss:$8 sps:$4 sm:$0xff]  }
 0x223   : > { %v16406_v60 = vpack.c.bf16 %v11495_v49, %v11493_v45  ;;  %v770_v61 = vsel %vm738_vm9, %v712_v42, %v754_v50  ;;  %vm740_vm11 = vcmp.ge.f32.partialorder %v716_v51, 0.0  ;;  %v756_v62 = vmul.f32 0.2, %v716_v51  ;;  %v14075_v42 = vld [vmem:[%s16281_s4] ss:$8 sps:$4 sm:$0xff]   ;;  %v14081_v46 = vld [vmem:[#allocation10 + $0x8] sm:$0xff]  }
 0x224   : > { %v786_v63 = vmul.f32 1.4142135, %v770_v61  ;;  %v771_v0 = vsel %vm739_vm10, %v714_v47, %v755_v58  ;;  %vm741_vm12 = vcmp.ge.f32.partialorder %v718_v59, 0.0  ;;  %v757_v1 = vmul.f32 0.2, %v718_v59 }
 0x225   : > { %v787_v3 = vmul.f32 1.4142135, %v771_v0  ;;  %v772_v4 = vsel %vm740_vm11, %v716_v51, %v756_v62  ;;  %914 = vmatprep.subr.bf16.mxu1 %v16406_v60  ;;  %1460 = vmatprep.mubr.bf16.mxu0 %v16406_v60  ;;  %v14084_v45 = vld [vmem:[%s16281_s4 + $0x24] ss:$8 sps:$4 sm:$0xff]   ;;  %v14082_v47 = vld [vmem:[%s16281_s4 + $0x20] ss:$8 sps:$4 sm:$0xff]  }
 0x226   : > { %v788_v5 = vmul.f32 1.4142135, %v772_v4  ;;  %v773_v6 = vsel %vm741_vm12, %v718_v59, %v757_v1  ;;  %v721_v7 = vpop.f32.mrb[12].mxu0  ;;  %915 = vmatpush1.bf16.msra.mxu1 %v16403_v54  ;;  %1461 = vmatmul.mubr.bf16.gmra.mrb[20].mxu0 %v16403_v54  ;;  %v11496_v11 = vclamps-f32 %v786_v63, 256.0  ;;  %v14087_v48 = vld [vmem:[%s16281_s4 + $0x34] ss:$8 sps:$4 sm:$0xff]  }
 0x227   : > { %v789_v8 = vmul.f32 1.4142135, %v773_v6  ;;  %v722_v9 = vadd.f32 %v721_v7, %v16379_v56  ;;  %v723_v10 = vpop.f32.mrb[13].mxu0  ;;  %v11497_v12 = vclamps-f32 %v787_v3, 256.0  ;;  %v14085_v49 = vld [vmem:[%s16281_s4 + $0x30] ss:$8 sps:$4 sm:$0xff]  }
 0x228   : > { %v11498_v13 = vclamps-f32 %v788_v5, 256.0  ;;  %v724_v14 = vadd.f32 %v723_v10, %v16382_v57  ;;  %v725_v15 = vpop.f32.mrb[14].mxu0  ;;  %v14091_v50 = vld [vmem:[%s16281_s4 + $0x44] ss:$8 sps:$4 sm:$0xff]   ;;  %v14089_v52 = vld [vmem:[%s16281_s4 + $0x40] ss:$8 sps:$4 sm:$0xff]  }
 0x229   : > { %v11499_v16 = vclamps-f32 %v789_v8, 256.0  ;;  %vm742_vm13 = vcmp.ge.f32.partialorder %v722_v9, 0.0  ;;  %v758_v17 = vmul.f32 0.2, %v722_v9  ;;  %v726_v18 = vadd.f32 %v725_v15, %v16379_v56  ;;  %v727_v19 = vpop.f32.mrb[15].mxu0  ;;  %v14088_v51 = vld [vmem:[#allocation10 + $0x10] sm:$0xff]  }
 0x22a   : > { %v16415_v20 = vpack.c.bf16 %v11498_v13, %v11496_v11  ;;  %vm743_vm14 = vcmp.ge.f32.partialorder %v724_v14, 0.0  ;;  %v759_v21 = vmul.f32 0.2, %v724_v14  ;;  %v728_v22 = vadd.f32 %v727_v19, %v16382_v57  ;;  %v14094_v58 = vld [vmem:[%s16281_s4 + $0x54] ss:$8 sps:$4 sm:$0xff]   ;;  %v14095_v62 = vld [vmem:[#allocation10 + $0x18] sm:$0xff]  }
 0x22b   : > { %v16418_v23 = vpack.c.bf16 %v11499_v16, %v11497_v12  ;;  %v774_v24 = vsel %vm742_vm13, %v722_v9, %v758_v17  ;;  %vm744_vm15 = vcmp.ge.f32.partialorder %v726_v18, 0.0  ;;  %v760_v25 = vmul.f32 0.2, %v726_v18  ;;  %v14092_v59 = vld [vmem:[%s16281_s4 + $0x50] ss:$8 sps:$4 sm:$0xff]  }
 0x22c   : > { %v790_v26 = vmul.f32 1.4142135, %v774_v24  ;;  %v775_v28 = vsel %vm743_vm14, %v724_v14, %v759_v21  ;;  %vm745_vm0 = vcmp.ge.f32.partialorder %v728_v22, 0.0  ;;  %v761_v29 = vmul.f32 0.2, %v728_v22 }
 0x22d   : > { %v791_v31 = vmul.f32 1.4142135, %v775_v28  ;;  %v776_v32 = vsel %vm744_vm15, %v726_v18, %v760_v25  ;;  %916 = vmatprep.subr.bf16.mxu1 %v16418_v23  ;;  %1470 = vmatprep.mubr.bf16.mxu0 %v16418_v23  ;;  %v14098_v61 = vld [vmem:[%s16281_s4 + $0x64] ss:$8 sps:$4 sm:$0xff]   ;;  %v14096_v63 = vld [vmem:[%s16281_s4 + $0x60] ss:$8 sps:$4 sm:$0xff]  }
 0x22e   : > { %v792_v56 = vmul.f32 1.4142135, %v776_v32  ;;  %v777_v33 = vsel %vm745_vm0, %v728_v22, %v761_v29  ;;  %917 = vmatpush1.bf16.msra.mxu1 %v16415_v20  ;;  %1471 = vmatmul.mubr.bf16.gmra.mrb[24].mxu0 %v16415_v20  ;;  %v11500_v34 = vclamps-f32 %v790_v26, 256.0  ;;  %v14101_v0 = vld [vmem:[%s16281_s4 + $0x74] ss:$8 sps:$4 sm:$0xff]  }
 0x22f   : > { %v793_v57 = vmul.f32 1.4142135, %v777_v33  ;;  %v11501_v36 = vclamps-f32 %v791_v31, 256.0  ;;  %v14099_v1 = vld [vmem:[%s16281_s4 + $0x70] ss:$8 sps:$4 sm:$0xff]  }
 0x230   : > { %v11502_v35 = vclamps-f32 %v792_v56, 256.0  ;;  %v14104_v3 = vld [vmem:[%s16281_s4 + $0x84] ss:$8 sps:$4 sm:$0xff]   ;;  %v14102_v4 = vld [vmem:[%s16281_s4 + $0x80] ss:$8 sps:$4 sm:$0xff]  }
 0x231   : > { %v11503_v37 = vclamps-f32 %v793_v57, 256.0  ;;  %v14107_v5 = vld [vmem:[%s16281_s4 + $0x94] ss:$8 sps:$4 sm:$0xff]   ;;  %v14105_v6 = vld [vmem:[%s16281_s4 + $0x90] ss:$8 sps:$4 sm:$0xff]  }
 0x232   : > { %v16424_v38 = vpack.c.bf16 %v11502_v35, %v11500_v34  ;;  %v14110_v7 = vld [vmem:[%s16281_s4 + $0xa4] ss:$8 sps:$4 sm:$0xff]   ;;  %v14108_v8 = vld [vmem:[%s16281_s4 + $0xa0] ss:$8 sps:$4 sm:$0xff]   ;;  %v14113_v9 = vld [vmem:[%s16281_s4 + $0xb4] ss:$8 sps:$4 sm:$0xff]  }
 0x233   : > { %v16426_v39 = vpack.c.bf16 %v11503_v37, %v11501_v36  ;;  %v14111_v10 = vld [vmem:[%s16281_s4 + $0xb0] ss:$8 sps:$4 sm:$0xff]   ;;  %v14116_v11 = vld [vmem:[%s16281_s4 + $0xc4] ss:$8 sps:$4 sm:$0xff]   ;;  %v14114_v12 = vld [vmem:[%s16281_s4 + $0xc0] ss:$8 sps:$4 sm:$0xff]  }
 0x234   : > { %v14119_v13 = vld [vmem:[%s16281_s4 + $0xd4] ss:$8 sps:$4 sm:$0xff]   ;;  %v14117_v14 = vld [vmem:[%s16281_s4 + $0xd0] ss:$8 sps:$4 sm:$0xff]   ;;  %v14122_v15 = vld [vmem:[%s16281_s4 + $0xe4] ss:$8 sps:$4 sm:$0xff]  }
 0x235   : > { %918 = vmatprep.subr.bf16.mxu1 %v16426_v39  ;;  %1480 = vmatprep.mubr.bf16.mxu0 %v16426_v39  ;;  %v14120_v16 = vld [vmem:[%s16281_s4 + $0xe0] ss:$8 sps:$4 sm:$0xff]   ;;  %v14125_v17 = vld [vmem:[%s16281_s4 + $0xf4] ss:$8 sps:$4 sm:$0xff]   ;;  %v14123_v18 = vld [vmem:[%s16281_s4 + $0xf0] ss:$8 sps:$4 sm:$0xff]  }
 0x236   : > { %919 = vmatpush1.bf16.msra.mxu1 %v16424_v38  ;;  %1481 = vmatmul.mubr.bf16.gmra.mrb[28].mxu0 %v16424_v38  ;;  %v14130_v19 = vld [vmem:[%s16281_s4 + $0x200] ss:$8 sps:$4 sm:$0xff]   ;;  %v14132_v21 = vld [vmem:[%s16281_s4 + $0x204] ss:$8 sps:$4 sm:$0xff]   ;;  %v14135_v22 = vld [vmem:[%s16281_s4 + $0x214] ss:$8 sps:$4 sm:$0xff]  }
 0x237   : > { %1185 = vmatprep.subr.bf16.mxu1 %v14077_v40  ;;  %1806 = vmatprep.subr.bf16.mxu0 %v14132_v21  ;;  %v14133_v24 = vld [vmem:[%s16281_s4 + $0x210] ss:$8 sps:$4 sm:$0xff]   ;;  %v14138_v25 = vld [vmem:[%s16281_s4 + $0x224] ss:$8 sps:$4 sm:$0xff]   ;;  %v14136_v26 = vld [vmem:[%s16281_s4 + $0x220] ss:$8 sps:$4 sm:$0xff]  }
 0x238   : > { %1807 = vmatpush1.bf16.msra.mxu0 %v14130_v19  ;;  %v14141_v28 = vld [vmem:[%s16281_s4 + $0x234] ss:$8 sps:$4 sm:$0xff]   ;;  %v14139_v29 = vld [vmem:[%s16281_s4 + $0x230] ss:$8 sps:$4 sm:$0xff]   ;;  %v14144_v31 = vld [vmem:[%s16281_s4 + $0x244] ss:$8 sps:$4 sm:$0xff]  }
 0x239   : > { %11540 = vmatmul.mubr.msk.bf16.vlgmr.msra.gmra.mrb[0].mxu1 %vm899_vm1, %v14074_v41  ;;  %1808 = vmatprep.subr.bf16.mxu0 %v14135_v22  ;;  %v14142_v32 = vld [vmem:[%s16281_s4 + $0x240] ss:$8 sps:$4 sm:$0xff]   ;;  %v14147_v56 = vld [vmem:[%s16281_s4 + $0x254] ss:$8 sps:$4 sm:$0xff]   ;;  %v14145_v33 = vld [vmem:[%s16281_s4 + $0x250] ss:$8 sps:$4 sm:$0xff]  }
 0x23a   : > { %1186 = vmatpush1.bf16.msra.mxu1 %v14075_v42  ;;  %954 = vmatprep.mubr.bf16.mxu1 %v18323_v2  ;;  %v14150_v57 = vld [vmem:[%s16281_s4 + $0x264] ss:$8 sps:$4 sm:$0xff]   ;;  %v14148_v34 = vld [vmem:[%s16281_s4 + $0x260] ss:$8 sps:$4 sm:$0xff]   ;;  %v14171_v21 = vld [vmem:[%s16281_s4 + $0x2d4] ss:$8 sps:$4 sm:$0xff]  }
 0x23b   : > { %1187 = vmatprep.subr.bf16.mxu1 %v14080_v43  ;;  %v14166_v19 = vld [vmem:[%s16281_s4 + $0x2c0] ss:$8 sps:$4 sm:$0xff]   ;;  %v14169_v22 = vld [vmem:[%s16281_s4 + $0x2d0] ss:$8 sps:$4 sm:$0xff]  }
 0x23c   : > { %1809 = vmatpush1.bf16.msra.mxu0 %v14133_v24  ;;  %v14174_v24 = vld [vmem:[%s16281_s4 + $0x2e4] ss:$8 sps:$4 sm:$0xff]  }
 0x23d   : > { %1810 = vmatprep.subr.bf16.mxu0 %v14138_v25  ;;  %v14172_v25 = vld [vmem:[%s16281_s4 + $0x2e0] ss:$8 sps:$4 sm:$0xff]  }
 0x23e   : > { %1188 = vmatpush1.bf16.msra.mxu1 %v14078_v44 }
 0x23f   : > { %1189 = vmatprep.subr.bf16.mxu1 %v14084_v45 }
 0x240   : > { %1811 = vmatpush1.bf16.msra.mxu0 %v14136_v26  ;;  %v14177_v26 = vld [vmem:[%s16281_s4 + $0x2f4] ss:$8 sps:$4 sm:$0xff]  }
 0x241   : > { %11541 = vmatmul.mubr.msk.bf16.gmra.mrb[4].mxu1 %vm899_vm1, %v14081_v46  ;;  %1812 = vmatprep.subr.bf16.mxu0 %v14141_v28  ;;  %v14175_v28 = vld [vmem:[%s16281_s4 + $0x2f0] ss:$8 sps:$4 sm:$0xff]  }
 0x242   : > { %1190 = vmatpush1.bf16.msra.mxu1 %v14082_v47  ;;  %964 = vmatprep.mubr.bf16.mxu1 %v18323_v2 }
 0x243   : > { %1191 = vmatprep.subr.bf16.mxu1 %v14087_v48 }
 0x244   : > { %1813 = vmatpush1.bf16.msra.mxu0 %v14139_v29 }
 0x245   : > { %1814 = vmatprep.subr.bf16.mxu0 %v14144_v31 }
 0x246   : > { %1192 = vmatpush1.bf16.msra.mxu1 %v14085_v49 }
 0x247   : > { %1193 = vmatprep.subr.bf16.mxu1 %v14091_v50 }
 0x248   : > { %1815 = vmatpush1.bf16.msra.mxu0 %v14142_v32 }
 0x249   : > { %11542 = vmatmul.mubr.msk.bf16.gmra.mrb[8].mxu1 %vm899_vm1, %v14088_v51  ;;  %1816 = vmatprep.subr.bf16.mxu0 %v14147_v56 }
 0x24a   : > { %1194 = vmatpush1.bf16.msra.mxu1 %v14089_v52  ;;  %974 = vmatprep.mubr.bf16.mxu1 %v18323_v2 }
 0x24b   : > { %1195 = vmatprep.subr.bf16.mxu1 %v14094_v58 }
 0x24c   : > { %1817 = vmatpush1.bf16.msra.mxu0 %v14145_v33 }
 0x24d   : > { %1818 = vmatprep.subr.bf16.mxu0 %v14150_v57 }
 0x24e   : > { %1196 = vmatpush1.bf16.msra.mxu1 %v14092_v59 }
 0x24f   : > { %1197 = vmatprep.subr.bf16.mxu1 %v14098_v61 }
 0x250   : > { %1819 = vmatpush1.bf16.msra.mxu0 %v14148_v34 }
 0x251   : > { %11543 = vmatmul.mubr.msk.bf16.gmra.mrb[12].mxu1 %vm899_vm1, %v14095_v62 }
 0x252   : > { %1198 = vmatpush1.bf16.msra.mxu1 %v14096_v63 }
 0x253   : > { %1199 = vmatprep.subr.bf16.mxu1 %v14101_v0 }
 0x256   : > { %1200 = vmatpush1.bf16.msra.mxu1 %v14099_v1 }
 0x257   : > { %1201 = vmatprep.subr.bf16.mxu1 %v14104_v3 }
 0x25a   : > { %1202 = vmatpush1.bf16.msra.mxu1 %v14102_v4  ;;  %v14126_v4 = vld [vmem:[#allocation10 + $0x20] sm:$0xff]  }
 0x25b   : > { %1203 = vmatprep.subr.bf16.mxu1 %v14107_v5  ;;  %v14127_v5 = vld [vmem:[#allocation10 + $0x28] sm:$0xff]  }
 0x25e   : > { %1204 = vmatpush1.bf16.msra.mxu1 %v14105_v6  ;;  %v14128_v6 = vld [vmem:[#allocation10 + $0x30] sm:$0xff]  }
 0x25f   : > { %1205 = vmatprep.subr.bf16.mxu1 %v14110_v7  ;;  %v14129_v7 = vld [vmem:[#allocation10 + $0x38] sm:$0xff]  }
 0x262   : > { %1206 = vmatpush1.bf16.msra.mxu1 %v14108_v8  ;;  %v14153_v8 = vld [vmem:[%s16281_s4 + $0x274] ss:$8 sps:$4 sm:$0xff]  }
 0x263   : > { %1207 = vmatprep.subr.bf16.mxu1 %v14113_v9  ;;  %v14151_v9 = vld [vmem:[%s16281_s4 + $0x270] ss:$8 sps:$4 sm:$0xff]   ;;  %1820 = vmatprep.subr.bf16.mxu0 %v14153_v8 }
 0x264   : > { %1821 = vmatpush1.bf16.msra.mxu0 %v14151_v9 }
 0x266   : > { %1208 = vmatpush1.bf16.msra.mxu1 %v14111_v10  ;;  %v14156_v10 = vld [vmem:[%s16281_s4 + $0x284] ss:$8 sps:$4 sm:$0xff]  }
 0x267   : > { %1209 = vmatprep.subr.bf16.mxu1 %v14116_v11  ;;  %v14154_v11 = vld [vmem:[%s16281_s4 + $0x280] ss:$8 sps:$4 sm:$0xff]   ;;  %1822 = vmatprep.subr.bf16.mxu0 %v14156_v10 }
 0x268   : > { %1823 = vmatpush1.bf16.msra.mxu0 %v14154_v11 }
 0x26a   : > { %1210 = vmatpush1.bf16.msra.mxu1 %v14114_v12  ;;  %v14159_v12 = vld [vmem:[%s16281_s4 + $0x294] ss:$8 sps:$4 sm:$0xff]  }
 0x26b   : > { %1211 = vmatprep.subr.bf16.mxu1 %v14119_v13  ;;  %v14157_v13 = vld [vmem:[%s16281_s4 + $0x290] ss:$8 sps:$4 sm:$0xff]   ;;  %1824 = vmatprep.subr.bf16.mxu0 %v14159_v12 }
 0x26c   : > { %1825 = vmatpush1.bf16.msra.mxu0 %v14157_v13  ;;  %v835_v13 = vld [vmem:[#allocation7 + $0x1] ss:$8 sm:$0x3] }
 0x26e   : > { %1212 = vmatpush1.bf16.msra.mxu1 %v14117_v14  ;;  %v14162_v14 = vld [vmem:[%s16281_s4 + $0x2a4] ss:$8 sps:$4 sm:$0xff]  }
 0x26f   : > { %1213 = vmatprep.subr.bf16.mxu1 %v14122_v15  ;;  %v14160_v15 = vld [vmem:[%s16281_s4 + $0x2a0] ss:$8 sps:$4 sm:$0xff]   ;;  %1826 = vmatprep.subr.bf16.mxu0 %v14162_v14  ;;  %v16546_v14 = vrot.slane %v835_v13, %v16374_v53 }
 0x270   : > { %1827 = vmatpush1.bf16.msra.mxu0 %v14160_v15 }
 0x272   : > { %1214 = vmatpush1.bf16.msra.mxu1 %v14120_v16  ;;  %v14165_v16 = vld [vmem:[%s16281_s4 + $0x2b4] ss:$8 sps:$4 sm:$0xff]  }
 0x273   : > { %1215 = vmatprep.subr.bf16.mxu1 %v14125_v17  ;;  %v14163_v17 = vld [vmem:[%s16281_s4 + $0x2b0] ss:$8 sps:$4 sm:$0xff]   ;;  %1828 = vmatprep.subr.bf16.mxu0 %v14165_v16  ;;  %v16549_v16 = vrot.slane %v835_v13, %v16376_v55 }
 0x274   : > { %1829 = vmatpush1.bf16.msra.mxu0 %v14163_v17 }
 0x276   : > { %1216 = vmatpush1.bf16.msra.mxu1 %v14123_v18  ;;  %v14168_v18 = vld [vmem:[%s16281_s4 + $0x2c4] ss:$8 sps:$4 sm:$0xff]  }
 0x277   : > { %1532 = vmatprep.subr.bf16.mxu1 %v16394_v30  ;;  %1830 = vmatprep.subr.bf16.mxu0 %v14168_v18 }
 0x278   : > { %1831 = vmatpush1.bf16.msra.mxu0 %v14166_v19 }
 0x279   : > { %1832 = vmatprep.subr.bf16.mxu0 %v14171_v21 }
 0x27c   : > { %1833 = vmatpush1.bf16.msra.mxu0 %v14169_v22 }
 0x27d   : > { %1834 = vmatprep.subr.bf16.mxu0 %v14174_v24 }
 0x280   : > { %1835 = vmatpush1.bf16.msra.mxu0 %v14172_v25 }
 0x281   : > { %1836 = vmatprep.subr.bf16.mxu0 %v14177_v26 }
 0x284   : > { %1837 = vmatpush1.bf16.msra.mxu0 %v14175_v28 }
 0x30c   : > { %v946_v35 = vpop.f32.mrb[0].mxu1 }
 0x30d   : > { %v948_v36 = vpop.f32.mrb[1].mxu1 }
 0x30e   : > { %v950_v37 = vpop.f32.mrb[2].mxu1 }
 0x30f   : > { %v985_v40 = vpack.c.bf16 %v950_v37, %v946_v35  ;;  %v952_v41 = vpop.f32.mrb[3].mxu1 }
 0x310   : > { %v986_v42 = vpack.c.bf16 %v952_v41, %v948_v36 }
 0x312   : > { %1217 = vmatprep.mubr.bf16.mxu1 %v986_v42 }
 0x313   : > { %1218 = vmatmul.mubr.bf16.vlgmr.msra.gmra.mrb[16].mxu1 %v985_v40 }
 0x314   : > { %1533 = vmatpush1.bf16.msra.mxu1 %v16391_v27  ;;  %v956_v43 = vpop.f32.mrb[4].mxu1 }
 0x315   : > { %1534 = vmatprep.subr.bf16.mxu1 %v16406_v60  ;;  %v958_v44 = vpop.f32.mrb[5].mxu1 }
 0x316   : > { %v960_v45 = vpop.f32.mrb[6].mxu1 }
 0x317   : > { %v987_v46 = vpack.c.bf16 %v960_v45, %v956_v43  ;;  %v962_v47 = vpop.f32.mrb[7].mxu1 }
 0x318   : > { %v988_v48 = vpack.c.bf16 %v962_v47, %v958_v44  ;;  %1535 = vmatpush1.bf16.msra.mxu1 %v16403_v54 }
 0x319   : > { %1536 = vmatprep.subr.bf16.mxu1 %v16418_v23 }
 0x31a   : > { %1227 = vmatprep.mubr.bf16.mxu1 %v988_v48 }
 0x31b   : > { %1228 = vmatmul.mubr.bf16.gmra.mrb[20].mxu1 %v987_v46 }
 0x31c   : > { %1537 = vmatpush1.bf16.msra.mxu1 %v16415_v20  ;;  %v966_v49 = vpop.f32.mrb[8].mxu1 }
 0x31d   : > { %1538 = vmatprep.subr.bf16.mxu1 %v16426_v39  ;;  %v968_v50 = vpop.f32.mrb[9].mxu1 }
 0x31e   : > { %v970_v51 = vpop.f32.mrb[10].mxu1 }
 0x31f   : > { %v989_v52 = vpack.c.bf16 %v970_v51, %v966_v49  ;;  %v972_v58 = vpop.f32.mrb[11].mxu1 }
 0x320   : > { %v990_v59 = vpack.c.bf16 %v972_v58, %v968_v50  ;;  %1539 = vmatpush1.bf16.msra.mxu1 %v16424_v38 }
 0x322   : > { %1237 = vmatprep.mubr.bf16.mxu1 %v990_v59 }
 0x323   : > { %1238 = vmatmul.mubr.bf16.gmra.mrb[24].mxu1 %v989_v52 }
 0x324   : > { %v976_v61 = vpop.f32.mrb[12].mxu1 }
 0x325   : > { %v978_v62 = vpop.f32.mrb[13].mxu1 }
 0x326   : > { %v980_v63 = vpop.f32.mrb[14].mxu1 }
 0x327   : > { %v991_v0 = vpack.c.bf16 %v980_v63, %v976_v61  ;;  %v982_v1 = vpop.f32.mrb[15].mxu1 }
 0x328   : > { %v992_v3 = vpack.c.bf16 %v982_v1, %v978_v62 }
 0x32a   : > { %1247 = vmatprep.mubr.bf16.mxu1 %v992_v3 }
 0x32b   : > { %1248 = vmatmul.mubr.bf16.gmra.mrb[28].mxu1 %v991_v0 }
 0x32c   : > { %1564 = vmatprep.mubr.bf16.mxu1 %v18323_v2 }
 0x333   : > { %11612 = vmatmul.mubr.msk.bf16.vlgmr.msra.gmra.mrb[32].mxu1 %vm899_vm1, %v14126_v4 }
 0x334   : > { %1574 = vmatprep.mubr.bf16.mxu1 %v18323_v2 }
 0x33b   : > { %11613 = vmatmul.mubr.msk.bf16.gmra.mrb[36].mxu1 %vm899_vm1, %v14127_v5 }
 0x33c   : > { %1584 = vmatprep.mubr.bf16.mxu1 %v18323_v2 }
 0x343   : > { %11614 = vmatmul.mubr.msk.bf16.gmra.mrb[40].mxu1 %vm899_vm1, %v14128_v6 }
 0x344   : > { %1594 = vmatprep.mubr.bf16.mxu1 %v18323_v2 }
 0x34b   : > { %11615 = vmatmul.mubr.msk.bf16.gmra.mrb[44].mxu1 %vm899_vm1, %v14129_v7 }
 0x34c   : > { %2189 = vmatprep.mubr.bf16.mxu1 %v18323_v2 }
 0x3e6   : > { %v1219_v29 = vpop.f32.mrb[16].mxu1 }
 0x3e7   : > { %v1221_v31 = vpop.f32.mrb[17].mxu1 }
 0x3e8   : > { %v1223_v32 = vpop.f32.mrb[18].mxu1 }
 0x3e9   : > { %v1225_v56 = vpop.f32.mrb[19].mxu1 }
 0x3ee   : > { %v16520_v33 = vpop.f32.mrb[20].mxu1 }
 0x3ef   : > { %v16522_v57 = vpop.f32.mrb[21].mxu1 }
 0x3f0   : > { %v16524_v34 = vpop.f32.mrb[22].mxu1 }
 0x3f1   : > { %v16526_v35 = vpop.f32.mrb[23].mxu1 }
 0x3f6   : > { %v16528_v36 = vpop.f32.mrb[24].mxu1 }
 0x3f7   : > { %v16530_v37 = vpop.f32.mrb[25].mxu1 }
 0x3f8   : > { %v16532_v40 = vpop.f32.mrb[26].mxu1 }
 0x3f9   : > { %v16534_v41 = vpop.f32.mrb[27].mxu1 }
 0x3fe   : > { %v16536_v42 = vpop.f32.mrb[28].mxu1 }
 0x3ff   : > { %v16538_v43 = vpop.f32.mrb[29].mxu1 }
 0x400   : > { %v16540_v44 = vpop.f32.mrb[30].mxu1 }
 0x401   : > { %v16542_v45 = vpop.f32.mrb[31].mxu1 }
 0x406   : > { %v1566_v46 = vpop.f32.mrb[32].mxu1 }
 0x407   : > { %v1568_v47 = vpop.f32.mrb[33].mxu1 }
 0x408   : > { %v1570_v48 = vpop.f32.mrb[34].mxu1 }
 0x409   : > { %v1605_v49 = vpack.c.bf16 %v1570_v48, %v1566_v46  ;;  %v1572_v50 = vpop.f32.mrb[35].mxu1 }
 0x40a   : > { %v1606_v51 = vpack.c.bf16 %v1572_v50, %v1568_v47 }
 0x40c   : > { %1838 = vmatprep.mubr.bf16.mxu0 %v1606_v51 }
 0x40d   : > { %1839 = vmatmul.mubr.bf16.vlgmr.msra.gmra.mrb[16].mxu0 %v1605_v49 }
 0x40e   : > { %v1576_v52 = vpop.f32.mrb[36].mxu1 }
 0x40f   : > { %v1578_v58 = vpop.f32.mrb[37].mxu1 }
 0x410   : > { %v1580_v59 = vpop.f32.mrb[38].mxu1 }
 0x411   : > { %v1607_v61 = vpack.c.bf16 %v1580_v59, %v1576_v52  ;;  %v1582_v62 = vpop.f32.mrb[39].mxu1 }
 0x412   : > { %v1608_v63 = vpack.c.bf16 %v1582_v62, %v1578_v58 }
 0x414   : > { %1848 = vmatprep.mubr.bf16.mxu0 %v1608_v63 }
 0x415   : > { %1849 = vmatmul.mubr.bf16.gmra.mrb[20].mxu0 %v1607_v61 }
 0x416   : > { %v1586_v0 = vpop.f32.mrb[40].mxu1 }
 0x417   : > { %v1588_v1 = vpop.f32.mrb[41].mxu1 }
 0x418   : > { %v1590_v3 = vpop.f32.mrb[42].mxu1 }
 0x419   : > { %v1609_v4 = vpack.c.bf16 %v1590_v3, %v1586_v0  ;;  %v1592_v5 = vpop.f32.mrb[43].mxu1 }
 0x41a   : > { %v1610_v6 = vpack.c.bf16 %v1592_v5, %v1588_v1 }
 0x41c   : > { %1858 = vmatprep.mubr.bf16.mxu0 %v1610_v6 }
 0x41d   : > { %1859 = vmatmul.mubr.bf16.gmra.mrb[24].mxu0 %v1609_v4 }
 0x41e   : > { %v1596_v7 = vpop.f32.mrb[44].mxu1 }
 0x41f   : > { %v1598_v8 = vpop.f32.mrb[45].mxu1 }
 0x420   : > { %v1600_v9 = vpop.f32.mrb[46].mxu1 }
 0x421   : > { %v1611_v10 = vpack.c.bf16 %v1600_v9, %v1596_v7  ;;  %v1602_v11 = vpop.f32.mrb[47].mxu1 }
 0x422   : > { %v1612_v12 = vpack.c.bf16 %v1602_v11, %v1598_v8 }
 0x424   : > { %1868 = vmatprep.mubr.bf16.mxu0 %v1612_v12 }
 0x425   : > { %1869 = vmatmul.mubr.bf16.gmra.mrb[28].mxu0 %v1611_v10 }
 0x426   : > { %2078 = vmatprep.mubr.bf16.mxu0 %v18323_v2 }
 0x4e0   : > { %v1840_v15 = vpop.f32.mrb[16].mxu0 }
 0x4e1   : > { %v13722_v17 = vadd.f32 %v1840_v15, %v1219_v29  ;;  %v1842_v18 = vpop.f32.mrb[17].mxu0 }
 0x4e2   : > { %v13723_v19 = vadd.f32 %v1842_v18, %v1221_v31  ;;  %v1844_v21 = vpop.f32.mrb[18].mxu0 }
 0x4e3   : > { %v1906_v22 = vadd.f32 %v13722_v17, %v16546_v14  ;;  %v13724_v24 = vadd.f32 %v1844_v21, %v1223_v32  ;;  %v1846_v25 = vpop.f32.mrb[19].mxu0 }
 0x4e4   : > { %v1907_v26 = vadd.f32 %v13723_v19, %v16549_v16  ;;  %v13725_v28 = vadd.f32 %v1846_v25, %v1225_v56 }
 0x4e5   : > { %vm1922_vm2 = vcmp.ge.f32.partialorder %v1906_v22, 0.0  ;;  %v1938_v46 = vmul.f32 0.2, %v1906_v22  ;;  %v1908_v47 = vadd.f32 %v13724_v24, %v16546_v14 }
 0x4e6   : > { %vm1923_vm3 = vcmp.ge.f32.partialorder %v1907_v26, 0.0  ;;  %v1939_v48 = vmul.f32 0.2, %v1907_v26  ;;  %v1909_v49 = vadd.f32 %v13725_v28, %v16549_v16 }
 0x4e7   : > { %v1954_v50 = vsel %vm1922_vm2, %v1906_v22, %v1938_v46  ;;  %vm1924_vm4 = vcmp.ge.f32.partialorder %v1908_v47, 0.0  ;;  %v1940_v29 = vmul.f32 0.2, %v1908_v47 }
 0x4e8   : > { %v1970_v31 = vmul.f32 1.4142135, %v1954_v50  ;;  %v1955_v51 = vsel %vm1923_vm3, %v1907_v26, %v1939_v48  ;;  %vm1925_vm5 = vcmp.ge.f32.partialorder %v1909_v49, 0.0  ;;  %v1941_v52 = vmul.f32 0.2, %v1909_v49  ;;  %v1850_v32 = vpop.f32.mrb[20].mxu0 }
 0x4e9   : > { %v1971_v58 = vmul.f32 1.4142135, %v1955_v51  ;;  %v1956_v59 = vsel %vm1924_vm4, %v1908_v47, %v1940_v29  ;;  %v13726_v56 = vadd.f32 %v1850_v32, %v16520_v33  ;;  %v1852_v61 = vpop.f32.mrb[21].mxu0 }
 0x4ea   : > { %v1972_v62 = vmul.f32 1.4142135, %v1956_v59  ;;  %v1957_v63 = vsel %vm1925_vm5, %v1909_v49, %v1941_v52  ;;  %v13727_v0 = vadd.f32 %v1852_v61, %v16522_v57  ;;  %v1854_v1 = vpop.f32.mrb[22].mxu0  ;;  %v11680_v3 = vclamps-f32 %v1970_v31, 256.0 }
 0x4eb   : > { %v1973_v4 = vmul.f32 1.4142135, %v1957_v63  ;;  %v1910_v5 = vadd.f32 %v13726_v56, %v16546_v14  ;;  %v13728_v6 = vadd.f32 %v1854_v1, %v16524_v34  ;;  %v1856_v7 = vpop.f32.mrb[23].mxu0  ;;  %v11681_v8 = vclamps-f32 %v1971_v58, 256.0 }
 0x4ec   : > { %v11682_v9 = vclamps-f32 %v1972_v62, 256.0  ;;  %v1911_v10 = vadd.f32 %v13727_v0, %v16549_v16  ;;  %v13729_v11 = vadd.f32 %v1856_v7, %v16526_v35 }
 0x4ed   : > { %v11683_v33 = vclamps-f32 %v1973_v4, 256.0  ;;  %vm1926_vm6 = vcmp.ge.f32.partialorder %v1910_v5, 0.0  ;;  %v1942_v12 = vmul.f32 0.2, %v1910_v5  ;;  %v1912_v13 = vadd.f32 %v13728_v6, %v16546_v14 }
 0x4ee   : > { %v16562_v57 = vpack.c.bf16 %v11682_v9, %v11680_v3  ;;  %vm1927_vm7 = vcmp.ge.f32.partialorder %v1911_v10, 0.0  ;;  %v1943_v15 = vmul.f32 0.2, %v1911_v10  ;;  %v1913_v17 = vadd.f32 %v13729_v11, %v16549_v16 }
 0x4ef   : > { %v16565_v18 = vpack.c.bf16 %v11683_v33, %v11681_v8  ;;  %v1958_v34 = vsel %vm1926_vm6, %v1910_v5, %v1942_v12  ;;  %vm1928_vm8 = vcmp.ge.f32.partialorder %v1912_v13, 0.0  ;;  %v1944_v19 = vmul.f32 0.2, %v1912_v13 }
 0x4f0   : > { %v1974_v21 = vmul.f32 1.4142135, %v1958_v34  ;;  %v1959_v22 = vsel %vm1927_vm7, %v1911_v10, %v1943_v15  ;;  %vm1929_vm9 = vcmp.ge.f32.partialorder %v1913_v17, 0.0  ;;  %v1945_v35 = vmul.f32 0.2, %v1913_v17  ;;  %v1860_v24 = vpop.f32.mrb[24].mxu0 }
 0x4f1   : > { %v1975_v25 = vmul.f32 1.4142135, %v1959_v22  ;;  %v1960_v26 = vsel %vm1928_vm8, %v1912_v13, %v1944_v19  ;;  %v13730_v28 = vadd.f32 %v1860_v24, %v16528_v36  ;;  %v1862_v46 = vpop.f32.mrb[25].mxu0  ;;  %2046 = vmatprep.subr.bf16.mxu0 %v16565_v18  ;;  %2157 = vmatprep.subr.bf16.mxu1 %v16565_v18 }
 0x4f2   : > { %v1976_v47 = vmul.f32 1.4142135, %v1960_v26  ;;  %v1961_v48 = vsel %vm1929_vm9, %v1913_v17, %v1945_v35  ;;  %v13731_v49 = vadd.f32 %v1862_v46, %v16530_v37  ;;  %v1864_v50 = vpop.f32.mrb[26].mxu0  ;;  %2047 = vmatpush1.bf16.msra.mxu0 %v16562_v57  ;;  %2158 = vmatpush1.bf16.msra.mxu1 %v16562_v57  ;;  %v11684_v29 = vclamps-f32 %v1974_v21, 256.0 }
 0x4f3   : > { %v1977_v31 = vmul.f32 1.4142135, %v1961_v48  ;;  %v1914_v51 = vadd.f32 %v13730_v28, %v16546_v14  ;;  %v13732_v36 = vadd.f32 %v1864_v50, %v16532_v40  ;;  %v1866_v52 = vpop.f32.mrb[27].mxu0  ;;  %v11685_v32 = vclamps-f32 %v1975_v25, 256.0 }
 0x4f4   : > { %v11686_v58 = vclamps-f32 %v1976_v47, 256.0  ;;  %v1915_v59 = vadd.f32 %v13731_v49, %v16549_v16  ;;  %v13733_v56 = vadd.f32 %v1866_v52, %v16534_v41 }
 0x4f5   : > { %v11687_v61 = vclamps-f32 %v1977_v31, 256.0  ;;  %vm1930_vm10 = vcmp.ge.f32.partialorder %v1914_v51, 0.0  ;;  %v1946_v37 = vmul.f32 0.2, %v1914_v51  ;;  %v1916_v62 = vadd.f32 %v13732_v36, %v16546_v14 }
 0x4f6   : > { %v16578_v63 = vpack.c.bf16 %v11686_v58, %v11684_v29  ;;  %vm1931_vm11 = vcmp.ge.f32.partialorder %v1915_v59, 0.0  ;;  %v1947_v0 = vmul.f32 0.2, %v1915_v59  ;;  %v1917_v1 = vadd.f32 %v13733_v56, %v16549_v16 }
 0x4f7   : > { %v16581_v3 = vpack.c.bf16 %v11687_v61, %v11685_v32  ;;  %v1962_v40 = vsel %vm1930_vm10, %v1914_v51, %v1946_v37  ;;  %vm1932_vm12 = vcmp.ge.f32.partialorder %v1916_v62, 0.0  ;;  %v1948_v4 = vmul.f32 0.2, %v1916_v62 }
 0x4f8   : > { %v1978_v5 = vmul.f32 1.4142135, %v1962_v40  ;;  %v1963_v6 = vsel %vm1931_vm11, %v1915_v59, %v1947_v0  ;;  %vm1933_vm13 = vcmp.ge.f32.partialorder %v1917_v1, 0.0  ;;  %v1949_v41 = vmul.f32 0.2, %v1917_v1  ;;  %v1870_v7 = vpop.f32.mrb[28].mxu0 }
 0x4f9   : > { %v1979_v8 = vmul.f32 1.4142135, %v1963_v6  ;;  %v1964_v9 = vsel %vm1932_vm12, %v1916_v62, %v1948_v4  ;;  %v13734_v10 = vadd.f32 %v1870_v7, %v16536_v42  ;;  %v1872_v11 = vpop.f32.mrb[29].mxu0  ;;  %2048 = vmatprep.subr.bf16.mxu0 %v16581_v3  ;;  %2159 = vmatprep.subr.bf16.mxu1 %v16581_v3  ;;  %v14192_v62 = vld [vmem:[%s16281_s4 + $0x404] ss:$8 sps:$4 sm:$0xff]   ;;  %v14178_v0 = vld [vmem:[#allocation8] sm:$0xff]  }
 0x4fa   : > { %v1980_v33 = vmul.f32 1.4142135, %v1964_v9  ;;  %v1965_v12 = vsel %vm1933_vm13, %v1917_v1, %v1949_v41  ;;  %v13735_v13 = vadd.f32 %v1872_v11, %v16538_v43  ;;  %v1874_v15 = vpop.f32.mrb[30].mxu0  ;;  %2049 = vmatpush1.bf16.msra.mxu0 %v16578_v63  ;;  %2160 = vmatpush1.bf16.msra.mxu1 %v16578_v63  ;;  %v11688_v17 = vclamps-f32 %v1978_v5, 256.0  ;;  %v16610_v1 = vld [vmem:[#allocation8 + $0x10] sm:$0xff]   ;;  %v14180_v6 = vld [vmem:[#allocation8 + $0x8] sm:$0xff]  }
 0x4fb   : > { %v1981_v34 = vmul.f32 1.4142135, %v1965_v12  ;;  %v1918_v19 = vadd.f32 %v13734_v10, %v16546_v14  ;;  %v13736_v42 = vadd.f32 %v1874_v15, %v16540_v44  ;;  %v1876_v21 = vpop.f32.mrb[31].mxu0  ;;  %v11689_v22 = vclamps-f32 %v1979_v8, 256.0  ;;  %v14190_v40 = vld [vmem:[%s16281_s4 + $0x400] ss:$8 sps:$4 sm:$0xff]  }
 0x4fc   : > { %v11690_v35 = vclamps-f32 %v1980_v33, 256.0  ;;  %v1919_v24 = vadd.f32 %v13735_v13, %v16549_v16  ;;  %v13737_v25 = vadd.f32 %v1876_v21, %v16542_v45  ;;  %v14195_v4 = vld [vmem:[%s16281_s4 + $0x414] ss:$8 sps:$4 sm:$0xff]   ;;  %v14193_v5 = vld [vmem:[%s16281_s4 + $0x410] ss:$8 sps:$4 sm:$0xff]   ;;  %v16625_v41 = vld [vmem:[#allocation8 + $0x18] sm:$0xff]  }
 0x4fd   : > { %v11691_v26 = vclamps-f32 %v1981_v34, 256.0  ;;  %vm1934_vm14 = vcmp.ge.f32.partialorder %v1918_v19, 0.0  ;;  %v1950_v43 = vmul.f32 0.2, %v1918_v19  ;;  %v1920_v28 = vadd.f32 %v13736_v42, %v16546_v14  ;;  %v14198_v7 = vld [vmem:[%s16281_s4 + $0x424] ss:$8 sps:$4 sm:$0xff]  }
 0x4fe   : > { %v16594_v46 = vpack.c.bf16 %v11690_v35, %v11688_v17  ;;  %vm1935_vm15 = vcmp.ge.f32.partialorder %v1919_v24, 0.0  ;;  %v1951_v47 = vmul.f32 0.2, %v1919_v24  ;;  %v1921_v48 = vadd.f32 %v13737_v25, %v16549_v16  ;;  %v14196_v8 = vld [vmem:[%s16281_s4 + $0x420] ss:$8 sps:$4 sm:$0xff]   ;;  %v16639_v11 = vld [vmem:[#allocation8 + $0x20] sm:$0xff]  }
 0x4ff   : > { %v16597_v49 = vpack.c.bf16 %v11691_v26, %v11689_v22  ;;  %v1966_v44 = vsel %vm1934_vm14, %v1918_v19, %v1950_v43  ;;  %vm1936_vm0 = vcmp.ge.f32.partialorder %v1920_v28, 0.0  ;;  %v1952_v50 = vmul.f32 0.2, %v1920_v28  ;;  %v14201_v9 = vld [vmem:[%s16281_s4 + $0x434] ss:$8 sps:$4 sm:$0xff]   ;;  %v14183_v22 = vld [vmem:[#allocation8 + $0x30] sm:$0xff]  }
 0x500   : > { %v1982_v29 = vmul.f32 1.4142135, %v1966_v44  ;;  %v1967_v31 = vsel %vm1935_vm15, %v1919_v24, %v1951_v47  ;;  %vm1937_vm2 = vcmp.ge.f32.partialorder %v1921_v48, 0.0  ;;  %v1953_v45 = vmul.f32 0.2, %v1921_v48  ;;  %v16652_v17 = vld [vmem:[#allocation8 + $0x28] sm:$0xff]  }
 0x501   : > { %v1983_v51 = vmul.f32 1.4142135, %v1967_v31  ;;  %v1968_v36 = vsel %vm1936_vm0, %v1920_v28, %v1952_v50  ;;  %2050 = vmatprep.subr.bf16.mxu0 %v16597_v49  ;;  %2161 = vmatprep.subr.bf16.mxu1 %v16597_v49  ;;  %v14199_v10 = vld [vmem:[%s16281_s4 + $0x430] ss:$8 sps:$4 sm:$0xff]   ;;  %v14204_v33 = vld [vmem:[%s16281_s4 + $0x444] ss:$8 sps:$4 sm:$0xff]  }
 0x502   : > { %v1984_v14 = vmul.f32 1.4142135, %v1968_v36  ;;  %v1969_v52 = vsel %vm1937_vm2, %v1921_v48, %v1953_v45  ;;  %2051 = vmatpush1.bf16.msra.mxu0 %v16594_v46  ;;  %2162 = vmatpush1.bf16.msra.mxu1 %v16594_v46  ;;  %v11692_v32 = vclamps-f32 %v1982_v29, 256.0  ;;  %v14202_v12 = vld [vmem:[%s16281_s4 + $0x440] ss:$8 sps:$4 sm:$0xff]   ;;  %v14185_v50 = vld [vmem:[#allocation8 + $0x40] sm:$0xff]  }
 0x503   : > { %v1985_v16 = vmul.f32 1.4142135, %v1969_v52  ;;  %v11693_v59 = vclamps-f32 %v1983_v51, 256.0  ;;  %v14207_v13 = vld [vmem:[%s16281_s4 + $0x454] ss:$8 sps:$4 sm:$0xff]   ;;  %v14184_v43 = vld [vmem:[#allocation8 + $0x38] sm:$0xff]  }
 0x504   : > { %v11694_v58 = vclamps-f32 %v1984_v14, 256.0  ;;  %v14205_v15 = vld [vmem:[%s16281_s4 + $0x450] ss:$8 sps:$4 sm:$0xff]   ;;  %v14210_v34 = vld [vmem:[%s16281_s4 + $0x464] ss:$8 sps:$4 sm:$0xff]  }
 0x505   : > { %v11695_v56 = vclamps-f32 %v1985_v16, 256.0  ;;  %v14208_v19 = vld [vmem:[%s16281_s4 + $0x460] ss:$8 sps:$4 sm:$0xff]   ;;  %v14213_v42 = vld [vmem:[%s16281_s4 + $0x474] ss:$8 sps:$4 sm:$0xff]  }
 0x506   : > { %v16603_v61 = vpack.c.bf16 %v11694_v58, %v11692_v32  ;;  %v14211_v21 = vld [vmem:[%s16281_s4 + $0x470] ss:$8 sps:$4 sm:$0xff]   ;;  %v14216_v35 = vld [vmem:[%s16281_s4 + $0x484] ss:$8 sps:$4 sm:$0xff]   ;;  %v14214_v24 = vld [vmem:[%s16281_s4 + $0x480] ss:$8 sps:$4 sm:$0xff]  }
 0x507   : > { %v16605_v37 = vpack.c.bf16 %v11695_v56, %v11693_v59  ;;  %v14219_v25 = vld [vmem:[%s16281_s4 + $0x494] ss:$8 sps:$4 sm:$0xff]   ;;  %v14217_v26 = vld [vmem:[%s16281_s4 + $0x490] ss:$8 sps:$4 sm:$0xff]   ;;  %v14222_v28 = vld [vmem:[%s16281_s4 + $0x4a4] ss:$8 sps:$4 sm:$0xff]  }
 0x508   : > { %v14220_v47 = vld [vmem:[%s16281_s4 + $0x4a0] ss:$8 sps:$4 sm:$0xff]   ;;  %v14225_v48 = vld [vmem:[%s16281_s4 + $0x4b4] ss:$8 sps:$4 sm:$0xff]   ;;  %v14223_v44 = vld [vmem:[%s16281_s4 + $0x4b0] ss:$8 sps:$4 sm:$0xff]  }
 0x509   : > { %2052 = vmatprep.subr.bf16.mxu0 %v16605_v37  ;;  %2163 = vmatprep.subr.bf16.mxu1 %v16605_v37  ;;  %v14228_v29 = vld [vmem:[%s16281_s4 + $0x4c4] ss:$8 sps:$4 sm:$0xff]   ;;  %v14226_v31 = vld [vmem:[%s16281_s4 + $0x4c0] ss:$8 sps:$4 sm:$0xff]   ;;  %v14231_v45 = vld [vmem:[%s16281_s4 + $0x4d4] ss:$8 sps:$4 sm:$0xff]  }
 0x50a   : > { %2053 = vmatpush1.bf16.msra.mxu0 %v16603_v61  ;;  %2164 = vmatpush1.bf16.msra.mxu1 %v16603_v61  ;;  %v14229_v51 = vld [vmem:[%s16281_s4 + $0x4d0] ss:$8 sps:$4 sm:$0xff]   ;;  %v14234_v14 = vld [vmem:[%s16281_s4 + $0x4e4] ss:$8 sps:$4 sm:$0xff]   ;;  %v14265_v52 = vld [vmem:[%s16281_s4 + $0xa00] ss:$8 sps:$4 sm:$0xff]  }
 0x50b   : > { %2694 = vmatprep.subr.bf16.mxu0 %v16565_v18  ;;  %2407 = vmatprep.subr.bf16.mxu1 %v14192_v62  ;;  %v14187_v36 = vld [vmem:[#allocation8 + $0x48] sm:$0xff]   ;;  %v14267_v16 = vld [vmem:[%s16281_s4 + $0xa04] ss:$8 sps:$4 sm:$0xff]   ;;  %v14277_v59 = vld [vmem:[%s16281_s4 + $0xa20] ss:$8 sps:$4 sm:$0xff]  }
 0x50c   : > { %v14271_v32 = vld [vmem:[%s16281_s4 + $0xa10] ss:$8 sps:$4 sm:$0xff]   ;;  %v14273_v58 = vld [vmem:[%s16281_s4 + $0xa14] ss:$8 sps:$4 sm:$0xff]   ;;  %v14279_v56 = vld [vmem:[%s16281_s4 + $0xa24] ss:$8 sps:$4 sm:$0xff]  }
 0x50d   : > { %11698 = vmatmul.mubr.msk.bf16.vlgmr.msra.gmra.mrb[32].mxu0 %vm899_vm1, %v14178_v0  ;;  %11734 = vmatmul.mubr.msk.bf16.vlgmr.msra.gmra.mrb[48].mxu1 %vm899_vm1, %v16610_v1  ;;  %v14289_v62 = vld [vmem:[%s16281_s4 + $0xa40] ss:$8 sps:$4 sm:$0xff]   ;;  %v14291_v0 = vld [vmem:[%s16281_s4 + $0xa44] ss:$8 sps:$4 sm:$0xff]  }
 0x50e   : > { %2695 = vmatpush1.bf16.msra.mxu0 %v16562_v57  ;;  %2088 = vmatprep.mubr.bf16.mxu0 %v18323_v2 }
 0x50f   : > { %2696 = vmatprep.subr.bf16.mxu0 %v16581_v3  ;;  %2199 = vmatprep.mubr.bf16.mxu1 %v18323_v2 }
 0x510   : > { %2408 = vmatpush1.bf16.msra.mxu1 %v14190_v40  ;;  %v14297_v40 = vld [vmem:[%s16281_s4 + $0xa54] ss:$8 sps:$4 sm:$0xff]  }
 0x511   : > { %2409 = vmatprep.subr.bf16.mxu1 %v14195_v4  ;;  %v14301_v4 = vld [vmem:[%s16281_s4 + $0xa60] ss:$8 sps:$4 sm:$0xff]  }
 0x512   : > { %2697 = vmatpush1.bf16.msra.mxu0 %v16578_v63 }
 0x513   : > { %2698 = vmatprep.subr.bf16.mxu0 %v16597_v49 }
 0x514   : > { %2410 = vmatpush1.bf16.msra.mxu1 %v14193_v5  ;;  %v14303_v5 = vld [vmem:[%s16281_s4 + $0xa64] ss:$8 sps:$4 sm:$0xff]  }
 0x515   : > { %11699 = vmatmul.mubr.msk.bf16.gmra.mrb[36].mxu0 %vm899_vm1, %v14180_v6  ;;  %11735 = vmatmul.mubr.msk.bf16.gmra.mrb[52].mxu1 %vm899_vm1, %v16625_v41  ;;  %v14307_v6 = vld [vmem:[%s16281_s4 + $0xa70] ss:$8 sps:$4 sm:$0xff]  }
 0x516   : > { %2699 = vmatpush1.bf16.msra.mxu0 %v16594_v46  ;;  %2726 = vmatprep.mubr.bf16.mxu0 %v18323_v2 }
 0x517   : > { %2700 = vmatprep.subr.bf16.mxu0 %v16605_v37  ;;  %2411 = vmatprep.subr.bf16.mxu1 %v14198_v7  ;;  %v14313_v7 = vld [vmem:[%s16281_s4 + $0xa80] ss:$8 sps:$4 sm:$0xff]  }
 0x518   : > { %2412 = vmatpush1.bf16.msra.mxu1 %v14196_v8  ;;  %v14315_v8 = vld [vmem:[%s16281_s4 + $0xa84] ss:$8 sps:$4 sm:$0xff]  }
 0x519   : > { %2413 = vmatprep.subr.bf16.mxu1 %v14201_v9  ;;  %v14319_v9 = vld [vmem:[%s16281_s4 + $0xa90] ss:$8 sps:$4 sm:$0xff]  }
 0x51a   : > { %2701 = vmatpush1.bf16.msra.mxu0 %v16603_v61 }
 0x51b   : > { %3026 = vmatprep.subr.bf16.mxu0 %v16565_v18 }
 0x51c   : > { %2414 = vmatpush1.bf16.msra.mxu1 %v14199_v10  ;;  %v14321_v10 = vld [vmem:[%s16281_s4 + $0xa94] ss:$8 sps:$4 sm:$0xff]  }
 0x51d   : > { %11834 = vmatmul.mubr.msk.bf16.vlgmr.msra.gmra.mrb[40].mxu0 %vm899_vm1, %v16639_v11  ;;  %2415 = vmatprep.subr.bf16.mxu1 %v14204_v33  ;;  %v14327_v33 = vld [vmem:[%s16281_s4 + $0xaa4] ss:$8 sps:$4 sm:$0xff]  }
 0x51e   : > { %3027 = vmatpush1.bf16.msra.mxu0 %v16562_v57  ;;  %2736 = vmatprep.mubr.bf16.mxu0 %v18323_v2 }
 0x51f   : > { %3028 = vmatprep.subr.bf16.mxu0 %v16581_v3 }
 0x520   : > { %2416 = vmatpush1.bf16.msra.mxu1 %v14202_v12  ;;  %v14331_v12 = vld [vmem:[%s16281_s4 + $0xab0] ss:$8 sps:$4 sm:$0xff]  }
 0x521   : > { %2417 = vmatprep.subr.bf16.mxu1 %v14207_v13  ;;  %v14333_v13 = vld [vmem:[%s16281_s4 + $0xab4] ss:$8 sps:$4 sm:$0xff]  }
 0x522   : > { %3029 = vmatpush1.bf16.msra.mxu0 %v16578_v63 }
 0x523   : > { %3030 = vmatprep.subr.bf16.mxu0 %v16597_v49 }
 0x524   : > { %2418 = vmatpush1.bf16.msra.mxu1 %v14205_v15  ;;  %v14337_v15 = vld [vmem:[%s16281_s4 + $0xac0] ss:$8 sps:$4 sm:$0xff]  }
 0x525   : > { %11835 = vmatmul.mubr.msk.bf16.gmra.mrb[44].mxu0 %vm899_vm1, %v16652_v17  ;;  %2419 = vmatprep.subr.bf16.mxu1 %v14210_v34  ;;  %v14343_v34 = vld [vmem:[%s16281_s4 + $0xad0] ss:$8 sps:$4 sm:$0xff]  }
 0x526   : > { %3031 = vmatpush1.bf16.msra.mxu0 %v16594_v46  ;;  %3058 = vmatprep.mubr.bf16.mxu0 %v18323_v2 }
 0x527   : > { %3032 = vmatprep.subr.bf16.mxu0 %v16605_v37 }
 0x528   : > { %2420 = vmatpush1.bf16.msra.mxu1 %v14208_v19  ;;  %v14345_v19 = vld [vmem:[%s16281_s4 + $0xad4] ss:$8 sps:$4 sm:$0xff]  }
 0x529   : > { %2421 = vmatprep.subr.bf16.mxu1 %v14213_v42  ;;  %v14349_v42 = vld [vmem:[%s16281_s4 + $0xae0] ss:$8 sps:$4 sm:$0xff]  }
 0x52a   : > { %3033 = vmatpush1.bf16.msra.mxu0 %v16603_v61 }
 0x52b   : > { %3358 = vmatprep.subr.bf16.mxu0 %v16565_v18 }
 0x52c   : > { %2422 = vmatpush1.bf16.msra.mxu1 %v14211_v21  ;;  %v14351_v21 = vld [vmem:[%s16281_s4 + $0xae4] ss:$8 sps:$4 sm:$0xff]  }
 0x52d   : > { %11902 = vmatmul.mubr.msk.bf16.vlgmr.msra.gmra.mrb[48].mxu0 %vm899_vm1, %v14183_v22  ;;  %2423 = vmatprep.subr.bf16.mxu1 %v14216_v35  ;;  %v14357_v22 = vld [vmem:[%s16281_s4 + $0xaf4] ss:$8 sps:$4 sm:$0xff]   ;;  %v14355_v35 = vld [vmem:[%s16281_s4 + $0xaf0] ss:$8 sps:$4 sm:$0xff]  }
 0x52e   : > { %3359 = vmatpush1.bf16.msra.mxu0 %v16562_v57  ;;  %3068 = vmatprep.mubr.bf16.mxu0 %v18323_v2 }
 0x52f   : > { %3360 = vmatprep.subr.bf16.mxu0 %v16581_v3 }
 0x530   : > { %2424 = vmatpush1.bf16.msra.mxu1 %v14214_v24  ;;  %v14363_v24 = vld [vmem:[%s16281_s4 + $0x904] ss:$8 sps:$4 sm:$0xff]  }
 0x531   : > { %2425 = vmatprep.subr.bf16.mxu1 %v14219_v25 }
 0x532   : > { %3361 = vmatpush1.bf16.msra.mxu0 %v16578_v63 }
 0x533   : > { %3362 = vmatprep.subr.bf16.mxu0 %v16597_v49 }
 0x534   : > { %2426 = vmatpush1.bf16.msra.mxu1 %v14217_v26 }
 0x535   : > { %11903 = vmatmul.mubr.msk.bf16.gmra.mrb[52].mxu0 %vm899_vm1, %v14184_v43  ;;  %2427 = vmatprep.subr.bf16.mxu1 %v14222_v28 }
 0x536   : > { %3363 = vmatpush1.bf16.msra.mxu0 %v16594_v46  ;;  %3390 = vmatprep.mubr.bf16.mxu0 %v18323_v2 }
 0x537   : > { %3364 = vmatprep.subr.bf16.mxu0 %v16605_v37 }
 0x538   : > { %2428 = vmatpush1.bf16.msra.mxu1 %v14220_v47 }
 0x539   : > { %2429 = vmatprep.subr.bf16.mxu1 %v14225_v48 }
 0x53a   : > { %3365 = vmatpush1.bf16.msra.mxu0 %v16603_v61 }
 0x53b   : > { %3690 = vmatprep.subr.bf16.mxu0 %v16565_v18  ;;  %v14232_v18 = vld [vmem:[%s16281_s4 + $0x4e0] ss:$8 sps:$4 sm:$0xff]  }
 0x53c   : > { %2430 = vmatpush1.bf16.msra.mxu1 %v14223_v44 }
 0x53d   : > { %11970 = vmatmul.mubr.msk.bf16.vlgmr.msra.gmra.mrb[56].mxu0 %vm899_vm1, %v14185_v50  ;;  %2431 = vmatprep.subr.bf16.mxu1 %v14228_v29 }
 0x53e   : > { %3691 = vmatpush1.bf16.msra.mxu0 %v16562_v57  ;;  %3400 = vmatprep.mubr.bf16.mxu0 %v18323_v2  ;;  %v14188_v57 = vld [vmem:[#allocation8 + $0x50] sm:$0xff]  }
 0x53f   : > { %3692 = vmatprep.subr.bf16.mxu0 %v16581_v3  ;;  %v14237_v3 = vld [vmem:[%s16281_s4 + $0x4f4] ss:$8 sps:$4 sm:$0xff]  }
 0x540   : > { %2432 = vmatpush1.bf16.msra.mxu1 %v14226_v31 }
 0x541   : > { %2433 = vmatprep.subr.bf16.mxu1 %v14231_v45 }
 0x542   : > { %3693 = vmatpush1.bf16.msra.mxu0 %v16578_v63  ;;  %v14189_v63 = vld [vmem:[#allocation8 + $0x58] sm:$0xff]  }
 0x543   : > { %3694 = vmatprep.subr.bf16.mxu0 %v16597_v49  ;;  %v14240_v49 = vld [vmem:[%s16281_s4 + $0x304] ss:$8 sps:$4 sm:$0xff]  }
 0x544   : > { %2434 = vmatpush1.bf16.msra.mxu1 %v14229_v51  ;;  %v14238_v51 = vld [vmem:[%s16281_s4 + $0x300] ss:$8 sps:$4 sm:$0xff]  }
 0x545   : > { %11971 = vmatmul.mubr.msk.bf16.gmra.mrb[60].mxu0 %vm899_vm1, %v14187_v36  ;;  %2435 = vmatprep.subr.bf16.mxu1 %v14234_v14  ;;  %v14243_v14 = vld [vmem:[%s16281_s4 + $0x314] ss:$8 sps:$4 sm:$0xff]  }
 0x546   : > { %3695 = vmatpush1.bf16.msra.mxu0 %v16594_v46  ;;  %3722 = vmatprep.mubr.bf16.mxu0 %v18323_v2  ;;  %v14235_v46 = vld [vmem:[%s16281_s4 + $0x4f0] ss:$8 sps:$4 sm:$0xff]  }
 0x547   : > { %3696 = vmatprep.subr.bf16.mxu0 %v16605_v37  ;;  %v14285_v37 = vld [vmem:[%s16281_s4 + $0xa34] ss:$8 sps:$4 sm:$0xff]  }
 0x548   : > { %2436 = vmatpush1.bf16.msra.mxu1 %v14232_v18  ;;  %v14241_v18 = vld [vmem:[%s16281_s4 + $0x310] ss:$8 sps:$4 sm:$0xff]  }
 0x549   : > { %2437 = vmatprep.subr.bf16.mxu1 %v14237_v3  ;;  %v14246_v3 = vld [vmem:[%s16281_s4 + $0x324] ss:$8 sps:$4 sm:$0xff]  }
 0x54a   : > { %3697 = vmatpush1.bf16.msra.mxu0 %v16603_v61  ;;  %v14283_v61 = vld [vmem:[%s16281_s4 + $0xa30] ss:$8 sps:$4 sm:$0xff]  }
 0x54b   : > { %4060 = vmatprep.subr.bf16.mxu0 %v16394_v30 }
 0x54c   : > { %2438 = vmatpush1.bf16.msra.mxu1 %v14235_v46 }
 0x54d   : > { %12038 = vmatmul.mubr.msk.bf16.vlgmr.msra.gmra.mrb[64].mxu0 %vm899_vm1, %v14188_v57  ;;  %2620 = vmatprep.subr.bf16.mxu1 %v14240_v49 }
 0x54e   : > { %4061 = vmatpush1.bf16.msra.mxu0 %v16391_v27  ;;  %3732 = vmatprep.mubr.bf16.mxu0 %v18323_v2 }
 0x54f   : > { %4062 = vmatprep.subr.bf16.mxu0 %v16406_v60 }
 0x552   : > { %4063 = vmatpush1.bf16.msra.mxu0 %v16403_v54 }
 0x553   : > { %4064 = vmatprep.subr.bf16.mxu0 %v16418_v23 }
 0x555   : > { %12039 = vmatmul.mubr.msk.bf16.gmra.mrb[68].mxu0 %vm899_vm1, %v14189_v63 }
 0x556   : > { %4065 = vmatpush1.bf16.msra.mxu0 %v16415_v20  ;;  %4092 = vmatprep.mubr.bf16.mxu0 %v18323_v2 }
 0x557   : > { %4066 = vmatprep.subr.bf16.mxu0 %v16426_v39 }
 0x55a   : > { %4067 = vmatpush1.bf16.msra.mxu0 %v16424_v38 }
 0x55b   : > { %4150 = vmatprep.subr.bf16.mxu0 %v16394_v30 }
 0x55d   : > { %12112 = vmatmul.mubr.msk.bf16.vlgmr.msra.gmra.mrb[72].mxu0 %vm899_vm1, %v16610_v1  ;;  %v14295_v1 = vld [vmem:[%s16281_s4 + $0xa50] ss:$8 sps:$4 sm:$0xff]  }
 0x55e   : > { %4151 = vmatpush1.bf16.msra.mxu0 %v16391_v27  ;;  %4102 = vmatprep.mubr.bf16.mxu0 %v18323_v2 }
 0x55f   : > { %4152 = vmatprep.subr.bf16.mxu0 %v16406_v60 }
 0x562   : > { %4153 = vmatpush1.bf16.msra.mxu0 %v16403_v54 }
 0x563   : > { %4154 = vmatprep.subr.bf16.mxu0 %v16418_v23 }
 0x565   : > { %12113 = vmatmul.mubr.msk.bf16.gmra.mrb[76].mxu0 %vm899_vm1, %v16625_v41  ;;  %v14309_v41 = vld [vmem:[%s16281_s4 + $0xa74] ss:$8 sps:$4 sm:$0xff]  }
 0x566   : > { %4155 = vmatpush1.bf16.msra.mxu0 %v16415_v20  ;;  %4182 = vmatprep.mubr.bf16.mxu0 %v18323_v2 }
 0x567   : > { %4156 = vmatprep.subr.bf16.mxu0 %v16426_v39 }
 0x56a   : > { %4157 = vmatpush1.bf16.msra.mxu0 %v16424_v38 }
 0x56b   : > { %4400 = vmatprep.subr.bf16.mxu0 %v14267_v16 }
 0x56d   : > { %12146 = vmatmul.mubr.msk.bf16.vlgmr.msra.gmra.mrb[80].mxu0 %vm899_vm1, %v16639_v11  ;;  %v14325_v11 = vld [vmem:[%s16281_s4 + $0xaa0] ss:$8 sps:$4 sm:$0xff]  }
 0x56e   : > { %4192 = vmatprep.mubr.bf16.mxu0 %v18323_v2  ;;  %4401 = vmatpush1.bf16.msra.mxu0 %v14265_v52  ;;  %v14360_v2 = vld [vmem:[%s16281_s4 + $0x584] ss:$8 sps:$4 sm:$0xff]  }
 0x56f   : > { %4402 = vmatprep.subr.bf16.mxu0 %v14273_v58 }
 0x572   : > { %4403 = vmatpush1.bf16.msra.mxu0 %v14271_v32 }
 0x573   : > { %4404 = vmatprep.subr.bf16.mxu0 %v14279_v56 }
 0x575   : > { %12147 = vmatmul.mubr.msk.bf16.gmra.mrb[84].mxu0 %vm899_vm1, %v16652_v17  ;;  %v14339_v17 = vld [vmem:[%s16281_s4 + $0xac4] ss:$8 sps:$4 sm:$0xff]  }
 0x576   : > { %4405 = vmatpush1.bf16.msra.mxu0 %v14277_v59 }
 0x577   : > { %4406 = vmatprep.subr.bf16.mxu0 %v14285_v37 }
 0x57a   : > { %4407 = vmatpush1.bf16.msra.mxu0 %v14283_v61  ;;  %v14244_v61 = vld [vmem:[%s16281_s4 + $0x320] ss:$8 sps:$4 sm:$0xff]  }
 0x57b   : > { %4408 = vmatprep.subr.bf16.mxu0 %v14291_v0  ;;  %v14249_v0 = vld [vmem:[%s16281_s4 + $0x334] ss:$8 sps:$4 sm:$0xff]  }
 0x57e   : > { %4409 = vmatpush1.bf16.msra.mxu0 %v14289_v62 }
 0x57f   : > { %4410 = vmatprep.subr.bf16.mxu0 %v14297_v40 }
 0x582   : > { %4411 = vmatpush1.bf16.msra.mxu0 %v14295_v1  ;;  %v14247_v1 = vld [vmem:[%s16281_s4 + $0x330] ss:$8 sps:$4 sm:$0xff]  }
 0x583   : > { %4412 = vmatprep.subr.bf16.mxu0 %v14303_v5 }
 0x586   : > { %4413 = vmatpush1.bf16.msra.mxu0 %v14301_v4  ;;  %v14252_v4 = vld [vmem:[%s16281_s4 + $0x344] ss:$8 sps:$4 sm:$0xff]  }
 0x587   : > { %4414 = vmatprep.subr.bf16.mxu0 %v14309_v41 }
 0x58a   : > { %4415 = vmatpush1.bf16.msra.mxu0 %v14307_v6 }
 0x58b   : > { %4416 = vmatprep.subr.bf16.mxu0 %v14315_v8  ;;  %v14250_v8 = vld [vmem:[%s16281_s4 + $0x340] ss:$8 sps:$4 sm:$0xff]  }
 0x58e   : > { %4417 = vmatpush1.bf16.msra.mxu0 %v14313_v7 }
 0x58f   : > { %4418 = vmatprep.subr.bf16.mxu0 %v14321_v10  ;;  %v14255_v10 = vld [vmem:[%s16281_s4 + $0x354] ss:$8 sps:$4 sm:$0xff]  }
 0x592   : > { %4419 = vmatpush1.bf16.msra.mxu0 %v14319_v9 }
 0x593   : > { %4420 = vmatprep.subr.bf16.mxu0 %v14327_v33 }
 0x596   : > { %4421 = vmatpush1.bf16.msra.mxu0 %v14325_v11  ;;  %v14253_v11 = vld [vmem:[%s16281_s4 + $0x350] ss:$8 sps:$4 sm:$0xff]  }
 0x597   : > { %4422 = vmatprep.subr.bf16.mxu0 %v14333_v13 }
 0x59a   : > { %4423 = vmatpush1.bf16.msra.mxu0 %v14331_v12  ;;  %v14258_v12 = vld [vmem:[%s16281_s4 + $0x364] ss:$8 sps:$4 sm:$0xff]  }
 0x59b   : > { %4424 = vmatprep.subr.bf16.mxu0 %v14339_v17  ;;  %v14366_v17 = vld [vmem:[%s16281_s4 + $0x594] ss:$8 sps:$4 sm:$0xff]  }
 0x59e   : > { %4425 = vmatpush1.bf16.msra.mxu0 %v14337_v15 }
 0x59f   : > { %4426 = vmatprep.subr.bf16.mxu0 %v14345_v19  ;;  %v14256_v19 = vld [vmem:[%s16281_s4 + $0x360] ss:$8 sps:$4 sm:$0xff]  }
 0x5a2   : > { %4427 = vmatpush1.bf16.msra.mxu0 %v14343_v34 }
 0x5a3   : > { %4428 = vmatprep.subr.bf16.mxu0 %v14351_v21  ;;  %v14261_v21 = vld [vmem:[%s16281_s4 + $0x374] ss:$8 sps:$4 sm:$0xff]  }
 0x5a6   : > { %4429 = vmatpush1.bf16.msra.mxu0 %v14349_v42  ;;  %v14369_v42 = vld [vmem:[%s16281_s4 + $0x914] ss:$8 sps:$4 sm:$0xff]  }
 0x5a7   : > { %4430 = vmatprep.subr.bf16.mxu0 %v14357_v22  ;;  %v14259_v22 = vld [vmem:[%s16281_s4 + $0x370] ss:$8 sps:$4 sm:$0xff]  }
 0x5aa   : > { %4431 = vmatpush1.bf16.msra.mxu0 %v14355_v35 }
 0x5ab   : > { %4613 = vmatprep.subr.bf16.mxu0 %v14363_v24  ;;  %v14264_v24 = vld [vmem:[%s16281_s4 + $0x384] ss:$8 sps:$4 sm:$0xff]  }
 0x5e0   : > { %v2191_v25 = vpop.f32.mrb[48].mxu1  ;;  %v16771_v26 = vpop.f32.mrb[32].mxu0 }
 0x5e1   : > { %v2193_v43 = vpop.f32.mrb[49].mxu1  ;;  %v2082_v28 = vpop.f32.mrb[33].mxu0 }
 0x5e2   : > { %v2195_v47 = vpop.f32.mrb[50].mxu1  ;;  %v16773_v48 = vpop.f32.mrb[34].mxu0 }
 0x5e3   : > { %v2210_v44 = vpack.c.bf16 %v2195_v47, %v2191_v25  ;;  %v2197_v50 = vpop.f32.mrb[51].mxu1  ;;  %v2099_v29 = vpack.c.bf16 %v16773_v48, %v16771_v26  ;;  %v2086_v31 = vpop.f32.mrb[35].mxu0  ;;  %v14348_v26 = vld [vmem:[%s16281_s4 + $0x564] ss:$8 sps:$4 sm:$0xff]  }
 0x5e4   : > { %v2211_v45 = vpack.c.bf16 %v2197_v50, %v2193_v43  ;;  %v2100_v36 = vpack.c.bf16 %v2086_v31, %v2082_v28  ;;  %v14270_v31 = vld [vmem:[%s16281_s4 + $0x394] ss:$8 sps:$4 sm:$0xff]  }
 0x5e6   : > { %2439 = vmatprep.mubr.bf16.mxu1 %v2211_v45  ;;  %v14268_v45 = vld [vmem:[%s16281_s4 + $0x390] ss:$8 sps:$4 sm:$0xff]  }
 0x5e7   : > { %2440 = vmatmul.mubr.bf16.vlgmr.msra.gmra.mrb[56].mxu1 %v2210_v44  ;;  %v14262_v44 = vld [vmem:[%s16281_s4 + $0x380] ss:$8 sps:$4 sm:$0xff]  }
 0x5e8   : > { %2621 = vmatpush1.bf16.msra.mxu1 %v14238_v51  ;;  %v16780_v57 = vpop.f32.mrb[36].mxu0  ;;  %v2201_v63 = vpop.f32.mrb[52].mxu1 }
 0x5e9   : > { %2622 = vmatprep.subr.bf16.mxu1 %v14243_v14  ;;  %v16783_v46 = vpop.f32.mrb[37].mxu0  ;;  %v2203_v49 = vpop.f32.mrb[53].mxu1 }
 0x5ea   : > { %v16785_v52 = vpop.f32.mrb[38].mxu0  ;;  %v2205_v16 = vpop.f32.mrb[54].mxu1 }
 0x5eb   : > { %v2101_v32 = vpack.c.bf16 %v16785_v52, %v16780_v57  ;;  %v16789_v58 = vpop.f32.mrb[39].mxu0  ;;  %v2212_v59 = vpack.c.bf16 %v2205_v16, %v2201_v63  ;;  %v2207_v56 = vpop.f32.mrb[55].mxu1  ;;  %v14352_v16 = vld [vmem:[%s16281_s4 + $0x570] ss:$8 sps:$4 sm:$0xff]  }
 0x5ec   : > { %2623 = vmatpush1.bf16.msra.mxu1 %v14241_v18  ;;  %v2102_v37 = vpack.c.bf16 %v16789_v58, %v16783_v46  ;;  %v2213_v62 = vpack.c.bf16 %v2207_v56, %v2203_v49  ;;  %v14274_v49 = vld [vmem:[%s16281_s4 + $0x3a0] ss:$8 sps:$4 sm:$0xff]   ;;  %v14280_v56 = vld [vmem:[%s16281_s4 + $0x3b0] ss:$8 sps:$4 sm:$0xff]   ;;  %v14330_v46 = vld [vmem:[%s16281_s4 + $0x534] ss:$8 sps:$4 sm:$0xff]  }
 0x5ed   : > { %2624 = vmatprep.subr.bf16.mxu1 %v14246_v3  ;;  %v14328_v58 = vld [vmem:[%s16281_s4 + $0x530] ss:$8 sps:$4 sm:$0xff]  }
 0x5ee   : > { %2449 = vmatprep.mubr.bf16.mxu1 %v2213_v62  ;;  %v14288_v62 = vld [vmem:[%s16281_s4 + $0x3c4] ss:$8 sps:$4 sm:$0xff]  }
 0x5ef   : > { %2450 = vmatmul.mubr.bf16.gmra.mrb[60].mxu1 %v2212_v59  ;;  %v14282_v59 = vld [vmem:[%s16281_s4 + $0x3b4] ss:$8 sps:$4 sm:$0xff]  }
 0x5f0   : > { %2625 = vmatpush1.bf16.msra.mxu1 %v14244_v61  ;;  %v16796_v40 = vpop.f32.mrb[40].mxu0  ;;  %2652 = vmatprep.mubr.bf16.mxu1 %v2100_v36  ;;  %v14276_v36 = vld [vmem:[%s16281_s4 + $0x3a4] ss:$8 sps:$4 sm:$0xff]  }
 0x5f1   : > { %2626 = vmatprep.subr.bf16.mxu1 %v14249_v0  ;;  %v16799_v5 = vpop.f32.mrb[41].mxu0 }
 0x5f2   : > { %v16801_v6 = vpop.f32.mrb[42].mxu0 }
 0x5f3   : > { %v16805_v7 = vpop.f32.mrb[43].mxu0 }
 0x5f4   : > { %2627 = vmatpush1.bf16.msra.mxu1 %v14247_v1  ;;  %v2748_v9 = vpack.c.bf16 %v16805_v7, %v16799_v5  ;;  %v14342_v5 = vld [vmem:[%s16281_s4 + $0x554] ss:$8 sps:$4 sm:$0xff]   ;;  %v14340_v7 = vld [vmem:[%s16281_s4 + $0x550] ss:$8 sps:$4 sm:$0xff]  }
 0x5f5   : > { %2628 = vmatprep.subr.bf16.mxu1 %v14252_v4 }
 0x5f8   : > { %2629 = vmatpush1.bf16.msra.mxu1 %v14250_v8  ;;  %v16812_v33 = vpop.f32.mrb[44].mxu0 }
 0x5f9   : > { %2630 = vmatprep.subr.bf16.mxu1 %v14255_v10  ;;  %v16815_v13 = vpop.f32.mrb[45].mxu0  ;;  %v14286_v10 = vld [vmem:[%s16281_s4 + $0x3c0] ss:$8 sps:$4 sm:$0xff]  }
 0x5fa   : > { %v16817_v15 = vpop.f32.mrb[46].mxu0 }
 0x5fb   : > { %v16821_v34 = vpop.f32.mrb[47].mxu0 }
 0x5fc   : > { %2631 = vmatpush1.bf16.msra.mxu1 %v14253_v11 }
 0x5fd   : > { %2632 = vmatprep.subr.bf16.mxu1 %v14258_v12  ;;  %v14294_v12 = vld [vmem:[%s16281_s4 + $0x3d4] ss:$8 sps:$4 sm:$0xff]  }
 0x600   : > { %2633 = vmatpush1.bf16.msra.mxu1 %v14256_v19  ;;  %v16828_v35 = vpop.f32.mrb[48].mxu0  ;;  %v14292_v19 = vld [vmem:[%s16281_s4 + $0x3d0] ss:$8 sps:$4 sm:$0xff]  }
 0x601   : > { %2634 = vmatprep.subr.bf16.mxu1 %v14261_v21  ;;  %v16831_v25 = vpop.f32.mrb[49].mxu0 }
 0x602   : > { %v16833_v43 = vpop.f32.mrb[50].mxu0 }
 0x603   : > { %v16837_v47 = vpop.f32.mrb[51].mxu0 }
 0x604   : > { %2635 = vmatpush1.bf16.msra.mxu1 %v14259_v22  ;;  %v14300_v22 = vld [vmem:[%s16281_s4 + $0x3e4] ss:$8 sps:$4 sm:$0xff]  }
 0x605   : > { %2636 = vmatprep.subr.bf16.mxu1 %v14264_v24 }
 0x608   : > { %2637 = vmatpush1.bf16.msra.mxu1 %v14262_v44  ;;  %v16844_v51 = vpop.f32.mrb[52].mxu0 }
 0x609   : > { %2638 = vmatprep.subr.bf16.mxu1 %v14270_v31  ;;  %v16847_v14 = vpop.f32.mrb[53].mxu0 }
 0x60a   : > { %v16849_v18 = vpop.f32.mrb[54].mxu0 }
 0x60b   : > { %v16853_v3 = vpop.f32.mrb[55].mxu0 }
 0x60c   : > { %2639 = vmatpush1.bf16.msra.mxu1 %v14268_v45 }
 0x60d   : > { %2640 = vmatprep.subr.bf16.mxu1 %v14276_v36  ;;  %v14298_v36 = vld [vmem:[%s16281_s4 + $0x3e0] ss:$8 sps:$4 sm:$0xff]  }
 0x610   : > { %2641 = vmatpush1.bf16.msra.mxu1 %v14274_v49  ;;  %v16860_v61 = vpop.f32.mrb[56].mxu0  ;;  %v14318_v49 = vld [vmem:[%s16281_s4 + $0x514] ss:$8 sps:$4 sm:$0xff]  }
 0x611   : > { %2642 = vmatprep.subr.bf16.mxu1 %v14282_v59  ;;  %v16863_v0 = vpop.f32.mrb[57].mxu0  ;;  %v14306_v59 = vld [vmem:[%s16281_s4 + $0x3f4] ss:$8 sps:$4 sm:$0xff]  }
 0x612   : > { %v16865_v1 = vpop.f32.mrb[58].mxu0 }
 0x613   : > { %v16869_v8 = vpop.f32.mrb[59].mxu0 }
 0x614   : > { %2643 = vmatpush1.bf16.msra.mxu1 %v14280_v56  ;;  %v14304_v56 = vld [vmem:[%s16281_s4 + $0x3f0] ss:$8 sps:$4 sm:$0xff]  }
 0x615   : > { %2644 = vmatprep.subr.bf16.mxu1 %v14288_v62 }
 0x618   : > { %2645 = vmatpush1.bf16.msra.mxu1 %v14286_v10  ;;  %v16876_v21 = vpop.f32.mrb[60].mxu0  ;;  %v14312_v10 = vld [vmem:[%s16281_s4 + $0x504] ss:$8 sps:$4 sm:$0xff]  }
 0x619   : > { %2646 = vmatprep.subr.bf16.mxu1 %v14294_v12  ;;  %v16879_v24 = vpop.f32.mrb[61].mxu0 }
 0x61a   : > { %v16881_v44 = vpop.f32.mrb[62].mxu0 }
 0x61b   : > { %v16885_v45 = vpop.f32.mrb[63].mxu0 }
 0x61c   : > { %2647 = vmatpush1.bf16.msra.mxu1 %v14292_v19 }
 0x61d   : > { %2648 = vmatprep.subr.bf16.mxu1 %v14300_v22  ;;  %v14310_v22 = vld [vmem:[%s16281_s4 + $0x500] ss:$8 sps:$4 sm:$0xff]  }
 0x620   : > { %2649 = vmatpush1.bf16.msra.mxu1 %v14298_v36  ;;  %v16892_v62 = vpop.f32.mrb[64].mxu0 }
 0x621   : > { %2650 = vmatprep.subr.bf16.mxu1 %v14306_v59  ;;  %v16895_v12 = vpop.f32.mrb[65].mxu0  ;;  %v14316_v59 = vld [vmem:[%s16281_s4 + $0x510] ss:$8 sps:$4 sm:$0xff]  }
 0x622   : > { %v16897_v31 = vpop.f32.mrb[66].mxu0 }
 0x623   : > { %v16901_v4 = vpop.f32.mrb[67].mxu0 }
 0x624   : > { %2651 = vmatpush1.bf16.msra.mxu1 %v14304_v56  ;;  %v14324_v56 = vld [vmem:[%s16281_s4 + $0x524] ss:$8 sps:$4 sm:$0xff]  }
 0x625   : > { %2944 = vmatprep.subr.bf16.mxu1 %v14312_v10 }
 0x627   : > { %2653 = vmatmul.mubr.bf16.vlgmr.msra.gmra.mrb[56].mxu1 %v2099_v29  ;;  %v14322_v29 = vld [vmem:[%s16281_s4 + $0x520] ss:$8 sps:$4 sm:$0xff]  }
 0x628   : > { %2945 = vmatpush1.bf16.msra.mxu1 %v14310_v22  ;;  %v16911_v11 = vpop.f32.mrb[68].mxu0  ;;  %2662 = vmatprep.mubr.bf16.mxu1 %v2102_v37 }
 0x629   : > { %2946 = vmatprep.subr.bf16.mxu1 %v14318_v49  ;;  %v16917_v19 = vpop.f32.mrb[69].mxu0  ;;  %v14336_v49 = vld [vmem:[%s16281_s4 + $0x544] ss:$8 sps:$4 sm:$0xff]  }
 0x62a   : > { %v16919_v10 = vpop.f32.mrb[70].mxu0 }
 0x62b   : > { %v16923_v48 = vpop.f32.mrb[71].mxu0 }
 0x62c   : > { %2947 = vmatpush1.bf16.msra.mxu1 %v14316_v59 }
 0x62d   : > { %2948 = vmatprep.subr.bf16.mxu1 %v14324_v56 }
 0x62f   : > { %2663 = vmatmul.mubr.bf16.gmra.mrb[60].mxu1 %v2101_v32  ;;  %v14334_v32 = vld [vmem:[%s16281_s4 + $0x540] ss:$8 sps:$4 sm:$0xff]  }
 0x630   : > { %2949 = vmatpush1.bf16.msra.mxu1 %v14322_v29  ;;  %v16933_v37 = vpop.f32.mrb[72].mxu0  ;;  %2976 = vmatprep.mubr.bf16.mxu1 %v2748_v9 }
 0x631   : > { %2950 = vmatprep.subr.bf16.mxu1 %v14330_v46  ;;  %v16939_v59 = vpop.f32.mrb[73].mxu0 }
 0x632   : > { %v16941_v56 = vpop.f32.mrb[74].mxu0 }
 0x633   : > { %v16945_v52 = vpop.f32.mrb[75].mxu0 }
 0x634   : > { %2951 = vmatpush1.bf16.msra.mxu1 %v14328_v58  ;;  %v4114_v29 = vpack.c.bf16 %v16945_v52, %v16939_v59  ;;  %v14391_v59 = vld [vmem:[%s16281_s4 + $0x950] ss:$8 sps:$4 sm:$0xff]   ;;  %v14396_v52 = vld [vmem:[%s16281_s4 + $0x5e4] ss:$8 sps:$4 sm:$0xff]  }
 0x635   : > { %2952 = vmatprep.subr.bf16.mxu1 %v14336_v49  ;;  %v14346_v49 = vld [vmem:[%s16281_s4 + $0x560] ss:$8 sps:$4 sm:$0xff]  }
 0x638   : > { %2953 = vmatpush1.bf16.msra.mxu1 %v14334_v32  ;;  %v16952_v9 = vpop.f32.mrb[76].mxu0  ;;  %v14358_v32 = vld [vmem:[%s16281_s4 + $0x580] ss:$8 sps:$4 sm:$0xff]  }
 0x639   : > { %2954 = vmatprep.subr.bf16.mxu1 %v14342_v5  ;;  %v16954_v46 = vpop.f32.mrb[77].mxu0  ;;  %v14354_v5 = vld [vmem:[%s16281_s4 + $0x574] ss:$8 sps:$4 sm:$0xff]  }
 0x63a   : > { %v16957_v22 = vpop.f32.mrb[78].mxu0 }
 0x63b   : > { %v16961_v36 = vpop.f32.mrb[79].mxu0 }
 0x63c   : > { %2955 = vmatpush1.bf16.msra.mxu1 %v14340_v7 }
 0x63d   : > { %2956 = vmatprep.subr.bf16.mxu1 %v14348_v26  ;;  %v14361_v26 = vld [vmem:[%s16281_s4 + $0x900] ss:$8 sps:$4 sm:$0xff]  }
 0x640   : > { %2957 = vmatpush1.bf16.msra.mxu1 %v14346_v49  ;;  %v4184_v63 = vpop.f32.mrb[80].mxu0  ;;  %v14364_v49 = vld [vmem:[%s16281_s4 + $0x590] ss:$8 sps:$4 sm:$0xff]  }
 0x641   : > { %v4186_v28 = vpop.f32.mrb[81].mxu0  ;;  %2958 = vmatprep.subr.bf16.mxu1 %v14354_v5  ;;  %v14367_v5 = vld [vmem:[%s16281_s4 + $0x910] ss:$8 sps:$4 sm:$0xff]  }
 0x642   : > { %v4188_v58 = vpop.f32.mrb[82].mxu0 }
 0x643   : > { %v4203_v7 = vpack.c.bf16 %v4188_v58, %v4184_v63  ;;  %v4190_v57 = vpop.f32.mrb[83].mxu0  ;;  %v14375_v63 = vld [vmem:[%s16281_s4 + $0x924] ss:$8 sps:$4 sm:$0xff]   ;;  %v14370_v58 = vld [vmem:[%s16281_s4 + $0x5a0] ss:$8 sps:$4 sm:$0xff]  }
 0x644   : > { %2959 = vmatpush1.bf16.msra.mxu1 %v14352_v16  ;;  %v4204_v50 = vpack.c.bf16 %v4190_v57, %v4186_v28  ;;  %v14372_v28 = vld [vmem:[%s16281_s4 + $0x5a4] ss:$8 sps:$4 sm:$0xff]  }
 0x645   : > { %2960 = vmatprep.subr.bf16.mxu1 %v14360_v2 }
 0x646   : > { %4432 = vmatprep.mubr.bf16.mxu0 %v4204_v50 }
 0x647   : > { %4433 = vmatmul.mubr.bf16.vlgmr.msra.gmra.mrb[88].mxu0 %v4203_v7 }
 0x648   : > { %2961 = vmatpush1.bf16.msra.mxu1 %v14358_v32  ;;  %4614 = vmatpush1.bf16.msra.mxu0 %v14361_v26  ;;  %v4194_v41 = vpop.f32.mrb[84].mxu0  ;;  %v14373_v32 = vld [vmem:[%s16281_s4 + $0x920] ss:$8 sps:$4 sm:$0xff]   ;;  %v14379_v26 = vld [vmem:[%s16281_s4 + $0x930] ss:$8 sps:$4 sm:$0xff]  }
 0x649   : > { %2962 = vmatprep.subr.bf16.mxu1 %v14366_v17  ;;  %4615 = vmatprep.subr.bf16.mxu0 %v14369_v42  ;;  %v4196_v16 = vpop.f32.mrb[85].mxu0  ;;  %v14378_v17 = vld [vmem:[%s16281_s4 + $0x5b4] ss:$8 sps:$4 sm:$0xff]  }
 0x64a   : > { %v4198_v57 = vpop.f32.mrb[86].mxu0  ;;  %v14381_v42 = vld [vmem:[%s16281_s4 + $0x934] ss:$8 sps:$4 sm:$0xff]  }
 0x64b   : > { %v4205_v2 = vpack.c.bf16 %v4198_v57, %v4194_v41  ;;  %v4200_v50 = vpop.f32.mrb[87].mxu0  ;;  %v14376_v41 = vld [vmem:[%s16281_s4 + $0x5b0] ss:$8 sps:$4 sm:$0xff]   ;;  %v14393_v57 = vld [vmem:[%s16281_s4 + $0x954] ss:$8 sps:$4 sm:$0xff]  }
 0x64c   : > { %2963 = vmatpush1.bf16.msra.mxu1 %v14364_v49  ;;  %4616 = vmatpush1.bf16.msra.mxu0 %v14367_v5  ;;  %v4206_v7 = vpack.c.bf16 %v4200_v50, %v4196_v16  ;;  %v14384_v49 = vld [vmem:[%s16281_s4 + $0x5c4] ss:$8 sps:$4 sm:$0xff]   ;;  %v14390_v16 = vld [vmem:[%s16281_s4 + $0x5d4] ss:$8 sps:$4 sm:$0xff]   ;;  %v14394_v50 = vld [vmem:[%s16281_s4 + $0x5e0] ss:$8 sps:$4 sm:$0xff]  }
 0x64d   : > { %2964 = vmatprep.subr.bf16.mxu1 %v14372_v28  ;;  %4617 = vmatprep.subr.bf16.mxu0 %v14375_v63  ;;  %v14387_v5 = vld [vmem:[%s16281_s4 + $0x944] ss:$8 sps:$4 sm:$0xff]   ;;  %v14382_v28 = vld [vmem:[%s16281_s4 + $0x5c0] ss:$8 sps:$4 sm:$0xff]  }
 0x64e   : > { %4442 = vmatprep.mubr.bf16.mxu0 %v4206_v7  ;;  %v14385_v63 = vld [vmem:[%s16281_s4 + $0x940] ss:$8 sps:$4 sm:$0xff]   ;;  %v14405_v7 = vld [vmem:[%s16281_s4 + $0x974] ss:$8 sps:$4 sm:$0xff]  }
 0x64f   : > { %4443 = vmatmul.mubr.bf16.gmra.mrb[92].mxu0 %v4205_v2  ;;  %v14388_v2 = vld [vmem:[%s16281_s4 + $0x5d0] ss:$8 sps:$4 sm:$0xff]  }
 0x650   : > { %2965 = vmatpush1.bf16.msra.mxu1 %v14370_v58  ;;  %4618 = vmatpush1.bf16.msra.mxu0 %v14373_v32  ;;  %v14397_v58 = vld [vmem:[%s16281_s4 + $0x960] ss:$8 sps:$4 sm:$0xff]   ;;  %v14402_v32 = vld [vmem:[%s16281_s4 + $0x5f4] ss:$8 sps:$4 sm:$0xff]  }
 0x651   : > { %2966 = vmatprep.subr.bf16.mxu1 %v14378_v17  ;;  %4619 = vmatprep.subr.bf16.mxu0 %v14381_v42  ;;  %v14400_v17 = vld [vmem:[%s16281_s4 + $0x5f0] ss:$8 sps:$4 sm:$0xff]  }
 0x652   : > { %4645 = vmatprep.mubr.bf16.mxu0 %v4114_v29  ;;  %v14399_v29 = vld [vmem:[%s16281_s4 + $0x964] ss:$8 sps:$4 sm:$0xff]   ;;  %v14403_v42 = vld [vmem:[%s16281_s4 + $0x970] ss:$8 sps:$4 sm:$0xff]  }
 0x654   : > { %2967 = vmatpush1.bf16.msra.mxu1 %v14376_v41  ;;  %4620 = vmatpush1.bf16.msra.mxu0 %v14379_v26  ;;  %v14408_v41 = vld [vmem:[%s16281_s4 + $0x604] ss:$8 sps:$4 sm:$0xff]  }
 0x655   : > { %2968 = vmatprep.subr.bf16.mxu1 %v14384_v49  ;;  %4621 = vmatprep.subr.bf16.mxu0 %v14387_v5  ;;  %v14411_v26 = vld [vmem:[%s16281_s4 + $0x984] ss:$8 sps:$4 sm:$0xff]   ;;  %v14406_v49 = vld [vmem:[%s16281_s4 + $0x600] ss:$8 sps:$4 sm:$0xff]  }
 0x656   : > { %v14409_v5 = vld [vmem:[%s16281_s4 + $0x980] ss:$8 sps:$4 sm:$0xff]  }
 0x658   : > { %2969 = vmatpush1.bf16.msra.mxu1 %v14382_v28  ;;  %4622 = vmatpush1.bf16.msra.mxu0 %v14385_v63  ;;  %v14414_v28 = vld [vmem:[%s16281_s4 + $0x614] ss:$8 sps:$4 sm:$0xff]  }
 0x659   : > { %2970 = vmatprep.subr.bf16.mxu1 %v14390_v16  ;;  %4623 = vmatprep.subr.bf16.mxu0 %v14393_v57  ;;  %v14417_v63 = vld [vmem:[%s16281_s4 + $0x994] ss:$8 sps:$4 sm:$0xff]   ;;  %v18359_v16 = vpack.c.bf16 %v16801_v6, %v16796_v40  ;;  %v18360_v57 = vpack.c.bf16 %v16821_v34, %v16815_v13  ;;  %v14418_v40 = vld [vmem:[%s16281_s4 + $0x620] ss:$8 sps:$4 sm:$0xff]  }
 0x65a   : > { %v14421_v6 = vld [vmem:[%s16281_s4 + $0x9a0] ss:$8 sps:$4 sm:$0xff]   ;;  %v14426_v13 = vld [vmem:[%s16281_s4 + $0x634] ss:$8 sps:$4 sm:$0xff]  }
 0x65b   : > { %v14429_v34 = vld [vmem:[%s16281_s4 + $0x9b4] ss:$8 sps:$4 sm:$0xff]  }
 0x65c   : > { %2971 = vmatpush1.bf16.msra.mxu1 %v14388_v2  ;;  %4624 = vmatpush1.bf16.msra.mxu0 %v14391_v59  ;;  %v14412_v2 = vld [vmem:[%s16281_s4 + $0x610] ss:$8 sps:$4 sm:$0xff]  }
 0x65d   : > { %2972 = vmatprep.subr.bf16.mxu1 %v14396_v52  ;;  %4625 = vmatprep.subr.bf16.mxu0 %v14399_v29  ;;  %v14415_v59 = vld [vmem:[%s16281_s4 + $0x990] ss:$8 sps:$4 sm:$0xff]   ;;  %v14420_v52 = vld [vmem:[%s16281_s4 + $0x624] ss:$8 sps:$4 sm:$0xff]  }
 0x65e   : > { %v14423_v29 = vld [vmem:[%s16281_s4 + $0x9a4] ss:$8 sps:$4 sm:$0xff]  }
 0x660   : > { %2973 = vmatpush1.bf16.msra.mxu1 %v14394_v50  ;;  %4626 = vmatpush1.bf16.msra.mxu0 %v14397_v58  ;;  %v18361_v50 = vpack.c.bf16 %v16817_v15, %v16812_v33  ;;  %v18362_v58 = vpack.c.bf16 %v16837_v47, %v16831_v25  ;;  %v14430_v33 = vld [vmem:[%s16281_s4 + $0x640] ss:$8 sps:$4 sm:$0xff]   ;;  %v14438_v25 = vld [vmem:[%s16281_s4 + $0x654] ss:$8 sps:$4 sm:$0xff]  }
 0x661   : > { %2974 = vmatprep.subr.bf16.mxu1 %v14402_v32  ;;  %4627 = vmatprep.subr.bf16.mxu0 %v14405_v7  ;;  %v14424_v32 = vld [vmem:[%s16281_s4 + $0x630] ss:$8 sps:$4 sm:$0xff]   ;;  %v14433_v15 = vld [vmem:[%s16281_s4 + $0x9c0] ss:$8 sps:$4 sm:$0xff]   ;;  %v14441_v47 = vld [vmem:[%s16281_s4 + $0x9d4] ss:$8 sps:$4 sm:$0xff]  }
 0x662   : > { %v14427_v7 = vld [vmem:[%s16281_s4 + $0x9b0] ss:$8 sps:$4 sm:$0xff]  }
 0x664   : > { %2975 = vmatpush1.bf16.msra.mxu1 %v14400_v17  ;;  %4628 = vmatpush1.bf16.msra.mxu0 %v14403_v42  ;;  %v14432_v17 = vld [vmem:[%s16281_s4 + $0x644] ss:$8 sps:$4 sm:$0xff]  }
 0x665   : > { %3276 = vmatprep.subr.bf16.mxu1 %v14408_v41  ;;  %4629 = vmatprep.subr.bf16.mxu0 %v14411_v26  ;;  %v14435_v42 = vld [vmem:[%s16281_s4 + $0x9c4] ss:$8 sps:$4 sm:$0xff]   ;;  %v14436_v41 = vld [vmem:[%s16281_s4 + $0x650] ss:$8 sps:$4 sm:$0xff]  }
 0x666   : > { %v14439_v26 = vld [vmem:[%s16281_s4 + $0x9d0] ss:$8 sps:$4 sm:$0xff]  }
 0x667   : > { %2977 = vmatmul.mubr.bf16.vlgmr.msra.gmra.mrb[56].mxu1 %v18359_v16  ;;  %v14450_v16 = vld [vmem:[%s16281_s4 + $0x674] ss:$8 sps:$4 sm:$0xff]  }
 0x668   : > { %2986 = vmatprep.mubr.bf16.mxu1 %v18360_v57  ;;  %3277 = vmatpush1.bf16.msra.mxu1 %v14406_v49  ;;  %v14444_v49 = vld [vmem:[%s16281_s4 + $0x664] ss:$8 sps:$4 sm:$0xff]   ;;  %v14453_v57 = vld [vmem:[%s16281_s4 + $0x9f4] ss:$8 sps:$4 sm:$0xff]  }
 0x669   : > { %4630 = vmatpush1.bf16.msra.mxu0 %v14409_v5  ;;  %3278 = vmatprep.subr.bf16.mxu1 %v14414_v28  ;;  %v14447_v5 = vld [vmem:[%s16281_s4 + $0x9e4] ss:$8 sps:$4 sm:$0xff]   ;;  %v14442_v28 = vld [vmem:[%s16281_s4 + $0x660] ss:$8 sps:$4 sm:$0xff]  }
 0x66a   : > { %4631 = vmatprep.subr.bf16.mxu0 %v14417_v63  ;;  %v14445_v63 = vld [vmem:[%s16281_s4 + $0x9e0] ss:$8 sps:$4 sm:$0xff]  }
 0x66c   : > { %3279 = vmatpush1.bf16.msra.mxu1 %v14412_v2  ;;  %v14448_v2 = vld [vmem:[%s16281_s4 + $0x670] ss:$8 sps:$4 sm:$0xff]  }
 0x66d   : > { %4632 = vmatpush1.bf16.msra.mxu0 %v14415_v59  ;;  %3280 = vmatprep.subr.bf16.mxu1 %v14420_v52  ;;  %v14451_v59 = vld [vmem:[%s16281_s4 + $0x9f0] ss:$8 sps:$4 sm:$0xff]   ;;  %v14456_v52 = vld [vmem:[%s16281_s4 + $0x684] ss:$8 sps:$4 sm:$0xff]  }
 0x66e   : > { %4633 = vmatprep.subr.bf16.mxu0 %v14423_v29  ;;  %v14454_v29 = vld [vmem:[%s16281_s4 + $0x680] ss:$8 sps:$4 sm:$0xff]  }
 0x66f   : > { %2987 = vmatmul.mubr.bf16.gmra.mrb[60].mxu1 %v18361_v50  ;;  %v18364_v50 = vpack.c.bf16 %v16961_v36, %v16954_v46  ;;  %v14468_v36 = vld [vmem:[%s16281_s4 + $0x6c4] ss:$8 sps:$4 sm:$0xff]   ;;  %v18366_v46 = vmov 0  }
 0x670   : > { %3281 = vmatpush1.bf16.msra.mxu1 %v14418_v40  ;;  %3308 = vmatprep.mubr.bf16.mxu1 %v18362_v58  ;;  %v14459_v40 = vld [vmem:[%s16281_s4 + $0x694] ss:$8 sps:$4 sm:$0xff]   ;;  %v14460_v58 = vld [vmem:[%s16281_s4 + $0x6a0] ss:$8 sps:$4 sm:$0xff]  }
 0x671   : > { %4634 = vmatpush1.bf16.msra.mxu0 %v14421_v6  ;;  %3282 = vmatprep.subr.bf16.mxu1 %v14426_v13  ;;  %v18363_v6 = vpack.c.bf16 %v16941_v56, %v16933_v37  ;;  %v14457_v13 = vld [vmem:[%s16281_s4 + $0x690] ss:$8 sps:$4 sm:$0xff]   ;;  %v14465_v37 = vld [vmem:[%s16281_s4 + $0x6b4] ss:$8 sps:$4 sm:$0xff]  }
 0x672   : > { %4635 = vmatprep.subr.bf16.mxu0 %v14429_v34  ;;  %v14462_v34 = vld [vmem:[%s16281_s4 + $0x6a4] ss:$8 sps:$4 sm:$0xff]   ;;  %v14463_v56 = vld [vmem:[%s16281_s4 + $0x6b0] ss:$8 sps:$4 sm:$0xff]  }
 0x674   : > { %3283 = vmatpush1.bf16.msra.mxu1 %v14424_v32  ;;  %v18365_v32 = vpack.c.bf16 %v16957_v22, %v16952_v9  ;;  %v14469_v22 = vld [vmem:[%s16281_s4 + $0x6d0] ss:$8 sps:$4 sm:$0xff]   ;;  %v14670_v9 = vld [vmem:[#allocation8 + $0x30] sm:$0xff]  }
 0x675   : > { %4636 = vmatpush1.bf16.msra.mxu0 %v14427_v7  ;;  %3284 = vmatprep.subr.bf16.mxu1 %v14432_v17  ;;  %v14466_v7 = vld [vmem:[%s16281_s4 + $0x6c0] ss:$8 sps:$4 sm:$0xff]   ;;  %v14471_v17 = vld [vmem:[%s16281_s4 + $0x6d4] ss:$8 sps:$4 sm:$0xff]  }
 0x676   : > { %4637 = vmatprep.subr.bf16.mxu0 %v14435_v42  ;;  %v14474_v42 = vld [vmem:[%s16281_s4 + $0x6e4] ss:$8 sps:$4 sm:$0xff]  }
 0x678   : > { %3285 = vmatpush1.bf16.msra.mxu1 %v14430_v33  ;;  %v14472_v33 = vld [vmem:[%s16281_s4 + $0x6e0] ss:$8 sps:$4 sm:$0xff]  }
 0x679   : > { %4638 = vmatpush1.bf16.msra.mxu0 %v14433_v15  ;;  %3286 = vmatprep.subr.bf16.mxu1 %v14438_v25  ;;  %v14477_v15 = vld [vmem:[%s16281_s4 + $0x6f4] ss:$8 sps:$4 sm:$0xff]   ;;  %v14475_v25 = vld [vmem:[%s16281_s4 + $0x6f0] ss:$8 sps:$4 sm:$0xff]  }
 0x67a   : > { %4639 = vmatprep.subr.bf16.mxu0 %v14441_v47  ;;  %v14671_v47 = vld [vmem:[#allocation8 + $0x38] sm:$0xff]  }
 0x67c   : > { %3287 = vmatpush1.bf16.msra.mxu1 %v14436_v41  ;;  %v14480_v41 = vld [vmem:[%s16281_s4 + $0x704] ss:$8 sps:$4 sm:$0xff]  }
 0x67d   : > { %4640 = vmatpush1.bf16.msra.mxu0 %v14439_v26  ;;  %3288 = vmatprep.subr.bf16.mxu1 %v14444_v49  ;;  %v14478_v26 = vld [vmem:[%s16281_s4 + $0x700] ss:$8 sps:$4 sm:$0xff]   ;;  %v14483_v49 = vld [vmem:[%s16281_s4 + $0x714] ss:$8 sps:$4 sm:$0xff]  }
 0x67e   : > { %4641 = vmatprep.subr.bf16.mxu0 %v14447_v5  ;;  %v18367_v5 = vpack.c.bf16 %v16833_v43, %v16828_v35  ;;  %v18369_v35 = vpack.c.bf16 %v16849_v18, %v16844_v51  ;;  %v18370_v43 = vpack.c.bf16 %v16869_v8, %v16863_v0  ;;  %v14495_v51 = vld [vmem:[%s16281_s4 + $0x754] ss:$8 sps:$4 sm:$0xff]   ;;  %v14493_v18 = vld [vmem:[%s16281_s4 + $0x750] ss:$8 sps:$4 sm:$0xff]   ;;  %v14496_v0 = vld [vmem:[%s16281_s4 + $0x760] ss:$8 sps:$4 sm:$0xff]  }
 0x67f   : > { %v14501_v8 = vld [vmem:[%s16281_s4 + $0x774] ss:$8 sps:$4 sm:$0xff]  }
 0x680   : > { %3289 = vmatpush1.bf16.msra.mxu1 %v14442_v28  ;;  %v18368_v28 = vpack.c.bf16 %v16853_v3, %v16847_v14  ;;  %v14487_v14 = vld [vmem:[%s16281_s4 + $0x730] ss:$8 sps:$4 sm:$0xff]   ;;  %v14492_v3 = vld [vmem:[%s16281_s4 + $0x744] ss:$8 sps:$4 sm:$0xff]  }
 0x681   : > { %4642 = vmatpush1.bf16.msra.mxu0 %v14445_v63  ;;  %3290 = vmatprep.subr.bf16.mxu1 %v14450_v16  ;;  %v14481_v63 = vld [vmem:[%s16281_s4 + $0x710] ss:$8 sps:$4 sm:$0xff]   ;;  %v14486_v16 = vld [vmem:[%s16281_s4 + $0x724] ss:$8 sps:$4 sm:$0xff]  }
 0x682   : > { %4643 = vmatprep.subr.bf16.mxu0 %v14453_v57  ;;  %v14484_v57 = vld [vmem:[%s16281_s4 + $0x720] ss:$8 sps:$4 sm:$0xff]  }
 0x684   : > { %3291 = vmatpush1.bf16.msra.mxu1 %v14448_v2  ;;  %v14489_v2 = vld [vmem:[%s16281_s4 + $0x734] ss:$8 sps:$4 sm:$0xff]  }
 0x685   : > { %4644 = vmatpush1.bf16.msra.mxu0 %v14451_v59  ;;  %3292 = vmatprep.subr.bf16.mxu1 %v14456_v52  ;;  %v14490_v59 = vld [vmem:[%s16281_s4 + $0x740] ss:$8 sps:$4 sm:$0xff]   ;;  %v14498_v52 = vld [vmem:[%s16281_s4 + $0x764] ss:$8 sps:$4 sm:$0xff]  }
 0x686   : > { %4666 = vmatprep.subr.bf16.mxu0 %v16394_v30 }
 0x688   : > { %3293 = vmatpush1.bf16.msra.mxu1 %v14454_v29  ;;  %4646 = vmatmul.mubr.bf16.vlgmr.msra.gmra.mrb[88].mxu0 %v18363_v6  ;;  %v14574_v29 = vld [vmem:[%s16281_s4 + $0xb00] ss:$8 sps:$4 sm:$0xff]   ;;  %v14499_v6 = vld [vmem:[%s16281_s4 + $0x770] ss:$8 sps:$4 sm:$0xff]  }
 0x689   : > { %4667 = vmatpush1.bf16.msra.mxu0 %v16391_v27  ;;  %3294 = vmatprep.subr.bf16.mxu1 %v14459_v40  ;;  %v14576_v40 = vld [vmem:[%s16281_s4 + $0xb04] ss:$8 sps:$4 sm:$0xff]  }
 0x68a   : > { %4668 = vmatprep.subr.bf16.mxu0 %v16406_v60  ;;  %4655 = vmatprep.mubr.bf16.mxu0 %v18364_v50  ;;  %v14577_v50 = vld [vmem:[%s16281_s4 + $0xb10] ss:$8 sps:$4 sm:$0xff]  }
 0x68c   : > { %3295 = vmatpush1.bf16.msra.mxu1 %v14457_v13  ;;  %v14579_v13 = vld [vmem:[%s16281_s4 + $0xb14] ss:$8 sps:$4 sm:$0xff]  }
 0x68d   : > { %4669 = vmatpush1.bf16.msra.mxu0 %v16403_v54  ;;  %3296 = vmatprep.subr.bf16.mxu1 %v14462_v34  ;;  %v14504_v34 = vld [vmem:[%s16281_s4 + $0x784] ss:$8 sps:$4 sm:$0xff]  }
 0x68e   : > { %4670 = vmatprep.subr.bf16.mxu0 %v16418_v23 }
 0x690   : > { %3297 = vmatpush1.bf16.msra.mxu1 %v14460_v58  ;;  %4656 = vmatmul.mubr.bf16.gmra.mrb[92].mxu0 %v18365_v32  ;;  %v14582_v58 = vld [vmem:[%s16281_s4 + $0xb24] ss:$8 sps:$4 sm:$0xff]   ;;  %v14580_v32 = vld [vmem:[%s16281_s4 + $0xb20] ss:$8 sps:$4 sm:$0xff]  }
 0x691   : > { %4671 = vmatpush1.bf16.msra.mxu0 %v16415_v20  ;;  %3298 = vmatprep.subr.bf16.mxu1 %v14465_v37  ;;  %v14502_v37 = vld [vmem:[%s16281_s4 + $0x780] ss:$8 sps:$4 sm:$0xff]  }
 0x692   : > { %4672 = vmatprep.subr.bf16.mxu0 %v16426_v39  ;;  %4698 = vmatprep.mubr.bf16.mxu0 %v18366_v46 }
 0x694   : > { %3299 = vmatpush1.bf16.msra.mxu1 %v14463_v56  ;;  %v14507_v56 = vld [vmem:[%s16281_s4 + $0x794] ss:$8 sps:$4 sm:$0xff]  }
 0x695   : > { %4673 = vmatpush1.bf16.msra.mxu0 %v16424_v38  ;;  %3300 = vmatprep.subr.bf16.mxu1 %v14468_v36  ;;  %v14585_v36 = vld [vmem:[%s16281_s4 + $0xb34] ss:$8 sps:$4 sm:$0xff]  }
 0x696   : > { %4916 = vmatprep.subr.bf16.mxu0 %v14576_v40  ;;  %v14531_v40 = vld [vmem:[%s16281_s4 + $0x814] ss:$8 sps:$4 sm:$0xff]  }
 0x698   : > { %3301 = vmatpush1.bf16.msra.mxu1 %v14466_v7  ;;  %12244 = vmatmul.mubr.msk.bf16.vlgmr.msra.gmra.mrb[96].mxu0 %vm899_vm1, %v14670_v9  ;;  %v14505_v7 = vld [vmem:[%s16281_s4 + $0x790] ss:$8 sps:$4 sm:$0xff]   ;;  %v14588_v9 = vld [vmem:[%s16281_s4 + $0xb44] ss:$8 sps:$4 sm:$0xff]  }
 0x699   : > { %3302 = vmatprep.subr.bf16.mxu1 %v14471_v17  ;;  %4708 = vmatprep.mubr.bf16.mxu0 %v18366_v46  ;;  %v14510_v17 = vld [vmem:[%s16281_s4 + $0x7a4] ss:$8 sps:$4 sm:$0xff]  }
 0x69a   : > { %4917 = vmatpush1.bf16.msra.mxu0 %v14574_v29  ;;  %v14526_v29 = vld [vmem:[%s16281_s4 + $0x800] ss:$8 sps:$4 sm:$0xff]  }
 0x69b   : > { %4918 = vmatprep.subr.bf16.mxu0 %v14579_v13  ;;  %v18371_v13 = vpack.c.bf16 %v16865_v1, %v16860_v61  ;;  %v14612_v61 = vld [vmem:[%s16281_s4 + $0xbc4] ss:$8 sps:$4 sm:$0xff]   ;;  %v14532_v1 = vld [vmem:[%s16281_s4 + $0x820] ss:$8 sps:$4 sm:$0xff]  }
 0x69c   : > { %3303 = vmatpush1.bf16.msra.mxu1 %v14469_v22  ;;  %v14583_v22 = vld [vmem:[%s16281_s4 + $0xb30] ss:$8 sps:$4 sm:$0xff]  }
 0x69d   : > { %3304 = vmatprep.subr.bf16.mxu1 %v14474_v42  ;;  %v14508_v42 = vld [vmem:[%s16281_s4 + $0x7a0] ss:$8 sps:$4 sm:$0xff]  }
 0x69e   : > { %4919 = vmatpush1.bf16.msra.mxu0 %v14577_v50  ;;  %v18372_v50 = vpack.c.bf16 %v16885_v45, %v16879_v24  ;;  %v14610_v24 = vld [vmem:[%s16281_s4 + $0xbc0] ss:$8 sps:$4 sm:$0xff]   ;;  %v18373_v45 = vpack.c.bf16 %v16881_v44, %v16876_v21  ;;  %v14618_v21 = vld [vmem:[%s16281_s4 + $0xbe4] ss:$8 sps:$4 sm:$0xff]  }
 0x69f   : > { %4920 = vmatprep.subr.bf16.mxu0 %v14582_v58  ;;  %v14529_v58 = vld [vmem:[%s16281_s4 + $0x810] ss:$8 sps:$4 sm:$0xff]   ;;  %v14538_v44 = vld [vmem:[%s16281_s4 + $0x840] ss:$8 sps:$4 sm:$0xff]  }
 0x6a0   : > { %3305 = vmatpush1.bf16.msra.mxu1 %v14472_v33  ;;  %12245 = vmatmul.mubr.msk.bf16.gmra.mrb[100].mxu0 %vm899_vm1, %v14671_v47  ;;  %v14513_v33 = vld [vmem:[%s16281_s4 + $0x7b4] ss:$8 sps:$4 sm:$0xff]   ;;  %v14511_v47 = vld [vmem:[%s16281_s4 + $0x7b0] ss:$8 sps:$4 sm:$0xff]  }
 0x6a1   : > { %3306 = vmatprep.subr.bf16.mxu1 %v14477_v15  ;;  %v14586_v15 = vld [vmem:[%s16281_s4 + $0xb40] ss:$8 sps:$4 sm:$0xff]  }
 0x6a2   : > { %4921 = vmatpush1.bf16.msra.mxu0 %v14580_v32  ;;  %v14537_v32 = vld [vmem:[%s16281_s4 + $0x834] ss:$8 sps:$4 sm:$0xff]  }
 0x6a3   : > { %4922 = vmatprep.subr.bf16.mxu0 %v14585_v36  ;;  %v14615_v36 = vld [vmem:[%s16281_s4 + $0xbd4] ss:$8 sps:$4 sm:$0xff]  }
 0x6a4   : > { %3307 = vmatpush1.bf16.msra.mxu1 %v14475_v25  ;;  %v14591_v25 = vld [vmem:[%s16281_s4 + $0xb54] ss:$8 sps:$4 sm:$0xff]  }
 0x6a5   : > { %3608 = vmatprep.subr.bf16.mxu1 %v14480_v41  ;;  %v14516_v41 = vld [vmem:[%s16281_s4 + $0x7c4] ss:$8 sps:$4 sm:$0xff]  }
 0x6a6   : > { %4923 = vmatpush1.bf16.msra.mxu0 %v14583_v22  ;;  %v14540_v22 = vld [vmem:[%s16281_s4 + $0x844] ss:$8 sps:$4 sm:$0xff]  }
 0x6a7   : > { %3309 = vmatmul.mubr.bf16.vlgmr.msra.gmra.mrb[56].mxu1 %v18367_v5  ;;  %4924 = vmatprep.subr.bf16.mxu0 %v14588_v9  ;;  %v14514_v5 = vld [vmem:[%s16281_s4 + $0x7c0] ss:$8 sps:$4 sm:$0xff]   ;;  %v14613_v9 = vld [vmem:[%s16281_s4 + $0xbd0] ss:$8 sps:$4 sm:$0xff]  }
 0x6a8   : > { %3318 = vmatprep.mubr.bf16.mxu1 %v18368_v28  ;;  %3609 = vmatpush1.bf16.msra.mxu1 %v14478_v26  ;;  %v14589_v26 = vld [vmem:[%s16281_s4 + $0xb50] ss:$8 sps:$4 sm:$0xff]   ;;  %v14519_v28 = vld [vmem:[%s16281_s4 + $0x7d4] ss:$8 sps:$4 sm:$0xff]  }
 0x6a9   : > { %3610 = vmatprep.subr.bf16.mxu1 %v14483_v49  ;;  %v14594_v49 = vld [vmem:[%s16281_s4 + $0xb64] ss:$8 sps:$4 sm:$0xff]  }
 0x6aa   : > { %4925 = vmatpush1.bf16.msra.mxu0 %v14586_v15  ;;  %v14546_v15 = vld [vmem:[%s16281_s4 + $0x864] ss:$8 sps:$4 sm:$0xff]  }
 0x6ab   : > { %4926 = vmatprep.subr.bf16.mxu0 %v14591_v25  ;;  %v14619_v25 = vld [vmem:[%s16281_s4 + $0xbf0] ss:$8 sps:$4 sm:$0xff]  }
 0x6ac   : > { %3611 = vmatpush1.bf16.msra.mxu1 %v14481_v63  ;;  %v14592_v63 = vld [vmem:[%s16281_s4 + $0xb60] ss:$8 sps:$4 sm:$0xff]  }
 0x6ad   : > { %3612 = vmatprep.subr.bf16.mxu1 %v14486_v16  ;;  %v14597_v16 = vld [vmem:[%s16281_s4 + $0xb74] ss:$8 sps:$4 sm:$0xff]  }
 0x6ae   : > { %4927 = vmatpush1.bf16.msra.mxu0 %v14589_v26  ;;  %v14549_v26 = vld [vmem:[%s16281_s4 + $0x874] ss:$8 sps:$4 sm:$0xff]  }
 0x6af   : > { %3319 = vmatmul.mubr.bf16.gmra.mrb[60].mxu1 %v18369_v35  ;;  %4928 = vmatprep.subr.bf16.mxu0 %v14594_v49  ;;  %v14595_v35 = vld [vmem:[%s16281_s4 + $0xb70] ss:$8 sps:$4 sm:$0xff]  }
 0x6b0   : > { %3613 = vmatpush1.bf16.msra.mxu1 %v14484_v57  ;;  %3640 = vmatprep.mubr.bf16.mxu1 %v18370_v43  ;;  %v14517_v57 = vld [vmem:[%s16281_s4 + $0x7d0] ss:$8 sps:$4 sm:$0xff]   ;;  %v14600_v43 = vld [vmem:[%s16281_s4 + $0xb84] ss:$8 sps:$4 sm:$0xff]  }
 0x6b1   : > { %3614 = vmatprep.subr.bf16.mxu1 %v14489_v2  ;;  %v14522_v2 = vld [vmem:[%s16281_s4 + $0x7e4] ss:$8 sps:$4 sm:$0xff]   ;;  %v14547_v49 = vld [vmem:[%s16281_s4 + $0x870] ss:$8 sps:$4 sm:$0xff]  }
 0x6b2   : > { %4929 = vmatpush1.bf16.msra.mxu0 %v14592_v63  ;;  %v14555_v63 = vld [vmem:[%s16281_s4 + $0x894] ss:$8 sps:$4 sm:$0xff]  }
 0x6b3   : > { %4930 = vmatprep.subr.bf16.mxu0 %v14597_v16  ;;  %v14553_v16 = vld [vmem:[%s16281_s4 + $0x890] ss:$8 sps:$4 sm:$0xff]  }
 0x6b4   : > { %3615 = vmatpush1.bf16.msra.mxu1 %v14487_v14  ;;  %v14520_v14 = vld [vmem:[%s16281_s4 + $0x7e0] ss:$8 sps:$4 sm:$0xff]  }
 0x6b5   : > { %3616 = vmatprep.subr.bf16.mxu1 %v14492_v3  ;;  %v14525_v3 = vld [vmem:[%s16281_s4 + $0x7f4] ss:$8 sps:$4 sm:$0xff]  }
 0x6b6   : > { %4931 = vmatpush1.bf16.msra.mxu0 %v14595_v35  ;;  %v14561_v35 = vld [vmem:[%s16281_s4 + $0x8b4] ss:$8 sps:$4 sm:$0xff]  }
 0x6b7   : > { %4932 = vmatprep.subr.bf16.mxu0 %v14600_v43  ;;  %v14559_v43 = vld [vmem:[%s16281_s4 + $0x8b0] ss:$8 sps:$4 sm:$0xff]  }
 0x6b8   : > { %3617 = vmatpush1.bf16.msra.mxu1 %v14490_v59  ;;  %v14598_v59 = vld [vmem:[%s16281_s4 + $0xb80] ss:$8 sps:$4 sm:$0xff]  }
 0x6b9   : > { %3618 = vmatprep.subr.bf16.mxu1 %v14495_v51  ;;  %v14603_v51 = vld [vmem:[%s16281_s4 + $0xb94] ss:$8 sps:$4 sm:$0xff]  }
 0x6ba   : > { %4933 = vmatpush1.bf16.msra.mxu0 %v14598_v59  ;;  %v14567_v59 = vld [vmem:[%s16281_s4 + $0x8d4] ss:$8 sps:$4 sm:$0xff]  }
 0x6bb   : > { %4934 = vmatprep.subr.bf16.mxu0 %v14603_v51  ;;  %v14565_v51 = vld [vmem:[%s16281_s4 + $0x8d0] ss:$8 sps:$4 sm:$0xff]  }
 0x6bc   : > { %3619 = vmatpush1.bf16.msra.mxu1 %v14493_v18  ;;  %v14523_v18 = vld [vmem:[%s16281_s4 + $0x7f0] ss:$8 sps:$4 sm:$0xff]  }
 0x6bd   : > { %3620 = vmatprep.subr.bf16.mxu1 %v14498_v52  ;;  %v14528_v52 = vld [vmem:[%s16281_s4 + $0x804] ss:$8 sps:$4 sm:$0xff]  }
 0x6c0   : > { %3621 = vmatpush1.bf16.msra.mxu1 %v14496_v0  ;;  %v14601_v0 = vld [vmem:[%s16281_s4 + $0xb90] ss:$8 sps:$4 sm:$0xff]  }
 0x6c1   : > { %3622 = vmatprep.subr.bf16.mxu1 %v14501_v8  ;;  %v14606_v8 = vld [vmem:[%s16281_s4 + $0xba4] ss:$8 sps:$4 sm:$0xff]   ;;  %4935 = vmatpush1.bf16.msra.mxu0 %v14601_v0  ;;  %v14573_v0 = vld [vmem:[%s16281_s4 + $0x8f4] ss:$8 sps:$4 sm:$0xff]  }
 0x6c2   : > { %4936 = vmatprep.subr.bf16.mxu0 %v14606_v8  ;;  %v14571_v8 = vld [vmem:[%s16281_s4 + $0x8f0] ss:$8 sps:$4 sm:$0xff]  }
 0x6c4   : > { %3623 = vmatpush1.bf16.msra.mxu1 %v14499_v6  ;;  %v14604_v6 = vld [vmem:[%s16281_s4 + $0xba0] ss:$8 sps:$4 sm:$0xff]  }
 0x6c5   : > { %3624 = vmatprep.subr.bf16.mxu1 %v14504_v34  ;;  %v14609_v34 = vld [vmem:[%s16281_s4 + $0xbb4] ss:$8 sps:$4 sm:$0xff]   ;;  %4937 = vmatpush1.bf16.msra.mxu0 %v14604_v6  ;;  %v18377_v6 = vpack.c.bf16 %v16919_v10, %v16911_v11  ;;  %v14628_v10 = vld [vmem:[%s16281_s4 + $0xc20] ss:$8 sps:$4 sm:$0xff]  }
 0x6c6   : > { %4938 = vmatprep.subr.bf16.mxu0 %v14609_v34  ;;  %v14634_v34 = vld [vmem:[%s16281_s4 + $0xc40] ss:$8 sps:$4 sm:$0xff]  }
 0x6c8   : > { %3625 = vmatpush1.bf16.msra.mxu1 %v14502_v37  ;;  %v14534_v37 = vld [vmem:[%s16281_s4 + $0x824] ss:$8 sps:$4 sm:$0xff]  }
 0x6c9   : > { %3626 = vmatprep.subr.bf16.mxu1 %v14507_v56  ;;  %v14607_v56 = vld [vmem:[%s16281_s4 + $0xbb0] ss:$8 sps:$4 sm:$0xff]  }
 0x6ca   : > { %4939 = vmatpush1.bf16.msra.mxu0 %v14607_v56 }
 0x6cb   : > { %4940 = vmatprep.subr.bf16.mxu0 %v14612_v61 }
 0x6cc   : > { %3627 = vmatpush1.bf16.msra.mxu1 %v14505_v7  ;;  %v18374_v7 = vpack.c.bf16 %v16901_v4, %v16895_v12  ;;  %v14616_v4 = vld [vmem:[%s16281_s4 + $0xbe0] ss:$8 sps:$4 sm:$0xff]   ;;  %v14621_v12 = vld [vmem:[%s16281_s4 + $0xbf4] ss:$8 sps:$4 sm:$0xff]  }
 0x6cd   : > { %3628 = vmatprep.subr.bf16.mxu1 %v14510_v17  ;;  %v14535_v17 = vld [vmem:[%s16281_s4 + $0x830] ss:$8 sps:$4 sm:$0xff]  }
 0x6ce   : > { %4941 = vmatpush1.bf16.msra.mxu0 %v14610_v24  ;;  %v14642_v24 = vld [vmem:[%s16281_s4 + $0xc64] ss:$8 sps:$4 sm:$0xff]  }
 0x6cf   : > { %4942 = vmatprep.subr.bf16.mxu0 %v14615_v36  ;;  %v14640_v36 = vld [vmem:[%s16281_s4 + $0xc60] ss:$8 sps:$4 sm:$0xff]  }
 0x6d0   : > { %3629 = vmatpush1.bf16.msra.mxu1 %v14508_v42  ;;  %v14543_v42 = vld [vmem:[%s16281_s4 + $0x854] ss:$8 sps:$4 sm:$0xff]  }
 0x6d1   : > { %3630 = vmatprep.subr.bf16.mxu1 %v14513_v33  ;;  %v14541_v33 = vld [vmem:[%s16281_s4 + $0x850] ss:$8 sps:$4 sm:$0xff]  }
 0x6d2   : > { %4943 = vmatpush1.bf16.msra.mxu0 %v14613_v9  ;;  %v14646_v9 = vld [vmem:[%s16281_s4 + $0xc80] ss:$8 sps:$4 sm:$0xff]  }
 0x6d3   : > { %4944 = vmatprep.subr.bf16.mxu0 %v14618_v21  ;;  %v14651_v21 = vld [vmem:[%s16281_s4 + $0xc94] ss:$8 sps:$4 sm:$0xff]  }
 0x6d4   : > { %3631 = vmatpush1.bf16.msra.mxu1 %v14511_v47  ;;  %v14624_v47 = vld [vmem:[%s16281_s4 + $0xc04] ss:$8 sps:$4 sm:$0xff]  }
 0x6d5   : > { %3632 = vmatprep.subr.bf16.mxu1 %v14516_v41  ;;  %v14544_v41 = vld [vmem:[%s16281_s4 + $0x860] ss:$8 sps:$4 sm:$0xff]  }
 0x6d6   : > { %4945 = vmatpush1.bf16.msra.mxu0 %v14616_v4  ;;  %v14652_v4 = vld [vmem:[%s16281_s4 + $0xca0] ss:$8 sps:$4 sm:$0xff]  }
 0x6d7   : > { %4946 = vmatprep.subr.bf16.mxu0 %v14621_v12  ;;  %v14657_v12 = vld [vmem:[%s16281_s4 + $0xcb4] ss:$8 sps:$4 sm:$0xff]  }
 0x6d8   : > { %3633 = vmatpush1.bf16.msra.mxu1 %v14514_v5  ;;  %v14552_v5 = vld [vmem:[%s16281_s4 + $0x884] ss:$8 sps:$4 sm:$0xff]  }
 0x6d9   : > { %3634 = vmatprep.subr.bf16.mxu1 %v14519_v28  ;;  %v14550_v28 = vld [vmem:[%s16281_s4 + $0x880] ss:$8 sps:$4 sm:$0xff]  }
 0x6da   : > { %4947 = vmatpush1.bf16.msra.mxu0 %v14619_v25  ;;  %v14658_v25 = vld [vmem:[%s16281_s4 + $0xcc0] ss:$8 sps:$4 sm:$0xff]  }
 0x6db   : > { %5227 = vmatprep.subr.bf16.mxu0 %v14624_v47  ;;  %v14663_v47 = vld [vmem:[%s16281_s4 + $0xcd4] ss:$8 sps:$4 sm:$0xff]  }
 0x6dc   : > { %3635 = vmatpush1.bf16.msra.mxu1 %v14517_v57  ;;  %v14558_v57 = vld [vmem:[%s16281_s4 + $0x8a4] ss:$8 sps:$4 sm:$0xff]  }
 0x6dd   : > { %3636 = vmatprep.subr.bf16.mxu1 %v14522_v2  ;;  %v14556_v2 = vld [vmem:[%s16281_s4 + $0x8a0] ss:$8 sps:$4 sm:$0xff]  }
 0x6e0   : > { %3637 = vmatpush1.bf16.msra.mxu1 %v14520_v14  ;;  %v14564_v14 = vld [vmem:[%s16281_s4 + $0x8c4] ss:$8 sps:$4 sm:$0xff]  }
 0x6e1   : > { %3638 = vmatprep.subr.bf16.mxu1 %v14525_v3  ;;  %v14562_v3 = vld [vmem:[%s16281_s4 + $0x8c0] ss:$8 sps:$4 sm:$0xff]  }
 0x6e4   : > { %3639 = vmatpush1.bf16.msra.mxu1 %v14523_v18  ;;  %v14570_v18 = vld [vmem:[%s16281_s4 + $0x8e4] ss:$8 sps:$4 sm:$0xff]  }
 0x6e5   : > { %3940 = vmatprep.subr.bf16.mxu1 %v14528_v52  ;;  %v14568_v52 = vld [vmem:[%s16281_s4 + $0x8e0] ss:$8 sps:$4 sm:$0xff]  }
 0x6e7   : > { %3641 = vmatmul.mubr.bf16.vlgmr.msra.gmra.mrb[56].mxu1 %v18371_v13  ;;  %v14636_v13 = vld [vmem:[%s16281_s4 + $0xc44] ss:$8 sps:$4 sm:$0xff]  }
 0x6e8   : > { %3650 = vmatprep.mubr.bf16.mxu1 %v18372_v50  ;;  %3941 = vmatpush1.bf16.msra.mxu1 %v14526_v29  ;;  %v18375_v29 = vpack.c.bf16 %v16897_v31, %v16892_v62  ;;  %v14627_v31 = vld [vmem:[%s16281_s4 + $0xc14] ss:$8 sps:$4 sm:$0xff]   ;;  %v14625_v62 = vld [vmem:[%s16281_s4 + $0xc10] ss:$8 sps:$4 sm:$0xff]  }
 0x6e9   : > { %3942 = vmatprep.subr.bf16.mxu1 %v14531_v40  ;;  %v18376_v40 = vpack.c.bf16 %v16923_v48, %v16917_v19  ;;  %v14630_v19 = vld [vmem:[%s16281_s4 + $0xc24] ss:$8 sps:$4 sm:$0xff]   ;;  %v14633_v48 = vld [vmem:[%s16281_s4 + $0xc34] ss:$8 sps:$4 sm:$0xff]  }
 0x6ec   : > { %3943 = vmatpush1.bf16.msra.mxu1 %v14529_v58  ;;  %v14639_v58 = vld [vmem:[%s16281_s4 + $0xc54] ss:$8 sps:$4 sm:$0xff]  }
 0x6ed   : > { %3944 = vmatprep.subr.bf16.mxu1 %v14534_v37 }
 0x6ef   : > { %3651 = vmatmul.mubr.bf16.gmra.mrb[60].mxu1 %v18373_v45 }
 0x6f0   : > { %3945 = vmatpush1.bf16.msra.mxu1 %v14532_v1  ;;  %3972 = vmatprep.mubr.bf16.mxu1 %v18374_v7  ;;  %v14637_v1 = vld [vmem:[%s16281_s4 + $0xc50] ss:$8 sps:$4 sm:$0xff]   ;;  %v14645_v7 = vld [vmem:[%s16281_s4 + $0xc74] ss:$8 sps:$4 sm:$0xff]  }
 0x6f1   : > { %3946 = vmatprep.subr.bf16.mxu1 %v14537_v32 }
 0x6f4   : > { %3947 = vmatpush1.bf16.msra.mxu1 %v14535_v17  ;;  %v14643_v17 = vld [vmem:[%s16281_s4 + $0xc70] ss:$8 sps:$4 sm:$0xff]  }
 0x6f5   : > { %3948 = vmatprep.subr.bf16.mxu1 %v14540_v22  ;;  %v14648_v22 = vld [vmem:[%s16281_s4 + $0xc84] ss:$8 sps:$4 sm:$0xff]  }
 0x6f8   : > { %3949 = vmatpush1.bf16.msra.mxu1 %v14538_v44  ;;  %v14649_v44 = vld [vmem:[%s16281_s4 + $0xc90] ss:$8 sps:$4 sm:$0xff]  }
 0x6f9   : > { %3950 = vmatprep.subr.bf16.mxu1 %v14543_v42  ;;  %v14654_v42 = vld [vmem:[%s16281_s4 + $0xca4] ss:$8 sps:$4 sm:$0xff]  }
 0x6fc   : > { %3951 = vmatpush1.bf16.msra.mxu1 %v14541_v33  ;;  %v14655_v33 = vld [vmem:[%s16281_s4 + $0xcb0] ss:$8 sps:$4 sm:$0xff]  }
 0x6fd   : > { %3952 = vmatprep.subr.bf16.mxu1 %v14546_v15  ;;  %v14660_v15 = vld [vmem:[%s16281_s4 + $0xcc4] ss:$8 sps:$4 sm:$0xff]  }
 0x700   : > { %3953 = vmatpush1.bf16.msra.mxu1 %v14544_v41  ;;  %v14661_v41 = vld [vmem:[%s16281_s4 + $0xcd0] ss:$8 sps:$4 sm:$0xff]  }
 0x701   : > { %3954 = vmatprep.subr.bf16.mxu1 %v14549_v26  ;;  %v14666_v26 = vld [vmem:[%s16281_s4 + $0xce4] ss:$8 sps:$4 sm:$0xff]  }
 0x704   : > { %3955 = vmatpush1.bf16.msra.mxu1 %v14547_v49  ;;  %v14664_v49 = vld [vmem:[%s16281_s4 + $0xce0] ss:$8 sps:$4 sm:$0xff]  }
 0x705   : > { %3956 = vmatprep.subr.bf16.mxu1 %v14552_v5  ;;  %v14669_v5 = vld [vmem:[%s16281_s4 + $0xcf4] ss:$8 sps:$4 sm:$0xff]  }
 0x708   : > { %3957 = vmatpush1.bf16.msra.mxu1 %v14550_v28  ;;  %v14667_v28 = vld [vmem:[%s16281_s4 + $0xcf0] ss:$8 sps:$4 sm:$0xff]  }
 0x709   : > { %3958 = vmatprep.subr.bf16.mxu1 %v14555_v63 }
 0x70c   : > { %3959 = vmatpush1.bf16.msra.mxu1 %v14553_v16 }
 0x70d   : > { %3960 = vmatprep.subr.bf16.mxu1 %v14558_v57 }
 0x710   : > { %3961 = vmatpush1.bf16.msra.mxu1 %v14556_v2 }
 0x711   : > { %3962 = vmatprep.subr.bf16.mxu1 %v14561_v35 }
 0x714   : > { %3963 = vmatpush1.bf16.msra.mxu1 %v14559_v43 }
 0x715   : > { %3964 = vmatprep.subr.bf16.mxu1 %v14564_v14 }
 0x718   : > { %3965 = vmatpush1.bf16.msra.mxu1 %v14562_v3 }
 0x719   : > { %3966 = vmatprep.subr.bf16.mxu1 %v14567_v59 }
 0x71c   : > { %3967 = vmatpush1.bf16.msra.mxu1 %v14565_v51 }
 0x71d   : > { %3968 = vmatprep.subr.bf16.mxu1 %v14570_v18 }
 0x720   : > { %3969 = vmatpush1.bf16.msra.mxu1 %v14568_v52 }
 0x721   : > { %3970 = vmatprep.subr.bf16.mxu1 %v14573_v0 }
 0x724   : > { %3971 = vmatpush1.bf16.msra.mxu1 %v14571_v8 }
 0x725   : > { %4977 = vmatprep.subr.bf16.mxu1 %v16394_v30  ;;  %v14673_v30 = vld [vmem:[#allocation8 + $0x48] sm:$0xff]  }
 0x727   : > { %3973 = vmatmul.mubr.bf16.vlgmr.msra.gmra.mrb[56].mxu1 %v18375_v29 }
 0x728   : > { %3982 = vmatprep.mubr.bf16.mxu1 %v18376_v40  ;;  %4978 = vmatpush1.bf16.msra.mxu1 %v16391_v27  ;;  %v14672_v27 = vld [vmem:[#allocation8 + $0x40] sm:$0xff]  }
 0x729   : > { %4979 = vmatprep.subr.bf16.mxu1 %v16406_v60 }
 0x72c   : > { %4980 = vmatpush1.bf16.msra.mxu1 %v16403_v54 }
 0x72d   : > { %4981 = vmatprep.subr.bf16.mxu1 %v16418_v23 }
 0x72f   : > { %3983 = vmatmul.mubr.bf16.gmra.mrb[60].mxu1 %v18377_v6 }
 0x730   : > { %4982 = vmatpush1.bf16.msra.mxu1 %v16415_v20  ;;  %5009 = vmatprep.mubr.bf16.mxu1 %v18366_v46 }
 0x731   : > { %4983 = vmatprep.subr.bf16.mxu1 %v16426_v39 }
 0x734   : > { %4984 = vmatpush1.bf16.msra.mxu1 %v16424_v38  ;;  %v14622_v38 = vld [vmem:[%s16281_s4 + $0xc00] ss:$8 sps:$4 sm:$0xff]  }
 0x737   : > { %12310 = vmatmul.mubr.msk.bf16.vlgmr.msra.gmra.mrb[64].mxu1 %vm899_vm1, %v14672_v27 }
 0x738   : > { %5019 = vmatprep.mubr.bf16.mxu1 %v18366_v46  ;;  %v14631_v46 = vld [vmem:[%s16281_s4 + $0xc30] ss:$8 sps:$4 sm:$0xff]  }
 0x73f   : > { %12311 = vmatmul.mubr.msk.bf16.gmra.mrb[68].mxu1 %vm899_vm1, %v14673_v30 }
 0x76b   : > { %v4700_v54 = vpop.f32.mrb[96].mxu0 }
 0x76c   : > { %v4702_v60 = vpop.f32.mrb[97].mxu0 }
 0x76d   : > { %v4704_v20 = vpop.f32.mrb[98].mxu0 }
 0x76e   : > { %v4719_v23 = vpack.c.bf16 %v4704_v20, %v4700_v54  ;;  %v4706_v39 = vpop.f32.mrb[99].mxu0 }
 0x76f   : > { %v4720_v11 = vpack.c.bf16 %v4706_v39, %v4702_v60  ;;  %v837_v60 = vld [vmem:[#allocation7 + $0x2] ss:$8 sm:$0x3] }
 0x770   : > { %v4005_v20 = vrot.slane %v837_v60, %v16374_v53 }
 0x771   : > { %4948 = vmatprep.mubr.bf16.mxu0 %v4720_v11 }
 0x772   : > { %4949 = vmatmul.mubr.bf16.vlgmr.msra.gmra.mrb[88].mxu0 %v4719_v23  ;;  %v4009_v23 = vrot.slane %v837_v60, %v16376_v55 }
 0x773   : > { %5228 = vmatpush1.bf16.msra.mxu0 %v14622_v38  ;;  %v4710_v50 = vpop.f32.mrb[100].mxu0 }
 0x774   : > { %5229 = vmatprep.subr.bf16.mxu0 %v14627_v31  ;;  %v4712_v37 = vpop.f32.mrb[101].mxu0 }
 0x775   : > { %v4714_v56 = vpop.f32.mrb[102].mxu0 }
 0x776   : > { %v4716_v61 = vpop.f32.mrb[103].mxu0  ;;  %v4721_v45 = vpack.c.bf16 %v4714_v56, %v4710_v50 }
 0x777   : > { %5230 = vmatpush1.bf16.msra.mxu0 %v14625_v62  ;;  %v4722_v32 = vpack.c.bf16 %v4716_v61, %v4712_v37 }
 0x778   : > { %5231 = vmatprep.subr.bf16.mxu0 %v14630_v19 }
 0x779   : > { %4958 = vmatprep.mubr.bf16.mxu0 %v4722_v32 }
 0x77a   : > { %4959 = vmatmul.mubr.bf16.gmra.mrb[92].mxu0 %v4721_v45 }
 0x77b   : > { %5232 = vmatpush1.bf16.msra.mxu0 %v14628_v10 }
 0x77c   : > { %5233 = vmatprep.subr.bf16.mxu0 %v14633_v48 }
 0x77f   : > { %5234 = vmatpush1.bf16.msra.mxu0 %v14631_v46 }
 0x780   : > { %5235 = vmatprep.subr.bf16.mxu0 %v14636_v13 }
 0x783   : > { %5236 = vmatpush1.bf16.msra.mxu0 %v14634_v34 }
 0x784   : > { %5237 = vmatprep.subr.bf16.mxu0 %v14639_v58 }
 0x787   : > { %5238 = vmatpush1.bf16.msra.mxu0 %v14637_v1 }
 0x788   : > { %5239 = vmatprep.subr.bf16.mxu0 %v14642_v24 }
 0x78b   : > { %5240 = vmatpush1.bf16.msra.mxu0 %v14640_v36 }
 0x78c   : > { %5241 = vmatprep.subr.bf16.mxu0 %v14645_v7 }
 0x78f   : > { %5242 = vmatpush1.bf16.msra.mxu0 %v14643_v17 }
 0x790   : > { %5243 = vmatprep.subr.bf16.mxu0 %v14648_v22 }
 0x793   : > { %5244 = vmatpush1.bf16.msra.mxu0 %v14646_v9 }
 0x794   : > { %5245 = vmatprep.subr.bf16.mxu0 %v14651_v21 }
 0x797   : > { %5246 = vmatpush1.bf16.msra.mxu0 %v14649_v44 }
 0x798   : > { %5247 = vmatprep.subr.bf16.mxu0 %v14654_v42 }
 0x79b   : > { %5248 = vmatpush1.bf16.msra.mxu0 %v14652_v4 }
 0x79c   : > { %5249 = vmatprep.subr.bf16.mxu0 %v14657_v12 }
 0x79f   : > { %5250 = vmatpush1.bf16.msra.mxu0 %v14655_v33 }
 0x7a0   : > { %5251 = vmatprep.subr.bf16.mxu0 %v14660_v15 }
 0x7a3   : > { %5252 = vmatpush1.bf16.msra.mxu0 %v14658_v25 }
 0x7a4   : > { %5253 = vmatprep.subr.bf16.mxu0 %v14663_v47 }
 0x7a7   : > { %5254 = vmatpush1.bf16.msra.mxu0 %v14661_v41 }
 0x7a8   : > { %5255 = vmatprep.subr.bf16.mxu0 %v14666_v26 }
 0x7ab   : > { %5256 = vmatpush1.bf16.msra.mxu0 %v14664_v49 }
 0x7ac   : > { %5257 = vmatprep.subr.bf16.mxu0 %v14669_v5 }
 0x7af   : > { %5258 = vmatpush1.bf16.msra.mxu0 %v14667_v28 }
 0x7fa   : > { %v3974_v63 = vpop.f32.mrb[56].mxu1 }
 0x7fb   : > { %v3976_v16 = vpop.f32.mrb[57].mxu1  ;;  %v4012_v39 = vadd.f32 %v4005_v20, %v3974_v63 }
 0x7fc   : > { %v3978_v57 = vpop.f32.mrb[58].mxu1  ;;  %v4013_v11 = vadd.f32 %v4009_v23, %v3976_v16 }
 0x7fd   : > { %v3980_v2 = vpop.f32.mrb[59].mxu1  ;;  %v4014_v38 = vadd.f32 %v4005_v20, %v3978_v57  ;;  %v4028_v62 = vmul.f32 0.2, %v4012_v39  ;;  %vm4020_vm1 = vcmp.ge.f32.partialorder %v4012_v39, 0.0 }
 0x7fe   : > { %v4015_v31 = vadd.f32 %v4009_v23, %v3980_v2  ;;  %v4029_v19 = vmul.f32 0.2, %v4013_v11  ;;  %vm4021_vm3 = vcmp.ge.f32.partialorder %v4013_v11, 0.0 }
 0x7ff   : > { %v4030_v10 = vmul.f32 0.2, %v4014_v38  ;;  %vm4022_vm4 = vcmp.ge.f32.partialorder %v4014_v38, 0.0  ;;  %v4036_v46 = vsel %vm4020_vm1, %v4012_v39, %v4028_v62 }
 0x800   : > { %v4031_v48 = vmul.f32 0.2, %v4015_v31  ;;  %vm4023_vm5 = vcmp.ge.f32.partialorder %v4015_v31, 0.0  ;;  %v4037_v13 = vsel %vm4021_vm3, %v4013_v11, %v4029_v19  ;;  %v12104_v37 = vclamps-f32 %v4036_v46, 181.01933 }
 0x801   : > { %v4038_v34 = vsel %vm4022_vm4, %v4014_v38, %v4030_v10  ;;  %v12105_v61 = vclamps-f32 %v4037_v13, 181.01933 }
 0x802   : > { %v3984_v35 = vpop.f32.mrb[60].mxu1  ;;  %v4039_v58 = vsel %vm4023_vm5, %v4015_v31, %v4031_v48  ;;  %v12106_v1 = vclamps-f32 %v4038_v34, 181.01933 }
 0x803   : > { %v3986_v43 = vpop.f32.mrb[61].mxu1  ;;  %v4016_v50 = vadd.f32 %v4005_v20, %v3984_v35  ;;  %v12107_v36 = vclamps-f32 %v4039_v58, 181.01933 }
 0x804   : > { %v3988_v14 = vpop.f32.mrb[62].mxu1  ;;  %v4017_v53 = vadd.f32 %v4009_v23, %v3986_v43 }
 0x805   : > { %v3990_v3 = vpop.f32.mrb[63].mxu1  ;;  %v4018_v55 = vadd.f32 %v4005_v20, %v3988_v14  ;;  %v4032_v7 = vmul.f32 0.2, %v4016_v50  ;;  %vm4024_vm6 = vcmp.ge.f32.partialorder %v4016_v50, 0.0 }
 0x806   : > { %v4019_v32 = vadd.f32 %v4009_v23, %v3990_v3  ;;  %v4033_v9 = vmul.f32 0.2, %v4017_v53  ;;  %vm4025_vm7 = vcmp.ge.f32.partialorder %v4017_v53, 0.0 }
 0x807   : > { %v4034_v4 = vmul.f32 0.2, %v4018_v55  ;;  %vm4026_vm8 = vcmp.ge.f32.partialorder %v4018_v55, 0.0  ;;  %v4040_v41 = vsel %vm4024_vm6, %v4016_v50, %v4032_v7 }
 0x808   : > { %v4035_v15 = vmul.f32 0.2, %v4019_v32  ;;  %vm4027_vm9 = vcmp.ge.f32.partialorder %v4019_v32, 0.0  ;;  %v4041_v26 = vsel %vm4025_vm7, %v4017_v53, %v4033_v9  ;;  %v12108_v28 = vclamps-f32 %v4040_v41, 181.01933 }
 0x809   : > { %v4042_v5 = vsel %vm4026_vm8, %v4018_v55, %v4034_v4  ;;  %v12109_v2 = vclamps-f32 %v4041_v26, 181.01933 }
 0x80a   : > { %v5011_v59 = vpop.f32.mrb[64].mxu1  ;;  %v4043_v57 = vsel %vm4027_vm9, %v4019_v32, %v4035_v15  ;;  %v12110_v3 = vclamps-f32 %v4042_v5, 181.01933 }
 0x80b   : > { %v5013_v51 = vpop.f32.mrb[65].mxu1 }
 0x80c   : > { %v5015_v18 = vpop.f32.mrb[66].mxu1 }
 0x80d   : > { %v5030_v52 = vpack.c.bf16 %v5015_v18, %v5011_v59  ;;  %v5017_v0 = vpop.f32.mrb[67].mxu1 }
 0x80e   : > { %v5031_v8 = vpack.c.bf16 %v5017_v0, %v5013_v51 }
 0x810   : > { %5259 = vmatprep.mubr.bf16.mxu0 %v5031_v8 }
 0x811   : > { %5260 = vmatmul.mubr.bf16.vlgmr.msra.gmra.mrb[88].mxu0 %v5030_v52  ;;  %v12111_v52 = vclamps-f32 %v4043_v57, 181.01933 }
 0x812   : > { %v5021_v29 = vpop.f32.mrb[68].mxu1 }
 0x813   : > { %v5023_v40 = vpop.f32.mrb[69].mxu1 }
 0x814   : > { %v5025_v6 = vpop.f32.mrb[70].mxu1 }
 0x815   : > { %v5032_v27 = vpack.c.bf16 %v5025_v6, %v5021_v29  ;;  %v5027_v30 = vpop.f32.mrb[71].mxu1 }
 0x816   : > { %v5033_v54 = vpack.c.bf16 %v5027_v30, %v5023_v40 }
 0x818   : > { %5269 = vmatprep.mubr.bf16.mxu0 %v5033_v54 }
 0x819   : > { %5270 = vmatmul.mubr.bf16.gmra.mrb[92].mxu0 %v5032_v27 }
 0x8e4   : > { %v5261_v56 = vpop.f32.mrb[88].mxu0 }
 0x8e5   : > { %v5288_v24 = vmul.f32 0.70710677, %v5261_v56  ;;  %v5263_v45 = vpop.f32.mrb[89].mxu0 }
 0x8e6   : > { %v5289_v17 = vmul.f32 0.70710677, %v5263_v45  ;;  %v5265_v22 = vpop.f32.mrb[90].mxu0 }
 0x8e7   : > { %v5296_v21 = vadd.f32 %v12104_v37, %v5288_v24  ;;  %v5290_v44 = vmul.f32 0.70710677, %v5265_v22  ;;  %v5267_v42 = vpop.f32.mrb[91].mxu0 }
 0x8e8   : > { %v5297_v12 = vadd.f32 %v12105_v61, %v5289_v17  ;;  %v5291_v33 = vmul.f32 0.70710677, %v5267_v42 }
 0x8e9   : > { %5304 = vst [vmem:[#allocation2] sm:$0xff] %v5296_v21  ;;  %v5298_v25 = vadd.f32 %v12106_v1, %v5290_v44 }
 0x8ea   : > { %5305 = vst [vmem:[#allocation2 + $0x8] sm:$0xff] %v5297_v12  ;;  %v5299_v47 = vadd.f32 %v12107_v36, %v5291_v33 }
 0x8eb   : > { %5306 = vst [vmem:[#allocation2 + $0x10] sm:$0xff] %v5298_v25 }
 0x8ec   : > { %5307 = vst [vmem:[#allocation2 + $0x18] sm:$0xff] %v5299_v47  ;;  %v5271_v49 = vpop.f32.mrb[92].mxu0 }
 0x8ed   : > { %v5292_v63 = vmul.f32 0.70710677, %v5271_v49  ;;  %v5273_v16 = vpop.f32.mrb[93].mxu0 }
 0x8ee   : > { %v5293_v35 = vmul.f32 0.70710677, %v5273_v16  ;;  %v5275_v43 = vpop.f32.mrb[94].mxu0 }
 0x8ef   : > { %v5300_v14 = vadd.f32 %v12108_v28, %v5292_v63  ;;  %v5294_v59 = vmul.f32 0.70710677, %v5275_v43  ;;  %v5277_v51 = vpop.f32.mrb[95].mxu0 }
 0x8f0   : > { %v5301_v18 = vadd.f32 %v12109_v2, %v5293_v35  ;;  %v5295_v0 = vmul.f32 0.70710677, %v5277_v51 }
 0x8f1   : > { %5308 = vst [vmem:[#allocation2 + $0x20] sm:$0xff] %v5300_v14  ;;  %v5302_v8 = vadd.f32 %v12110_v3, %v5294_v59 }
 0x8f2   : > { %5309 = vst [vmem:[#allocation2 + $0x28] sm:$0xff] %v5301_v18  ;;  %v5303_v29 = vadd.f32 %v12111_v52, %v5295_v0 }
 0x8f3   : > { %5310 = vst [vmem:[#allocation2 + $0x30] sm:$0xff] %v5302_v8 }
 0x8f4   : > { %5311 = vst [vmem:[#allocation2 + $0x38] sm:$0xff] %v5303_v29 }
 0x8f5 PF: > { %p12376_p7 = scmp.ne.s32.totalorder %s15983_s14, 1 }
 0x8f6   : > { %v5317_v40 = vld [vmem:[#allocation2 + $0x8] sm:$0xff] (!%p12376_p7)  ;;  %v5319_v6 = vld [vmem:[#allocation2 + $0x18] sm:$0xff] (!%p12376_p7)  ;;  %v5316_v27 = vld [vmem:[#allocation2] sm:$0xff] (!%p12376_p7)  ;;  %v15888_v23 = vmov (!%p12376_p7), 0   ;;  %vm5379_vm10 = vcmask (!%p12376_p7), 261120   ;;  %vm9248_vm7 = vcmask (!%p12376_p7), 130048  }
 0x8f7   : > { %5315 = sbr.rel (%p12376_p7) target bundleno = 6005 (0x1775), region = 120  ;;  %v17260_v30 = vpack.c.bf16 (!%p12376_p7), %v5319_v6, %v5317_v40  ;;  %v5318_v54 = vld [vmem:[#allocation2 + $0x10] sm:$0xff] (!%p12376_p7)  ;;  %5418 = vmatprep.mubr.bf16.mxu0 (!%p12376_p7), %v15888_v23  ;;  %v14681_v46 = vld [vmem:[%s16281_s4 + $0x14] ss:$8 sps:$4 sm:$0xff] (!%p12376_p7)   ;;  %v14683_v13 = vld [vmem:[%s16281_s4 + $0x10] ss:$8 sps:$4 sm:$0xff] (!%p12376_p7)  }
 0x8f8   : > { %v17263_v39 = vpack.c.bf16 (!%p12376_p7), %v5318_v54, %v5316_v27  ;;  %v5320_v38 = vld [vmem:[#allocation2 + $0x20] sm:$0xff] (!%p12376_p7)  ;;  %v14674_v19 = vld [vmem:[#allocation13] sm:$0xff] (!%p12376_p7)   ;;  %v14675_v58 = vld [vmem:[#allocation13 + $0x8] sm:$0xff] (!%p12376_p7)   ;;  %s18378_s20 = sld [smem:[#allocation30_spill]] (!%p12376_p7)  ;;  %s18379_s17 = sld [smem:[#allocation31_spill]] (!%p12376_p7) }
 0x8f9   : > { %v5321_v60 = vld [vmem:[#allocation2 + $0x28] sm:$0xff] (!%p12376_p7)  ;;  %5386 = vmatprep.subr.bf16.mxu0 (!%p12376_p7), %v17260_v30  ;;  %v14678_v10 = vld [vmem:[%s16281_s4 + $0x4] ss:$8 sps:$4 sm:$0xff] (!%p12376_p7)   ;;  %v14680_v48 = vld [vmem:[%s16281_s4] ss:$8 sps:$4 sm:$0xff] (!%p12376_p7)   ;;  %s18380_s25 = sld [smem:[#allocation32_spill]] (!%p12376_p7) }
 0x8fa   : > { %v5322_v31 = vld [vmem:[#allocation2 + $0x30] sm:$0xff] (!%p12376_p7)  ;;  %5387 = vmatpush1.bf16.msra.mxu0 (!%p12376_p7), %v17263_v39  ;;  %5635 = vmatprep.subr.bf16.mxu1 (!%p12376_p7), %v14678_v10  ;;  %v14687_v53 = vld [vmem:[%s16281_s4 + $0x34] ss:$8 sps:$4 sm:$0xff] (!%p12376_p7)   ;;  %v14689_v37 = vld [vmem:[%s16281_s4 + $0x30] ss:$8 sps:$4 sm:$0xff] (!%p12376_p7)  }
 0x8fb   : > { %v5323_v20 = vld [vmem:[#allocation2 + $0x38] sm:$0xff] (!%p12376_p7)  ;;  %v17269_v62 = vpack.c.bf16 (!%p12376_p7), %v5322_v31, %v5320_v38  ;;  %5636 = vmatpush1.bf16.msra.mxu1 (!%p12376_p7), %v14680_v48  ;;  %v14676_v61 = vld [vmem:[#allocation13 + $0x10] sm:$0xff] (!%p12376_p7)   ;;  %v14677_v36 = vld [vmem:[#allocation13 + $0x18] sm:$0xff] (!%p12376_p7)  }
 0x8fc   : > { %v17265_v11 = vpack.c.bf16 (!%p12376_p7), %v5323_v20, %v5321_v60  ;;  %5637 = vmatprep.subr.bf16.mxu1 (!%p12376_p7), %v14681_v46  ;;  %v14684_v34 = vld [vmem:[%s16281_s4 + $0x24] ss:$8 sps:$4 sm:$0xff] (!%p12376_p7)   ;;  %v14686_v50 = vld [vmem:[%s16281_s4 + $0x20] ss:$8 sps:$4 sm:$0xff] (!%p12376_p7)   ;;  %v14693_v1 = vld [vmem:[%s16281_s4 + $0x54] ss:$8 sps:$4 sm:$0xff] (!%p12376_p7)  }
 0x8fd   : > { %v14690_v55 = vld [vmem:[%s16281_s4 + $0x44] ss:$8 sps:$4 sm:$0xff] (!%p12376_p7)   ;;  %v14692_v56 = vld [vmem:[%s16281_s4 + $0x40] ss:$8 sps:$4 sm:$0xff] (!%p12376_p7)   ;;  %v14695_v32 = vld [vmem:[%s16281_s4 + $0x50] ss:$8 sps:$4 sm:$0xff] (!%p12376_p7)  }
 0x8fe   : > { %5388 = vmatprep.subr.bf16.mxu0 %v17265_v11  ;;  %v14696_v24 = vld [vmem:[%s16281_s4 + $0x64] ss:$8 sps:$4 sm:$0xff]   ;;  %v14698_v45 = vld [vmem:[%s16281_s4 + $0x60] ss:$8 sps:$4 sm:$0xff]   ;;  %v14699_v7 = vld [vmem:[%s16281_s4 + $0x74] ss:$8 sps:$4 sm:$0xff]  }
 0x8ff   : > { %5389 = vmatpush1.bf16.msra.mxu0 %v17269_v62  ;;  %5638 = vmatpush1.bf16.msra.mxu1 %v14683_v13  ;;  %v14701_v17 = vld [vmem:[%s16281_s4 + $0x70] ss:$8 sps:$4 sm:$0xff]   ;;  %v14702_v22 = vld [vmem:[%s16281_s4 + $0x84] ss:$8 sps:$4 sm:$0xff]   ;;  %v14704_v9 = vld [vmem:[%s16281_s4 + $0x80] ss:$8 sps:$4 sm:$0xff]  }
 0x900   : > { %5922 = vmatprep.subr.bf16.mxu0 %v17260_v30  ;;  %5639 = vmatprep.subr.bf16.mxu1 %v14684_v34  ;;  %v14705_v21 = vld [vmem:[%s16281_s4 + $0x94] ss:$8 sps:$4 sm:$0xff]   ;;  %v14707_v44 = vld [vmem:[%s16281_s4 + $0x90] ss:$8 sps:$4 sm:$0xff]   ;;  %v14708_v42 = vld [vmem:[%s16281_s4 + $0xa4] ss:$8 sps:$4 sm:$0xff]  }
 0x901   : > { %v14710_v4 = vld [vmem:[%s16281_s4 + $0xa0] ss:$8 sps:$4 sm:$0xff]   ;;  %v14711_v12 = vld [vmem:[%s16281_s4 + $0xb4] ss:$8 sps:$4 sm:$0xff]   ;;  %v14713_v33 = vld [vmem:[%s16281_s4 + $0xb0] ss:$8 sps:$4 sm:$0xff]  }
 0x902   : > { %12411 = vmatmul.mubr.msk.bf16.vlgmr.msra.gmra.mrb[0].mxu0 %vm5379_vm10, %v14674_v19  ;;  %v14714_v15 = vld [vmem:[%s16281_s4 + $0xc4] ss:$8 sps:$4 sm:$0xff]   ;;  %v14716_v25 = vld [vmem:[%s16281_s4 + $0xc0] ss:$8 sps:$4 sm:$0xff]   ;;  %v14717_v47 = vld [vmem:[%s16281_s4 + $0xd4] ss:$8 sps:$4 sm:$0xff]  }
 0x903   : > { %5428 = vmatprep.mubr.bf16.mxu0 %v15888_v23  ;;  %5923 = vmatpush1.bf16.msra.mxu0 %v17263_v39  ;;  %v14719_v41 = vld [vmem:[%s16281_s4 + $0xd0] ss:$8 sps:$4 sm:$0xff]   ;;  %v14720_v26 = vld [vmem:[%s16281_s4 + $0xe4] ss:$8 sps:$4 sm:$0xff]   ;;  %v14722_v49 = vld [vmem:[%s16281_s4 + $0xe0] ss:$8 sps:$4 sm:$0xff]  }
 0x904   : > { %5924 = vmatprep.subr.bf16.mxu0 %v17265_v11  ;;  %5640 = vmatpush1.bf16.msra.mxu1 %v14686_v50  ;;  %v14723_v5 = vld [vmem:[%s16281_s4 + $0xf4] ss:$8 sps:$4 sm:$0xff]   ;;  %v14725_v28 = vld [vmem:[%s16281_s4 + $0xf0] ss:$8 sps:$4 sm:$0xff]   ;;  %v14728_v63 = vld [vmem:[%s16281_s4 + $0x104] ss:$8 sps:$4 sm:$0xff]  }
 0x905   : > { %5641 = vmatprep.subr.bf16.mxu1 %v14687_v53  ;;  %v14726_v35 = vld [vmem:[%s16281_s4 + $0x100] ss:$8 sps:$4 sm:$0xff]   ;;  %v14731_v3 = vld [vmem:[%s16281_s4 + $0x114] ss:$8 sps:$4 sm:$0xff]   ;;  %v14729_v51 = vld [vmem:[%s16281_s4 + $0x110] ss:$8 sps:$4 sm:$0xff]  }
 0x906   : > { %v14734_v18 = vld [vmem:[%s16281_s4 + $0x124] ss:$8 sps:$4 sm:$0xff]   ;;  %v14732_v8 = vld [vmem:[%s16281_s4 + $0x120] ss:$8 sps:$4 sm:$0xff]   ;;  %v14737_v40 = vld [vmem:[%s16281_s4 + $0x134] ss:$8 sps:$4 sm:$0xff]  }
 0x907   : > { %5925 = vmatpush1.bf16.msra.mxu0 %v17269_v62  ;;  %v14735_v60 = vld [vmem:[%s16281_s4 + $0x130] ss:$8 sps:$4 sm:$0xff]   ;;  %v14740_v20 = vld [vmem:[%s16281_s4 + $0x144] ss:$8 sps:$4 sm:$0xff]   ;;  %v14738_v19 = vld [vmem:[%s16281_s4 + $0x140] ss:$8 sps:$4 sm:$0xff]  }
 0x908   : > { %5642 = vmatpush1.bf16.msra.mxu1 %v14689_v37  ;;  %v14743_v48 = vld [vmem:[%s16281_s4 + $0x154] ss:$8 sps:$4 sm:$0xff]   ;;  %v14741_v50 = vld [vmem:[%s16281_s4 + $0x150] ss:$8 sps:$4 sm:$0xff]  }
 0x909   : > { %5643 = vmatprep.subr.bf16.mxu1 %v14690_v55  ;;  %v14744_v55 = vld [vmem:[%s16281_s4 + $0x160] ss:$8 sps:$4 sm:$0xff]  }
 0x90a   : > { %12412 = vmatmul.mubr.msk.bf16.gmra.mrb[4].mxu0 %vm5379_vm10, %v14675_v58  ;;  %v14746_v58 = vld [vmem:[%s16281_s4 + $0x164] ss:$8 sps:$4 sm:$0xff]  }
 0x90b   : > { %5954 = vmatprep.mubr.bf16.mxu0 %v15888_v23 }
 0x90c   : > { %5644 = vmatpush1.bf16.msra.mxu1 %v14692_v56 }
 0x90d   : > { %5645 = vmatprep.subr.bf16.mxu1 %v14693_v1 }
 0x910   : > { %5646 = vmatpush1.bf16.msra.mxu1 %v14695_v32 }
 0x911   : > { %5647 = vmatprep.subr.bf16.mxu1 %v14696_v24 }
 0x912   : > { %12479 = vmatmul.mubr.msk.bf16.vlgmr.msra.gmra.mrb[8].mxu0 %vm5379_vm10, %v14676_v61  ;;  %v14749_v61 = vld [vmem:[%s16281_s4 + $0x174] ss:$8 sps:$4 sm:$0xff]  }
 0x913   : > { %5964 = vmatprep.mubr.bf16.mxu0 %v15888_v23 }
 0x914   : > { %5648 = vmatpush1.bf16.msra.mxu1 %v14698_v45  ;;  %v14747_v45 = vld [vmem:[%s16281_s4 + $0x170] ss:$8 sps:$4 sm:$0xff]  }
 0x915   : > { %5649 = vmatprep.subr.bf16.mxu1 %v14699_v7  ;;  %v14750_v7 = vld [vmem:[%s16281_s4 + $0x180] ss:$8 sps:$4 sm:$0xff]  }
 0x918   : > { %5650 = vmatpush1.bf16.msra.mxu1 %v14701_v17  ;;  %v14755_v17 = vld [vmem:[%s16281_s4 + $0x194] ss:$8 sps:$4 sm:$0xff]  }
 0x919   : > { %5651 = vmatprep.subr.bf16.mxu1 %v14702_v22  ;;  %v14753_v22 = vld [vmem:[%s16281_s4 + $0x190] ss:$8 sps:$4 sm:$0xff]  }
 0x91a   : > { %12480 = vmatmul.mubr.msk.bf16.gmra.mrb[12].mxu0 %vm5379_vm10, %v14677_v36  ;;  %v14752_v36 = vld [vmem:[%s16281_s4 + $0x184] ss:$8 sps:$4 sm:$0xff]  }
 0x91b   : > { %6346 = vmatprep.mubr.bf16.mxu0 %v15888_v23 }
 0x91c   : > { %5652 = vmatpush1.bf16.msra.mxu1 %v14704_v9  ;;  %v14758_v9 = vld [vmem:[%s16281_s4 + $0x1a4] ss:$8 sps:$4 sm:$0xff]  }
 0x91d   : > { %5653 = vmatprep.subr.bf16.mxu1 %v14705_v21  ;;  %v14756_v21 = vld [vmem:[%s16281_s4 + $0x1a0] ss:$8 sps:$4 sm:$0xff]  }
 0x920   : > { %5654 = vmatpush1.bf16.msra.mxu1 %v14707_v44  ;;  %v14761_v44 = vld [vmem:[%s16281_s4 + $0x1b4] ss:$8 sps:$4 sm:$0xff]  }
 0x921   : > { %5655 = vmatprep.subr.bf16.mxu1 %v14708_v42  ;;  %v14759_v42 = vld [vmem:[%s16281_s4 + $0x1b0] ss:$8 sps:$4 sm:$0xff]  }
 0x924   : > { %5656 = vmatpush1.bf16.msra.mxu1 %v14710_v4  ;;  %v14764_v4 = vld [vmem:[%s16281_s4 + $0x1c4] ss:$8 sps:$4 sm:$0xff]  }
 0x925   : > { %5657 = vmatprep.subr.bf16.mxu1 %v14711_v12  ;;  %v14762_v12 = vld [vmem:[%s16281_s4 + $0x1c0] ss:$8 sps:$4 sm:$0xff]  }
 0x928   : > { %5658 = vmatpush1.bf16.msra.mxu1 %v14713_v33  ;;  %v14767_v33 = vld [vmem:[%s16281_s4 + $0x1d4] ss:$8 sps:$4 sm:$0xff]  }
 0x929   : > { %5659 = vmatprep.subr.bf16.mxu1 %v14714_v15  ;;  %v14765_v15 = vld [vmem:[%s16281_s4 + $0x1d0] ss:$8 sps:$4 sm:$0xff]  }
 0x92c   : > { %5660 = vmatpush1.bf16.msra.mxu1 %v14716_v25  ;;  %v14770_v25 = vld [vmem:[%s16281_s4 + $0x1e4] ss:$8 sps:$4 sm:$0xff]  }
 0x92d   : > { %5661 = vmatprep.subr.bf16.mxu1 %v14717_v47  ;;  %v14768_v47 = vld [vmem:[%s16281_s4 + $0x1e0] ss:$8 sps:$4 sm:$0xff]  }
 0x930   : > { %5662 = vmatpush1.bf16.msra.mxu1 %v14719_v41  ;;  %v14773_v41 = vld [vmem:[%s16281_s4 + $0x1f4] ss:$8 sps:$4 sm:$0xff]  }
 0x931   : > { %5663 = vmatprep.subr.bf16.mxu1 %v14720_v26  ;;  %v14771_v26 = vld [vmem:[%s16281_s4 + $0x1f0] ss:$8 sps:$4 sm:$0xff]  }
 0x934   : > { %5664 = vmatpush1.bf16.msra.mxu1 %v14722_v49  ;;  %v14776_v49 = vld [vmem:[%s16281_s4 + $0x204] ss:$8 sps:$4 sm:$0xff]  }
 0x935   : > { %5665 = vmatprep.subr.bf16.mxu1 %v14723_v5  ;;  %v14774_v5 = vld [vmem:[%s16281_s4 + $0x200] ss:$8 sps:$4 sm:$0xff]  }
 0x938   : > { %5666 = vmatpush1.bf16.msra.mxu1 %v14725_v28  ;;  %v14779_v28 = vld [vmem:[%s16281_s4 + $0x214] ss:$8 sps:$4 sm:$0xff]  }
 0x939   : > { %5848 = vmatprep.subr.bf16.mxu1 %v14728_v63  ;;  %v14777_v63 = vld [vmem:[%s16281_s4 + $0x210] ss:$8 sps:$4 sm:$0xff]  }
 0x9d5   : > { %v5420_v16 = vpop.f32.mrb[0].mxu0 }
 0x9d6   : > { %v5422_v57 = vpop.f32.mrb[1].mxu0 }
 0x9d7   : > { %v5424_v2 = vpop.f32.mrb[2].mxu0 }
 0x9d8   : > { %v5439_v43 = vpack.c.bf16 %v5424_v2, %v5420_v16  ;;  %v5426_v14 = vpop.f32.mrb[3].mxu0  ;;  %v14782_v16 = vld [vmem:[%s16281_s4 + $0x224] ss:$8 sps:$4 sm:$0xff]   ;;  %v14785_v2 = vld [vmem:[%s16281_s4 + $0x234] ss:$8 sps:$4 sm:$0xff]  }
 0x9d9   : > { %v5440_v59 = vpack.c.bf16 %v5426_v14, %v5422_v57  ;;  %v14780_v57 = vld [vmem:[%s16281_s4 + $0x220] ss:$8 sps:$4 sm:$0xff]  }
 0x9da   : > { %v14786_v14 = vld [vmem:[%s16281_s4 + $0x240] ss:$8 sps:$4 sm:$0xff]  }
 0x9db   : > { %5667 = vmatprep.mubr.bf16.mxu1 %v5440_v59  ;;  %v14789_v59 = vld [vmem:[%s16281_s4 + $0x250] ss:$8 sps:$4 sm:$0xff]  }
 0x9dc   : > { %5668 = vmatmul.mubr.bf16.vlgmr.msra.gmra.mrb[0].mxu1 %v5439_v43  ;;  %v14788_v43 = vld [vmem:[%s16281_s4 + $0x244] ss:$8 sps:$4 sm:$0xff]  }
 0x9dd   : > { %5849 = vmatpush1.bf16.msra.mxu1 %v14726_v35  ;;  %v5430_v52 = vpop.f32.mrb[4].mxu0  ;;  %v14783_v35 = vld [vmem:[%s16281_s4 + $0x230] ss:$8 sps:$4 sm:$0xff]  }
 0x9de   : > { %5850 = vmatprep.subr.bf16.mxu1 %v14731_v3  ;;  %v5432_v0 = vpop.f32.mrb[5].mxu0  ;;  %v14791_v3 = vld [vmem:[%s16281_s4 + $0x254] ss:$8 sps:$4 sm:$0xff]  }
 0x9df   : > { %v5434_v29 = vpop.f32.mrb[6].mxu0 }
 0x9e0   : > { %v5441_v6 = vpack.c.bf16 %v5434_v29, %v5430_v52  ;;  %v5436_v27 = vpop.f32.mrb[7].mxu0  ;;  %v14797_v52 = vld [vmem:[%s16281_s4 + $0x274] ss:$8 sps:$4 sm:$0xff]   ;;  %v14798_v29 = vld [vmem:[%s16281_s4 + $0x280] ss:$8 sps:$4 sm:$0xff]  }
 0x9e1   : > { %5851 = vmatpush1.bf16.msra.mxu1 %v14729_v51  ;;  %v5442_v54 = vpack.c.bf16 %v5436_v27, %v5432_v0  ;;  %v14794_v51 = vld [vmem:[%s16281_s4 + $0x264] ss:$8 sps:$4 sm:$0xff]   ;;  %v14795_v0 = vld [vmem:[%s16281_s4 + $0x270] ss:$8 sps:$4 sm:$0xff]  }
 0x9e2   : > { %5852 = vmatprep.subr.bf16.mxu1 %v14734_v18  ;;  %v14792_v18 = vld [vmem:[%s16281_s4 + $0x260] ss:$8 sps:$4 sm:$0xff]   ;;  %v14806_v27 = vld [vmem:[%s16281_s4 + $0x2a4] ss:$8 sps:$4 sm:$0xff]  }
 0x9e3   : > { %5677 = vmatprep.mubr.bf16.mxu1 %v5442_v54  ;;  %v14804_v54 = vld [vmem:[%s16281_s4 + $0x2a0] ss:$8 sps:$4 sm:$0xff]  }
 0x9e4   : > { %5678 = vmatmul.mubr.bf16.gmra.mrb[4].mxu1 %v5441_v6  ;;  %v14801_v6 = vld [vmem:[%s16281_s4 + $0x290] ss:$8 sps:$4 sm:$0xff]  }
 0x9e5   : > { %5853 = vmatpush1.bf16.msra.mxu1 %v14732_v8  ;;  %5880 = vmatprep.mubr.bf16.mxu1 %v17260_v30  ;;  %v17327_v38 = vpop.f32.mrb[8].mxu0  ;;  %v14800_v8 = vld [vmem:[%s16281_s4 + $0x284] ss:$8 sps:$4 sm:$0xff]  }
 0x9e6   : > { %5854 = vmatprep.subr.bf16.mxu1 %v14737_v40  ;;  %v17329_v31 = vpop.f32.mrb[9].mxu0  ;;  %v14803_v40 = vld [vmem:[%s16281_s4 + $0x294] ss:$8 sps:$4 sm:$0xff]  }
 0x9e7   : > { %v17332_v10 = vpop.f32.mrb[10].mxu0 }
 0x9e8   : > { %v5975_v46 = vpack.c.bf16 %v17332_v10, %v17327_v38  ;;  %v17337_v13 = vpop.f32.mrb[11].mxu0 }
 0x9e9   : > { %5855 = vmatpush1.bf16.msra.mxu1 %v14735_v60  ;;  %v5976_v34 = vpack.c.bf16 %v17337_v13, %v17329_v31  ;;  %v14809_v60 = vld [vmem:[%s16281_s4 + $0x2b4] ss:$8 sps:$4 sm:$0xff]   ;;  %v14812_v31 = vld [vmem:[%s16281_s4 + $0x2c4] ss:$8 sps:$4 sm:$0xff]   ;;  %v14813_v13 = vld [vmem:[%s16281_s4 + $0x2d0] ss:$8 sps:$4 sm:$0xff]  }
 0x9ea   : > { %5856 = vmatprep.subr.bf16.mxu1 %v14740_v20  ;;  %v14807_v20 = vld [vmem:[%s16281_s4 + $0x2b0] ss:$8 sps:$4 sm:$0xff]  }
 0x9ed   : > { %5857 = vmatpush1.bf16.msra.mxu1 %v14738_v19  ;;  %v17343_v53 = vpop.f32.mrb[12].mxu0  ;;  %v14810_v19 = vld [vmem:[%s16281_s4 + $0x2c0] ss:$8 sps:$4 sm:$0xff]  }
 0x9ee   : > { %5858 = vmatprep.subr.bf16.mxu1 %v14743_v48  ;;  %v17345_v37 = vpop.f32.mrb[13].mxu0  ;;  %v14815_v48 = vld [vmem:[%s16281_s4 + $0x2d4] ss:$8 sps:$4 sm:$0xff]  }
 0x9ef   : > { %v17348_v56 = vpop.f32.mrb[14].mxu0 }
 0x9f0   : > { %v5977_v1 = vpack.c.bf16 %v17348_v56, %v17343_v53  ;;  %v17353_v32 = vpop.f32.mrb[15].mxu0 }
 0x9f1   : > { %5859 = vmatpush1.bf16.msra.mxu1 %v14741_v50  ;;  %v5978_v24 = vpack.c.bf16 %v17353_v32, %v17345_v37  ;;  %v14816_v50 = vld [vmem:[%s16281_s4 + $0x2e0] ss:$8 sps:$4 sm:$0xff]  }
 0x9f2   : > { %5860 = vmatprep.subr.bf16.mxu1 %v14746_v58  ;;  %v14821_v58 = vld [vmem:[%s16281_s4 + $0x2f4] ss:$8 sps:$4 sm:$0xff]  }
 0x9f5   : > { %5861 = vmatpush1.bf16.msra.mxu1 %v14744_v55  ;;  %v14819_v55 = vld [vmem:[%s16281_s4 + $0x2f0] ss:$8 sps:$4 sm:$0xff]  }
 0x9f6   : > { %5862 = vmatprep.subr.bf16.mxu1 %v14749_v61  ;;  %v6234_v61 = vlaneseq }
 0x9f9   : > { %5863 = vmatpush1.bf16.msra.mxu1 %v14747_v45  ;;  %v6235_v45 = vshrl.u32 %v6234_v61, 7  ;;  %v14822_v61 = vld [vmem:[#allocation11] sm:$0xff]  }
 0x9fa   : > { %5864 = vmatprep.subr.bf16.mxu1 %v14752_v36 }
 0x9fb   : > { %v17422_v36 = vsub.s32 0, %v6235_v45 }
 0x9fd   : > { %5865 = vmatpush1.bf16.msra.mxu1 %v14750_v7  ;;  %v5329_v7 = vld [vmem:[#allocation7 + $0x3] ss:$8 sm:$0x3] }
 0x9fe   : > { %5866 = vmatprep.subr.bf16.mxu1 %v14755_v17  ;;  %v17424_v17 = vsub.s32 1, %v6235_v45  ;;  %v6237_v38 = vrot.slane %v5329_v7, %v17422_v36  ;;  %v17442_v45 = vld [vmem:[#allocation11 + $0x18] sm:$0xff]  }
 0xa00   : > { %v6241_v10 = vrot.slane %v5329_v7, %v17424_v17  ;;  %v14828_v7 = vld [vmem:[%s16281_s4 + $0x404] ss:$8 sps:$4 sm:$0xff]  }
 0xa01   : > { %5867 = vmatpush1.bf16.msra.mxu1 %v14753_v22 }
 0xa02   : > { %5868 = vmatprep.subr.bf16.mxu1 %v14758_v9 }
 0xa05   : > { %5869 = vmatpush1.bf16.msra.mxu1 %v14756_v21 }
 0xa06   : > { %5870 = vmatprep.subr.bf16.mxu1 %v14761_v44 }
 0xa09   : > { %5871 = vmatpush1.bf16.msra.mxu1 %v14759_v42 }
 0xa0a   : > { %5872 = vmatprep.subr.bf16.mxu1 %v14764_v4 }
 0xa0d   : > { %5873 = vmatpush1.bf16.msra.mxu1 %v14762_v12 }
 0xa0e   : > { %5874 = vmatprep.subr.bf16.mxu1 %v14767_v33 }
 0xa11   : > { %5875 = vmatpush1.bf16.msra.mxu1 %v14765_v15 }
 0xa12   : > { %5876 = vmatprep.subr.bf16.mxu1 %v14770_v25 }
 0xa15   : > { %5877 = vmatpush1.bf16.msra.mxu1 %v14768_v47 }
 0xa16   : > { %5878 = vmatprep.subr.bf16.mxu1 %v14773_v41 }
 0xa19   : > { %5879 = vmatpush1.bf16.msra.mxu1 %v14771_v26 }
 0xa1a   : > { %6172 = vmatprep.subr.bf16.mxu1 %v14776_v49 }
 0xa1c   : > { %5881 = vmatmul.mubr.bf16.vlgmr.msra.gmra.mrb[0].mxu1 %v17263_v39 }
 0xa1d   : > { %6173 = vmatpush1.bf16.msra.mxu1 %v14774_v5  ;;  %5890 = vmatprep.mubr.bf16.mxu1 %v17265_v11 }
 0xa1e   : > { %6174 = vmatprep.subr.bf16.mxu1 %v14779_v28 }
 0xa21   : > { %6175 = vmatpush1.bf16.msra.mxu1 %v14777_v63 }
 0xa22   : > { %6176 = vmatprep.subr.bf16.mxu1 %v14782_v16 }
 0xa24   : > { %5891 = vmatmul.mubr.bf16.gmra.mrb[4].mxu1 %v17269_v62 }
 0xa25   : > { %6177 = vmatpush1.bf16.msra.mxu1 %v14780_v57  ;;  %6204 = vmatprep.mubr.bf16.mxu1 %v5976_v34  ;;  %v14818_v34 = vld [vmem:[%s16281_s4 + $0x2e4] ss:$8 sps:$4 sm:$0xff]  }
 0xa26   : > { %6178 = vmatprep.subr.bf16.mxu1 %v14785_v2 }
 0xa29   : > { %6179 = vmatpush1.bf16.msra.mxu1 %v14783_v35 }
 0xa2a   : > { %6180 = vmatprep.subr.bf16.mxu1 %v14788_v43 }
 0xa2d   : > { %6181 = vmatpush1.bf16.msra.mxu1 %v14786_v14 }
 0xa2e   : > { %6182 = vmatprep.subr.bf16.mxu1 %v14791_v3 }
 0xa31   : > { %6183 = vmatpush1.bf16.msra.mxu1 %v14789_v59 }
 0xa32   : > { %6184 = vmatprep.subr.bf16.mxu1 %v14794_v51 }
 0xa35   : > { %6185 = vmatpush1.bf16.msra.mxu1 %v14792_v18 }
 0xa36   : > { %6186 = vmatprep.subr.bf16.mxu1 %v14797_v52 }
 0xa39   : > { %6187 = vmatpush1.bf16.msra.mxu1 %v14795_v0 }
 0xa3a   : > { %6188 = vmatprep.subr.bf16.mxu1 %v14800_v8 }
 0xa3d   : > { %6189 = vmatpush1.bf16.msra.mxu1 %v14798_v29 }
 0xa3e   : > { %6190 = vmatprep.subr.bf16.mxu1 %v14803_v40 }
 0xa41   : > { %6191 = vmatpush1.bf16.msra.mxu1 %v14801_v6 }
 0xa42   : > { %6192 = vmatprep.subr.bf16.mxu1 %v14806_v27 }
 0xa45   : > { %6193 = vmatpush1.bf16.msra.mxu1 %v14804_v54 }
 0xa46   : > { %6194 = vmatprep.subr.bf16.mxu1 %v14809_v60 }
 0xa49   : > { %6195 = vmatpush1.bf16.msra.mxu1 %v14807_v20 }
 0xa4a   : > { %6196 = vmatprep.subr.bf16.mxu1 %v14812_v31 }
 0xa4d   : > { %6197 = vmatpush1.bf16.msra.mxu1 %v14810_v19 }
 0xa4e   : > { %6198 = vmatprep.subr.bf16.mxu1 %v14815_v48 }
 0xa51   : > { %6199 = vmatpush1.bf16.msra.mxu1 %v14813_v13 }
 0xa52   : > { %6200 = vmatprep.subr.bf16.mxu1 %v14818_v34 }
 0xa55   : > { %6201 = vmatpush1.bf16.msra.mxu1 %v14816_v50 }
 0xa56   : > { %6202 = vmatprep.subr.bf16.mxu1 %v14821_v58 }
 0xa59   : > { %6203 = vmatpush1.bf16.msra.mxu1 %v14819_v55 }
 0xa5c   : > { %6205 = vmatmul.mubr.bf16.vlgmr.msra.gmra.mrb[0].mxu1 %v5975_v46 }
 0xa5d   : > { %6214 = vmatprep.mubr.bf16.mxu1 %v5978_v24 }
 0xa64   : > { %6215 = vmatmul.mubr.bf16.gmra.mrb[4].mxu1 %v5977_v1 }
 0xa65   : > { %7226 = vmatprep.mubr.bf16.mxu1 %v15888_v23 }
 0xb2f   : > { %v6206_v46 = vpop.f32.mrb[0].mxu1 }
 0xb30   : > { %v6244_v37 = vadd.f32 %v6237_v38, %v6206_v46  ;;  %v6208_v32 = vpop.f32.mrb[1].mxu1  ;;  %v14826_v46 = vld [vmem:[%s16281_s4 + $0x400] ss:$8 sps:$4 sm:$0xff]  }
 0xb31   : > { %v6245_v24 = vadd.f32 %v6241_v10, %v6208_v32  ;;  %v6210_v22 = vpop.f32.mrb[2].mxu1  ;;  %v14829_v32 = vld [vmem:[%s16281_s4 + $0x410] ss:$8 sps:$4 sm:$0xff]  }
 0xb32   : > { %vm6252_vm11 = vcmp.ge.f32.partialorder %v6244_v37, 0.0  ;;  %v6260_v53 = vmul.f32 0.2, %v6244_v37  ;;  %v6246_v56 = vadd.f32 %v6237_v38, %v6210_v22  ;;  %v6212_v1 = vpop.f32.mrb[3].mxu1  ;;  %v14832_v22 = vld [vmem:[%s16281_s4 + $0x420] ss:$8 sps:$4 sm:$0xff]  }
 0xb33   : > { %vm6253_vm12 = vcmp.ge.f32.partialorder %v6245_v24, 0.0  ;;  %v6261_v9 = vmul.f32 0.2, %v6245_v24  ;;  %v6247_v21 = vadd.f32 %v6241_v10, %v6212_v1  ;;  %v14840_v1 = vld [vmem:[%s16281_s4 + $0x444] ss:$8 sps:$4 sm:$0xff]  }
 0xb34   : > { %v6268_v44 = vsel %vm6252_vm11, %v6244_v37, %v6260_v53  ;;  %vm6254_vm13 = vcmp.ge.f32.partialorder %v6246_v56, 0.0  ;;  %v6262_v42 = vmul.f32 0.2, %v6246_v56  ;;  %v14831_v37 = vld [vmem:[%s16281_s4 + $0x414] ss:$8 sps:$4 sm:$0xff]  }
 0xb35   : > { %v6276_v4 = vmul.f32 1.4142135, %v6268_v44  ;;  %v6269_v12 = vsel %vm6253_vm12, %v6245_v24, %v6261_v9  ;;  %vm6255_vm14 = vcmp.ge.f32.partialorder %v6247_v21, 0.0  ;;  %v6263_v33 = vmul.f32 0.2, %v6247_v21 }
 0xb36   : > { %v6277_v15 = vmul.f32 1.4142135, %v6269_v12  ;;  %v6270_v25 = vsel %vm6254_vm13, %v6246_v56, %v6262_v42  ;;  %v14834_v24 = vld [vmem:[%s16281_s4 + $0x424] ss:$8 sps:$4 sm:$0xff]   ;;  %v14837_v53 = vld [vmem:[%s16281_s4 + $0x434] ss:$8 sps:$4 sm:$0xff]  }
 0xb37   : > { %v6278_v47 = vmul.f32 1.4142135, %v6270_v25  ;;  %v6271_v41 = vsel %vm6255_vm14, %v6247_v21, %v6263_v33  ;;  %v6216_v26 = vpop.f32.mrb[4].mxu1  ;;  %v12545_v63 = vclamps-f32 %v6276_v4, 256.0  ;;  %v14835_v56 = vld [vmem:[%s16281_s4 + $0x430] ss:$8 sps:$4 sm:$0xff]  }
 0xb38   : > { %v6279_v49 = vmul.f32 1.4142135, %v6271_v41  ;;  %v6248_v5 = vadd.f32 %v6237_v38, %v6216_v26  ;;  %v6218_v28 = vpop.f32.mrb[5].mxu1  ;;  %v12546_v16 = vclamps-f32 %v6277_v15, 256.0  ;;  %v14838_v9 = vld [vmem:[%s16281_s4 + $0x440] ss:$8 sps:$4 sm:$0xff]  }
 0xb39   : > { %v12547_v57 = vclamps-f32 %v6278_v47, 256.0  ;;  %v6249_v2 = vadd.f32 %v6241_v10, %v6218_v28  ;;  %v6220_v35 = vpop.f32.mrb[6].mxu1  ;;  %v14843_v21 = vld [vmem:[%s16281_s4 + $0x454] ss:$8 sps:$4 sm:$0xff]   ;;  %v14841_v44 = vld [vmem:[%s16281_s4 + $0x450] ss:$8 sps:$4 sm:$0xff]  }
 0xb3a   : > { %v12548_v43 = vclamps-f32 %v6279_v49, 256.0  ;;  %vm6256_vm15 = vcmp.ge.f32.partialorder %v6248_v5, 0.0  ;;  %v6264_v14 = vmul.f32 0.2, %v6248_v5  ;;  %v6250_v3 = vadd.f32 %v6237_v38, %v6220_v35  ;;  %v6222_v59 = vpop.f32.mrb[7].mxu1  ;;  %v17458_v38 = vld [vmem:[#allocation11 + $0x8] sm:$0xff]  }
 0xb3b   : > { %v17428_v51 = vpack.c.bf16 %v12547_v57, %v12545_v63  ;;  %vm6257_vm0 = vcmp.ge.f32.partialorder %v6249_v2, 0.0  ;;  %v6265_v18 = vmul.f32 0.2, %v6249_v2  ;;  %v6251_v52 = vadd.f32 %v6241_v10, %v6222_v59  ;;  %v14825_v10 = vld [vmem:[#allocation11 + $0x20] sm:$0xff]   ;;  %v14846_v42 = vld [vmem:[%s16281_s4 + $0x464] ss:$8 sps:$4 sm:$0xff]  }
 0xb3c   : > { %v17430_v0 = vpack.c.bf16 %v12548_v43, %v12546_v16  ;;  %v6272_v8 = vsel %vm6256_vm15, %v6248_v5, %v6264_v14  ;;  %vm6258_vm2 = vcmp.ge.f32.partialorder %v6250_v3, 0.0  ;;  %v6266_v29 = vmul.f32 0.2, %v6250_v3  ;;  %v14844_v4 = vld [vmem:[%s16281_s4 + $0x460] ss:$8 sps:$4 sm:$0xff]  }
 0xb3d   : > { %v6280_v40 = vmul.f32 1.4142135, %v6272_v8  ;;  %v6273_v6 = vsel %vm6257_vm0, %v6249_v2, %v6265_v18  ;;  %vm6259_vm1 = vcmp.ge.f32.partialorder %v6251_v52, 0.0  ;;  %v6267_v27 = vmul.f32 0.2, %v6251_v52  ;;  %v14910_v18 = vld [vmem:[#allocation11 + $0x28] sm:$0xff]  }
 0xb3e   : > { %v6281_v54 = vmul.f32 1.4142135, %v6273_v6  ;;  %v6274_v60 = vsel %vm6258_vm2, %v6250_v3, %v6266_v29  ;;  %6314 = vmatprep.subr.bf16.mxu0 %v17430_v0  ;;  %7194 = vmatprep.subr.bf16.mxu1 %v17430_v0  ;;  %v14849_v12 = vld [vmem:[%s16281_s4 + $0x474] ss:$8 sps:$4 sm:$0xff]   ;;  %v14847_v33 = vld [vmem:[%s16281_s4 + $0x470] ss:$8 sps:$4 sm:$0xff]  }
 0xb3f   : > { %v6282_v20 = vmul.f32 1.4142135, %v6274_v60  ;;  %v6275_v31 = vsel %vm6259_vm1, %v6251_v52, %v6267_v27  ;;  %6315 = vmatpush1.bf16.msra.mxu0 %v17428_v51  ;;  %7195 = vmatpush1.bf16.msra.mxu1 %v17428_v51  ;;  %v12549_v48 = vclamps-f32 %v6280_v40, 256.0  ;;  %v14852_v15 = vld [vmem:[%s16281_s4 + $0x484] ss:$8 sps:$4 sm:$0xff]   ;;  %vm10302_vm0 = vcmask 1041408  }
 0xb40   : > { %v6283_v19 = vmul.f32 1.4142135, %v6275_v31  ;;  %v12550_v34 = vclamps-f32 %v6281_v54, 256.0  ;;  %v14850_v25 = vld [vmem:[%s16281_s4 + $0x480] ss:$8 sps:$4 sm:$0xff]  }
 0xb41   : > { %v12551_v13 = vclamps-f32 %v6282_v20, 256.0  ;;  %v14855_v47 = vld [vmem:[%s16281_s4 + $0x494] ss:$8 sps:$4 sm:$0xff]   ;;  %v14853_v41 = vld [vmem:[%s16281_s4 + $0x490] ss:$8 sps:$4 sm:$0xff]   ;;  %v17515_v52 = vld [vmem:[#allocation11 + $0x10] sm:$0xff]  }
 0xb42   : > { %v12552_v50 = vclamps-f32 %v6283_v19, 256.0  ;;  %v14858_v26 = vld [vmem:[%s16281_s4 + $0x4a4] ss:$8 sps:$4 sm:$0xff]   ;;  %v14856_v49 = vld [vmem:[%s16281_s4 + $0x4a0] ss:$8 sps:$4 sm:$0xff]  }
 0xb43   : > { %v17436_v58 = vpack.c.bf16 %v12551_v13, %v12549_v48  ;;  %v14861_v5 = vld [vmem:[%s16281_s4 + $0x4b4] ss:$8 sps:$4 sm:$0xff]   ;;  %v14859_v28 = vld [vmem:[%s16281_s4 + $0x4b0] ss:$8 sps:$4 sm:$0xff]   ;;  %v14864_v63 = vld [vmem:[%s16281_s4 + $0x4c4] ss:$8 sps:$4 sm:$0xff]  }
 0xb44   : > { %v17438_v55 = vpack.c.bf16 %v12552_v50, %v12550_v34  ;;  %v14862_v16 = vld [vmem:[%s16281_s4 + $0x4c0] ss:$8 sps:$4 sm:$0xff]   ;;  %v14867_v57 = vld [vmem:[%s16281_s4 + $0x4d4] ss:$8 sps:$4 sm:$0xff]   ;;  %v14865_v2 = vld [vmem:[%s16281_s4 + $0x4d0] ss:$8 sps:$4 sm:$0xff]  }
 0xb45   : > { %v14868_v35 = vld [vmem:[%s16281_s4 + $0x4e0] ss:$8 sps:$4 sm:$0xff]   ;;  %v14870_v43 = vld [vmem:[%s16281_s4 + $0x4e4] ss:$8 sps:$4 sm:$0xff]   ;;  %v14873_v14 = vld [vmem:[%s16281_s4 + $0x4f4] ss:$8 sps:$4 sm:$0xff]  }
 0xb46   : > { %6316 = vmatprep.subr.bf16.mxu0 %v17438_v55  ;;  %7196 = vmatprep.subr.bf16.mxu1 %v17438_v55  ;;  %v14871_v3 = vld [vmem:[%s16281_s4 + $0x4f0] ss:$8 sps:$4 sm:$0xff]   ;;  %v14876_v59 = vld [vmem:[%s16281_s4 + $0x304] ss:$8 sps:$4 sm:$0xff]   ;;  %v14924_v8 = vld [vmem:[%s16281_s4 + $0xa00] ss:$8 sps:$4 sm:$0xff]  }
 0xb47   : > { %6317 = vmatpush1.bf16.msra.mxu0 %v17436_v58  ;;  %7197 = vmatpush1.bf16.msra.mxu1 %v17436_v58  ;;  %v14926_v29 = vld [vmem:[%s16281_s4 + $0xa04] ss:$8 sps:$4 sm:$0xff]   ;;  %v14929_v40 = vld [vmem:[%s16281_s4 + $0xa14] ss:$8 sps:$4 sm:$0xff]   ;;  %v14927_v6 = vld [vmem:[%s16281_s4 + $0xa10] ss:$8 sps:$4 sm:$0xff]  }
 0xb48   : > { %6403 = vmatprep.subr.bf16.mxu0 %v17430_v0  ;;  %7490 = vmatprep.subr.bf16.mxu1 %v17430_v0  ;;  %v14932_v27 = vld [vmem:[%s16281_s4 + $0xa24] ss:$8 sps:$4 sm:$0xff]   ;;  %v14930_v54 = vld [vmem:[%s16281_s4 + $0xa20] ss:$8 sps:$4 sm:$0xff]   ;;  %v14938_v60 = vld [vmem:[%s16281_s4 + $0xa34] ss:$8 sps:$4 sm:$0xff]  }
 0xb49   : > { %v14936_v20 = vld [vmem:[%s16281_s4 + $0xa30] ss:$8 sps:$4 sm:$0xff]   ;;  %v14944_v31 = vld [vmem:[%s16281_s4 + $0xa44] ss:$8 sps:$4 sm:$0xff]   ;;  %v14942_v19 = vld [vmem:[%s16281_s4 + $0xa40] ss:$8 sps:$4 sm:$0xff]  }
 0xb4a   : > { %12554 = vmatmul.mubr.msk.bf16.vlgmr.msra.gmra.mrb[16].mxu0 %vm5379_vm10, %v14822_v61  ;;  %12752 = vmatmul.mubr.msk.bf16.vlgmr.msra.gmra.mrb[8].mxu1 %vm5379_vm10, %v17442_v45  ;;  %v14950_v48 = vld [vmem:[%s16281_s4 + $0xa54] ss:$8 sps:$4 sm:$0xff]   ;;  %v14948_v13 = vld [vmem:[%s16281_s4 + $0xa50] ss:$8 sps:$4 sm:$0xff]   ;;  %v14956_v34 = vld [vmem:[%s16281_s4 + $0xa64] ss:$8 sps:$4 sm:$0xff]  }
 0xb4b   : > { %6404 = vmatpush1.bf16.msra.mxu0 %v17428_v51  ;;  %7491 = vmatpush1.bf16.msra.mxu1 %v17428_v51  ;;  %v14954_v50 = vld [vmem:[%s16281_s4 + $0xa60] ss:$8 sps:$4 sm:$0xff]   ;;  %v14962_v61 = vld [vmem:[%s16281_s4 + $0xa74] ss:$8 sps:$4 sm:$0xff]  }
 0xb4c   : > { %6405 = vmatprep.subr.bf16.mxu0 %v17438_v55  ;;  %7492 = vmatprep.subr.bf16.mxu1 %v17438_v55 }
 0xb4d   : > { %6435 = vmatprep.mubr.bf16.mxu0 %v15888_v23  ;;  %7522 = vmatprep.mubr.bf16.mxu1 %v15888_v23 }
 0xb4f   : > { %6406 = vmatpush1.bf16.msra.mxu0 %v17436_v58  ;;  %7493 = vmatpush1.bf16.msra.mxu1 %v17436_v58 }
 0xb50   : > { %7786 = vmatprep.subr.bf16.mxu1 %v17430_v0  ;;  %6641 = vmatprep.subr.bf16.mxu0 %v14828_v7  ;;  %v14960_v7 = vld [vmem:[%s16281_s4 + $0xa70] ss:$8 sps:$4 sm:$0xff]  }
 0xb52   : > { %12588 = vmatmul.mubr.msk.bf16.vlgmr.msra.gmra.mrb[20].mxu0 %vm5379_vm10, %v17458_v38  ;;  %12818 = vmatmul.mubr.msk.bf16.vlgmr.msra.gmra.mrb[12].mxu1 %vm5379_vm10, %v14825_v10  ;;  %v14966_v10 = vld [vmem:[%s16281_s4 + $0xa80] ss:$8 sps:$4 sm:$0xff]  }
 0xb53   : > { %7787 = vmatpush1.bf16.msra.mxu1 %v17428_v51  ;;  %6642 = vmatpush1.bf16.msra.mxu0 %v14826_v46  ;;  %v14974_v46 = vld [vmem:[%s16281_s4 + $0xa94] ss:$8 sps:$4 sm:$0xff]  }
 0xb54   : > { %7788 = vmatprep.subr.bf16.mxu1 %v17438_v55  ;;  %6643 = vmatprep.subr.bf16.mxu0 %v14831_v37  ;;  %v14972_v37 = vld [vmem:[%s16281_s4 + $0xa90] ss:$8 sps:$4 sm:$0xff]  }
 0xb55   : > { %7818 = vmatprep.mubr.bf16.mxu1 %v15888_v23 }
 0xb57   : > { %7789 = vmatpush1.bf16.msra.mxu1 %v17436_v58  ;;  %6644 = vmatpush1.bf16.msra.mxu0 %v14829_v32  ;;  %v14980_v32 = vld [vmem:[%s16281_s4 + $0xaa4] ss:$8 sps:$4 sm:$0xff]  }
 0xb58   : > { %6645 = vmatprep.subr.bf16.mxu0 %v14834_v24  ;;  %8106 = vmatprep.subr.bf16.mxu1 %v17260_v30  ;;  %v14978_v24 = vld [vmem:[%s16281_s4 + $0xaa0] ss:$8 sps:$4 sm:$0xff]  }
 0xb5a   : > { %12884 = vmatmul.mubr.msk.bf16.vlgmr.msra.gmra.mrb[16].mxu1 %vm5379_vm10, %v14910_v18 }
 0xb5b   : > { %6646 = vmatpush1.bf16.msra.mxu0 %v14832_v22  ;;  %8107 = vmatpush1.bf16.msra.mxu1 %v17263_v39  ;;  %v14986_v22 = vld [vmem:[%s16281_s4 + $0xab4] ss:$8 sps:$4 sm:$0xff]  }
 0xb5c   : > { %6647 = vmatprep.subr.bf16.mxu0 %v14837_v53  ;;  %8138 = vmatprep.mubr.bf16.mxu1 %v15888_v23 }
 0xb5d   : > { %8108 = vmatprep.subr.bf16.mxu1 %v17265_v11 }
 0xb5f   : > { %6648 = vmatpush1.bf16.msra.mxu0 %v14835_v56  ;;  %8109 = vmatpush1.bf16.msra.mxu1 %v17269_v62 }
 0xb60   : > { %6649 = vmatprep.subr.bf16.mxu0 %v14840_v1  ;;  %8184 = vmatprep.subr.bf16.mxu1 %v17260_v30 }
 0xb62   : > { %12953 = vmatmul.mubr.msk.bf16.vlgmr.msra.gmra.mrb[20].mxu1 %vm5379_vm10, %v17458_v38  ;;  %v14968_v38 = vld [vmem:[%s16281_s4 + $0xa84] ss:$8 sps:$4 sm:$0xff]  }
 0xb63   : > { %6650 = vmatpush1.bf16.msra.mxu0 %v14838_v9  ;;  %8185 = vmatpush1.bf16.msra.mxu1 %v17263_v39 }
 0xb64   : > { %6651 = vmatprep.subr.bf16.mxu0 %v14843_v21  ;;  %8216 = vmatprep.mubr.bf16.mxu1 %v15888_v23 }
 0xb65   : > { %8186 = vmatprep.subr.bf16.mxu1 %v17265_v11 }
 0xb67   : > { %6652 = vmatpush1.bf16.msra.mxu0 %v14841_v44  ;;  %8187 = vmatpush1.bf16.msra.mxu1 %v17269_v62 }
 0xb68   : > { %6653 = vmatprep.subr.bf16.mxu0 %v14846_v42  ;;  %8422 = vmatprep.subr.bf16.mxu1 %v14926_v29  ;;  %v14984_v42 = vld [vmem:[%s16281_s4 + $0xab0] ss:$8 sps:$4 sm:$0xff]  }
 0xb69   : > { %v14877_v29 = vld [vmem:[%s16281_s4 + $0x310] ss:$8 sps:$4 sm:$0xff]  }
 0xb6a   : > { %12986 = vmatmul.mubr.msk.bf16.vlgmr.msra.gmra.mrb[24].mxu1 %vm5379_vm10, %v17515_v52 }
 0xb6b   : > { %6654 = vmatpush1.bf16.msra.mxu0 %v14844_v4  ;;  %8423 = vmatpush1.bf16.msra.mxu1 %v14924_v8  ;;  %v14879_v8 = vld [vmem:[%s16281_s4 + $0x314] ss:$8 sps:$4 sm:$0xff]  }
 0xb6c   : > { %6655 = vmatprep.subr.bf16.mxu0 %v14849_v12  ;;  %8424 = vmatprep.subr.bf16.mxu1 %v14929_v40  ;;  %v14882_v40 = vld [vmem:[%s16281_s4 + $0x324] ss:$8 sps:$4 sm:$0xff]  }
 0xb6f   : > { %6656 = vmatpush1.bf16.msra.mxu0 %v14847_v33  ;;  %8425 = vmatpush1.bf16.msra.mxu1 %v14927_v6  ;;  %v14996_v6 = vld [vmem:[%s16281_s4 + $0xad0] ss:$8 sps:$4 sm:$0xff]  }
 0xb70   : > { %6657 = vmatprep.subr.bf16.mxu0 %v14852_v15  ;;  %8426 = vmatprep.subr.bf16.mxu1 %v14932_v27  ;;  %v14998_v27 = vld [vmem:[%s16281_s4 + $0xad4] ss:$8 sps:$4 sm:$0xff]  }
 0xb73   : > { %6658 = vmatpush1.bf16.msra.mxu0 %v14850_v25  ;;  %8427 = vmatpush1.bf16.msra.mxu1 %v14930_v54  ;;  %v14992_v25 = vld [vmem:[%s16281_s4 + $0xac4] ss:$8 sps:$4 sm:$0xff]   ;;  %v14880_v54 = vld [vmem:[%s16281_s4 + $0x320] ss:$8 sps:$4 sm:$0xff]  }
 0xb74   : > { %6659 = vmatprep.subr.bf16.mxu0 %v14855_v47  ;;  %8428 = vmatprep.subr.bf16.mxu1 %v14938_v60  ;;  %v14885_v60 = vld [vmem:[%s16281_s4 + $0x334] ss:$8 sps:$4 sm:$0xff]  }
 0xb77   : > { %6660 = vmatpush1.bf16.msra.mxu0 %v14853_v41  ;;  %8429 = vmatpush1.bf16.msra.mxu1 %v14936_v20  ;;  %v14883_v20 = vld [vmem:[%s16281_s4 + $0x330] ss:$8 sps:$4 sm:$0xff]  }
 0xb78   : > { %6661 = vmatprep.subr.bf16.mxu0 %v14858_v26  ;;  %8430 = vmatprep.subr.bf16.mxu1 %v14944_v31  ;;  %v14990_v26 = vld [vmem:[%s16281_s4 + $0xac0] ss:$8 sps:$4 sm:$0xff]   ;;  %v14888_v31 = vld [vmem:[%s16281_s4 + $0x344] ss:$8 sps:$4 sm:$0xff]  }
 0xb7b   : > { %6662 = vmatpush1.bf16.msra.mxu0 %v14856_v49  ;;  %8431 = vmatpush1.bf16.msra.mxu1 %v14942_v19  ;;  %v15002_v19 = vld [vmem:[%s16281_s4 + $0xae0] ss:$8 sps:$4 sm:$0xff]  }
 0xb7c   : > { %6663 = vmatprep.subr.bf16.mxu0 %v14861_v5  ;;  %8432 = vmatprep.subr.bf16.mxu1 %v14950_v48  ;;  %v15004_v48 = vld [vmem:[%s16281_s4 + $0xae4] ss:$8 sps:$4 sm:$0xff]  }
 0xb7f   : > { %6664 = vmatpush1.bf16.msra.mxu0 %v14859_v28  ;;  %8433 = vmatpush1.bf16.msra.mxu1 %v14948_v13  ;;  %v14886_v13 = vld [vmem:[%s16281_s4 + $0x340] ss:$8 sps:$4 sm:$0xff]  }
 0xb80   : > { %6665 = vmatprep.subr.bf16.mxu0 %v14864_v63  ;;  %8434 = vmatprep.subr.bf16.mxu1 %v14956_v34  ;;  %v14891_v34 = vld [vmem:[%s16281_s4 + $0x354] ss:$8 sps:$4 sm:$0xff]  }
 0xb83   : > { %6666 = vmatpush1.bf16.msra.mxu0 %v14862_v16  ;;  %8435 = vmatpush1.bf16.msra.mxu1 %v14954_v50  ;;  %v14889_v50 = vld [vmem:[%s16281_s4 + $0x350] ss:$8 sps:$4 sm:$0xff]  }
 0xb84   : > { %6667 = vmatprep.subr.bf16.mxu0 %v14867_v57  ;;  %8436 = vmatprep.subr.bf16.mxu1 %v14962_v61  ;;  %v14894_v61 = vld [vmem:[%s16281_s4 + $0x364] ss:$8 sps:$4 sm:$0xff]  }
 0xb87   : > { %6668 = vmatpush1.bf16.msra.mxu0 %v14865_v2  ;;  %8437 = vmatpush1.bf16.msra.mxu1 %v14960_v7  ;;  %v15008_v7 = vld [vmem:[%s16281_s4 + $0xaf0] ss:$8 sps:$4 sm:$0xff]  }
 0xb88   : > { %6669 = vmatprep.subr.bf16.mxu0 %v14870_v43  ;;  %8438 = vmatprep.subr.bf16.mxu1 %v14968_v38  ;;  %v15010_v38 = vld [vmem:[%s16281_s4 + $0xaf4] ss:$8 sps:$4 sm:$0xff]  }
 0xb8b   : > { %6670 = vmatpush1.bf16.msra.mxu0 %v14868_v35  ;;  %8439 = vmatpush1.bf16.msra.mxu1 %v14966_v10  ;;  %v14892_v10 = vld [vmem:[%s16281_s4 + $0x360] ss:$8 sps:$4 sm:$0xff]  }
 0xb8c   : > { %6671 = vmatprep.subr.bf16.mxu0 %v14873_v14  ;;  %8440 = vmatprep.subr.bf16.mxu1 %v14974_v46  ;;  %v14897_v46 = vld [vmem:[%s16281_s4 + $0x374] ss:$8 sps:$4 sm:$0xff]  }
 0xb8f   : > { %6672 = vmatpush1.bf16.msra.mxu0 %v14871_v3  ;;  %8441 = vmatpush1.bf16.msra.mxu1 %v14972_v37  ;;  %v15016_v37 = vld [vmem:[%s16281_s4 + $0x904] ss:$8 sps:$4 sm:$0xff]  }
 0xb90   : > { %6844 = vmatprep.subr.bf16.mxu0 %v14876_v59  ;;  %8442 = vmatprep.subr.bf16.mxu1 %v14980_v32  ;;  %v14874_v59 = vld [vmem:[%s16281_s4 + $0x300] ss:$8 sps:$4 sm:$0xff]   ;;  %v14895_v32 = vld [vmem:[%s16281_s4 + $0x370] ss:$8 sps:$4 sm:$0xff]  }
 0xb93   : > { %8443 = vmatpush1.bf16.msra.mxu1 %v14978_v24  ;;  %v14900_v24 = vld [vmem:[%s16281_s4 + $0x384] ss:$8 sps:$4 sm:$0xff]  }
 0xb94   : > { %8444 = vmatprep.subr.bf16.mxu1 %v14986_v22  ;;  %v14898_v22 = vld [vmem:[%s16281_s4 + $0x380] ss:$8 sps:$4 sm:$0xff]  }
 0xb97   : > { %8445 = vmatpush1.bf16.msra.mxu1 %v14984_v42  ;;  %v14901_v42 = vld [vmem:[%s16281_s4 + $0x390] ss:$8 sps:$4 sm:$0xff]  }
 0xb98   : > { %8446 = vmatprep.subr.bf16.mxu1 %v14992_v25  ;;  %v14904_v25 = vld [vmem:[%s16281_s4 + $0x3a0] ss:$8 sps:$4 sm:$0xff]  }
 0xb9b   : > { %8447 = vmatpush1.bf16.msra.mxu1 %v14990_v26  ;;  %v14907_v26 = vld [vmem:[%s16281_s4 + $0x3b0] ss:$8 sps:$4 sm:$0xff]  }
 0xb9c   : > { %8448 = vmatprep.subr.bf16.mxu1 %v14998_v27  ;;  %v14963_v27 = vld [vmem:[%s16281_s4 + $0x550] ss:$8 sps:$4 sm:$0xff]  }
 0xb9f   : > { %8449 = vmatpush1.bf16.msra.mxu1 %v14996_v6  ;;  %v14965_v6 = vld [vmem:[%s16281_s4 + $0x554] ss:$8 sps:$4 sm:$0xff]  }
 0xba0   : > { %8450 = vmatprep.subr.bf16.mxu1 %v15004_v48  ;;  %v14981_v48 = vld [vmem:[%s16281_s4 + $0x580] ss:$8 sps:$4 sm:$0xff]  }
 0xba3   : > { %8451 = vmatpush1.bf16.msra.mxu1 %v15002_v19  ;;  %v14983_v19 = vld [vmem:[%s16281_s4 + $0x584] ss:$8 sps:$4 sm:$0xff]  }
 0xba4   : > { %8452 = vmatprep.subr.bf16.mxu1 %v15010_v38  ;;  %v14999_v38 = vld [vmem:[%s16281_s4 + $0x5b0] ss:$8 sps:$4 sm:$0xff]  }
 0xba7   : > { %8453 = vmatpush1.bf16.msra.mxu1 %v15008_v7  ;;  %v15001_v7 = vld [vmem:[%s16281_s4 + $0x5b4] ss:$8 sps:$4 sm:$0xff]  }
 0xba8   : > { %8625 = vmatprep.subr.bf16.mxu1 %v15016_v37  ;;  %v15013_v37 = vld [vmem:[%s16281_s4 + $0x5d4] ss:$8 sps:$4 sm:$0xff]  }
 0xc1d   : > { %v17542_v53 = vpop.f32.mrb[16].mxu0  ;;  %v17544_v56 = vpop.f32.mrb[8].mxu1 }
 0xc1e   : > { %v6350_v1 = vpop.f32.mrb[17].mxu0  ;;  %v17546_v9 = vpop.f32.mrb[9].mxu1 }
 0xc1f   : > { %v17548_v21 = vpop.f32.mrb[18].mxu0  ;;  %v17550_v44 = vpop.f32.mrb[10].mxu1 }
 0xc20   : > { %v6357_v4 = vpack.c.bf16 %v17548_v21, %v17542_v53  ;;  %v6354_v12 = vpop.f32.mrb[19].mxu0  ;;  %v7237_v33 = vpack.c.bf16 %v17550_v44, %v17544_v56  ;;  %v17557_v15 = vpop.f32.mrb[11].mxu1  ;;  %v14947_v53 = vld [vmem:[%s16281_s4 + $0x524] ss:$8 sps:$4 sm:$0xff]   ;;  %v14951_v21 = vld [vmem:[%s16281_s4 + $0x530] ss:$8 sps:$4 sm:$0xff]  }
 0xc21   : > { %v6358_v47 = vpack.c.bf16 %v6354_v12, %v6350_v1  ;;  %v7238_v41 = vpack.c.bf16 %v17557_v15, %v17546_v9  ;;  %v14903_v1 = vld [vmem:[%s16281_s4 + $0x394] ss:$8 sps:$4 sm:$0xff]   ;;  %v14906_v12 = vld [vmem:[%s16281_s4 + $0x3a4] ss:$8 sps:$4 sm:$0xff]   ;;  %v15059_v15 = vld [vmem:[%s16281_s4 + $0x650] ss:$8 sps:$4 sm:$0xff]  }
 0xc22   : > { %v15061_v9 = vld [vmem:[%s16281_s4 + $0x654] ss:$8 sps:$4 sm:$0xff]   ;;  %v15214_v56 = vld [vmem:[%s16281_s4 + $0xb04] ss:$8 sps:$4 sm:$0xff]   ;;  %v15125_v44 = vld [vmem:[%s16281_s4 + $0x730] ss:$8 sps:$4 sm:$0xff]  }
 0xc25   : > { %v6437_v49 = vpop.f32.mrb[20].mxu0  ;;  %v17563_v5 = vpop.f32.mrb[12].mxu1 }
 0xc26   : > { %v6439_v28 = vpop.f32.mrb[21].mxu0  ;;  %v17565_v63 = vpop.f32.mrb[13].mxu1 }
 0xc27   : > { %v6441_v16 = vpop.f32.mrb[22].mxu0  ;;  %v17567_v57 = vpop.f32.mrb[14].mxu1 }
 0xc28   : > { %v6446_v2 = vpack.c.bf16 %v6441_v16, %v6437_v49  ;;  %v6443_v35 = vpop.f32.mrb[23].mxu0  ;;  %v7533_v43 = vpack.c.bf16 %v17567_v57, %v17563_v5  ;;  %v17571_v14 = vpop.f32.mrb[15].mxu1  ;;  %v14913_v49 = vld [vmem:[%s16281_s4 + $0x3c4] ss:$8 sps:$4 sm:$0xff]   ;;  %v14916_v16 = vld [vmem:[%s16281_s4 + $0x3d4] ss:$8 sps:$4 sm:$0xff]  }
 0xc29   : > { %v6447_v3 = vpack.c.bf16 %v6443_v35, %v6439_v28  ;;  %v7534_v18 = vpack.c.bf16 %v17571_v14, %v17565_v63  ;;  %v14911_v28 = vld [vmem:[%s16281_s4 + $0x3c0] ss:$8 sps:$4 sm:$0xff]   ;;  %v14919_v35 = vld [vmem:[%s16281_s4 + $0x3e4] ss:$8 sps:$4 sm:$0xff]   ;;  %v15215_v14 = vld [vmem:[%s16281_s4 + $0xb10] ss:$8 sps:$4 sm:$0xff]  }
 0xc2a   : > { %v15130_v63 = vld [vmem:[%s16281_s4 + $0x744] ss:$8 sps:$4 sm:$0xff]   ;;  %v15170_v57 = vld [vmem:[%s16281_s4 + $0x820] ss:$8 sps:$4 sm:$0xff]  }
 0xc2b   : > { %6673 = vmatprep.mubr.bf16.mxu0 %v6447_v3  ;;  %v14917_v3 = vld [vmem:[%s16281_s4 + $0x3e0] ss:$8 sps:$4 sm:$0xff]   ;;  %v15262_v5 = vld [vmem:[%s16281_s4 + $0xc04] ss:$8 sps:$4 sm:$0xff]  }
 0xc2c   : > { %6674 = vmatmul.mubr.bf16.vlgmr.msra.gmra.mrb[24].mxu0 %v6446_v2  ;;  %v14914_v2 = vld [vmem:[%s16281_s4 + $0x3d0] ss:$8 sps:$4 sm:$0xff]  }
 0xc2d   : > { %6845 = vmatpush1.bf16.msra.mxu0 %v14874_v59  ;;  %6876 = vmatprep.mubr.bf16.mxu0 %v6358_v47  ;;  %v14909_v47 = vld [vmem:[%s16281_s4 + $0x3b4] ss:$8 sps:$4 sm:$0xff]  }
 0xc2e   : > { %6846 = vmatprep.subr.bf16.mxu0 %v14879_v8  ;;  %v14922_v59 = vld [vmem:[%s16281_s4 + $0x3f4] ss:$8 sps:$4 sm:$0xff]   ;;  %v14920_v8 = vld [vmem:[%s16281_s4 + $0x3f0] ss:$8 sps:$4 sm:$0xff]  }
 0xc31   : > { %6847 = vmatpush1.bf16.msra.mxu0 %v14877_v29  ;;  %v14935_v29 = vld [vmem:[%s16281_s4 + $0x504] ss:$8 sps:$4 sm:$0xff]  }
 0xc32   : > { %6848 = vmatprep.subr.bf16.mxu0 %v14882_v40  ;;  %v14933_v40 = vld [vmem:[%s16281_s4 + $0x500] ss:$8 sps:$4 sm:$0xff]  }
 0xc35   : > { %6849 = vmatpush1.bf16.msra.mxu0 %v14880_v54  ;;  %v14971_v54 = vld [vmem:[%s16281_s4 + $0x564] ss:$8 sps:$4 sm:$0xff]  }
 0xc36   : > { %6850 = vmatprep.subr.bf16.mxu0 %v14885_v60  ;;  %v14969_v60 = vld [vmem:[%s16281_s4 + $0x560] ss:$8 sps:$4 sm:$0xff]  }
 0xc39   : > { %6851 = vmatpush1.bf16.msra.mxu0 %v14883_v20  ;;  %v14977_v20 = vld [vmem:[%s16281_s4 + $0x574] ss:$8 sps:$4 sm:$0xff]  }
 0xc3a   : > { %6852 = vmatprep.subr.bf16.mxu0 %v14888_v31  ;;  %v14975_v31 = vld [vmem:[%s16281_s4 + $0x570] ss:$8 sps:$4 sm:$0xff]  }
 0xc3d   : > { %6853 = vmatpush1.bf16.msra.mxu0 %v14886_v13  ;;  %v14989_v13 = vld [vmem:[%s16281_s4 + $0x594] ss:$8 sps:$4 sm:$0xff]  }
 0xc3e   : > { %6854 = vmatprep.subr.bf16.mxu0 %v14891_v34  ;;  %v14987_v34 = vld [vmem:[%s16281_s4 + $0x590] ss:$8 sps:$4 sm:$0xff]  }
 0xc41   : > { %6855 = vmatpush1.bf16.msra.mxu0 %v14889_v50  ;;  %v14995_v50 = vld [vmem:[%s16281_s4 + $0x5a4] ss:$8 sps:$4 sm:$0xff]  }
 0xc42   : > { %6856 = vmatprep.subr.bf16.mxu0 %v14894_v61  ;;  %v14993_v61 = vld [vmem:[%s16281_s4 + $0x5a0] ss:$8 sps:$4 sm:$0xff]  }
 0xc45   : > { %6857 = vmatpush1.bf16.msra.mxu0 %v14892_v10  ;;  %v15007_v10 = vld [vmem:[%s16281_s4 + $0x5c4] ss:$8 sps:$4 sm:$0xff]  }
 0xc46   : > { %6858 = vmatprep.subr.bf16.mxu0 %v14897_v46  ;;  %v15005_v46 = vld [vmem:[%s16281_s4 + $0x5c0] ss:$8 sps:$4 sm:$0xff]  }
 0xc49   : > { %6859 = vmatpush1.bf16.msra.mxu0 %v14895_v32  ;;  %v15011_v32 = vld [vmem:[%s16281_s4 + $0x5d0] ss:$8 sps:$4 sm:$0xff]  }
 0xc4a   : > { %6860 = vmatprep.subr.bf16.mxu0 %v14900_v24  ;;  %v15019_v24 = vld [vmem:[%s16281_s4 + $0x5e4] ss:$8 sps:$4 sm:$0xff]  }
 0xc4d   : > { %6861 = vmatpush1.bf16.msra.mxu0 %v14898_v22  ;;  %v15017_v22 = vld [vmem:[%s16281_s4 + $0x5e0] ss:$8 sps:$4 sm:$0xff]  }
 0xc4e   : > { %6862 = vmatprep.subr.bf16.mxu0 %v14903_v1  ;;  %v17653_v1 = vpop.f32.mrb[16].mxu1 }
 0xc51   : > { %6863 = vmatpush1.bf16.msra.mxu0 %v14901_v42  ;;  %v17655_v42 = vpop.f32.mrb[17].mxu1 }
 0xc52   : > { %6864 = vmatprep.subr.bf16.mxu0 %v14906_v12  ;;  %v17657_v12 = vpop.f32.mrb[18].mxu1 }
 0xc55   : > { %6865 = vmatpush1.bf16.msra.mxu0 %v14904_v25  ;;  %v7829_v25 = vpack.c.bf16 %v17657_v12, %v17653_v1  ;;  %v15296_v1 = vld [vmem:[%s16281_s4 + $0xcc0] ss:$8 sps:$4 sm:$0xff]   ;;  %v15526_v12 = vld [vmem:[#allocation11 + $0x20] sm:$0xff]  }
 0xc56   : > { %6866 = vmatprep.subr.bf16.mxu0 %v14909_v47  ;;  %v17661_v47 = vpop.f32.mrb[19].mxu1 }
 0xc59   : > { %6867 = vmatpush1.bf16.msra.mxu0 %v14907_v26  ;;  %v7830_v26 = vpack.c.bf16 %v17661_v47, %v17655_v42  ;;  %v15173_v42 = vld [vmem:[%s16281_s4 + $0x830] ss:$8 sps:$4 sm:$0xff]   ;;  %v15178_v47 = vld [vmem:[%s16281_s4 + $0x844] ss:$8 sps:$4 sm:$0xff]  }
 0xc5a   : > { %6868 = vmatprep.subr.bf16.mxu0 %v14913_v49  ;;  %v17665_v49 = vpop.f32.mrb[20].mxu1 }
 0xc5d   : > { %6869 = vmatpush1.bf16.msra.mxu0 %v14911_v28  ;;  %v8142_v28 = vpop.f32.mrb[21].mxu1 }
 0xc5e   : > { %6870 = vmatprep.subr.bf16.mxu0 %v14916_v16  ;;  %v17667_v16 = vpop.f32.mrb[22].mxu1 }
 0xc61   : > { %6871 = vmatpush1.bf16.msra.mxu0 %v14914_v2  ;;  %v8149_v2 = vpack.c.bf16 %v17667_v16, %v17665_v49 }
 0xc62   : > { %6872 = vmatprep.subr.bf16.mxu0 %v14919_v35  ;;  %v8146_v35 = vpop.f32.mrb[23].mxu1 }
 0xc65   : > { %6873 = vmatpush1.bf16.msra.mxu0 %v14917_v3  ;;  %v8150_v3 = vpack.c.bf16 %v8146_v35, %v8142_v28  ;;  %v15088_v28 = vld [vmem:[%s16281_s4 + $0x9c4] ss:$8 sps:$4 sm:$0xff]   ;;  %v15086_v35 = vld [vmem:[%s16281_s4 + $0x9c0] ss:$8 sps:$4 sm:$0xff]  }
 0xc66   : > { %6874 = vmatprep.subr.bf16.mxu0 %v14922_v59  ;;  %v8218_v59 = vpop.f32.mrb[24].mxu1 }
 0xc69   : > { %6875 = vmatpush1.bf16.msra.mxu0 %v14920_v8  ;;  %v8220_v8 = vpop.f32.mrb[25].mxu1 }
 0xc6a   : > { %6898 = vmatprep.subr.bf16.mxu0 %v17430_v0  ;;  %v14941_v0 = vld [vmem:[%s16281_s4 + $0x514] ss:$8 sps:$4 sm:$0xff]  }
 0xc6c   : > { %6877 = vmatmul.mubr.bf16.vlgmr.msra.gmra.mrb[24].mxu0 %v6357_v4  ;;  %v14959_v4 = vld [vmem:[%s16281_s4 + $0x544] ss:$8 sps:$4 sm:$0xff]  }
 0xc6d   : > { %6899 = vmatpush1.bf16.msra.mxu0 %v17428_v51  ;;  %6930 = vmatprep.mubr.bf16.mxu0 %v15888_v23  ;;  %v14939_v51 = vld [vmem:[%s16281_s4 + $0x510] ss:$8 sps:$4 sm:$0xff]  }
 0xc6e   : > { %6900 = vmatprep.subr.bf16.mxu0 %v17438_v55  ;;  %v14945_v55 = vld [vmem:[%s16281_s4 + $0x520] ss:$8 sps:$4 sm:$0xff]  }
 0xc71   : > { %6901 = vmatpush1.bf16.msra.mxu0 %v17436_v58  ;;  %v14953_v58 = vld [vmem:[%s16281_s4 + $0x534] ss:$8 sps:$4 sm:$0xff]  }
 0xc72   : > { %7136 = vmatprep.subr.bf16.mxu0 %v14935_v29  ;;  %v8222_v29 = vpop.f32.mrb[26].mxu1 }
 0xc74   : > { %12686 = vmatmul.mubr.msk.bf16.vlgmr.msra.gmra.mrb[28].mxu0 %vm5379_vm10, %v17515_v52  ;;  %v14957_v52 = vld [vmem:[%s16281_s4 + $0x540] ss:$8 sps:$4 sm:$0xff]  }
 0xc75   : > { %7137 = vmatpush1.bf16.msra.mxu0 %v14933_v40  ;;  %v8227_v40 = vpack.c.bf16 %v8222_v29, %v8218_v59  ;;  %v15092_v59 = vld [vmem:[%s16281_s4 + $0x9d0] ss:$8 sps:$4 sm:$0xff]   ;;  %v15098_v29 = vld [vmem:[%s16281_s4 + $0x9e0] ss:$8 sps:$4 sm:$0xff]  }
 0xc76   : > { %7138 = vmatprep.subr.bf16.mxu0 %v14941_v0  ;;  %v8224_v0 = vpop.f32.mrb[27].mxu1 }
 0xc79   : > { %7139 = vmatpush1.bf16.msra.mxu0 %v14939_v51  ;;  %v8228_v51 = vpack.c.bf16 %v8224_v0, %v8220_v8  ;;  %v15100_v8 = vld [vmem:[%s16281_s4 + $0x9e4] ss:$8 sps:$4 sm:$0xff]   ;;  %v15104_v0 = vld [vmem:[%s16281_s4 + $0x9f0] ss:$8 sps:$4 sm:$0xff]  }
 0xc7a   : > { %7140 = vmatprep.subr.bf16.mxu0 %v14947_v53  ;;  %v15014_v53 = vld [vmem:[%s16281_s4 + $0x900] ss:$8 sps:$4 sm:$0xff]  }
 0xc7b   : > { %8454 = vmatprep.mubr.bf16.mxu1 %v8228_v51 }
 0xc7c   : > { %8455 = vmatmul.mubr.bf16.vlgmr.msra.gmra.mrb[28].mxu1 %v8227_v40  ;;  %v15106_v40 = vld [vmem:[%s16281_s4 + $0x9f4] ss:$8 sps:$4 sm:$0xff]  }
 0xc7d   : > { %7141 = vmatpush1.bf16.msra.mxu0 %v14945_v55  ;;  %8626 = vmatpush1.bf16.msra.mxu1 %v15014_v53  ;;  %v15022_v55 = vld [vmem:[%s16281_s4 + $0x914] ss:$8 sps:$4 sm:$0xff]  }
 0xc7e   : > { %7142 = vmatprep.subr.bf16.mxu0 %v14953_v58  ;;  %8657 = vmatprep.mubr.bf16.mxu1 %v8150_v3  ;;  %v15020_v58 = vld [vmem:[%s16281_s4 + $0x910] ss:$8 sps:$4 sm:$0xff]   ;;  %v15094_v3 = vld [vmem:[%s16281_s4 + $0x9d4] ss:$8 sps:$4 sm:$0xff]  }
 0xc7f   : > { %8627 = vmatprep.subr.bf16.mxu1 %v15022_v55 }
 0xc81   : > { %7143 = vmatpush1.bf16.msra.mxu0 %v14951_v21  ;;  %v15025_v21 = vld [vmem:[%s16281_s4 + $0x5f4] ss:$8 sps:$4 sm:$0xff]   ;;  %8628 = vmatpush1.bf16.msra.mxu1 %v15020_v58  ;;  %v15029_v58 = vld [vmem:[%s16281_s4 + $0x600] ss:$8 sps:$4 sm:$0xff]  }
 0xc82   : > { %7144 = vmatprep.subr.bf16.mxu0 %v14959_v4  ;;  %v15023_v4 = vld [vmem:[%s16281_s4 + $0x5f0] ss:$8 sps:$4 sm:$0xff]  }
 0xc85   : > { %7145 = vmatpush1.bf16.msra.mxu0 %v14957_v52  ;;  %v15028_v52 = vld [vmem:[%s16281_s4 + $0x924] ss:$8 sps:$4 sm:$0xff]  }
 0xc86   : > { %7146 = vmatprep.subr.bf16.mxu0 %v14965_v6  ;;  %v15026_v6 = vld [vmem:[%s16281_s4 + $0x920] ss:$8 sps:$4 sm:$0xff]   ;;  %8629 = vmatprep.subr.bf16.mxu1 %v15028_v52 }
 0xc87   : > { %8630 = vmatpush1.bf16.msra.mxu1 %v15026_v6  ;;  %v15041_v52 = vld [vmem:[%s16281_s4 + $0x620] ss:$8 sps:$4 sm:$0xff]   ;;  %v15049_v6 = vld [vmem:[%s16281_s4 + $0x634] ss:$8 sps:$4 sm:$0xff]  }
 0xc89   : > { %7147 = vmatpush1.bf16.msra.mxu0 %v14963_v27  ;;  %v15031_v27 = vld [vmem:[%s16281_s4 + $0x604] ss:$8 sps:$4 sm:$0xff]  }
 0xc8a   : > { %7148 = vmatprep.subr.bf16.mxu0 %v14971_v54  ;;  %v15034_v54 = vld [vmem:[%s16281_s4 + $0x934] ss:$8 sps:$4 sm:$0xff]  }
 0xc8b   : > { %8631 = vmatprep.subr.bf16.mxu1 %v15034_v54  ;;  %v15055_v54 = vld [vmem:[%s16281_s4 + $0x644] ss:$8 sps:$4 sm:$0xff]  }
 0xc8d   : > { %7149 = vmatpush1.bf16.msra.mxu0 %v14969_v60  ;;  %v15032_v60 = vld [vmem:[%s16281_s4 + $0x930] ss:$8 sps:$4 sm:$0xff]  }
 0xc8e   : > { %7150 = vmatprep.subr.bf16.mxu0 %v14977_v20  ;;  %8632 = vmatpush1.bf16.msra.mxu1 %v15032_v60  ;;  %v15040_v20 = vld [vmem:[%s16281_s4 + $0x944] ss:$8 sps:$4 sm:$0xff]   ;;  %v15053_v60 = vld [vmem:[%s16281_s4 + $0x640] ss:$8 sps:$4 sm:$0xff]  }
 0xc8f   : > { %8633 = vmatprep.subr.bf16.mxu1 %v15040_v20  ;;  %v15065_v20 = vld [vmem:[%s16281_s4 + $0x660] ss:$8 sps:$4 sm:$0xff]  }
 0xc91   : > { %7151 = vmatpush1.bf16.msra.mxu0 %v14975_v31  ;;  %v15038_v31 = vld [vmem:[%s16281_s4 + $0x940] ss:$8 sps:$4 sm:$0xff]  }
 0xc92   : > { %7152 = vmatprep.subr.bf16.mxu0 %v14983_v19  ;;  %8634 = vmatpush1.bf16.msra.mxu1 %v15038_v31  ;;  %v15046_v19 = vld [vmem:[%s16281_s4 + $0x954] ss:$8 sps:$4 sm:$0xff]  }
 0xc93   : > { %8635 = vmatprep.subr.bf16.mxu1 %v15046_v19  ;;  %v15073_v31 = vld [vmem:[%s16281_s4 + $0x674] ss:$8 sps:$4 sm:$0xff]   ;;  %v15071_v19 = vld [vmem:[%s16281_s4 + $0x670] ss:$8 sps:$4 sm:$0xff]  }
 0xc95   : > { %7153 = vmatpush1.bf16.msra.mxu0 %v14981_v48  ;;  %v15044_v48 = vld [vmem:[%s16281_s4 + $0x950] ss:$8 sps:$4 sm:$0xff]  }
 0xc96   : > { %7154 = vmatprep.subr.bf16.mxu0 %v14989_v13  ;;  %8636 = vmatpush1.bf16.msra.mxu1 %v15044_v48  ;;  %v15052_v13 = vld [vmem:[%s16281_s4 + $0x964] ss:$8 sps:$4 sm:$0xff]  }
 0xc97   : > { %8637 = vmatprep.subr.bf16.mxu1 %v15052_v13  ;;  %v15079_v48 = vld [vmem:[%s16281_s4 + $0x684] ss:$8 sps:$4 sm:$0xff]   ;;  %v15077_v13 = vld [vmem:[%s16281_s4 + $0x680] ss:$8 sps:$4 sm:$0xff]  }
 0xc99   : > { %7155 = vmatpush1.bf16.msra.mxu0 %v14987_v34  ;;  %v15050_v34 = vld [vmem:[%s16281_s4 + $0x960] ss:$8 sps:$4 sm:$0xff]  }
 0xc9a   : > { %7156 = vmatprep.subr.bf16.mxu0 %v14995_v50  ;;  %8638 = vmatpush1.bf16.msra.mxu1 %v15050_v34  ;;  %v15058_v50 = vld [vmem:[%s16281_s4 + $0x974] ss:$8 sps:$4 sm:$0xff]  }
 0xc9b   : > { %8639 = vmatprep.subr.bf16.mxu1 %v15058_v50  ;;  %v15085_v34 = vld [vmem:[%s16281_s4 + $0x694] ss:$8 sps:$4 sm:$0xff]   ;;  %v15083_v50 = vld [vmem:[%s16281_s4 + $0x690] ss:$8 sps:$4 sm:$0xff]  }
 0xc9d   : > { %7157 = vmatpush1.bf16.msra.mxu0 %v14993_v61  ;;  %v15056_v61 = vld [vmem:[%s16281_s4 + $0x970] ss:$8 sps:$4 sm:$0xff]  }
 0xc9e   : > { %7158 = vmatprep.subr.bf16.mxu0 %v15001_v7  ;;  %8640 = vmatpush1.bf16.msra.mxu1 %v15056_v61  ;;  %v15064_v7 = vld [vmem:[%s16281_s4 + $0x984] ss:$8 sps:$4 sm:$0xff]  }
 0xc9f   : > { %8641 = vmatprep.subr.bf16.mxu1 %v15064_v7  ;;  %v15091_v61 = vld [vmem:[%s16281_s4 + $0x6a4] ss:$8 sps:$4 sm:$0xff]   ;;  %v15089_v7 = vld [vmem:[%s16281_s4 + $0x6a0] ss:$8 sps:$4 sm:$0xff]  }
 0xca1   : > { %7159 = vmatpush1.bf16.msra.mxu0 %v14999_v38  ;;  %v15062_v38 = vld [vmem:[%s16281_s4 + $0x980] ss:$8 sps:$4 sm:$0xff]  }
 0xca2   : > { %7160 = vmatprep.subr.bf16.mxu0 %v15007_v10  ;;  %8642 = vmatpush1.bf16.msra.mxu1 %v15062_v38  ;;  %v15070_v10 = vld [vmem:[%s16281_s4 + $0x994] ss:$8 sps:$4 sm:$0xff]  }
 0xca3   : > { %8643 = vmatprep.subr.bf16.mxu1 %v15070_v10  ;;  %v15097_v38 = vld [vmem:[%s16281_s4 + $0x6b4] ss:$8 sps:$4 sm:$0xff]   ;;  %v15095_v10 = vld [vmem:[%s16281_s4 + $0x6b0] ss:$8 sps:$4 sm:$0xff]  }
 0xca5   : > { %7161 = vmatpush1.bf16.msra.mxu0 %v15005_v46  ;;  %v15068_v46 = vld [vmem:[%s16281_s4 + $0x990] ss:$8 sps:$4 sm:$0xff]  }
 0xca6   : > { %7162 = vmatprep.subr.bf16.mxu0 %v15013_v37  ;;  %8644 = vmatpush1.bf16.msra.mxu1 %v15068_v46  ;;  %v15076_v37 = vld [vmem:[%s16281_s4 + $0x9a4] ss:$8 sps:$4 sm:$0xff]  }
 0xca7   : > { %8645 = vmatprep.subr.bf16.mxu1 %v15076_v37  ;;  %v15103_v46 = vld [vmem:[%s16281_s4 + $0x6c4] ss:$8 sps:$4 sm:$0xff]   ;;  %v15101_v37 = vld [vmem:[%s16281_s4 + $0x6c0] ss:$8 sps:$4 sm:$0xff]  }
 0xca9   : > { %7163 = vmatpush1.bf16.msra.mxu0 %v15011_v32  ;;  %v15074_v32 = vld [vmem:[%s16281_s4 + $0x9a0] ss:$8 sps:$4 sm:$0xff]  }
 0xcaa   : > { %7164 = vmatprep.subr.bf16.mxu0 %v15019_v24  ;;  %8646 = vmatpush1.bf16.msra.mxu1 %v15074_v32  ;;  %v15082_v24 = vld [vmem:[%s16281_s4 + $0x9b4] ss:$8 sps:$4 sm:$0xff]  }
 0xcab   : > { %8647 = vmatprep.subr.bf16.mxu1 %v15082_v24  ;;  %v15109_v32 = vld [vmem:[%s16281_s4 + $0x6d4] ss:$8 sps:$4 sm:$0xff]   ;;  %v15107_v24 = vld [vmem:[%s16281_s4 + $0x6d0] ss:$8 sps:$4 sm:$0xff]  }
 0xcad   : > { %7165 = vmatpush1.bf16.msra.mxu0 %v15017_v22  ;;  %v15080_v22 = vld [vmem:[%s16281_s4 + $0x9b0] ss:$8 sps:$4 sm:$0xff]  }
 0xcae   : > { %7166 = vmatprep.subr.bf16.mxu0 %v15025_v21  ;;  %8648 = vmatpush1.bf16.msra.mxu1 %v15080_v22  ;;  %v15037_v21 = vld [vmem:[%s16281_s4 + $0x614] ss:$8 sps:$4 sm:$0xff]   ;;  %v15112_v22 = vld [vmem:[%s16281_s4 + $0x6e4] ss:$8 sps:$4 sm:$0xff]  }
 0xcaf   : > { %8649 = vmatprep.subr.bf16.mxu1 %v15088_v28  ;;  %v15110_v28 = vld [vmem:[%s16281_s4 + $0x6e0] ss:$8 sps:$4 sm:$0xff]  }
 0xcb1   : > { %7167 = vmatpush1.bf16.msra.mxu0 %v15023_v4  ;;  %v15035_v4 = vld [vmem:[%s16281_s4 + $0x610] ss:$8 sps:$4 sm:$0xff]  }
 0xcb2   : > { %7432 = vmatprep.subr.bf16.mxu0 %v15031_v27  ;;  %8650 = vmatpush1.bf16.msra.mxu1 %v15086_v35  ;;  %v15047_v27 = vld [vmem:[%s16281_s4 + $0x630] ss:$8 sps:$4 sm:$0xff]   ;;  %v15115_v35 = vld [vmem:[%s16281_s4 + $0x6f4] ss:$8 sps:$4 sm:$0xff]  }
 0xcb3   : > { %8651 = vmatprep.subr.bf16.mxu1 %v15094_v3  ;;  %v15113_v3 = vld [vmem:[%s16281_s4 + $0x6f0] ss:$8 sps:$4 sm:$0xff]  }
 0xcb6   : > { %8652 = vmatpush1.bf16.msra.mxu1 %v15092_v59  ;;  %v15118_v59 = vld [vmem:[%s16281_s4 + $0x704] ss:$8 sps:$4 sm:$0xff]  }
 0xcb7   : > { %8653 = vmatprep.subr.bf16.mxu1 %v15100_v8  ;;  %v15116_v8 = vld [vmem:[%s16281_s4 + $0x700] ss:$8 sps:$4 sm:$0xff]  }
 0xcba   : > { %8654 = vmatpush1.bf16.msra.mxu1 %v15098_v29  ;;  %v15121_v29 = vld [vmem:[%s16281_s4 + $0x714] ss:$8 sps:$4 sm:$0xff]  }
 0xcbb   : > { %8655 = vmatprep.subr.bf16.mxu1 %v15106_v40  ;;  %v15119_v40 = vld [vmem:[%s16281_s4 + $0x710] ss:$8 sps:$4 sm:$0xff]  }
 0xcbe   : > { %8656 = vmatpush1.bf16.msra.mxu1 %v15104_v0  ;;  %v15124_v0 = vld [vmem:[%s16281_s4 + $0x724] ss:$8 sps:$4 sm:$0xff]  }
 0xcbf   : > { %8668 = vmatprep.subr.bf16.mxu1 %v17260_v30 }
 0xcc1   : > { %8658 = vmatmul.mubr.bf16.vlgmr.msra.gmra.mrb[28].mxu1 %v8149_v2 }
 0xcc2   : > { %8669 = vmatpush1.bf16.msra.mxu1 %v17263_v39  ;;  %8700 = vmatprep.mubr.bf16.mxu1 %v15888_v23 }
 0xcc3   : > { %8670 = vmatprep.subr.bf16.mxu1 %v17265_v11 }
 0xcc6   : > { %8671 = vmatpush1.bf16.msra.mxu1 %v17269_v62 }
 0xcc7   : > { %8906 = vmatprep.subr.bf16.mxu1 %v15214_v56  ;;  %v15248_v56 = vld [vmem:[%s16281_s4 + $0xbc0] ss:$8 sps:$4 sm:$0xff]  }
 0xcc9   : > { %13083 = vmatmul.mubr.msk.bf16.vlgmr.msra.gmra.mrb[32].mxu1 %vm5379_vm10, %v17442_v45  ;;  %v15043_v45 = vld [vmem:[%s16281_s4 + $0x624] ss:$8 sps:$4 sm:$0xff]  }
 0xd47   : > { %v6932_v51 = vpop.f32.mrb[28].mxu0 }
 0xd48   : > { %v6934_v53 = vpop.f32.mrb[29].mxu0 }
 0xd49   : > { %v6936_v55 = vpop.f32.mrb[30].mxu0 }
 0xd4a   : > { %v6941_v49 = vpack.c.bf16 %v6936_v55, %v6932_v51  ;;  %v6938_v16 = vpop.f32.mrb[31].mxu0  ;;  %v15122_v51 = vld [vmem:[%s16281_s4 + $0x720] ss:$8 sps:$4 sm:$0xff]  }
 0xd4b   : > { %v6942_v2 = vpack.c.bf16 %v6938_v16, %v6934_v53  ;;  %v15127_v53 = vld [vmem:[%s16281_s4 + $0x734] ss:$8 sps:$4 sm:$0xff]   ;;  %v15212_v55 = vld [vmem:[%s16281_s4 + $0xb00] ss:$8 sps:$4 sm:$0xff]  }
 0xd4c   : > { %8907 = vmatpush1.bf16.msra.mxu1 %v15212_v55  ;;  %v15133_v16 = vld [vmem:[%s16281_s4 + $0x754] ss:$8 sps:$4 sm:$0xff]  }
 0xd4d   : > { %7168 = vmatprep.mubr.bf16.mxu0 %v6942_v2  ;;  %v15218_v2 = vld [vmem:[%s16281_s4 + $0xb20] ss:$8 sps:$4 sm:$0xff]   ;;  %v15163_v55 = vld [vmem:[%s16281_s4 + $0x7f4] ss:$8 sps:$4 sm:$0xff]  }
 0xd4e   : > { %7169 = vmatmul.mubr.bf16.vlgmr.msra.gmra.mrb[24].mxu0 %v6941_v49  ;;  %v15128_v49 = vld [vmem:[%s16281_s4 + $0x740] ss:$8 sps:$4 sm:$0xff]  }
 0xd4f   : > { %7433 = vmatpush1.bf16.msra.mxu0 %v15029_v58  ;;  %7464 = vmatprep.mubr.bf16.mxu0 %v7238_v41  ;;  %v15067_v41 = vld [vmem:[%s16281_s4 + $0x664] ss:$8 sps:$4 sm:$0xff]   ;;  %v15223_v58 = vld [vmem:[%s16281_s4 + $0xb34] ss:$8 sps:$4 sm:$0xff]  }
 0xd50   : > { %7434 = vmatprep.subr.bf16.mxu0 %v15037_v21  ;;  %v15131_v21 = vld [vmem:[%s16281_s4 + $0x750] ss:$8 sps:$4 sm:$0xff]  }
 0xd53   : > { %7435 = vmatpush1.bf16.msra.mxu0 %v15035_v4  ;;  %v15136_v4 = vld [vmem:[%s16281_s4 + $0x764] ss:$8 sps:$4 sm:$0xff]  }
 0xd54   : > { %7436 = vmatprep.subr.bf16.mxu0 %v15043_v45  ;;  %v15221_v45 = vld [vmem:[%s16281_s4 + $0xb30] ss:$8 sps:$4 sm:$0xff]  }
 0xd57   : > { %7437 = vmatpush1.bf16.msra.mxu0 %v15041_v52  ;;  %v15226_v52 = vld [vmem:[%s16281_s4 + $0xb44] ss:$8 sps:$4 sm:$0xff]  }
 0xd58   : > { %7438 = vmatprep.subr.bf16.mxu0 %v15049_v6  ;;  %v15134_v6 = vld [vmem:[%s16281_s4 + $0x760] ss:$8 sps:$4 sm:$0xff]  }
 0xd5b   : > { %7439 = vmatpush1.bf16.msra.mxu0 %v15047_v27  ;;  %v15139_v27 = vld [vmem:[%s16281_s4 + $0x774] ss:$8 sps:$4 sm:$0xff]  }
 0xd5c   : > { %7440 = vmatprep.subr.bf16.mxu0 %v15055_v54  ;;  %v15224_v54 = vld [vmem:[%s16281_s4 + $0xb40] ss:$8 sps:$4 sm:$0xff]  }
 0xd5f   : > { %7441 = vmatpush1.bf16.msra.mxu0 %v15053_v60  ;;  %v15229_v60 = vld [vmem:[%s16281_s4 + $0xb54] ss:$8 sps:$4 sm:$0xff]  }
 0xd60   : > { %7442 = vmatprep.subr.bf16.mxu0 %v15061_v9  ;;  %v15137_v9 = vld [vmem:[%s16281_s4 + $0x770] ss:$8 sps:$4 sm:$0xff]  }
 0xd63   : > { %7443 = vmatpush1.bf16.msra.mxu0 %v15059_v15  ;;  %v15142_v15 = vld [vmem:[%s16281_s4 + $0x784] ss:$8 sps:$4 sm:$0xff]  }
 0xd64   : > { %7444 = vmatprep.subr.bf16.mxu0 %v15067_v41  ;;  %v15227_v41 = vld [vmem:[%s16281_s4 + $0xb50] ss:$8 sps:$4 sm:$0xff]  }
 0xd67   : > { %7445 = vmatpush1.bf16.msra.mxu0 %v15065_v20  ;;  %v15232_v20 = vld [vmem:[%s16281_s4 + $0xb64] ss:$8 sps:$4 sm:$0xff]  }
 0xd68   : > { %7446 = vmatprep.subr.bf16.mxu0 %v15073_v31  ;;  %v15140_v31 = vld [vmem:[%s16281_s4 + $0x780] ss:$8 sps:$4 sm:$0xff]  }
 0xd6b   : > { %7447 = vmatpush1.bf16.msra.mxu0 %v15071_v19  ;;  %v15145_v19 = vld [vmem:[%s16281_s4 + $0x794] ss:$8 sps:$4 sm:$0xff]  }
 0xd6c   : > { %7448 = vmatprep.subr.bf16.mxu0 %v15079_v48  ;;  %v15230_v48 = vld [vmem:[%s16281_s4 + $0xb60] ss:$8 sps:$4 sm:$0xff]  }
 0xd6f   : > { %7449 = vmatpush1.bf16.msra.mxu0 %v15077_v13  ;;  %v15235_v13 = vld [vmem:[%s16281_s4 + $0xb74] ss:$8 sps:$4 sm:$0xff]  }
 0xd70   : > { %7450 = vmatprep.subr.bf16.mxu0 %v15085_v34  ;;  %v15143_v34 = vld [vmem:[%s16281_s4 + $0x790] ss:$8 sps:$4 sm:$0xff]  }
 0xd73   : > { %7451 = vmatpush1.bf16.msra.mxu0 %v15083_v50  ;;  %v15148_v50 = vld [vmem:[%s16281_s4 + $0x7a4] ss:$8 sps:$4 sm:$0xff]  }
 0xd74   : > { %7452 = vmatprep.subr.bf16.mxu0 %v15091_v61  ;;  %v15233_v61 = vld [vmem:[%s16281_s4 + $0xb70] ss:$8 sps:$4 sm:$0xff]  }
 0xd77   : > { %7453 = vmatpush1.bf16.msra.mxu0 %v15089_v7  ;;  %v15238_v7 = vld [vmem:[%s16281_s4 + $0xb84] ss:$8 sps:$4 sm:$0xff]  }
 0xd78   : > { %7454 = vmatprep.subr.bf16.mxu0 %v15097_v38  ;;  %v15146_v38 = vld [vmem:[%s16281_s4 + $0x7a0] ss:$8 sps:$4 sm:$0xff]  }
 0xd7b   : > { %7455 = vmatpush1.bf16.msra.mxu0 %v15095_v10  ;;  %v15151_v10 = vld [vmem:[%s16281_s4 + $0x7b4] ss:$8 sps:$4 sm:$0xff]  }
 0xd7c   : > { %7456 = vmatprep.subr.bf16.mxu0 %v15103_v46  ;;  %v15236_v46 = vld [vmem:[%s16281_s4 + $0xb80] ss:$8 sps:$4 sm:$0xff]  }
 0xd7f   : > { %7457 = vmatpush1.bf16.msra.mxu0 %v15101_v37  ;;  %v15241_v37 = vld [vmem:[%s16281_s4 + $0xb94] ss:$8 sps:$4 sm:$0xff]  }
 0xd80   : > { %7458 = vmatprep.subr.bf16.mxu0 %v15109_v32  ;;  %v15149_v32 = vld [vmem:[%s16281_s4 + $0x7b0] ss:$8 sps:$4 sm:$0xff]  }
 0xd83   : > { %7459 = vmatpush1.bf16.msra.mxu0 %v15107_v24  ;;  %v15154_v24 = vld [vmem:[%s16281_s4 + $0x7c4] ss:$8 sps:$4 sm:$0xff]  }
 0xd84   : > { %7460 = vmatprep.subr.bf16.mxu0 %v15112_v22  ;;  %v15239_v22 = vld [vmem:[%s16281_s4 + $0xb90] ss:$8 sps:$4 sm:$0xff]  }
 0xd87   : > { %7461 = vmatpush1.bf16.msra.mxu0 %v15110_v28  ;;  %v15244_v28 = vld [vmem:[%s16281_s4 + $0xba4] ss:$8 sps:$4 sm:$0xff]  }
 0xd88   : > { %7462 = vmatprep.subr.bf16.mxu0 %v15115_v35  ;;  %v15152_v35 = vld [vmem:[%s16281_s4 + $0x7c0] ss:$8 sps:$4 sm:$0xff]  }
 0xd8b   : > { %7463 = vmatpush1.bf16.msra.mxu0 %v15113_v3  ;;  %v15157_v3 = vld [vmem:[%s16281_s4 + $0x7d4] ss:$8 sps:$4 sm:$0xff]  }
 0xd8c   : > { %7728 = vmatprep.subr.bf16.mxu0 %v15118_v59  ;;  %v15242_v59 = vld [vmem:[%s16281_s4 + $0xba0] ss:$8 sps:$4 sm:$0xff]  }
 0xd8e   : > { %7465 = vmatmul.mubr.bf16.vlgmr.msra.gmra.mrb[24].mxu0 %v7237_v33  ;;  %v15217_v33 = vld [vmem:[%s16281_s4 + $0xb14] ss:$8 sps:$4 sm:$0xff]  }
 0xd8f   : > { %7729 = vmatpush1.bf16.msra.mxu0 %v15116_v8  ;;  %7760 = vmatprep.mubr.bf16.mxu0 %v7534_v18  ;;  %v15220_v18 = vld [vmem:[%s16281_s4 + $0xb24] ss:$8 sps:$4 sm:$0xff]   ;;  %v15247_v8 = vld [vmem:[%s16281_s4 + $0xbb4] ss:$8 sps:$4 sm:$0xff]  }
 0xd90   : > { %7730 = vmatprep.subr.bf16.mxu0 %v15121_v29  ;;  %8908 = vmatprep.subr.bf16.mxu1 %v15217_v33  ;;  %v15155_v29 = vld [vmem:[%s16281_s4 + $0x7d0] ss:$8 sps:$4 sm:$0xff]  }
 0xd91   : > { %8909 = vmatpush1.bf16.msra.mxu1 %v15215_v14  ;;  %v15161_v33 = vld [vmem:[%s16281_s4 + $0x7f0] ss:$8 sps:$4 sm:$0xff]  }
 0xd92   : > { %8910 = vmatprep.subr.bf16.mxu1 %v15220_v18  ;;  %v15251_v14 = vld [vmem:[%s16281_s4 + $0xbd0] ss:$8 sps:$4 sm:$0xff]   ;;  %v15256_v18 = vld [vmem:[%s16281_s4 + $0xbe4] ss:$8 sps:$4 sm:$0xff]  }
 0xd93   : > { %7731 = vmatpush1.bf16.msra.mxu0 %v15119_v40  ;;  %v15160_v40 = vld [vmem:[%s16281_s4 + $0x7e4] ss:$8 sps:$4 sm:$0xff]  }
 0xd94   : > { %7732 = vmatprep.subr.bf16.mxu0 %v15124_v0  ;;  %v15245_v0 = vld [vmem:[%s16281_s4 + $0xbb0] ss:$8 sps:$4 sm:$0xff]  }
 0xd95   : > { %8911 = vmatpush1.bf16.msra.mxu1 %v15218_v2  ;;  %v15254_v2 = vld [vmem:[%s16281_s4 + $0xbe0] ss:$8 sps:$4 sm:$0xff]  }
 0xd96   : > { %8912 = vmatprep.subr.bf16.mxu1 %v15223_v58  ;;  %v15259_v58 = vld [vmem:[%s16281_s4 + $0xbf4] ss:$8 sps:$4 sm:$0xff]  }
 0xd97   : > { %7733 = vmatpush1.bf16.msra.mxu0 %v15122_v51  ;;  %v15250_v51 = vld [vmem:[%s16281_s4 + $0xbc4] ss:$8 sps:$4 sm:$0xff]  }
 0xd98   : > { %7734 = vmatprep.subr.bf16.mxu0 %v15127_v53  ;;  %v15158_v53 = vld [vmem:[%s16281_s4 + $0x7e0] ss:$8 sps:$4 sm:$0xff]  }
 0xd99   : > { %8913 = vmatpush1.bf16.msra.mxu1 %v15221_v45  ;;  %v15257_v45 = vld [vmem:[%s16281_s4 + $0xbf0] ss:$8 sps:$4 sm:$0xff]  }
 0xd9a   : > { %8914 = vmatprep.subr.bf16.mxu1 %v15226_v52  ;;  %v15181_v52 = vld [vmem:[%s16281_s4 + $0x854] ss:$8 sps:$4 sm:$0xff]  }
 0xd9b   : > { %7735 = vmatpush1.bf16.msra.mxu0 %v15125_v44  ;;  %v15253_v44 = vld [vmem:[%s16281_s4 + $0xbd4] ss:$8 sps:$4 sm:$0xff]  }
 0xd9c   : > { %7736 = vmatprep.subr.bf16.mxu0 %v15130_v63  ;;  %v15166_v63 = vld [vmem:[%s16281_s4 + $0x804] ss:$8 sps:$4 sm:$0xff]  }
 0xd9d   : > { %8915 = vmatpush1.bf16.msra.mxu1 %v15224_v54  ;;  %v15184_v54 = vld [vmem:[%s16281_s4 + $0x864] ss:$8 sps:$4 sm:$0xff]  }
 0xd9e   : > { %8916 = vmatprep.subr.bf16.mxu1 %v15229_v60 }
 0xd9f   : > { %7737 = vmatpush1.bf16.msra.mxu0 %v15128_v49  ;;  %v15164_v49 = vld [vmem:[%s16281_s4 + $0x800] ss:$8 sps:$4 sm:$0xff]  }
 0xda0   : > { %7738 = vmatprep.subr.bf16.mxu0 %v15133_v16  ;;  %v15169_v16 = vld [vmem:[%s16281_s4 + $0x814] ss:$8 sps:$4 sm:$0xff]  }
 0xda1   : > { %8917 = vmatpush1.bf16.msra.mxu1 %v15227_v41 }
 0xda2   : > { %8918 = vmatprep.subr.bf16.mxu1 %v15232_v20  ;;  %v15182_v20 = vld [vmem:[%s16281_s4 + $0x860] ss:$8 sps:$4 sm:$0xff]  }
 0xda3   : > { %7739 = vmatpush1.bf16.msra.mxu0 %v15131_v21  ;;  %v15167_v21 = vld [vmem:[%s16281_s4 + $0x810] ss:$8 sps:$4 sm:$0xff]  }
 0xda4   : > { %7740 = vmatprep.subr.bf16.mxu0 %v15136_v4  ;;  %v15172_v4 = vld [vmem:[%s16281_s4 + $0x824] ss:$8 sps:$4 sm:$0xff]  }
 0xda5   : > { %8919 = vmatpush1.bf16.msra.mxu1 %v15230_v48  ;;  %v15187_v48 = vld [vmem:[%s16281_s4 + $0x874] ss:$8 sps:$4 sm:$0xff]  }
 0xda6   : > { %8920 = vmatprep.subr.bf16.mxu1 %v15235_v13  ;;  %v15265_v13 = vld [vmem:[%s16281_s4 + $0xc14] ss:$8 sps:$4 sm:$0xff]  }
 0xda7   : > { %7741 = vmatpush1.bf16.msra.mxu0 %v15134_v6  ;;  %v15179_v6 = vld [vmem:[%s16281_s4 + $0x850] ss:$8 sps:$4 sm:$0xff]  }
 0xda8   : > { %7742 = vmatprep.subr.bf16.mxu0 %v15139_v27  ;;  %v8702_v27 = vpop.f32.mrb[32].mxu1 }
 0xda9   : > { %8921 = vmatpush1.bf16.msra.mxu1 %v15233_v61  ;;  %v8704_v60 = vpop.f32.mrb[33].mxu1  ;;  %v15190_v61 = vld [vmem:[%s16281_s4 + $0x884] ss:$8 sps:$4 sm:$0xff]  }
 0xdaa   : > { %8922 = vmatprep.subr.bf16.mxu1 %v15238_v7  ;;  %v15268_v7 = vld [vmem:[%s16281_s4 + $0xc24] ss:$8 sps:$4 sm:$0xff]  }
 0xdab   : > { %7743 = vmatpush1.bf16.msra.mxu0 %v15137_v9  ;;  %v8706_v9 = vpop.f32.mrb[34].mxu1 }
 0xdac   : > { %7744 = vmatprep.subr.bf16.mxu0 %v15142_v15  ;;  %v8711_v15 = vpack.c.bf16 %v8706_v9, %v8702_v27  ;;  %v8708_v41 = vpop.f32.mrb[35].mxu1 }
 0xdad   : > { %8923 = vmatpush1.bf16.msra.mxu1 %v15236_v46  ;;  %v15193_v46 = vld [vmem:[%s16281_s4 + $0x894] ss:$8 sps:$4 sm:$0xff]  }
 0xdae   : > { %8924 = vmatprep.subr.bf16.mxu1 %v15241_v37  ;;  %v15271_v37 = vld [vmem:[%s16281_s4 + $0xc34] ss:$8 sps:$4 sm:$0xff]  }
 0xdaf   : > { %7745 = vmatpush1.bf16.msra.mxu0 %v15140_v31  ;;  %v8712_v31 = vpack.c.bf16 %v8708_v41, %v8704_v60 }
 0xdb0   : > { %7746 = vmatprep.subr.bf16.mxu0 %v15145_v19  ;;  %v15260_v19 = vld [vmem:[%s16281_s4 + $0xc00] ss:$8 sps:$4 sm:$0xff]  }
 0xdb1   : > { %8925 = vmatpush1.bf16.msra.mxu1 %v15239_v22  ;;  %8938 = vmatprep.mubr.bf16.mxu1 %v8712_v31  ;;  %v15196_v22 = vld [vmem:[%s16281_s4 + $0x8a4] ss:$8 sps:$4 sm:$0xff]   ;;  %v15889_v31 = vmov 0.0  }
 0xdb2   : > { %8926 = vmatprep.subr.bf16.mxu1 %v15244_v28  ;;  %v15274_v28 = vld [vmem:[%s16281_s4 + $0xc44] ss:$8 sps:$4 sm:$0xff]  }
 0xdb3   : > { %7747 = vmatpush1.bf16.msra.mxu0 %v15143_v34  ;;  %v15185_v34 = vld [vmem:[%s16281_s4 + $0x870] ss:$8 sps:$4 sm:$0xff]  }
 0xdb4   : > { %7748 = vmatprep.subr.bf16.mxu0 %v15148_v50  ;;  %v15263_v50 = vld [vmem:[%s16281_s4 + $0xc10] ss:$8 sps:$4 sm:$0xff]  }
 0xdb5   : > { %8927 = vmatpush1.bf16.msra.mxu1 %v15242_v59  ;;  %v15199_v59 = vld [vmem:[%s16281_s4 + $0x8b4] ss:$8 sps:$4 sm:$0xff]  }
 0xdb6   : > { %8928 = vmatprep.subr.bf16.mxu1 %v15247_v8  ;;  %v15277_v8 = vld [vmem:[%s16281_s4 + $0xc54] ss:$8 sps:$4 sm:$0xff]  }
 0xdb7   : > { %7749 = vmatpush1.bf16.msra.mxu0 %v15146_v38  ;;  %v15188_v38 = vld [vmem:[%s16281_s4 + $0x880] ss:$8 sps:$4 sm:$0xff]  }
 0xdb8   : > { %7750 = vmatprep.subr.bf16.mxu0 %v15151_v10  ;;  %v15266_v10 = vld [vmem:[%s16281_s4 + $0xc20] ss:$8 sps:$4 sm:$0xff]  }
 0xdb9   : > { %8929 = vmatpush1.bf16.msra.mxu1 %v15245_v0  ;;  %v15202_v0 = vld [vmem:[%s16281_s4 + $0x8c4] ss:$8 sps:$4 sm:$0xff]  }
 0xdba   : > { %8930 = vmatprep.subr.bf16.mxu1 %v15250_v51  ;;  %v15280_v51 = vld [vmem:[%s16281_s4 + $0xc64] ss:$8 sps:$4 sm:$0xff]  }
 0xdbb   : > { %7751 = vmatpush1.bf16.msra.mxu0 %v15149_v32  ;;  %v15191_v32 = vld [vmem:[%s16281_s4 + $0x890] ss:$8 sps:$4 sm:$0xff]  }
 0xdbc   : > { %7752 = vmatprep.subr.bf16.mxu0 %v15154_v24  ;;  %v15269_v24 = vld [vmem:[%s16281_s4 + $0xc30] ss:$8 sps:$4 sm:$0xff]  }
 0xdbd   : > { %8931 = vmatpush1.bf16.msra.mxu1 %v15248_v56  ;;  %v15205_v56 = vld [vmem:[%s16281_s4 + $0x8d4] ss:$8 sps:$4 sm:$0xff]  }
 0xdbe   : > { %8932 = vmatprep.subr.bf16.mxu1 %v15253_v44  ;;  %v15283_v44 = vld [vmem:[%s16281_s4 + $0xc74] ss:$8 sps:$4 sm:$0xff]  }
 0xdbf   : > { %7753 = vmatpush1.bf16.msra.mxu0 %v15152_v35  ;;  %v15194_v35 = vld [vmem:[%s16281_s4 + $0x8a0] ss:$8 sps:$4 sm:$0xff]  }
 0xdc0   : > { %7754 = vmatprep.subr.bf16.mxu0 %v15157_v3  ;;  %v15272_v3 = vld [vmem:[%s16281_s4 + $0xc40] ss:$8 sps:$4 sm:$0xff]  }
 0xdc1   : > { %8933 = vmatpush1.bf16.msra.mxu1 %v15251_v14  ;;  %v15208_v14 = vld [vmem:[%s16281_s4 + $0x8e4] ss:$8 sps:$4 sm:$0xff]  }
 0xdc2   : > { %8934 = vmatprep.subr.bf16.mxu1 %v15256_v18  ;;  %v15286_v18 = vld [vmem:[%s16281_s4 + $0xc84] ss:$8 sps:$4 sm:$0xff]  }
 0xdc3   : > { %7755 = vmatpush1.bf16.msra.mxu0 %v15155_v29  ;;  %v15197_v29 = vld [vmem:[%s16281_s4 + $0x8b0] ss:$8 sps:$4 sm:$0xff]  }
 0xdc4   : > { %7756 = vmatprep.subr.bf16.mxu0 %v15160_v40  ;;  %v15275_v40 = vld [vmem:[%s16281_s4 + $0xc50] ss:$8 sps:$4 sm:$0xff]  }
 0xdc5   : > { %8935 = vmatpush1.bf16.msra.mxu1 %v15254_v2  ;;  %v15211_v2 = vld [vmem:[%s16281_s4 + $0x8f4] ss:$8 sps:$4 sm:$0xff]  }
 0xdc6   : > { %8936 = vmatprep.subr.bf16.mxu1 %v15259_v58  ;;  %v15289_v58 = vld [vmem:[%s16281_s4 + $0xc94] ss:$8 sps:$4 sm:$0xff]  }
 0xdc7   : > { %7757 = vmatpush1.bf16.msra.mxu0 %v15158_v53  ;;  %v15200_v53 = vld [vmem:[%s16281_s4 + $0x8c0] ss:$8 sps:$4 sm:$0xff]  }
 0xdc8   : > { %7758 = vmatprep.subr.bf16.mxu0 %v15163_v55  ;;  %v15278_v55 = vld [vmem:[%s16281_s4 + $0xc60] ss:$8 sps:$4 sm:$0xff]  }
 0xdc9   : > { %8937 = vmatpush1.bf16.msra.mxu1 %v15257_v45  ;;  %v15292_v45 = vld [vmem:[%s16281_s4 + $0xca4] ss:$8 sps:$4 sm:$0xff]  }
 0xdca   : > { %9191 = vmatprep.subr.bf16.mxu1 %v15262_v5  ;;  %v15290_v5 = vld [vmem:[%s16281_s4 + $0xca0] ss:$8 sps:$4 sm:$0xff]  }
 0xdcb   : > { %7759 = vmatpush1.bf16.msra.mxu0 %v15161_v33  ;;  %v15203_v33 = vld [vmem:[%s16281_s4 + $0x8d0] ss:$8 sps:$4 sm:$0xff]  }
 0xdcc   : > { %8024 = vmatprep.subr.bf16.mxu0 %v15166_v63  ;;  %8939 = vmatmul.mubr.bf16.vlgmr.msra.gmra.mrb[28].mxu1 %v8711_v15  ;;  %v15281_v63 = vld [vmem:[%s16281_s4 + $0xc70] ss:$8 sps:$4 sm:$0xff]  }
 0xdcd   : > { %9192 = vmatpush1.bf16.msra.mxu1 %v15260_v19  ;;  %v5331_v19 = vld [vmem:[#allocation7 + $0x4] ss:$8 sm:$0x3] }
 0xdce   : > { %7761 = vmatmul.mubr.bf16.vlgmr.msra.gmra.mrb[24].mxu0 %v7533_v43  ;;  %v15175_v43 = vld [vmem:[%s16281_s4 + $0x834] ss:$8 sps:$4 sm:$0xff]   ;;  %9193 = vmatprep.subr.bf16.mxu1 %v15265_v13  ;;  %v8079_v13 = vrot.slane %v5331_v19, %v17424_v17 }
 0xdcf   : > { %8025 = vmatpush1.bf16.msra.mxu0 %v15164_v49  ;;  %8056 = vmatprep.mubr.bf16.mxu0 %v7830_v26  ;;  %v15176_v26 = vld [vmem:[%s16281_s4 + $0x840] ss:$8 sps:$4 sm:$0xff]  }
 0xdd0   : > { %8026 = vmatprep.subr.bf16.mxu0 %v15169_v16  ;;  %v15206_v49 = vld [vmem:[%s16281_s4 + $0x8e0] ss:$8 sps:$4 sm:$0xff]  }
 0xdd1   : > { %9194 = vmatpush1.bf16.msra.mxu1 %v15263_v50  ;;  %v15284_v16 = vld [vmem:[%s16281_s4 + $0xc80] ss:$8 sps:$4 sm:$0xff]  }
 0xdd2   : > { %9195 = vmatprep.subr.bf16.mxu1 %v15268_v7 }
 0xdd3   : > { %8027 = vmatpush1.bf16.msra.mxu0 %v15167_v21  ;;  %v15209_v21 = vld [vmem:[%s16281_s4 + $0x8f0] ss:$8 sps:$4 sm:$0xff]  }
 0xdd4   : > { %8028 = vmatprep.subr.bf16.mxu0 %v15172_v4  ;;  %v15287_v4 = vld [vmem:[%s16281_s4 + $0xc90] ss:$8 sps:$4 sm:$0xff]  }
 0xdd5   : > { %9196 = vmatpush1.bf16.msra.mxu1 %v15266_v10 }
 0xdd6   : > { %9197 = vmatprep.subr.bf16.mxu1 %v15271_v37 }
 0xdd7   : > { %8029 = vmatpush1.bf16.msra.mxu0 %v15170_v57  ;;  %v15295_v57 = vld [vmem:[%s16281_s4 + $0xcb4] ss:$8 sps:$4 sm:$0xff]  }
 0xdd8   : > { %8030 = vmatprep.subr.bf16.mxu0 %v15175_v43  ;;  %v15293_v43 = vld [vmem:[%s16281_s4 + $0xcb0] ss:$8 sps:$4 sm:$0xff]  }
 0xdd9   : > { %9198 = vmatpush1.bf16.msra.mxu1 %v15269_v24 }
 0xdda   : > { %9199 = vmatprep.subr.bf16.mxu1 %v15274_v28 }
 0xddb   : > { %8031 = vmatpush1.bf16.msra.mxu0 %v15173_v42  ;;  %v15302_v42 = vld [vmem:[%s16281_s4 + $0xce0] ss:$8 sps:$4 sm:$0xff]  }
 0xddc   : > { %8032 = vmatprep.subr.bf16.mxu0 %v15178_v47  ;;  %v15307_v47 = vld [vmem:[%s16281_s4 + $0xcf4] ss:$8 sps:$4 sm:$0xff]  }
 0xddd   : > { %9200 = vmatpush1.bf16.msra.mxu1 %v15272_v3 }
 0xdde   : > { %9201 = vmatprep.subr.bf16.mxu1 %v15277_v8 }
 0xddf   : > { %8033 = vmatpush1.bf16.msra.mxu0 %v15176_v26  ;;  %v15305_v26 = vld [vmem:[%s16281_s4 + $0xcf0] ss:$8 sps:$4 sm:$0xff]  }
 0xde0   : > { %8034 = vmatprep.subr.bf16.mxu0 %v15181_v52 }
 0xde1   : > { %9202 = vmatpush1.bf16.msra.mxu1 %v15275_v40 }
 0xde2   : > { %9203 = vmatprep.subr.bf16.mxu1 %v15280_v51 }
 0xde3   : > { %8035 = vmatpush1.bf16.msra.mxu0 %v15179_v6 }
 0xde4   : > { %8036 = vmatprep.subr.bf16.mxu0 %v15184_v54 }
 0xde5   : > { %9204 = vmatpush1.bf16.msra.mxu1 %v15278_v55 }
 0xde6   : > { %9205 = vmatprep.subr.bf16.mxu1 %v15283_v44 }
 0xde7   : > { %8037 = vmatpush1.bf16.msra.mxu0 %v15182_v20 }
 0xde8   : > { %8038 = vmatprep.subr.bf16.mxu0 %v15187_v48  ;;  %v8075_v48 = vrot.slane %v5331_v19, %v17422_v36  ;;  %v15322_v19 = vld [vmem:[%s16281_s4 + $0xd40] ss:$8 sps:$4 sm:$0xff]  }
 0xde9   : > { %9206 = vmatpush1.bf16.msra.mxu1 %v15281_v63 }
 0xdea   : > { %9207 = vmatprep.subr.bf16.mxu1 %v15286_v18 }
 0xdeb   : > { %8039 = vmatpush1.bf16.msra.mxu0 %v15185_v34 }
 0xdec   : > { %8040 = vmatprep.subr.bf16.mxu0 %v15190_v61 }
 0xded   : > { %9208 = vmatpush1.bf16.msra.mxu1 %v15284_v16 }
 0xdee   : > { %9209 = vmatprep.subr.bf16.mxu1 %v15289_v58  ;;  %v9247_v58 = vld [vmem:[#allocation16 + $0x8] sm:$0xff] }
 0xdef   : > { %8041 = vmatpush1.bf16.msra.mxu0 %v15188_v38 }
 0xdf0   : > { %8042 = vmatprep.subr.bf16.mxu0 %v15193_v46 }
 0xdf1   : > { %9210 = vmatpush1.bf16.msra.mxu1 %v15287_v4 }
 0xdf2   : > { %9211 = vmatprep.subr.bf16.mxu1 %v15292_v45 }
 0xdf3   : > { %8043 = vmatpush1.bf16.msra.mxu0 %v15191_v32 }
 0xdf4   : > { %8044 = vmatprep.subr.bf16.mxu0 %v15196_v22 }
 0xdf5   : > { %9212 = vmatpush1.bf16.msra.mxu1 %v15290_v5 }
 0xdf6   : > { %9213 = vmatprep.subr.bf16.mxu1 %v15295_v57 }
 0xdf7   : > { %8045 = vmatpush1.bf16.msra.mxu0 %v15194_v35 }
 0xdf8   : > { %8046 = vmatprep.subr.bf16.mxu0 %v15199_v59 }
 0xdf9   : > { %9214 = vmatpush1.bf16.msra.mxu1 %v15293_v43 }
 0xdfb   : > { %8047 = vmatpush1.bf16.msra.mxu0 %v15197_v29 }
 0xdfc   : > { %8048 = vmatprep.subr.bf16.mxu0 %v15202_v0 }
 0xdff   : > { %8049 = vmatpush1.bf16.msra.mxu0 %v15200_v53 }
 0xe00   : > { %8050 = vmatprep.subr.bf16.mxu0 %v15205_v56 }
 0xe03   : > { %8051 = vmatpush1.bf16.msra.mxu0 %v15203_v33 }
 0xe04   : > { %8052 = vmatprep.subr.bf16.mxu0 %v15208_v14 }
 0xe07   : > { %8053 = vmatpush1.bf16.msra.mxu0 %v15206_v49 }
 0xe08   : > { %8054 = vmatprep.subr.bf16.mxu0 %v15211_v2  ;;  %v9246_v2 = vld [vmem:[#allocation16] sm:$0xff] }
 0xe0b   : > { %8055 = vmatpush1.bf16.msra.mxu0 %v15209_v21  ;;  %v15309_v21 = vld [vmem:[#allocation14 + $0x8] sm:$0xff]  }
 0xe0c   : > { %8953 = vmatprep.subr.bf16.mxu0 %v17260_v30  ;;  %v15298_v30 = vld [vmem:[%s16281_s4 + $0xcc4] ss:$8 sps:$4 sm:$0xff]  }
 0xe0d   : > { %9215 = vmatprep.subr.bf16.mxu1 %v15298_v30 }
 0xe0e   : > { %8057 = vmatmul.mubr.bf16.vlgmr.msra.gmra.mrb[24].mxu0 %v7829_v25  ;;  %9216 = vmatpush1.bf16.msra.mxu1 %v15296_v1  ;;  %v15299_v25 = vld [vmem:[%s16281_s4 + $0xcd0] ss:$8 sps:$4 sm:$0xff]  }
 0xe0f   : > { %8954 = vmatpush1.bf16.msra.mxu0 %v17263_v39  ;;  %8985 = vmatprep.mubr.bf16.mxu0 %v15888_v23  ;;  %v15301_v39 = vld [vmem:[%s16281_s4 + $0xcd4] ss:$8 sps:$4 sm:$0xff]  }
 0xe10   : > { %8955 = vmatprep.subr.bf16.mxu0 %v17265_v11  ;;  %9217 = vmatprep.subr.bf16.mxu1 %v15301_v39  ;;  %v15304_v11 = vld [vmem:[%s16281_s4 + $0xce4] ss:$8 sps:$4 sm:$0xff]  }
 0xe12   : > { %9218 = vmatpush1.bf16.msra.mxu1 %v15299_v25 }
 0xe13   : > { %8956 = vmatpush1.bf16.msra.mxu0 %v17269_v62  ;;  %9219 = vmatprep.subr.bf16.mxu1 %v15304_v11 }
 0xe16   : > { %13148 = vmatmul.mubr.msk.bf16.vlgmr.msra.gmra.mrb[32].mxu0 %vm5379_vm10, %v15526_v12  ;;  %9220 = vmatpush1.bf16.msra.mxu1 %v15302_v42 }
 0xe17   : > { %9221 = vmatprep.subr.bf16.mxu1 %v15307_v47  ;;  %9319 = vmatprep.mubr.f32.mxu0 %v15889_v31 }
 0xe1a   : > { %9222 = vmatpush1.bf16.msra.mxu1 %v15305_v26 }
 0xee1   : > { %v8058_v62 = vpop.f32.mrb[24].mxu0 }
 0xee2   : > { %v8060_v52 = vpop.f32.mrb[25].mxu0  ;;  %v8082_v34 = vadd.f32 %v8075_v48, %v8058_v62  ;;  %v15312_v62 = vld [vmem:[%s16281_s4 + $0xd04] ss:$8 sps:$4 sm:$0xff]  }
 0xee3   : > { %v8062_v6 = vpop.f32.mrb[26].mxu0  ;;  %v8083_v50 = vadd.f32 %v8079_v13, %v8060_v52  ;;  %v15308_v52 = vld [vmem:[#allocation14] sm:$0xff]  }
 0xee4   : > { %v8064_v27 = vpop.f32.mrb[27].mxu0  ;;  %v8084_v61 = vadd.f32 %v8075_v48, %v8062_v6  ;;  %v8090_v38 = vmul.f32 0.2, %v8082_v34  ;;  %vm8086_vm3 = vcmp.ge.f32.partialorder %v8082_v34, 0.0  ;;  %v15310_v6 = vld [vmem:[%s16281_s4 + $0xd00] ss:$8 sps:$4 sm:$0xff]  }
 0xee5   : > { %v8085_v7 = vadd.f32 %v8079_v13, %v8064_v27  ;;  %v8091_v10 = vmul.f32 0.2, %v8083_v50  ;;  %vm8087_vm4 = vcmp.ge.f32.partialorder %v8083_v50, 0.0  ;;  %v15315_v27 = vld [vmem:[%s16281_s4 + $0xd14] ss:$8 sps:$4 sm:$0xff]  }
 0xee6   : > { %v8092_v46 = vmul.f32 0.2, %v8084_v61  ;;  %vm8088_vm5 = vcmp.ge.f32.partialorder %v8084_v61, 0.0  ;;  %v8094_v32 = vsel %vm8086_vm3, %v8082_v34, %v8090_v38  ;;  %v15327_v48 = vld [vmem:[%s16281_s4 + $0xd54] ss:$8 sps:$4 sm:$0xff]  }
 0xee7   : > { %v8093_v37 = vmul.f32 0.2, %v8085_v7  ;;  %vm8089_vm6 = vcmp.ge.f32.partialorder %v8085_v7, 0.0  ;;  %v8095_v24 = vsel %vm8087_vm4, %v8083_v50, %v8091_v10  ;;  %v12949_v35 = vclamps-f32 %v8094_v32, 181.01933 }
 0xee8   : > { %v8096_v28 = vsel %vm8088_vm5, %v8084_v61, %v8092_v46  ;;  %v12950_v29 = vclamps-f32 %v8095_v24, 181.01933  ;;  %v15325_v13 = vld [vmem:[%s16281_s4 + $0xd50] ss:$8 sps:$4 sm:$0xff]   ;;  %v15330_v34 = vld [vmem:[%s16281_s4 + $0xd64] ss:$8 sps:$4 sm:$0xff]  }
 0xee9   : > { %v8987_v54 = vpop.f32.mrb[32].mxu0  ;;  %v8097_v8 = vsel %vm8089_vm6, %v8085_v7, %v8093_v37  ;;  %v12951_v53 = vclamps-f32 %v8096_v28, 181.01933  ;;  %v15328_v50 = vld [vmem:[%s16281_s4 + $0xd60] ss:$8 sps:$4 sm:$0xff]   ;;  %vm15891_vm5 = vmmov 0  }
 0xeea   : > { %v8989_v60 = vpop.f32.mrb[33].mxu0  ;;  %v12952_v33 = vclamps-f32 %v8097_v8, 181.01933  ;;  %v15333_v61 = vld [vmem:[%s16281_s4 + $0xd74] ss:$8 sps:$4 sm:$0xff]  }
 0xeeb   : > { %v8991_v9 = vpop.f32.mrb[34].mxu0  ;;  %v15331_v7 = vld [vmem:[%s16281_s4 + $0xd70] ss:$8 sps:$4 sm:$0xff]   ;;  %v15336_v38 = vld [vmem:[%s16281_s4 + $0xd84] ss:$8 sps:$4 sm:$0xff]  }
 0xeec   : > { %v8996_v15 = vpack.c.bf16 %v8991_v9, %v8987_v54  ;;  %v8993_v41 = vpop.f32.mrb[35].mxu0  ;;  %v15313_v54 = vld [vmem:[%s16281_s4 + $0xd10] ss:$8 sps:$4 sm:$0xff]   ;;  %v15316_v9 = vld [vmem:[%s16281_s4 + $0xd20] ss:$8 sps:$4 sm:$0xff]  }
 0xeed   : > { %v8997_v20 = vpack.c.bf16 %v8993_v41, %v8989_v60  ;;  %v15318_v60 = vld [vmem:[%s16281_s4 + $0xd24] ss:$8 sps:$4 sm:$0xff]   ;;  %v15319_v41 = vld [vmem:[%s16281_s4 + $0xd30] ss:$8 sps:$4 sm:$0xff]   ;;  %v15334_v10 = vld [vmem:[%s16281_s4 + $0xd80] ss:$8 sps:$4 sm:$0xff]  }
 0xeee   : > { %v15339_v46 = vld [vmem:[%s16281_s4 + $0xd94] ss:$8 sps:$4 sm:$0xff]   ;;  %v15337_v37 = vld [vmem:[%s16281_s4 + $0xd90] ss:$8 sps:$4 sm:$0xff]   ;;  %v15342_v32 = vld [vmem:[%s16281_s4 + $0xda4] ss:$8 sps:$4 sm:$0xff]  }
 0xeef   : > { %9223 = vmatprep.mubr.bf16.mxu1 %v8997_v20  ;;  %v15324_v20 = vld [vmem:[%s16281_s4 + $0xd44] ss:$8 sps:$4 sm:$0xff]   ;;  %v15340_v24 = vld [vmem:[%s16281_s4 + $0xda0] ss:$8 sps:$4 sm:$0xff]   ;;  %v15343_v28 = vld [vmem:[%s16281_s4 + $0xdb0] ss:$8 sps:$4 sm:$0xff]  }
 0xef0   : > { %9224 = vmatmul.mubr.bf16.vlgmr.msra.gmra.mrb[28].mxu1 %v8996_v15  ;;  %v15321_v15 = vld [vmem:[%s16281_s4 + $0xd34] ss:$8 sps:$4 sm:$0xff]   ;;  %v15349_v8 = vld [vmem:[%s16281_s4 + $0xdd0] ss:$8 sps:$4 sm:$0xff]  }
 0xef1   : > { %10031 = vmatprep.mubr.bf16.mxu1 %v15888_v23 }
 0xfc3   : > { %v9225_v22 = vpop.f32.mrb[28].mxu1 }
 0xfc4   : > { %v9238_v3 = vmul.f32 0.70710677, %v9225_v22  ;;  %v9227_v59 = vpop.f32.mrb[29].mxu1  ;;  %v15345_v22 = vld [vmem:[%s16281_s4 + $0xdb4] ss:$8 sps:$4 sm:$0xff]  }
 0xfc5   : > { %v9239_v40 = vmul.f32 0.70710677, %v9227_v59  ;;  %v9229_v0 = vpop.f32.mrb[30].mxu1  ;;  %v15351_v59 = vld [vmem:[%s16281_s4 + $0xdd4] ss:$8 sps:$4 sm:$0xff]  }
 0xfc6   : > { %v9242_v51 = vadd.f32 %v12949_v35, %v9238_v3  ;;  %v9240_v55 = vmul.f32 0.70710677, %v9229_v0  ;;  %v9231_v56 = vpop.f32.mrb[31].mxu1  ;;  %v15348_v35 = vld [vmem:[%s16281_s4 + $0xdc4] ss:$8 sps:$4 sm:$0xff]  }
 0xfc7   : > { %v9243_v44 = vadd.f32 %v12950_v29, %v9239_v40  ;;  %v9241_v63 = vmul.f32 0.70710677, %v9231_v56  ;;  %v15346_v3 = vld [vmem:[%s16281_s4 + $0xdc0] ss:$8 sps:$4 sm:$0xff]   ;;  %v15354_v29 = vld [vmem:[%s16281_s4 + $0xde4] ss:$8 sps:$4 sm:$0xff]  }
 0xfc8   : > { %v9244_v14 = vadd.f32 %v12951_v53, %v9240_v55  ;;  %v15352_v40 = vld [vmem:[%s16281_s4 + $0xde0] ss:$8 sps:$4 sm:$0xff]   ;;  %v15357_v0 = vld [vmem:[%s16281_s4 + $0xdf4] ss:$8 sps:$4 sm:$0xff]   ;;  %v15360_v53 = vld [vmem:[%s16281_s4 + $0xe04] ss:$8 sps:$4 sm:$0xff]  }
 0xfc9   : > { %v9245_v18 = vadd.f32 %v12952_v33, %v9241_v63 }
 0xfca   : > { %v17904_v16 = vpack.c.bf16 %v9244_v14, %v9242_v51 }
 0xfcb   : > { %v17902_v49 = vpack.c.bf16 %v9245_v18, %v9243_v44 }
 0xfcd   : > { %13703 = vmatprep.subr.bf16.mxu0 %v17902_v49  ;;  %9999 = vmatprep.subr.bf16.mxu1 %v17902_v49 }
 0xfce   : > { %13705 = vmatpush1.bf16.msra.mxu0 %v17904_v16  ;;  %10000 = vmatpush1.bf16.msra.mxu1 %v17904_v16 }
 0xfd1   : > { %13213 = vmatmul.mubr.msk.f32.vlgmr.msra.gmra.mrb[36].mxu0 %vm9248_vm7, %v9246_v2  ;;  %13348 = vmatmul.mubr.msk.bf16.vlgmr.msra.gmra.mrb[36].mxu1 %vm9248_vm7, %v15309_v21 }
 0xfd2   : > { %9325 = vmatprep.mubr.f32.mxu0 %v15889_v31  ;;  %10400 = vmatprep.mubr.bf16.mxu1 %v15888_v23 }
 0xfd5   : > { %13214 = vmatmul.mubr.msk.f32.gmra.mrb[38].mxu0 %vm9248_vm7, %v9247_v58 }
 0xfd6   : > { %9404 = vmatprep.mubr.f32.mxu0 %v15889_v31 }
0x10a4   : > { %v9321_v4 = vpop.f32.mrb[36].mxu0 }
0x10a5   : > { %v9323_v45 = vpop.f32.mrb[37].mxu0  ;;  %v9332_v5 = vsub.f32 %v9242_v51, %v9321_v4  ;;  %v15355_v51 = vld [vmem:[%s16281_s4 + $0xdf0] ss:$8 sps:$4 sm:$0xff]  }
0x10a6   : > { %v9333_v57 = vsub.f32 %v9243_v44, %v9323_v45 }
0x10a7   : > { %v9336_v39 = vmul.f32 %v9332_v5, %v9332_v5 }
0x10a8   : > { %v9327_v43 = vpop.f32.mrb[38].mxu0  ;;  %v9337_v11 = vmul.f32 %v9333_v57, %v9333_v57 }
0x10a9   : > { %v9334_v30 = vsub.f32 %v9244_v14, %v9327_v43  ;;  %v9329_v1 = vpop.f32.mrb[39].mxu0  ;;  %v17956_v14 = vpop.f32.mrb[36].mxu1 }
0x10aa   : > { %v9335_v12 = vsub.f32 %v9245_v18, %v9329_v1 }
0x10ab   : > { %v9338_v25 = vmul.f32 %v9334_v30, %v9334_v30 }
0x10ac   : > { %v9339_v42 = vmul.f32 %v9335_v12, %v9335_v12 }
0x10ad   : > { %v13708_v47 = vpack.c.bf16 %v9338_v25, %v9336_v39 }
0x10ae   : > { %v13706_v26 = vpack.c.bf16 %v9339_v42, %v9337_v11  ;;  %v15358_v11 = vld [vmem:[%s16281_s4 + $0xe00] ss:$8 sps:$4 sm:$0xff]  }
0x10b0   : > { %13707 = vmatprep.subr.bf16.mxu0 %v13706_v26 }
0x10b1   : > { %13709 = vmatpush1.bf16.msra.mxu0 %v13708_v47  ;;  %v15363_v47 = vld [vmem:[%s16281_s4 + $0xe14] ss:$8 sps:$4 sm:$0xff]  }
0x10b2   : > { %9504 = vmatprep.subr.bf16.mxu0 %v17902_v49 }
0x10b4   : > { %13215 = vmatmul.mubr.msk.f32.vlgmr.msra.gmra.mrb[40].mxu0 %vm9248_vm7, %v9246_v2 }
0x10b5   : > { %9505 = vmatpush1.bf16.msra.mxu0 %v17904_v16  ;;  %9410 = vmatprep.mubr.f32.mxu0 %v15889_v31 }
0x10b6   : > { %9742 = vmatprep.subr.bf16.mxu0 %v15312_v62 }
0x10b8   : > { %13216 = vmatmul.mubr.msk.f32.gmra.mrb[42].mxu0 %vm9248_vm7, %v9247_v58  ;;  %v17958_v58 = vpop.f32.mrb[37].mxu1 }
0x10b9   : > { %9536 = vmatprep.mubr.bf16.mxu0 %v15888_v23  ;;  %v17960_v4 = vpop.f32.mrb[38].mxu1 }
0x10ba   : > { %v17962_v45 = vpop.f32.mrb[39].mxu1  ;;  %v10042_v43 = vpack.c.bf16 %v17960_v4, %v17956_v14 }
0x10bb   : > { %v10043_v30 = vpack.c.bf16 %v17962_v45, %v17958_v58  ;;  %v15423_v58 = vld [vmem:[%s16281_s4 + $0xf54] ss:$8 sps:$4 sm:$0xff]   ;;  %v15421_v45 = vld [vmem:[%s16281_s4 + $0xf50] ss:$8 sps:$4 sm:$0xff]  }
0x10bc   : > { %13250 = vmatmul.mubr.msk.bf16.vlgmr.msra.gmra.mrb[44].mxu0 %vm9248_vm7, %v15308_v52 }
0x10bd   : > { %9743 = vmatpush1.bf16.msra.mxu0 %v15310_v6 }
0x10be   : > { %9744 = vmatprep.subr.bf16.mxu0 %v15315_v27  ;;  %v15361_v27 = vld [vmem:[%s16281_s4 + $0xe10] ss:$8 sps:$4 sm:$0xff]  }
0x10c1   : > { %9745 = vmatpush1.bf16.msra.mxu0 %v15313_v54 }
0x10c2   : > { %9746 = vmatprep.subr.bf16.mxu0 %v15318_v60 }
0x10c5   : > { %9747 = vmatpush1.bf16.msra.mxu0 %v15316_v9 }
0x10c6   : > { %9748 = vmatprep.subr.bf16.mxu0 %v15321_v15 }
0x10c9   : > { %9749 = vmatpush1.bf16.msra.mxu0 %v15319_v41 }
0x10ca   : > { %9750 = vmatprep.subr.bf16.mxu0 %v15324_v20  ;;  %v15366_v20 = vld [vmem:[%s16281_s4 + $0xe24] ss:$8 sps:$4 sm:$0xff]  }
0x10cd   : > { %9751 = vmatpush1.bf16.msra.mxu0 %v15322_v19 }
0x10ce   : > { %9752 = vmatprep.subr.bf16.mxu0 %v15327_v48 }
0x10d1   : > { %9753 = vmatpush1.bf16.msra.mxu0 %v15325_v13 }
0x10d2   : > { %9754 = vmatprep.subr.bf16.mxu0 %v15330_v34 }
0x10d5   : > { %9755 = vmatpush1.bf16.msra.mxu0 %v15328_v50 }
0x10d6   : > { %9756 = vmatprep.subr.bf16.mxu0 %v15333_v61  ;;  %v15364_v61 = vld [vmem:[%s16281_s4 + $0xe20] ss:$8 sps:$4 sm:$0xff]  }
0x10d9   : > { %9757 = vmatpush1.bf16.msra.mxu0 %v15331_v7 }
0x10da   : > { %9758 = vmatprep.subr.bf16.mxu0 %v15336_v38 }
0x10dd   : > { %9759 = vmatpush1.bf16.msra.mxu0 %v15334_v10 }
0x10de   : > { %9760 = vmatprep.subr.bf16.mxu0 %v15339_v46 }
0x10e1   : > { %9761 = vmatpush1.bf16.msra.mxu0 %v15337_v37  ;;  %v15369_v37 = vld [vmem:[%s16281_s4 + $0xe34] ss:$8 sps:$4 sm:$0xff]  }
0x10e2   : > { %9762 = vmatprep.subr.bf16.mxu0 %v15342_v32 }
0x10e5   : > { %9763 = vmatpush1.bf16.msra.mxu0 %v15340_v24 }
0x10e6   : > { %9764 = vmatprep.subr.bf16.mxu0 %v15345_v22  ;;  %v15367_v22 = vld [vmem:[%s16281_s4 + $0xe30] ss:$8 sps:$4 sm:$0xff]  }
0x10e9   : > { %9765 = vmatpush1.bf16.msra.mxu0 %v15343_v28  ;;  %v15372_v28 = vld [vmem:[%s16281_s4 + $0xe44] ss:$8 sps:$4 sm:$0xff]  }
0x10ea   : > { %9766 = vmatprep.subr.bf16.mxu0 %v15348_v35  ;;  %v15370_v35 = vld [vmem:[%s16281_s4 + $0xe40] ss:$8 sps:$4 sm:$0xff]  }
0x10ed   : > { %9767 = vmatpush1.bf16.msra.mxu0 %v15346_v3  ;;  %v15375_v3 = vld [vmem:[%s16281_s4 + $0xe54] ss:$8 sps:$4 sm:$0xff]  }
0x10ee   : > { %9768 = vmatprep.subr.bf16.mxu0 %v15351_v59  ;;  %v15373_v59 = vld [vmem:[%s16281_s4 + $0xe50] ss:$8 sps:$4 sm:$0xff]  }
0x10f1   : > { %9769 = vmatpush1.bf16.msra.mxu0 %v15349_v8  ;;  %v15378_v8 = vld [vmem:[%s16281_s4 + $0xe64] ss:$8 sps:$4 sm:$0xff]  }
0x10f2   : > { %9770 = vmatprep.subr.bf16.mxu0 %v15354_v29  ;;  %v15376_v29 = vld [vmem:[%s16281_s4 + $0xe60] ss:$8 sps:$4 sm:$0xff]  }
0x10f5   : > { %9771 = vmatpush1.bf16.msra.mxu0 %v15352_v40  ;;  %v15381_v40 = vld [vmem:[%s16281_s4 + $0xe74] ss:$8 sps:$4 sm:$0xff]  }
0x10f6   : > { %9772 = vmatprep.subr.bf16.mxu0 %v15357_v0  ;;  %v15379_v0 = vld [vmem:[%s16281_s4 + $0xe70] ss:$8 sps:$4 sm:$0xff]  }
0x10f9   : > { %9773 = vmatpush1.bf16.msra.mxu0 %v15355_v51  ;;  %v15384_v51 = vld [vmem:[%s16281_s4 + $0xe84] ss:$8 sps:$4 sm:$0xff]  }
0x10fa   : > { %9945 = vmatprep.subr.bf16.mxu0 %v15360_v53  ;;  %v15382_v53 = vld [vmem:[%s16281_s4 + $0xe80] ss:$8 sps:$4 sm:$0xff]  }
0x1187   : > { %v9406_v55 = vpop.f32.mrb[40].mxu0 }
0x1188   : > { %v9407_v56 = vadd.f32 1e-08, %v9406_v55  ;;  %v9408_v44 = vpop.f32.mrb[41].mxu0  ;;  %v15387_v55 = vld [vmem:[%s16281_s4 + $0xe94] ss:$8 sps:$4 sm:$0xff]  }
0x1189   : > { %v9409_v33 = vadd.f32 1e-08, %v9408_v44  ;;  %v15390_v44 = vld [vmem:[%s16281_s4 + $0xea4] ss:$8 sps:$4 sm:$0xff]  }
0x118a   : > { %15518 = vrsqrt.f32 %v9407_v56  ;;  %vm9419_vm8 = vcmp.eq.f32.partialorder %v9407_v56, inf  ;;  %v9422_v52 = vand.u32 2147483648, %v9407_v56  ;;  %vm9421_vm9 = vcmp.eq.f32.partialorder %v9407_v56, 0.0 }
0x118b   : > { %15520 = vrsqrt.f32 %v9409_v33  ;;  %v9412_v63 = vpop.f32.mrb[42].mxu0  ;;  %vm9426_vm10 = vcmp.eq.f32.partialorder %v9409_v33, inf  ;;  %v9429_v60 = vand.u32 2147483648, %v9409_v33  ;;  %vm9428_vm11 = vcmp.eq.f32.partialorder %v9409_v33, 0.0 }
0x118c   : > { %v9413_v18 = vadd.f32 1e-08, %v9412_v63  ;;  %v9414_v2 = vpop.f32.mrb[43].mxu0  ;;  %v15393_v63 = vld [vmem:[%s16281_s4 + $0xeb4] ss:$8 sps:$4 sm:$0xff]  }
0x118d   : > { %v9415_v21 = vadd.f32 1e-08, %v9414_v2  ;;  %v15396_v2 = vld [vmem:[%s16281_s4 + $0xec4] ss:$8 sps:$4 sm:$0xff]  }
0x118e   : > { %15522 = vrsqrt.f32 %v9413_v18  ;;  %vm9433_vm12 = vcmp.eq.f32.partialorder %v9413_v18, inf  ;;  %v9436_v50 = vand.u32 2147483648, %v9413_v18  ;;  %vm9435_vm13 = vcmp.eq.f32.partialorder %v9413_v18, 0.0 }
0x118f   : > { %15524 = vrsqrt.f32 %v9415_v21  ;;  %v9538_v5 = vpop.f32.mrb[44].mxu0  ;;  %vm9440_vm14 = vcmp.eq.f32.partialorder %v9415_v21, inf  ;;  %v9443_v38 = vand.u32 2147483648, %v9415_v21  ;;  %vm9442_vm15 = vcmp.eq.f32.partialorder %v9415_v21, 0.0 }
0x1190   : > { %v9540_v57 = vpop.f32.mrb[45].mxu0 }
0x1191   : > { %v9542_v1 = vpop.f32.mrb[46].mxu0 }
0x1192   : > { %v9547_v12 = vpack.c.bf16 %v9542_v1, %v9538_v5  ;;  %v9544_v39 = vpop.f32.mrb[47].mxu0  ;;  %v15399_v5 = vld [vmem:[%s16281_s4 + $0xed4] ss:$8 sps:$4 sm:$0xff]   ;;  %v15402_v1 = vld [vmem:[%s16281_s4 + $0xee4] ss:$8 sps:$4 sm:$0xff]  }
0x1193   : > { %v9548_v25 = vpack.c.bf16 %v9544_v39, %v9540_v57  ;;  %v15397_v57 = vld [vmem:[%s16281_s4 + $0xed0] ss:$8 sps:$4 sm:$0xff]   ;;  %v15405_v39 = vld [vmem:[%s16281_s4 + $0xef4] ss:$8 sps:$4 sm:$0xff]  }
0x1194   : > { %v15519_v42 = vpop.eup %15518 }
0x1195   : > { %v15521_v26 = vpop.eup %15520  ;;  %9774 = vmatprep.mubr.bf16.mxu0 %v9548_v25  ;;  %v9418_v62 = vmul.f32 %v15519_v42, %v9407_v56  ;;  %v15403_v25 = vld [vmem:[%s16281_s4 + $0xef0] ss:$8 sps:$4 sm:$0xff]   ;;  %v15406_v42 = vld [vmem:[%s16281_s4 + $0xf00] ss:$8 sps:$4 sm:$0xff]  }
0x1196   : > { %9775 = vmatmul.mubr.bf16.vlgmr.msra.gmra.mrb[48].mxu0 %v9547_v12  ;;  %v9425_v6 = vmul.f32 %v15521_v26, %v9409_v33  ;;  %v15400_v12 = vld [vmem:[%s16281_s4 + $0xee0] ss:$8 sps:$4 sm:$0xff]   ;;  %v15409_v26 = vld [vmem:[%s16281_s4 + $0xf10] ss:$8 sps:$4 sm:$0xff]  }
0x1197   : > { %9946 = vmatpush1.bf16.msra.mxu0 %v15358_v11  ;;  %9977 = vmatprep.mubr.bf16.mxu0 %v17902_v49  ;;  %v9420_v54 = vsel %vm9419_vm8, %v9407_v56, %v9418_v62  ;;  %v15385_v56 = vld [vmem:[%s16281_s4 + $0xe90] ss:$8 sps:$4 sm:$0xff]   ;;  %v15408_v11 = vld [vmem:[%s16281_s4 + $0xf04] ss:$8 sps:$4 sm:$0xff]   ;;  %vm11321_vm8 = vcmask 3072  }
0x1198   : > { %v15523_v9 = vpop.eup %15522  ;;  %9947 = vmatprep.subr.bf16.mxu0 %v15363_v47  ;;  %v9423_v15 = vsel %vm9421_vm9, %v9422_v52, %v9420_v54  ;;  %v9427_v41 = vsel %vm9426_vm10, %v9409_v33, %v9425_v6  ;;  %v15388_v33 = vld [vmem:[%s16281_s4 + $0xea0] ss:$8 sps:$4 sm:$0xff]   ;;  %v15411_v47 = vld [vmem:[%s16281_s4 + $0xf14] ss:$8 sps:$4 sm:$0xff]   ;;  %v15414_v62 = vld [vmem:[%s16281_s4 + $0xf24] ss:$8 sps:$4 sm:$0xff]  }
0x1199   : > { %v15525_v19 = vpop.eup %15524  ;;  %v9430_v48 = vsel %vm9428_vm11, %v9429_v60, %v9427_v41  ;;  %v9432_v13 = vmul.f32 %v15523_v9, %v9413_v18  ;;  %v15412_v52 = vld [vmem:[%s16281_s4 + $0xf20] ss:$8 sps:$4 sm:$0xff]   ;;  %v15417_v6 = vld [vmem:[%s16281_s4 + $0xf34] ss:$8 sps:$4 sm:$0xff]   ;;  %v15432_v41 = vld [vmem:[%s16281_s4 + $0xf84] ss:$8 sps:$4 sm:$0xff]  }
0x119a   : > { %v9445_v34 = vadd.f32 %v9430_v48, %v9423_v15  ;;  %v9439_v49 = vmul.f32 %v15525_v19, %v9415_v21  ;;  %v15418_v54 = vld [vmem:[%s16281_s4 + $0xf40] ss:$8 sps:$4 sm:$0xff]   ;;  %v15429_v9 = vld [vmem:[%s16281_s4 + $0xf74] ss:$8 sps:$4 sm:$0xff]   ;;  %v15427_v15 = vld [vmem:[%s16281_s4 + $0xf70] ss:$8 sps:$4 sm:$0xff]  }
0x119b   : > { %9948 = vmatpush1.bf16.msra.mxu0 %v15361_v27  ;;  %v9434_v7 = vsel %vm9433_vm12, %v9413_v18, %v9432_v13  ;;  %v15391_v18 = vld [vmem:[%s16281_s4 + $0xeb0] ss:$8 sps:$4 sm:$0xff]   ;;  %v15424_v60 = vld [vmem:[%s16281_s4 + $0xf60] ss:$8 sps:$4 sm:$0xff]   ;;  %v15435_v19 = vld [vmem:[%s16281_s4 + $0xf94] ss:$8 sps:$4 sm:$0xff]  }
0x119c   : > { %9446 = vadd.xlane.f32.xlu0 %v9445_v34  ;;  %9949 = vmatprep.subr.bf16.mxu0 %v15366_v20  ;;  %v9437_v10 = vsel %vm9435_vm13, %v9436_v50, %v9434_v7  ;;  %v9441_v46 = vsel %vm9440_vm14, %v9415_v21, %v9439_v49  ;;  %v15394_v21 = vld [vmem:[%s16281_s4 + $0xec0] ss:$8 sps:$4 sm:$0xff]   ;;  %v15415_v27 = vld [vmem:[%s16281_s4 + $0xf30] ss:$8 sps:$4 sm:$0xff]   ;;  %v15438_v13 = vld [vmem:[%s16281_s4 + $0xfa4] ss:$8 sps:$4 sm:$0xff]  }
0x119d   : > { %v9444_v32 = vsel %vm9442_vm15, %v9443_v38, %v9441_v46  ;;  %v15430_v20 = vld [vmem:[%s16281_s4 + $0xf80] ss:$8 sps:$4 sm:$0xff]   ;;  %v15433_v48 = vld [vmem:[%s16281_s4 + $0xf90] ss:$8 sps:$4 sm:$0xff]   ;;  %v15441_v50 = vld [vmem:[%s16281_s4 + $0xfb4] ss:$8 sps:$4 sm:$0xff]  }
0x119e   : > { %v9448_v24 = vadd.f32 %v9444_v32, %v9437_v10  ;;  %v15436_v34 = vld [vmem:[%s16281_s4 + $0xfa0] ss:$8 sps:$4 sm:$0xff]   ;;  %v15439_v49 = vld [vmem:[%s16281_s4 + $0xfb0] ss:$8 sps:$4 sm:$0xff]   ;;  %v15447_v38 = vld [vmem:[%s16281_s4 + $0xfd4] ss:$8 sps:$4 sm:$0xff]  }
0x119f   : > { %9950 = vmatpush1.bf16.msra.mxu0 %v15364_v61  ;;  %v15444_v61 = vld [vmem:[%s16281_s4 + $0xfc4] ss:$8 sps:$4 sm:$0xff]   ;;  %v15442_v7 = vld [vmem:[%s16281_s4 + $0xfc0] ss:$8 sps:$4 sm:$0xff]   ;;  %v15445_v10 = vld [vmem:[%s16281_s4 + $0xfd0] ss:$8 sps:$4 sm:$0xff]  }
0x11a0   : > { %9449 = vadd.xlane.f32.xlu0 %v9448_v24  ;;  %9951 = vmatprep.subr.bf16.mxu0 %v15369_v37  ;;  %v15450_v46 = vld [vmem:[%s16281_s4 + $0xfe4] ss:$8 sps:$4 sm:$0xff]   ;;  %v15448_v37 = vld [vmem:[%s16281_s4 + $0xfe0] ss:$8 sps:$4 sm:$0xff]   ;;  %v15453_v32 = vld [vmem:[%s16281_s4 + $0xff4] ss:$8 sps:$4 sm:$0xff]  }
0x11a1   : > { %v15451_v24 = vld [vmem:[%s16281_s4 + $0xff0] ss:$8 sps:$4 sm:$0xff]  }
0x11a3   : > { %9952 = vmatpush1.bf16.msra.mxu0 %v15367_v22 }
0x11a4   : > { %9953 = vmatprep.subr.bf16.mxu0 %v15372_v28 }
0x11a7   : > { %9954 = vmatpush1.bf16.msra.mxu0 %v15370_v35 }
0x11a8   : > { %9955 = vmatprep.subr.bf16.mxu0 %v15375_v3 }
0x11ab   : > { %9956 = vmatpush1.bf16.msra.mxu0 %v15373_v59 }
0x11ac   : > { %9957 = vmatprep.subr.bf16.mxu0 %v15378_v8 }
0x11af   : > { %9958 = vmatpush1.bf16.msra.mxu0 %v15376_v29 }
0x11b0   : > { %9959 = vmatprep.subr.bf16.mxu0 %v15381_v40 }
0x11b3   : > { %9960 = vmatpush1.bf16.msra.mxu0 %v15379_v0 }
0x11b4   : > { %9961 = vmatprep.subr.bf16.mxu0 %v15384_v51 }
0x11b7   : > { %9962 = vmatpush1.bf16.msra.mxu0 %v15382_v53  ;;  %v10284_v53 = vld [vmem:[#allocation7] sm:$0xc0] }
0x11b8   : > { %9963 = vmatprep.subr.bf16.mxu0 %v15387_v55  ;;  %v10286_v55 = vld [vmem:[#allocation7 + $0x10] sm:$0xff] }
0x11bb   : > { %9964 = vmatpush1.bf16.msra.mxu0 %v15385_v56  ;;  %v10285_v56 = vld [vmem:[#allocation7 + $0x8] sm:$0xc0] }
0x11bc   : > { %9965 = vmatprep.subr.bf16.mxu0 %v15390_v44  ;;  %v10287_v44 = vld [vmem:[#allocation7 + $0x18] sm:$0xff] }
0x11bf   : > { %9966 = vmatpush1.bf16.msra.mxu0 %v15388_v33  ;;  %v10288_v33 = vld [vmem:[#allocation7 + $0x20] sm:$0x3f] }
0x11c0   : > { %9967 = vmatprep.subr.bf16.mxu0 %v15393_v63 }
0x11c3   : > { %9968 = vmatpush1.bf16.msra.mxu0 %v15391_v18 }
0x11c4   : > { %9969 = vmatprep.subr.bf16.mxu0 %v15396_v2  ;;  %v10289_v2 = vld [vmem:[#allocation7 + $0x28] sm:$0x3f] }
0x11c7   : > { %9970 = vmatpush1.bf16.msra.mxu0 %v15394_v21 }
0x11c8   : > { %9971 = vmatprep.subr.bf16.mxu0 %v15399_v5 }
0x11cb   : > { %9972 = vmatpush1.bf16.msra.mxu0 %v15397_v57 }
0x11cc   : > { %9973 = vmatprep.subr.bf16.mxu0 %v15402_v1  ;;  %v10322_v1 = vld [vmem:[#allocation7 + $0x5] ss:$8 sm:$0x3] }
0x11cf   : > { %9974 = vmatpush1.bf16.msra.mxu0 %v15400_v12 }
0x11d0   : > { %9975 = vmatprep.subr.bf16.mxu0 %v15405_v39 }
0x11d3   : > { %9976 = vmatpush1.bf16.msra.mxu0 %v15403_v25 }
0x11d4   : > { %10237 = vmatprep.subr.bf16.mxu0 %v15408_v11  ;;  %v10327_v11 = vrot.slane %v10322_v1, %v17422_v36 }
0x11d6   : > { %9978 = vmatmul.mubr.bf16.vlgmr.msra.gmra.mrb[48].mxu0 %v17904_v16  ;;  %v15420_v16 = vld [vmem:[%s16281_s4 + $0xf44] ss:$8 sps:$4 sm:$0xff]  }
0x11d7   : > { %10238 = vmatpush1.bf16.msra.mxu0 %v15406_v42  ;;  %10269 = vmatprep.mubr.bf16.mxu0 %v10043_v30  ;;  %v15426_v30 = vld [vmem:[%s16281_s4 + $0xf64] ss:$8 sps:$4 sm:$0xff]  }
0x11d8   : > { %10239 = vmatprep.subr.bf16.mxu0 %v15411_v47 }
0x11db   : > { %10240 = vmatpush1.bf16.msra.mxu0 %v15409_v26 }
0x11dc   : > { %10241 = vmatprep.subr.bf16.mxu0 %v15414_v62  ;;  %v10331_v62 = vrot.slane %v10322_v1, %v17424_v17 }
0x11df   : > { %10242 = vmatpush1.bf16.msra.mxu0 %v15412_v52 }
0x11e0   : > { %10243 = vmatprep.subr.bf16.mxu0 %v15417_v6 }
0x11e3   : > { %10244 = vmatpush1.bf16.msra.mxu0 %v15415_v27 }
0x11e4   : > { %10245 = vmatprep.subr.bf16.mxu0 %v15420_v16 }
0x11e7   : > { %10246 = vmatpush1.bf16.msra.mxu0 %v15418_v54 }
0x11e8   : > { %10247 = vmatprep.subr.bf16.mxu0 %v15423_v58 }
0x11eb   : > { %10248 = vmatpush1.bf16.msra.mxu0 %v15421_v45 }
0x11ec   : > { %10249 = vmatprep.subr.bf16.mxu0 %v15426_v30 }
0x11ef   : > { %10250 = vmatpush1.bf16.msra.mxu0 %v15424_v60 }
0x11f0   : > { %10251 = vmatprep.subr.bf16.mxu0 %v15429_v9 }
0x11f3   : > { %10252 = vmatpush1.bf16.msra.mxu0 %v15427_v15 }
0x11f4   : > { %10253 = vmatprep.subr.bf16.mxu0 %v15432_v41 }
0x11f7   : > { %10254 = vmatpush1.bf16.msra.mxu0 %v15430_v20 }
0x11f8   : > { %10255 = vmatprep.subr.bf16.mxu0 %v15435_v19 }
0x11fb   : > { %10256 = vmatpush1.bf16.msra.mxu0 %v15433_v48 }
0x11fc   : > { %10257 = vmatprep.subr.bf16.mxu0 %v15438_v13 }
0x11ff   : > { %10258 = vmatpush1.bf16.msra.mxu0 %v15436_v34 }
0x1200   : > { %10259 = vmatprep.subr.bf16.mxu0 %v15441_v50 }
0x1203   : > { %10260 = vmatpush1.bf16.msra.mxu0 %v15439_v49 }
0x1204   : > { %10261 = vmatprep.subr.bf16.mxu0 %v15444_v61 }
0x1207   : > { %10262 = vmatpush1.bf16.msra.mxu0 %v15442_v7 }
0x1208   : > { %10263 = vmatprep.subr.bf16.mxu0 %v15447_v38 }
0x120b   : > { %10264 = vmatpush1.bf16.msra.mxu0 %v15445_v10 }
0x120c   : > { %10265 = vmatprep.subr.bf16.mxu0 %v15450_v46 }
0x120f   : > { %10266 = vmatpush1.bf16.msra.mxu0 %v15448_v37 }
0x1210   : > { %10267 = vmatprep.subr.bf16.mxu0 %v15453_v32 }
0x1213   : > { %10268 = vmatpush1.bf16.msra.mxu0 %v15451_v24 }
0x1216   : > { %10270 = vmatmul.mubr.bf16.vlgmr.msra.gmra.mrb[48].mxu0 %v10042_v43 }
0x1217   : > { %13699 = vmatprep.mubr.msk.f32.mxu0 %vm15891_vm5, %v15889_v31 }
0x1229   : > { %v9447_v22 = vpop.xlane.xlu0 %9446 }
0x122d   : > { %v9450_v28 = vpop.xlane.xlu0 %9449 }
0x122e   : > { %v9451_v35 = vadd.f32 %v9450_v28, %v9447_v22 }
0x1230   : > { %v9452_v3 = vrot.slane %v9451_v35, 4 }
0x1232   : > { %v9453_v59 = vadd.f32 %v9452_v3, %v9451_v35  ;;  %v10364_v3 = vld [vmem:[#allocation17] sm:$0x3] }
0x1234   : > { %v9454_v8 = vrot.slane %v9453_v59, 2 }
0x1236   : > { %v9455_v29 = vadd.f32 %v9454_v8, %v9453_v59  ;;  %v15454_v59 = vld [vmem:[%s18378_s20 + $0xc0] sm:$0xff]   ;;  %v10444_v8 = vld [vmem:[#allocation17 + $0x2] sm:$0x3] }
0x1238   : > { %v9456_v40 = vrot.slane %v9455_v29, 1 }
0x123a   : > { %v9457_v0 = vadd.f32 %v9456_v40, %v9455_v29  ;;  %v15455_v29 = vld [vmem:[%s18378_s20 + $0x80] sm:$0xff]   ;;  %v15456_v40 = vld [vmem:[%s18378_s20 + $0xc8] sm:$0xff]  }
0x123c   : > { %v9458_v51 = vmul.f32 0.00024414063, %v9457_v0  ;;  %v15457_v0 = vld [vmem:[%s18378_s20 + $0x88] sm:$0xff]  }
0x123e   : > { %v10290_v63 = vmul.f32 %v10284_v53, %v9458_v51  ;;  %v10292_v18 = vmul.f32 %v10286_v55, %v9458_v51  ;;  %v10291_v14 = vmul.f32 %v10285_v56, %v9458_v51  ;;  %v10293_v4 = vmul.f32 %v10287_v44, %v9458_v51  ;;  %v15459_v53 = vld [vmem:[%s18378_s20 + $0x90] sm:$0xff]   ;;  %v15460_v55 = vld [vmem:[%s18378_s20 + $0xd8] sm:$0xff]   ;;  %v15462_v44 = vld [vmem:[%s18378_s20 + $0xe0] sm:$0xff]  }
0x123f   : > { %v10294_v43 = vmul.f32 %v10288_v33, %v9458_v51  ;;  %v10295_v21 = vmul.f32 %v10289_v2, %v9458_v51  ;;  %v15458_v51 = vld [vmem:[%s18378_s20 + $0xd0] sm:$0xff]   ;;  %v15461_v56 = vld [vmem:[%s18378_s20 + $0x98] sm:$0xff]   ;;  %v15463_v33 = vld [vmem:[%s18378_s20 + $0xa0] sm:$0xff]  }
0x1240   : > { %v10303_v5 = vrot.slane %v10290_v63, 6  ;;  %v10304_v57 = vrot.slane %v10292_v18, 6  ;;  %v10306_v12 = vrot.slane %v10291_v14, 6  ;;  %v10307_v39 = vrot.slane %v10293_v4, 6  ;;  %v15464_v63 = vld [vmem:[%s18378_s20 + $0xe8] sm:$0xff]   ;;  %v15466_v2 = vld [vmem:[%s18378_s20 + $0xf0] sm:$0xff]  }
0x1241   : > { %v10309_v25 = vrot.slane %v10294_v43, 6  ;;  %v10311_v42 = vrot.slane %v10295_v21, 6  ;;  %v15465_v18 = vld [vmem:[%s18378_s20 + $0xa8] sm:$0xff]   ;;  %v15467_v14 = vld [vmem:[%s18378_s20 + $0xb0] sm:$0xff]   ;;  %v15468_v4 = vld [vmem:[%s18378_s20 + $0xf8] sm:$0xff]  }
0x1242   : > { %v10305_v26 = vsel %vm10302_vm0, %v10303_v5, %v10304_v57  ;;  %v10308_v27 = vsel %vm10302_vm0, %v10306_v12, %v10307_v39  ;;  %v15469_v43 = vld [vmem:[%s18378_s20 + $0xb8] sm:$0xff]   ;;  %v15470_v21 = vld [vmem:[%s18378_s20 + $0x40] sm:$0xff]  }
0x1243   : > { %v10310_v58 = vsel %vm10302_vm0, %v10304_v57, %v10309_v25  ;;  %v10312_v9 = vsel %vm10302_vm0, %v10307_v39, %v10311_v42 }
0x12e9   : > { %v10271_v47 = vpop.f32.mrb[48].mxu0 }
0x12ea   : > { %v10317_v52 = vadd.f32 %v10305_v26, %v10271_v47  ;;  %v10273_v6 = vpop.f32.mrb[49].mxu0  ;;  %v15471_v47 = vld [vmem:[%s18378_s20] sm:$0xff]  }
0x12eb   : > { %v10318_v16 = vadd.f32 %v10308_v27, %v10273_v6  ;;  %v10275_v54 = vpop.f32.mrb[50].mxu0  ;;  %v15473_v27 = vld [vmem:[%s18378_s20 + $0x8] sm:$0xff]  }
0x12ec   : > { %v10334_v45 = vadd.f32 %v10327_v11, %v10317_v52  ;;  %v10319_v30 = vadd.f32 %v10310_v58, %v10275_v54  ;;  %v10277_v60 = vpop.f32.mrb[51].mxu0  ;;  %v15472_v52 = vld [vmem:[%s18378_s20 + $0x48] sm:$0xff]   ;;  %v15475_v54 = vld [vmem:[%s18378_s20 + $0x10] sm:$0xff]   ;;  %v15476_v58 = vld [vmem:[%s18378_s20 + $0x58] sm:$0xff]  }
0x12ed   : > { %v10335_v36 = vadd.f32 %v10331_v62, %v10318_v16  ;;  %v10320_v15 = vadd.f32 %v10312_v9, %v10277_v60  ;;  %v15474_v16 = vld [vmem:[%s18378_s20 + $0x50] sm:$0xff]   ;;  %v15479_v60 = vld [vmem:[%s18378_s20 + $0x20] sm:$0xff]   ;;  %v15480_v9 = vld [vmem:[%s18378_s20 + $0x68] sm:$0xff]  }
0x12ee   : > { %vm10338_vm2 = vcmp.ge.f32.partialorder %v10334_v45, 0.0  ;;  %v10342_v41 = vmul.f32 0.2, %v10334_v45  ;;  %v10336_v20 = vadd.f32 %v10327_v11, %v10319_v30  ;;  %v15478_v30 = vld [vmem:[%s18378_s20 + $0x60] sm:$0xff]  }
0x12ef   : > { %vm10339_vm1 = vcmp.ge.f32.partialorder %v10335_v36, 0.0  ;;  %v10343_v17 = vmul.f32 0.2, %v10335_v36  ;;  %v10337_v19 = vadd.f32 %v10331_v62, %v10320_v15  ;;  %v15482_v15 = vld [vmem:[%s18378_s20 + $0x70] sm:$0xff]  }
0x12f0   : > { %v10346_v48 = vsel %vm10338_vm2, %v10334_v45, %v10342_v41  ;;  %vm10340_vm3 = vcmp.ge.f32.partialorder %v10336_v20, 0.0  ;;  %v10344_v13 = vmul.f32 0.2, %v10336_v20  ;;  %v15477_v45 = vld [vmem:[%s18378_s20 + $0x18] sm:$0xff]   ;;  %v15483_v41 = vld [vmem:[%s18378_s20 + $0x30] sm:$0xff]  }
0x12f1   : > { %v10350_v34 = vmul.f32 1.4142135, %v10346_v48  ;;  %v10347_v50 = vsel %vm10339_vm1, %v10335_v36, %v10343_v17  ;;  %vm10341_vm4 = vcmp.ge.f32.partialorder %v10337_v19, 0.0  ;;  %v10345_v49 = vmul.f32 0.2, %v10337_v19  ;;  %v15481_v36 = vld [vmem:[%s18378_s20 + $0x28] sm:$0xff]  }
0x12f2   : > { %v10351_v61 = vmul.f32 1.4142135, %v10347_v50  ;;  %v10348_v7 = vsel %vm10340_vm3, %v10336_v20, %v10344_v13  ;;  %v15484_v20 = vld [vmem:[%s18378_s20 + $0x78] sm:$0xff]   ;;  %v15486_v48 = vld [vmem:[%s18378_s20 + $0x140] sm:$0xff]   ;;  %v10797_v13 = vld [vmem:[#allocation17 + $0x4] sm:$0x3] }
0x12f3   : > { %v10352_v38 = vmul.f32 1.4142135, %v10348_v7  ;;  %v10349_v10 = vsel %vm10341_vm4, %v10337_v19, %v10345_v49  ;;  %v13413_v37 = vclamps-f32 %v10350_v34, 256.0  ;;  %v15485_v17 = vld [vmem:[%s18378_s20 + $0x38] sm:$0xff]   ;;  %v15487_v34 = vld [vmem:[%s18378_s20 + $0x100] sm:$0xff]   ;;  %v15488_v50 = vld [vmem:[%s18378_s20 + $0x148] sm:$0xff]  }
0x12f4   : > { %v10353_v46 = vmul.f32 1.4142135, %v10349_v10  ;;  %v13414_v24 = vclamps-f32 %v10351_v61, 256.0  ;;  %v15489_v49 = vld [vmem:[%s18378_s20 + $0x108] sm:$0xff]   ;;  %v15490_v61 = vld [vmem:[%s18378_s20 + $0x150] sm:$0xff]   ;;  %v15493_v10 = vld [vmem:[%s18378_s20 + $0x118] sm:$0xff]  }
0x12f5   : > { %v13415_v32 = vclamps-f32 %v10352_v38, 256.0  ;;  %v15491_v7 = vld [vmem:[%s18378_s20 + $0x110] sm:$0xff]   ;;  %v15492_v38 = vld [vmem:[%s18378_s20 + $0x158] sm:$0xff]  }
0x12f6   : > { %v13416_v22 = vclamps-f32 %v10353_v46, 256.0  ;;  %v15494_v46 = vld [vmem:[%s18378_s20 + $0x160] sm:$0xff]  }
0x12f7   : > { %v18045_v28 = vpack.c.bf16 %v13415_v32, %v13413_v37  ;;  %v15495_v37 = vld [vmem:[%s18378_s20 + $0x120] sm:$0xff]   ;;  %v15496_v32 = vld [vmem:[%s18378_s20 + $0x168] sm:$0xff]  }
0x12f8   : > { %v18047_v35 = vpack.c.bf16 %v13416_v22, %v13414_v24  ;;  %v15497_v24 = vld [vmem:[%s18378_s20 + $0x128] sm:$0xff]   ;;  %v15498_v22 = vld [vmem:[%s18378_s20 + $0x170] sm:$0xff]  }
0x12fa   : > { %10368 = vmatprep.subr.bf16.mxu1 %v18047_v35 }
0x12fb   : > { %10369 = vmatpush1.bf16.msra.mxu1 %v18045_v28 }
0x12fc   : > { %10448 = vmatprep.subr.bf16.mxu1 %v18047_v35 }
0x12fe   : > { %13417 = vmatmul.mubr.msk.bf16.vlgmr.msra.gmra.mrb[40].mxu1 %vm9248_vm7, %v10364_v3  ;;  %v15499_v3 = vld [vmem:[%s18378_s20 + $0x130] sm:$0xff]  }
0x12ff   : > { %10449 = vmatpush1.bf16.msra.mxu1 %v18045_v28  ;;  %10480 = vmatprep.mubr.bf16.mxu1 %v15888_v23 }
0x1300   : > { %13586 = vmatprep.subr.bf16.mxu1 %v15454_v59  ;;  %v15500_v59 = vld [vmem:[%s18378_s20 + $0x178] sm:$0xff]  }
0x1306   : > { %13418 = vmatmul.mubr.msk.bf16.vlgmr.msra.gmra.mrb[44].mxu1 %vm9248_vm7, %v10444_v8  ;;  %v15501_v8 = vld [vmem:[%s18378_s20 + $0x138] sm:$0xff]  }
0x1307   : > { %13587 = vmatpush3.bf16.msra.mxu1 %v15455_v29 }
0x1308   : > { %13588 = vmatprep.subr.bf16.mxu1 %v15456_v40 }
0x130b   : > { %13589 = vmatpush3.bf16.msra.mxu1 %v15457_v0 }
0x130c   : > { %13590 = vmatprep.subr.bf16.mxu1 %v15458_v51 }
0x130f   : > { %13591 = vmatpush3.bf16.msra.mxu1 %v15459_v53 }
0x1310   : > { %13592 = vmatprep.subr.bf16.mxu1 %v15460_v55 }
0x1313   : > { %13593 = vmatpush3.bf16.msra.mxu1 %v15461_v56 }
0x1314   : > { %13594 = vmatprep.subr.bf16.mxu1 %v15462_v44 }
0x1317   : > { %13595 = vmatpush3.bf16.msra.mxu1 %v15463_v33 }
0x1318   : > { %13596 = vmatprep.subr.bf16.mxu1 %v15464_v63 }
0x131b   : > { %13597 = vmatpush3.bf16.msra.mxu1 %v15465_v18 }
0x131c   : > { %13598 = vmatprep.subr.bf16.mxu1 %v15466_v2 }
0x131f   : > { %13599 = vmatpush3.bf16.msra.mxu1 %v15467_v14 }
0x1320   : > { %13600 = vmatprep.subr.bf16.mxu1 %v15468_v4 }
0x1323   : > { %13601 = vmatpush3.bf16.msra.mxu1 %v15469_v43 }
0x1324   : > { %13608 = vmatprep.subr.bf16.mxu1 %v15470_v21 }
0x13d1   : > { %v10402_v5 = vpop.f32.mrb[40].mxu1 }
0x13d2   : > { %v10404_v57 = vpop.f32.mrb[41].mxu1  ;;  %v10409_v19 = vpack.c.bf16 %v10402_v5, %v10402_v5 }
0x13d3   : > { %v10406_v1 = vpop.f32.mrb[42].mxu1  ;;  %v10410_v6 = vpack.c.bf16 %v10404_v57, %v10404_v57  ;;  %v11015_v57 = vld [vmem:[#allocation17 + $0x6] sm:$0x3] }
0x13d4   : > { %v10407_v12 = vpop.f32.mrb[43].mxu1  ;;  %v15503_v1 = vld [vmem:[%s18378_s20 + $0x180] sm:$0xff]  }
0x13d5   : > { %v15504_v12 = vld [vmem:[%s18378_s20 + $0x1c8] sm:$0xff]  }
0x13d9   : > { %v10482_v39 = vpop.f32.mrb[44].mxu1 }
0x13da   : > { %v10484_v25 = vpop.f32.mrb[45].mxu1  ;;  %v10489_v26 = vpack.c.bf16 %v10482_v39, %v10482_v39  ;;  %v15505_v39 = vld [vmem:[%s18378_s20 + $0x188] sm:$0xff]  }
0x13db   : > { %v10490_v11 = vpack.c.bf16 %v10484_v25, %v10484_v25  ;;  %v10486_v42 = vpop.f32.mrb[46].mxu1  ;;  %v15508_v25 = vld [vmem:[%s18378_s20 + $0x1d8] sm:$0xff]  }
0x13dc   : > { %v10487_v62 = vpop.f32.mrb[47].mxu1  ;;  %v15510_v42 = vld [vmem:[%s18378_s20 + $0x1e0] sm:$0xff]  }
0x13dd   : > { %10652 = vmatprep.mubr.bf16.mxu1 %v10490_v11  ;;  %v15509_v11 = vld [vmem:[%s18378_s20 + $0x198] sm:$0xff]   ;;  %v15513_v62 = vld [vmem:[%s18378_s20 + $0x1a8] sm:$0xff]  }
0x13de   : > { %10653 = vmatmul.mubr.bf16.vlgmr.msra.gmra.mrb[48].mxu1 %v10489_v26  ;;  %v15512_v26 = vld [vmem:[%s18378_s20 + $0x1e8] sm:$0xff]  }
0x13df   : > { %13609 = vmatpush3.bf16.msra.mxu1 %v15471_v47  ;;  %10788 = vmatprep.mubr.bf16.mxu1 %v10410_v6  ;;  %v15511_v47 = vld [vmem:[%s18378_s20 + $0x1a0] sm:$0xff]   ;;  %v15515_v6 = vld [vmem:[%s18378_s20 + $0x1b0] sm:$0xff]  }
0x13e0   : > { %13610 = vmatprep.subr.bf16.mxu1 %v15472_v52  ;;  %v15514_v52 = vld [vmem:[%s18378_s20 + $0x1f0] sm:$0xff]  }
0x13e3   : > { %13611 = vmatpush3.bf16.msra.mxu1 %v15473_v27  ;;  %v15516_v27 = vld [vmem:[%s18378_s20 + $0x1f8] sm:$0xff]  }
0x13e4   : > { %13612 = vmatprep.subr.bf16.mxu1 %v15474_v16  ;;  %v15517_v16 = vld [vmem:[%s18378_s20 + $0x1b8] sm:$0xff]  }
0x13e7   : > { %13613 = vmatpush3.bf16.msra.mxu1 %v15475_v54  ;;  %v11238_v54 = vld [vmem:[%s18379_s17] sm:$0xff] }
0x13e8   : > { %13614 = vmatprep.subr.bf16.mxu1 %v15476_v58  ;;  %v11239_v58 = vld [vmem:[%s18379_s17 + $0x8] sm:$0xff] }
0x13eb   : > { %13615 = vmatpush3.bf16.msra.mxu1 %v15477_v45  ;;  %v15890_v45 = vmov 0.0|0.0  }
0x13ec   : > { %13616 = vmatprep.subr.bf16.mxu1 %v15478_v30  ;;  %13710 = vmatprep.subr.bf16.mxu0 %v15890_v45  ;;  %v13711_v30 = vpack.c.bf16 %v11239_v58, %v11238_v54 }
0x13ee   : > { %13712 = vmatpush3.bf16.msra.mxu0 %v13711_v30 }
0x13ef   : > { %13617 = vmatpush3.bf16.msra.mxu1 %v15479_v60  ;;  %13713 = vmatprep.subr.bf16.mxu0 %v15890_v45 }
0x13f0   : > { %13618 = vmatprep.subr.bf16.mxu1 %v15480_v9 }
0x13f3   : > { %13619 = vmatpush3.bf16.msra.mxu1 %v15481_v36 }
0x13f4   : > { %13620 = vmatprep.subr.bf16.mxu1 %v15482_v15 }
0x13f7   : > { %13621 = vmatpush3.bf16.msra.mxu1 %v15483_v41 }
0x13f8   : > { %13622 = vmatprep.subr.bf16.mxu1 %v15484_v20 }
0x13fb   : > { %13623 = vmatpush3.bf16.msra.mxu1 %v15485_v17 }
0x13fc   : > { %10801 = vmatprep.subr.bf16.mxu1 %v18047_v35 }
0x13fe   : > { %10789 = vmatmul.mubr.bf16.vlgmr.msra.gmra.mrb[52].mxu1 %v10409_v19 }
0x13ff   : > { %10802 = vmatpush1.bf16.msra.mxu1 %v18045_v28  ;;  %10833 = vmatprep.mubr.bf16.mxu1 %v15888_v23 }
0x1400   : > { %13630 = vmatprep.subr.bf16.mxu1 %v15486_v48 }
0x1406   : > { %13483 = vmatmul.mubr.msk.bf16.vlgmr.msra.gmra.mrb[56].mxu1 %vm9248_vm7, %v10797_v13 }
0x1407   : > { %13631 = vmatpush3.bf16.msra.mxu1 %v15487_v34 }
0x1408   : > { %13632 = vmatprep.subr.bf16.mxu1 %v15488_v50 }
0x140b   : > { %13633 = vmatpush3.bf16.msra.mxu1 %v15489_v49  ;;  %v11240_v49 = vld [vmem:[%s18379_s17 + $0x10] sm:$0xff] }
0x140c   : > { %13634 = vmatprep.subr.bf16.mxu1 %v15490_v61  ;;  %v11241_v61 = vld [vmem:[%s18379_s17 + $0x18] sm:$0xff] }
0x140f   : > { %13635 = vmatpush3.bf16.msra.mxu1 %v15491_v7  ;;  %v13714_v7 = vpack.c.bf16 %v11241_v61, %v11240_v49 }
0x1410   : > { %13636 = vmatprep.subr.bf16.mxu1 %v15492_v38  ;;  %v11242_v38 = vld [vmem:[%s18379_s17 + $0x20] sm:$0xff] }
0x1411   : > { %13715 = vmatpush3.bf16.msra.mxu0 %v13714_v7 }
0x1412   : > { %13716 = vmatprep.subr.bf16.mxu0 %v15890_v45 }
0x1413   : > { %13637 = vmatpush3.bf16.msra.mxu1 %v15493_v10  ;;  %v11243_v10 = vld [vmem:[%s18379_s17 + $0x28] sm:$0xff] }
0x1414   : > { %13638 = vmatprep.subr.bf16.mxu1 %v15494_v46  ;;  %v13717_v46 = vpack.c.bf16 %v11243_v10, %v11242_v38 }
0x1416   : > { %13718 = vmatpush3.bf16.msra.mxu0 %v13717_v46 }
0x1417   : > { %13639 = vmatpush3.bf16.msra.mxu1 %v15495_v37  ;;  %13719 = vmatprep.subr.bf16.mxu0 %v15890_v45  ;;  %v11244_v37 = vld [vmem:[%s18379_s17 + $0x30] sm:$0xff] }
0x1418   : > { %13640 = vmatprep.subr.bf16.mxu1 %v15496_v32  ;;  %v11245_v32 = vld [vmem:[%s18379_s17 + $0x38] sm:$0xff] }
0x141b   : > { %13641 = vmatpush3.bf16.msra.mxu1 %v15497_v24  ;;  %v13720_v24 = vpack.c.bf16 %v11245_v32, %v11244_v37 }
0x141c   : > { %13642 = vmatprep.subr.bf16.mxu1 %v15498_v22 }
0x141d   : > { %13721 = vmatpush3.bf16.msra.mxu0 %v13720_v24 }
0x141f   : > { %13643 = vmatpush3.bf16.msra.mxu1 %v15499_v3 }
0x1420   : > { %13644 = vmatprep.subr.bf16.mxu1 %v15500_v59 }
0x1423   : > { %13645 = vmatpush3.bf16.msra.mxu1 %v15501_v8 }
0x1424   : > { %11019 = vmatprep.subr.bf16.mxu1 %v18047_v35  ;;  %v15502_v35 = vld [vmem:[%s18378_s20 + $0x1c0] sm:$0xff]  }
0x14b1   : > { %v13602_v29 = vpop.f32.mrb[48].mxu1 }
0x14b2   : > { %v13603_v40 = vpop.f32.mrb[49].mxu1 }
0x14b3   : > { %v13604_v0 = vadd.f32 %v13603_v40, %v13602_v29  ;;  %v13605_v51 = vpop.f32.mrb[50].mxu1  ;;  %v11232_v29 = vld [vmem:[#allocation7 + $0x26] ss:$0 sm:$0xff] }
0x14b4   : > { %v13606_v53 = vpop.f32.mrb[51].mxu1 }
0x14d1   : > { %v13624_v55 = vpop.f32.mrb[52].mxu1 }
0x14d2   : > { %v13625_v56 = vpop.f32.mrb[53].mxu1 }
0x14d3   : > { %v13626_v44 = vadd.f32 %v13625_v56, %v13624_v55  ;;  %v13627_v33 = vpop.f32.mrb[54].mxu1 }
0x14d4   : > { %v13628_v63 = vpop.f32.mrb[55].mxu1 }
0x14d5   : > { %v10791_v18 = vadd.f32 %v13626_v44, %v13604_v0  ;;  %v11246_v44 = vld [vmem:[#allocation7 + $0x27] ss:$0 sm:$0xff] }
0x14d9   : > { %v10835_v2 = vpop.f32.mrb[56].mxu1 }
0x14da   : > { %v10837_v14 = vpop.f32.mrb[57].mxu1  ;;  %v10842_v21 = vpack.c.bf16 %v10835_v2, %v10835_v2 }
0x14db   : > { %v10843_v4 = vpack.c.bf16 %v10837_v14, %v10837_v14  ;;  %v10839_v43 = vpop.f32.mrb[58].mxu1 }
0x14dc   : > { %v10840_v5 = vpop.f32.mrb[59].mxu1 }
0x14dd   : > { %11005 = vmatprep.mubr.bf16.mxu1 %v10843_v4 }
0x14de   : > { %11006 = vmatmul.mubr.bf16.vlgmr.msra.gmra.mrb[60].mxu1 %v10842_v21 }
0x14df   : > { %11020 = vmatpush1.bf16.msra.mxu1 %v18045_v28  ;;  %11051 = vmatprep.mubr.bf16.mxu1 %v15888_v23  ;;  %v15506_v23 = vld [vmem:[%s18378_s20 + $0x1d0] sm:$0xff]  }
0x14e0   : > { %13652 = vmatprep.subr.bf16.mxu1 %v15502_v35  ;;  %v15507_v28 = vld [vmem:[%s18378_s20 + $0x190] sm:$0xff]  }
0x14e6   : > { %13532 = vmatmul.mubr.msk.bf16.vlgmr.msra.gmra.mrb[64].mxu1 %vm9248_vm7, %v11015_v57  ;;  %vm11247_vm7 = vcmask 523264  }
0x14e7   : > { %13653 = vmatpush3.bf16.msra.mxu1 %v15503_v1 }
0x14e8   : > { %13654 = vmatprep.subr.bf16.mxu1 %v15504_v12 }
0x14eb   : > { %13655 = vmatpush3.bf16.msra.mxu1 %v15505_v39 }
0x14ec   : > { %13656 = vmatprep.subr.bf16.mxu1 %v15506_v23 }
0x14ef   : > { %13657 = vmatpush3.bf16.msra.mxu1 %v15507_v28 }
0x14f0   : > { %13658 = vmatprep.subr.bf16.mxu1 %v15508_v25 }
0x14f3   : > { %13659 = vmatpush3.bf16.msra.mxu1 %v15509_v11 }
0x14f4   : > { %13660 = vmatprep.subr.bf16.mxu1 %v15510_v42 }
0x14f7   : > { %13661 = vmatpush3.bf16.msra.mxu1 %v15511_v47 }
0x14f8   : > { %13662 = vmatprep.subr.bf16.mxu1 %v15512_v26 }
0x14fb   : > { %13663 = vmatpush3.bf16.msra.mxu1 %v15513_v62 }
0x14fc   : > { %13664 = vmatprep.subr.bf16.mxu1 %v15514_v52 }
0x14ff   : > { %13665 = vmatpush3.bf16.msra.mxu1 %v15515_v6 }
0x1500   : > { %13666 = vmatprep.subr.bf16.mxu1 %v15516_v27 }
0x1503   : > { %13667 = vmatpush3.bf16.msra.mxu1 %v15517_v16 }
0x15b1   : > { %v13646_v60 = vpop.f32.mrb[60].mxu1 }
0x15b2   : > { %v13647_v9 = vpop.f32.mrb[61].mxu1 }
0x15b3   : > { %v13648_v36 = vadd.f32 %v13647_v9, %v13646_v60  ;;  %v13649_v15 = vpop.f32.mrb[62].mxu1 }
0x15b4   : > { %v13650_v41 = vpop.f32.mrb[63].mxu1 }
0x15b5   : > { %v11013_v20 = vadd.f32 %v13648_v36, %v10791_v18 }
0x15b9   : > { %v11053_v17 = vpop.f32.mrb[64].mxu1 }
0x15ba   : > { %v11055_v19 = vpop.f32.mrb[65].mxu1  ;;  %v11060_v34 = vpack.c.bf16 %v11053_v17, %v11053_v17 }
0x15bb   : > { %v11061_v48 = vpack.c.bf16 %v11055_v19, %v11055_v19  ;;  %v11057_v13 = vpop.f32.mrb[66].mxu1 }
0x15bc   : > { %v11058_v50 = vpop.f32.mrb[67].mxu1 }
0x15bd   : > { %11223 = vmatprep.mubr.bf16.mxu1 %v11061_v48 }
0x15be   : > { %11224 = vmatmul.mubr.bf16.vlgmr.msra.gmra.mrb[68].mxu1 %v11060_v34 }
0x1691   : > { %v13668_v22 = vpop.f32.mrb[68].mxu1 }
0x1692   : > { %v13669_v3 = vpop.f32.mrb[69].mxu1 }
0x1693   : > { %v13670_v59 = vadd.f32 %v13669_v3, %v13668_v22  ;;  %v13671_v8 = vpop.f32.mrb[70].mxu1 }
0x1694   : > { %v13672_v40 = vpop.f32.mrb[71].mxu1 }
0x1695   : > { %v11231_v0 = vadd.f32 %v13670_v59, %v11013_v20 }
0x1697   : > { %v11233_v51 = vadd.f32 %v11232_v29, %v11231_v0 }
0x1699   : > { %vm11234_vm6 = vcmp.ge.f32.partialorder %v11233_v51, 0.0  ;;  %v11235_v53 = vmul.f32 0.2, %v11233_v51 }
0x169b   : > { %v11236_v55 = vsel %vm11234_vm6, %v11233_v51, %v11235_v53 }
0x169c   : > { %v11237_v56 = vmul.f32 1.4142135, %v11236_v55 }
0x169e   : > { %13700 = vmatmul.mubr.msk.f32.vlgmr.msra.gmra.mrb[52].mxu0 %vm11247_vm7, %v11237_v56 }
0x1771   : > { %v11317_v33 = vpop.f32.mrb[52].mxu0 }
0x1772   : > { %v11318_v63 = vadd.f32 %v11317_v33, %v11246_v44  ;;  %v13701_v18 = vpop.f32.mrb[53].mxu0 }
0x1774   : > { %11322 = vst.msk [vmem:[%s18380_s25] sm:$0xf] %vm11321_vm8, %v11318_v63 }
0x1775 PF: > { %p28_p3 = scmp.ge.s32.totalorder %s16208_s22, 4   ;;  %s18381_s25 = smov %s15859_s26 }
0x1776   : > { %s18382_s26 = smov %s15863_s27  ;;  %s18383_s27 = smov %s16219_s11 }
0x1777   : > { %s18384_s28 = smov %s16208_s22  ;;  %30 = sbr.rel (!%p28_p3) target bundleno = 15 (0xf), region = 204 }
0x177e   :  { %11334 = vsyncpa [#allocation4], 1 }
0x177f   :  { %11336 = vsyncpa [#allocation4 + $0x1], 1 }
0x1780   :  { %11337 = vsyncpa [#allocation6], 1 }
0x1781   :  { %11339 = vsyncpa [#allocation6 + $0x1], 1 }
0x1782   :  { %11340 = vsyncpa [#allocation9], 1 }
0x1783   :  { %11341 = vsyncpa [#allocation12], 1 }
0x1784   :  { %11342 = vsyncpa [#allocation15], 1 }
0x1785   :  { %11343 = vsyncpa [#allocation18], 1 }

</bundles_post_ra>
